<compile_context>
chip_gen: v6e
topology: v6e:2x2x1
jax: 0.10.0
libtpu: 0.0.40
codegen_flags: <defaults>
</compile_context>

<pallas_src>
import jax
import jax.numpy as jnp
from jax.experimental import pallas as pl
from jax.experimental.pallas import tpu as pltpu


# ----------------------------------------------------------------------------
# Pallas kernel: one group of NB images per grid step.
#   xpad_ref : (NB, H+2, W+2, Cin)  zero-padded input images (f32)
#   w1_ref   : (Cin, F)             1x1 conv weight, bn1 folded (bf16)
#   b1_ref   : (1, F)               (f32)
#   w2_ref   : (9*Cin, F)           3x3 conv weight (im2col), bn2 folded (bf16)
#   b2_ref   : (1, F)               (f32)
#   w21_ref  : (9*F, F)             3x3 conv weight (im2col), bn2_1 folded (bf16)
#   b21_ref  : (1, F)               (f32)
#   out_ref  : (NB, H, W, F)
#   x2pad    : VMEM scratch (NB, H+2, W+2, F) — zero-halo staging of x2
# ----------------------------------------------------------------------------
def _trans_block_kernel(xpad_ref, w1_ref, b1_ref, w2_ref, b2_ref,
                        w21_ref, b21_ref, out_ref, x2pad):
    NB, H, W, F_ = out_ref.shape
    Hp, Wp, Cin = xpad_ref.shape[1], xpad_ref.shape[2], xpad_ref.shape[3]
    M = NB * H * W

    # ---- branch 1: 1x1 conv (+ folded bn1) ---------------------------------
    center = xpad_ref[:, 1:1 + H, 1:1 + W, :].reshape(M, Cin)
    x1 = jnp.dot(center.astype(jnp.bfloat16), w1_ref[...],
                 preferred_element_type=jnp.float32) + b1_ref[...]

    # ---- branch 2: 3x3 conv (+ folded bn2) + relu as ONE im2col matmul ------
    taps = [xpad_ref[:, kh:kh + H, kw:kw + W, :].reshape(M, Cin)
            for kh in range(3) for kw in range(3)]
    cols = jnp.concatenate(taps, axis=-1).astype(jnp.bfloat16)       # (M, 9*Cin)
    x2 = jnp.dot(cols, w2_ref[...], preferred_element_type=jnp.float32)
    x2 = jnp.maximum(x2 + b2_ref[...], 0.0)

    # ---- stage x2 with a zero halo in VMEM ----------------------------------
    # Only the 1-wide border needs zeroing; the interior is fully overwritten
    # every step.  Re-zero every step (cheap thin stores) so this is correct
    # even when the "parallel" batch axis is sharded across TensorCores.
    x2pad[:, 0:1, :, :] = jnp.zeros((NB, 1, Wp, F_), jnp.float32)
    x2pad[:, Hp - 1:Hp, :, :] = jnp.zeros((NB, 1, Wp, F_), jnp.float32)
    x2pad[:, :, 0:1, :] = jnp.zeros((NB, Hp, 1, F_), jnp.float32)
    x2pad[:, :, Wp - 1:Wp, :] = jnp.zeros((NB, Hp, 1, F_), jnp.float32)
    x2pad[:, 1:1 + H, 1:1 + W, :] = x2.reshape(NB, H, W, F_)

    # ---- second 3x3 conv (+ folded bn2_1) as ONE im2col matmul --------------
    taps2 = [x2pad[:, kh:kh + H, kw:kw + W, :].reshape(M, F_)
             for kh in range(3) for kw in range(3)]
    cols2 = jnp.concatenate(taps2, axis=-1).astype(jnp.bfloat16)     # (M, 9*F)
    x2_1 = jnp.dot(cols2, w21_ref[...],
                   preferred_element_type=jnp.float32) + b21_ref[...]

    # ---- eltwise = relu(x1 + x2_1) ------------------------------------------
    out = jnp.maximum(x1 + x2_1, 0.0)
    out_ref[...] = out.reshape(NB, H, W, F_).astype(out_ref.dtype)


# ----------------------------------------------------------------------------
# Wrapper: BN folding (glue) + pallas_call
# ----------------------------------------------------------------------------
def _fold_bn(w_hwio, b, gamma, beta, mean, var, eps=1e-5):
    scale = gamma / jnp.sqrt(var + eps)           # (F,)
    return w_hwio * scale, (b - mean) * scale + beta


def trans_block_forward(x_nhwc, p, *, images_per_block=1):
    N, H, W, Cin = x_nhwc.shape
    F_ = p["conv1_w"].shape[-1]
    Hp, Wp = H + 2, W + 2
    nb = images_per_block
    assert N % nb == 0, "images_per_block must divide the batch size"

    # fold inference-mode BN into conv weights / biases (plain-JAX glue)
    w1, b1 = _fold_bn(p["conv1_w"], p["conv1_b"],
                      p["bn1_g"], p["bn1_b"], p["bn1_m"], p["bn1_v"])
    w2, b2 = _fold_bn(p["conv2_w"], p["conv2_b"],
                      p["bn2_g"], p["bn2_b"], p["bn2_m"], p["bn2_v"])
    w21, b21 = _fold_bn(p["conv2_1_w"], p["conv2_1_b"],
                        p["bn2_1_g"], p["bn2_1_b"], p["bn2_1_m"], p["bn2_1_v"])

    # im2col weight layout; bf16 operands (f32 accumulation happens in-kernel)
    w1 = w1.reshape(Cin, F_).astype(jnp.bfloat16)          # (1,1,Cin,F) -> (Cin,F)
    w2 = w2.reshape(9 * Cin, F_).astype(jnp.bfloat16)      # (3,3,Cin,F) -> (9Cin,F)
    w21 = w21.reshape(9 * F_, F_).astype(jnp.bfloat16)     # (3,3,F,F)   -> (9F,F)
    b1 = b1.reshape(1, F_).astype(jnp.float32)
    b2 = b2.reshape(1, F_).astype(jnp.float32)
    b21 = b21.reshape(1, F_).astype(jnp.float32)

    xpad = jnp.pad(x_nhwc, ((0, 0), (1, 1), (1, 1), (0, 0)))

    flops = 2 * N * H * W * F_ * (Cin + 9 * Cin + 9 * F_)
    bytes_accessed = (N * Hp * Wp * Cin * 4 + N * H * W * F_ * 4
                      + 2 * (Cin * F_ + 9 * Cin * F_ + 9 * F_ * F_)
                      + 3 * 4 * F_)

    return pl.pallas_call(
        _trans_block_kernel,
        out_shape=jax.ShapeDtypeStruct((N, H, W, F_), jnp.float32),
        grid_spec=pltpu.PrefetchScalarGridSpec(
            num_scalar_prefetch=0,
            grid=(N // nb,),
            in_specs=[
                pl.BlockSpec((nb, Hp, Wp, Cin), lambda n: (n, 0, 0, 0)),
                pl.BlockSpec((Cin, F_), lambda n: (0, 0)),
                pl.BlockSpec((1, F_), lambda n: (0, 0)),
                pl.BlockSpec((9 * Cin, F_), lambda n: (0, 0)),
                pl.BlockSpec((1, F_), lambda n: (0, 0)),
                pl.BlockSpec((9 * F_, F_), lambda n: (0, 0)),
                pl.BlockSpec((1, F_), lambda n: (0, 0)),
            ],
            out_specs=pl.BlockSpec((nb, H, W, F_), lambda n: (n, 0, 0, 0)),
            scratch_shapes=[pltpu.VMEM((nb, Hp, Wp, F_), jnp.float32)],
        ),
        compiler_params=pltpu.CompilerParams(
            dimension_semantics=("parallel",)),
        cost_estimate=pl.CostEstimate(flops=flops, transcendentals=0,
                                      bytes_accessed=bytes_accessed),
    )(xpad, w1, b1, w2, b2, w21, b21)


# ----------------------------------------------------------------------------
# Pure-JAX reference (unfolded, f32), for correctness check
# ----------------------------------------------------------------------------
def _bn_eval(x, gamma, beta, mean, var, eps=1e-5):
    return (x - mean) * (gamma / jnp.sqrt(var + eps)) + beta


def ref_forward(x, p):
    dn = ("NHWC", "HWIO", "NHWC")

    def conv(lhs, w, pad):
        return jax.lax.conv_general_dilated(lhs, w, (1, 1), pad,
                                            dimension_numbers=dn)

    x1 = _bn_eval(conv(x, p["conv1_w"], "VALID") + p["conv1_b"],
                  p["bn1_g"], p["bn1_b"], p["bn1_m"], p["bn1_v"])
    x2 = jax.nn.relu(_bn_eval(conv(x, p["conv2_w"], ((1, 1), (1, 1))) + p["conv2_b"],
                              p["bn2_g"], p["bn2_b"], p["bn2_m"], p["bn2_v"]))
    x2_1 = _bn_eval(conv(x2, p["conv2_1_w"], ((1, 1), (1, 1))) + p["conv2_1_b"],
                    p["bn2_1_g"], p["bn2_1_b"], p["bn2_1_m"], p["bn2_1_v"])
    return jax.nn.relu(x1 + x2_1)


# ----------------------------------------------------------------------------
# Deterministic parameter init (synthetic; no checkpoint)
# ----------------------------------------------------------------------------
def init_params(key, cin, f):
    ks = jax.random.split(key, 20)
    u = lambda k, s: jax.random.uniform(k, s, jnp.float32, 0.5, 1.5)
    n = lambda k, s: 0.1 * jax.random.normal(k, s, jnp.float32)
    return {
        "conv1_w": n(ks[0], (1, 1, cin, f)), "conv1_b": n(ks[1], (f,)),
        "bn1_g": u(ks[2], (f,)), "bn1_b": n(ks[3], (f,)),
        "bn1_m": n(ks[4], (f,)), "bn1_v": u(ks[5], (f,)),
        "conv2_w": n(ks[6], (3, 3, cin, f)), "conv2_b": n(ks[7], (f,)),
        "bn2_g": u(ks[8], (f,)), "bn2_b": n(ks[9], (f,)),
        "bn2_m": n(ks[10], (f,)), "bn2_v": u(ks[11], (f,)),
        "conv2_1_w": n(ks[12], (3, 3, f, f)), "conv2_1_b": n(ks[13], (f,)),
        "bn2_1_g": u(ks[14], (f,)), "bn2_1_b": n(ks[15], (f,)),
        "bn2_1_m": n(ks[16], (f,)), "bn2_1_v": u(ks[17], (f,)),
    }


if __name__ == "__main__":
    N, Cin, H, W, F_ = 2, 4, 16, 16, 8
    key = jax.random.PRNGKey(0)
    kx, kp = jax.random.split(key)

    x_nchw = jax.random.normal(kx, (N, Cin, H, W), jnp.float32)   # PyTorch NCHW
    x = jnp.transpose(x_nchw, (0, 2, 3, 1))                       # -> NHWC for kernel
    params = init_params(kp, Cin, F_)

    out = trans_block_forward(x, params, images_per_block=2)
    out = jax.block_until_ready(out)

    ref = ref_forward(x, params)
    assert out.shape == (N, H, W, F_)
    err = float(jnp.max(jnp.abs(out - ref)))
    # bf16 matmul operands with f32 accumulation -> loosened tolerance
    assert jnp.allclose(out, ref, atol=1.5e-1, rtol=1e-1), f"max abs err={err}"

    print("KERNEL_OK")
</pallas_src>

<mosaic_0001>
module attributes {stable_mosaic.version = 11 : i64} {
  func.func @_trans_block_kernel(%arg0: i32, %arg1: memref<2x18x18x4xf32, #tpu.memory_space<vmem>>, %arg2: memref<4x8xbf16, #tpu.memory_space<vmem>>, %arg3: memref<1x8xf32, #tpu.memory_space<vmem>>, %arg4: memref<36x8xbf16, #tpu.memory_space<vmem>>, %arg5: memref<1x8xf32, #tpu.memory_space<vmem>>, %arg6: memref<72x8xbf16, #tpu.memory_space<vmem>>, %arg7: memref<1x8xf32, #tpu.memory_space<vmem>>, %arg8: memref<2x16x16x8xf32, #tpu.memory_space<vmem>>, %arg9: memref<2x18x18x8xf32, #tpu.memory_space<vmem>>) attributes {dimension_semantics = [#tpu.dimension_semantics<parallel>], iteration_bounds = array<i64: 1>, scalar_prefetch = 0 : i64, scratch_operands = 1 : i64, tpu.core_type = #tpu.core_type<tc>, window_params = [{transform_indices = @transform_0, window_bounds = array<i64: 2, 18, 18, 4>}, {pipeline_mode = #tpu.pipeline_mode<synchronous>, transform_indices = @transform_1, window_bounds = array<i64: 4, 8>}, {pipeline_mode = #tpu.pipeline_mode<synchronous>, transform_indices = @transform_2, window_bounds = array<i64: 1, 8>}, {pipeline_mode = #tpu.pipeline_mode<synchronous>, transform_indices = @transform_3, window_bounds = array<i64: 36, 8>}, {pipeline_mode = #tpu.pipeline_mode<synchronous>, transform_indices = @transform_4, window_bounds = array<i64: 1, 8>}, {pipeline_mode = #tpu.pipeline_mode<synchronous>, transform_indices = @transform_5, window_bounds = array<i64: 72, 8>}, {pipeline_mode = #tpu.pipeline_mode<synchronous>, transform_indices = @transform_6, window_bounds = array<i64: 1, 8>}, {transform_indices = @transform_7, window_bounds = array<i64: 2, 16, 16, 8>}]} {
    %c0 = arith.constant 0 : index
    %c1 = arith.constant 1 : index
    %c1_0 = arith.constant 1 : index
    %c0_1 = arith.constant 0 : index
    %0 = vector.load %arg1[%c0, %c1, %c1_0, %c0_1] : memref<2x18x18x4xf32, #tpu.memory_space<vmem>>, vector<2x16x16x4xf32>
    %1 = vector.shape_cast %0 : vector<2x16x16x4xf32> to vector<512x4xf32>
    %2 = arith.truncf %1 : vector<512x4xf32> to vector<512x4xbf16>
    %c0_2 = arith.constant 0 : index
    %c0_3 = arith.constant 0 : index
    %3 = vector.load %arg2[%c0_2, %c0_3] : memref<4x8xbf16, #tpu.memory_space<vmem>>, vector<4x8xbf16>
    %cst = arith.constant dense<0.000000e+00> : vector<512x8xf32>
    %4 = tpu.matmul %2, %3, %cst {dimension_numbers = #tpu.dot_dimension_numbers<[1], [0], [0], [1], [0, 0, 1, 1], [], []>} : vector<512x4xbf16>, vector<4x8xbf16>, vector<512x8xf32> -> vector<512x8xf32>
    %c0_4 = arith.constant 0 : index
    %c0_5 = arith.constant 0 : index
    %5 = vector.load %arg3[%c0_4, %c0_5] : memref<1x8xf32, #tpu.memory_space<vmem>>, vector<1x8xf32>
    %6 = vector.broadcast %5 : vector<1x8xf32> to vector<512x8xf32>
    %7 = arith.addf %4, %6 : vector<512x8xf32>
    %c0_6 = arith.constant 0 : index
    %c0_7 = arith.constant 0 : index
    %c0_8 = arith.constant 0 : index
    %c0_9 = arith.constant 0 : index
    %8 = vector.load %arg1[%c0_6, %c0_7, %c0_8, %c0_9] : memref<2x18x18x4xf32, #tpu.memory_space<vmem>>, vector<2x16x16x4xf32>
    %9 = vector.shape_cast %8 : vector<2x16x16x4xf32> to vector<512x4xf32>
    %c0_10 = arith.constant 0 : index
    %c0_11 = arith.constant 0 : index
    %c1_12 = arith.constant 1 : index
    %c0_13 = arith.constant 0 : index
    %10 = vector.load %arg1[%c0_10, %c0_11, %c1_12, %c0_13] : memref<2x18x18x4xf32, #tpu.memory_space<vmem>>, vector<2x16x16x4xf32>
    %11 = vector.shape_cast %10 : vector<2x16x16x4xf32> to vector<512x4xf32>
    %c0_14 = arith.constant 0 : index
    %c0_15 = arith.constant 0 : index
    %c2 = arith.constant 2 : index
    %c0_16 = arith.constant 0 : index
    %12 = vector.load %arg1[%c0_14, %c0_15, %c2, %c0_16] : memref<2x18x18x4xf32, #tpu.memory_space<vmem>>, vector<2x16x16x4xf32>
    %13 = vector.shape_cast %12 : vector<2x16x16x4xf32> to vector<512x4xf32>
    %c0_17 = arith.constant 0 : index
    %c1_18 = arith.constant 1 : index
    %c0_19 = arith.constant 0 : index
    %c0_20 = arith.constant 0 : index
    %14 = vector.load %arg1[%c0_17, %c1_18, %c0_19, %c0_20] : memref<2x18x18x4xf32, #tpu.memory_space<vmem>>, vector<2x16x16x4xf32>
    %15 = vector.shape_cast %14 : vector<2x16x16x4xf32> to vector<512x4xf32>
    %c0_21 = arith.constant 0 : index
    %c1_22 = arith.constant 1 : index
    %c1_23 = arith.constant 1 : index
    %c0_24 = arith.constant 0 : index
    %16 = vector.load %arg1[%c0_21, %c1_22, %c1_23, %c0_24] : memref<2x18x18x4xf32, #tpu.memory_space<vmem>>, vector<2x16x16x4xf32>
    %17 = vector.shape_cast %16 : vector<2x16x16x4xf32> to vector<512x4xf32>
    %c0_25 = arith.constant 0 : index
    %c1_26 = arith.constant 1 : index
    %c2_27 = arith.constant 2 : index
    %c0_28 = arith.constant 0 : index
    %18 = vector.load %arg1[%c0_25, %c1_26, %c2_27, %c0_28] : memref<2x18x18x4xf32, #tpu.memory_space<vmem>>, vector<2x16x16x4xf32>
    %19 = vector.shape_cast %18 : vector<2x16x16x4xf32> to vector<512x4xf32>
    %c0_29 = arith.constant 0 : index
    %c2_30 = arith.constant 2 : index
    %c0_31 = arith.constant 0 : index
    %c0_32 = arith.constant 0 : index
    %20 = vector.load %arg1[%c0_29, %c2_30, %c0_31, %c0_32] : memref<2x18x18x4xf32, #tpu.memory_space<vmem>>, vector<2x16x16x4xf32>
    %21 = vector.shape_cast %20 : vector<2x16x16x4xf32> to vector<512x4xf32>
    %c0_33 = arith.constant 0 : index
    %c2_34 = arith.constant 2 : index
    %c1_35 = arith.constant 1 : index
    %c0_36 = arith.constant 0 : index
    %22 = vector.load %arg1[%c0_33, %c2_34, %c1_35, %c0_36] : memref<2x18x18x4xf32, #tpu.memory_space<vmem>>, vector<2x16x16x4xf32>
    %23 = vector.shape_cast %22 : vector<2x16x16x4xf32> to vector<512x4xf32>
    %c0_37 = arith.constant 0 : index
    %c2_38 = arith.constant 2 : index
    %c2_39 = arith.constant 2 : index
    %c0_40 = arith.constant 0 : index
    %24 = vector.load %arg1[%c0_37, %c2_38, %c2_39, %c0_40] : memref<2x18x18x4xf32, #tpu.memory_space<vmem>>, vector<2x16x16x4xf32>
    %25 = vector.shape_cast %24 : vector<2x16x16x4xf32> to vector<512x4xf32>
    %26 = tpu.concatenate %9, %11, %13, %15, %17, %19, %21, %23, %25 in 1 : vector<512x4xf32>, vector<512x4xf32>, vector<512x4xf32>, vector<512x4xf32>, vector<512x4xf32>, vector<512x4xf32>, vector<512x4xf32>, vector<512x4xf32>, vector<512x4xf32> -> vector<512x36xf32>
    %27 = arith.truncf %26 : vector<512x36xf32> to vector<512x36xbf16>
    %c0_41 = arith.constant 0 : index
    %c0_42 = arith.constant 0 : index
    %28 = vector.load %arg4[%c0_41, %c0_42] : memref<36x8xbf16, #tpu.memory_space<vmem>>, vector<36x8xbf16>
    %cst_43 = arith.constant dense<0.000000e+00> : vector<512x8xf32>
    %29 = tpu.matmul %27, %28, %cst_43 {dimension_numbers = #tpu.dot_dimension_numbers<[1], [0], [0], [1], [0, 0, 1, 1], [], []>} : vector<512x36xbf16>, vector<36x8xbf16>, vector<512x8xf32> -> vector<512x8xf32>
    %c0_44 = arith.constant 0 : index
    %c0_45 = arith.constant 0 : index
    %30 = vector.load %arg5[%c0_44, %c0_45] : memref<1x8xf32, #tpu.memory_space<vmem>>, vector<1x8xf32>
    %31 = vector.broadcast %30 : vector<1x8xf32> to vector<512x8xf32>
    %32 = arith.addf %29, %31 : vector<512x8xf32>
    %cst_46 = arith.constant 0.000000e+00 : f32
    %33 = vector.broadcast %cst_46 : f32 to vector<512x8xf32>
    %34 = arith.maximumf %32, %33 : vector<512x8xf32>
    %cst_47 = arith.constant 0.000000e+00 : f32
    %35 = vector.broadcast %cst_47 : f32 to vector<2x1x18x8xf32>
    %c0_48 = arith.constant 0 : index
    %c0_49 = arith.constant 0 : index
    %c0_50 = arith.constant 0 : index
    %c0_51 = arith.constant 0 : index
    %36 = vector.load %arg9[%c0_48, %c0_49, %c0_50, %c0_51] : memref<2x18x18x8xf32, #tpu.memory_space<vmem>>, vector<2x1x18x8xf32>
    tpu.vector_store %arg9[%c0_48, %c0_49, %c0_50, %c0_51], %35 {strides = array<i32>} : memref<2x18x18x8xf32, #tpu.memory_space<vmem>>, vector<2x1x18x8xf32>,
    %cst_52 = arith.constant 0.000000e+00 : f32
    %37 = vector.broadcast %cst_52 : f32 to vector<2x1x18x8xf32>
    %c0_53 = arith.constant 0 : index
    %c17 = arith.constant 17 : index
    %c0_54 = arith.constant 0 : index
    %c0_55 = arith.constant 0 : index
    %38 = vector.load %arg9[%c0_53, %c17, %c0_54, %c0_55] : memref<2x18x18x8xf32, #tpu.memory_space<vmem>>, vector<2x1x18x8xf32>
    tpu.vector_store %arg9[%c0_53, %c17, %c0_54, %c0_55], %37 {strides = array<i32>} : memref<2x18x18x8xf32, #tpu.memory_space<vmem>>, vector<2x1x18x8xf32>,
    %cst_56 = arith.constant 0.000000e+00 : f32
    %39 = vector.broadcast %cst_56 : f32 to vector<2x18x1x8xf32>
    %c0_57 = arith.constant 0 : index
    %c0_58 = arith.constant 0 : index
    %c0_59 = arith.constant 0 : index
    %c0_60 = arith.constant 0 : index
    %40 = vector.load %arg9[%c0_57, %c0_58, %c0_59, %c0_60] : memref<2x18x18x8xf32, #tpu.memory_space<vmem>>, vector<2x18x1x8xf32>
    tpu.vector_store %arg9[%c0_57, %c0_58, %c0_59, %c0_60], %39 {strides = array<i32>} : memref<2x18x18x8xf32, #tpu.memory_space<vmem>>, vector<2x18x1x8xf32>,
    %cst_61 = arith.constant 0.000000e+00 : f32
    %41 = vector.broadcast %cst_61 : f32 to vector<2x18x1x8xf32>
    %c0_62 = arith.constant 0 : index
    %c0_63 = arith.constant 0 : index
    %c17_64 = arith.constant 17 : index
    %c0_65 = arith.constant 0 : index
    %42 = vector.load %arg9[%c0_62, %c0_63, %c17_64, %c0_65] : memref<2x18x18x8xf32, #tpu.memory_space<vmem>>, vector<2x18x1x8xf32>
    tpu.vector_store %arg9[%c0_62, %c0_63, %c17_64, %c0_65], %41 {strides = array<i32>} : memref<2x18x18x8xf32, #tpu.memory_space<vmem>>, vector<2x18x1x8xf32>,
    %43 = vector.shape_cast %34 : vector<512x8xf32> to vector<2x16x16x8xf32>
    %c0_66 = arith.constant 0 : index
    %c1_67 = arith.constant 1 : index
    %c1_68 = arith.constant 1 : index
    %c0_69 = arith.constant 0 : index
    %44 = vector.load %arg9[%c0_66, %c1_67, %c1_68, %c0_69] : memref<2x18x18x8xf32, #tpu.memory_space<vmem>>, vector<2x16x16x8xf32>
    tpu.vector_store %arg9[%c0_66, %c1_67, %c1_68, %c0_69], %43 {strides = array<i32>} : memref<2x18x18x8xf32, #tpu.memory_space<vmem>>, vector<2x16x16x8xf32>,
    %c0_70 = arith.constant 0 : index
    %c0_71 = arith.constant 0 : index
    %c0_72 = arith.constant 0 : index
    %c0_73 = arith.constant 0 : index
    %45 = vector.load %arg9[%c0_70, %c0_71, %c0_72, %c0_73] : memref<2x18x18x8xf32, #tpu.memory_space<vmem>>, vector<2x16x16x8xf32>
    %46 = vector.shape_cast %45 : vector<2x16x16x8xf32> to vector<512x8xf32>
    %c0_74 = arith.constant 0 : index
    %c0_75 = arith.constant 0 : index
    %c1_76 = arith.constant 1 : index
    %c0_77 = arith.constant 0 : index
    %47 = vector.load %arg9[%c0_74, %c0_75, %c1_76, %c0_77] : memref<2x18x18x8xf32, #tpu.memory_space<vmem>>, vector<2x16x16x8xf32>
    %48 = vector.shape_cast %47 : vector<2x16x16x8xf32> to vector<512x8xf32>
    %c0_78 = arith.constant 0 : index
    %c0_79 = arith.constant 0 : index
    %c2_80 = arith.constant 2 : index
    %c0_81 = arith.constant 0 : index
    %49 = vector.load %arg9[%c0_78, %c0_79, %c2_80, %c0_81] : memref<2x18x18x8xf32, #tpu.memory_space<vmem>>, vector<2x16x16x8xf32>
    %50 = vector.shape_cast %49 : vector<2x16x16x8xf32> to vector<512x8xf32>
    %c0_82 = arith.constant 0 : index
    %c1_83 = arith.constant 1 : index
    %c0_84 = arith.constant 0 : index
    %c0_85 = arith.constant 0 : index
    %51 = vector.load %arg9[%c0_82, %c1_83, %c0_84, %c0_85] : memref<2x18x18x8xf32, #tpu.memory_space<vmem>>, vector<2x16x16x8xf32>
    %52 = vector.shape_cast %51 : vector<2x16x16x8xf32> to vector<512x8xf32>
    %c0_86 = arith.constant 0 : index
    %c1_87 = arith.constant 1 : index
    %c1_88 = arith.constant 1 : index
    %c0_89 = arith.constant 0 : index
    %53 = vector.load %arg9[%c0_86, %c1_87, %c1_88, %c0_89] : memref<2x18x18x8xf32, #tpu.memory_space<vmem>>, vector<2x16x16x8xf32>
    %54 = vector.shape_cast %53 : vector<2x16x16x8xf32> to vector<512x8xf32>
    %c0_90 = arith.constant 0 : index
    %c1_91 = arith.constant 1 : index
    %c2_92 = arith.constant 2 : index
    %c0_93 = arith.constant 0 : index
    %55 = vector.load %arg9[%c0_90, %c1_91, %c2_92, %c0_93] : memref<2x18x18x8xf32, #tpu.memory_space<vmem>>, vector<2x16x16x8xf32>
    %56 = vector.shape_cast %55 : vector<2x16x16x8xf32> to vector<512x8xf32>
    %c0_94 = arith.constant 0 : index
    %c2_95 = arith.constant 2 : index
    %c0_96 = arith.constant 0 : index
    %c0_97 = arith.constant 0 : index
    %57 = vector.load %arg9[%c0_94, %c2_95, %c0_96, %c0_97] : memref<2x18x18x8xf32, #tpu.memory_space<vmem>>, vector<2x16x16x8xf32>
    %58 = vector.shape_cast %57 : vector<2x16x16x8xf32> to vector<512x8xf32>
    %c0_98 = arith.constant 0 : index
    %c2_99 = arith.constant 2 : index
    %c1_100 = arith.constant 1 : index
    %c0_101 = arith.constant 0 : index
    %59 = vector.load %arg9[%c0_98, %c2_99, %c1_100, %c0_101] : memref<2x18x18x8xf32, #tpu.memory_space<vmem>>, vector<2x16x16x8xf32>
    %60 = vector.shape_cast %59 : vector<2x16x16x8xf32> to vector<512x8xf32>
    %c0_102 = arith.constant 0 : index
    %c2_103 = arith.constant 2 : index
    %c2_104 = arith.constant 2 : index
    %c0_105 = arith.constant 0 : index
    %61 = vector.load %arg9[%c0_102, %c2_103, %c2_104, %c0_105] : memref<2x18x18x8xf32, #tpu.memory_space<vmem>>, vector<2x16x16x8xf32>
    %62 = vector.shape_cast %61 : vector<2x16x16x8xf32> to vector<512x8xf32>
    %63 = tpu.concatenate %46, %48, %50, %52, %54, %56, %58, %60, %62 in 1 : vector<512x8xf32>, vector<512x8xf32>, vector<512x8xf32>, vector<512x8xf32>, vector<512x8xf32>, vector<512x8xf32>, vector<512x8xf32>, vector<512x8xf32>, vector<512x8xf32> -> vector<512x72xf32>
    %64 = arith.truncf %63 : vector<512x72xf32> to vector<512x72xbf16>
    %c0_106 = arith.constant 0 : index
    %c0_107 = arith.constant 0 : index
    %65 = vector.load %arg6[%c0_106, %c0_107] : memref<72x8xbf16, #tpu.memory_space<vmem>>, vector<72x8xbf16>
    %cst_108 = arith.constant dense<0.000000e+00> : vector<512x8xf32>
    %66 = tpu.matmul %64, %65, %cst_108 {dimension_numbers = #tpu.dot_dimension_numbers<[1], [0], [0], [1], [0, 0, 1, 1], [], []>} : vector<512x72xbf16>, vector<72x8xbf16>, vector<512x8xf32> -> vector<512x8xf32>
    %c0_109 = arith.constant 0 : index
    %c0_110 = arith.constant 0 : index
    %67 = vector.load %arg7[%c0_109, %c0_110] : memref<1x8xf32, #tpu.memory_space<vmem>>, vector<1x8xf32>
    %68 = vector.broadcast %67 : vector<1x8xf32> to vector<512x8xf32>
    %69 = arith.addf %66, %68 : vector<512x8xf32>
    %70 = arith.addf %7, %69 : vector<512x8xf32>
    %cst_111 = arith.constant 0.000000e+00 : f32
    %71 = vector.broadcast %cst_111 : f32 to vector<512x8xf32>
    %72 = arith.maximumf %70, %71 : vector<512x8xf32>
    %73 = vector.shape_cast %72 : vector<512x8xf32> to vector<2x16x16x8xf32>
    %c0_112 = arith.constant 0 : index
    %c0_113 = arith.constant 0 : index
    %c0_114 = arith.constant 0 : index
    %c0_115 = arith.constant 0 : index
    %74 = vector.load %arg8[%c0_112, %c0_113, %c0_114, %c0_115] : memref<2x16x16x8xf32, #tpu.memory_space<vmem>>, vector<2x16x16x8xf32>
    tpu.vector_store %arg8[%c0_112, %c0_113, %c0_114, %c0_115], %73 {strides = array<i32>} : memref<2x16x16x8xf32, #tpu.memory_space<vmem>>, vector<2x16x16x8xf32>,
    return
  }
  func.func @transform_0(%arg0: i32) -> (i32, i32, i32, i32) {
    %c0_i32 = arith.constant 0 : i32
    %c0_i32_0 = arith.constant 0 : i32
    %c0_i32_1 = arith.constant 0 : i32
    %c0_i32_2 = arith.constant 0 : i32
    return %arg0, %c0_i32, %c0_i32_0, %c0_i32_1 : i32, i32, i32, i32
  }
  func.func @transform_1(%arg0: i32) -> (i32, i32) {
    %c0_i32 = arith.constant 0 : i32
    %c0_i32_0 = arith.constant 0 : i32
    %c0_i32_1 = arith.constant 0 : i32
    return %c0_i32, %c0_i32_0 : i32, i32
  }
  func.func @transform_2(%arg0: i32) -> (i32, i32) {
    %c0_i32 = arith.constant 0 : i32
    %c0_i32_0 = arith.constant 0 : i32
    %c0_i32_1 = arith.constant 0 : i32
    return %c0_i32, %c0_i32_0 : i32, i32
  }
  func.func @transform_3(%arg0: i32) -> (i32, i32) {
    %c0_i32 = arith.constant 0 : i32
    %c0_i32_0 = arith.constant 0 : i32
    %c0_i32_1 = arith.constant 0 : i32
    return %c0_i32, %c0_i32_0 : i32, i32
  }
  func.func @transform_4(%arg0: i32) -> (i32, i32) {
    %c0_i32 = arith.constant 0 : i32
    %c0_i32_0 = arith.constant 0 : i32
    %c0_i32_1 = arith.constant 0 : i32
    return %c0_i32, %c0_i32_0 : i32, i32
  }
  func.func @transform_5(%arg0: i32) -> (i32, i32) {
    %c0_i32 = arith.constant 0 : i32
    %c0_i32_0 = arith.constant 0 : i32
    %c0_i32_1 = arith.constant 0 : i32
    return %c0_i32, %c0_i32_0 : i32, i32
  }
  func.func @transform_6(%arg0: i32) -> (i32, i32) {
    %c0_i32 = arith.constant 0 : i32
    %c0_i32_0 = arith.constant 0 : i32
    %c0_i32_1 = arith.constant 0 : i32
    return %c0_i32, %c0_i32_0 : i32, i32
  }
  func.func @transform_7(%arg0: i32) -> (i32, i32, i32, i32) {
    %c0_i32 = arith.constant 0 : i32
    %c0_i32_0 = arith.constant 0 : i32
    %c0_i32_1 = arith.constant 0 : i32
    %c0_i32_2 = arith.constant 0 : i32
    return %arg0, %c0_i32, %c0_i32_0, %c0_i32_1 : i32, i32, i32, i32
  }
}

</mosaic_0001>

<bundles_post_ra>
// kernel: tpu_custom_call.1
= control target key start
LH: loop header
LB: loop body
LE: loop exit
PB: predicated region body
PF: predicated region fallthrough
CT: control target
= control target key end

     0   :  { %s11637_s17 = smov 4   ;;  %s11638_s13 = smov 8   ;;  %vm132_vm0 = vcmask 31744   ;;  %vm3147_vm1 = vcmask 64512   ;;  %vm229_vm2 = vcmask 1041408   ;;  %vm3212_vm3 = vcmask 97280   ;;  %s20314_s0 = inlined_call_operand.vmem [shape: f32[2,18,18,4], index: 0, kind: input, shape index: {}]   ;;  %s20315_s1 = inlined_call_operand.vmem [shape: bf16[4,8], index: 1, kind: input, shape index: {}]   ;;  %s20316_s3 = inlined_call_operand.vmem [shape: bf16[36,8], index: 3, kind: input, shape index: {}]   ;;  %s20317_s4 = inlined_call_operand.vmem [shape: f32[1,8], index: 4, kind: input, shape index: {}]   ;;  %s20318_s5 = inlined_call_operand.vmem [shape: bf16[72,8], index: 5, kind: input, shape index: {}]   ;;  %s20319_s2 = inlined_call_operand.vmem [shape: f32[1,8], index: 2, kind: input, shape index: {}]   ;;  %s20320_s6 = inlined_call_operand.vmem [shape: f32[1,8], index: 6, kind: input, shape index: {}]   ;;  %s20321_s7 = inlined_call_operand.vmem [shape: f32[2,16,16,8], index: 7, kind: output, shape index: {}]  }
   0x1   :  { %v590_v0 = vld [vmem:[%s20314_s0 + $0x31] sm:$0xff]  ;;  %v591_v1 = vld [vmem:[%s20314_s0 + $0x39] sm:$0xff]  ;;  %v586_v2 = vld [vmem:[%s20314_s0 + $0x1] sm:$0xff]  ;;  %s11641_s14 = smov 20   ;;  %s11643_s12 = smov 28   ;;  %vm3277_vm4 = vcmask 130048  }
   0x2   :  { %v8903_v3 = vpack.i.bf16 %v591_v1, %v590_v0  ;;  %v587_v4 = vld [vmem:[%s20314_s0 + $0x9] sm:$0xff]  ;;  %v593_v6 = vld [vmem:[%s20314_s0 + $0x51] sm:$0xff]  ;;  %v588_v8 = vld [vmem:[%s20314_s0 + $0x19] sm:$0xff]  ;;  %vm3342_vm5 = vcmask 162816   ;;  %s11644_s18 = smov 32   ;;  %vm3407_vm6 = vcmask 195584  }
   0x3   :  { %v592_v5 = vld [vmem:[%s20314_s0 + $0x49] sm:$0xff]  ;;  %v8893_v7 = vpack.i.bf16 %v587_v4, %v586_v2  ;;  %v589_v9 = vld [vmem:[%s20314_s0 + $0x21] sm:$0xff]  ;;  %v596_v12 = vld [vmem:[%s20314_s0 + $0x79] sm:$0xff]  ;;  %vm3472_vm7 = vcmask 228352   ;;  %vm3537_vm8 = vcmask 261120   ;;  %vm3661_vm9 = vcmask 293888  }
   0x4   :  { %8904 = vrot.lane.b32.xlu1 %v8903_v3, %s11637_s17  ;;  %v8908_v10 = vpack.i.bf16 %v593_v6, %v592_v5  ;;  %v8898_v11 = vpack.i.bf16 %v589_v9, %v588_v8  ;;  %v597_v13 = vld [vmem:[%s20314_s0 + $0x81] sm:$0xff]  ;;  %v595_v15 = vld [vmem:[%s20314_s0 + $0x69] sm:$0xff]  ;;  %v601_v19 = vld [vmem:[%s20314_s0 + $0xb1] sm:$0xff]  ;;  %vm4116_vm10 = vcmask 58368   ;;  %vm4128_vm11 = vcmask 57344   ;;  %s11648_s22 = smov 56  }
   0x5   :  { %8894 = vrot.lane.b32.xlu0 %v8893_v7, %s11637_s17  ;;  %v594_v14 = vld [vmem:[%s20314_s0 + $0x61] sm:$0xff]  ;;  %v8918_v16 = vpack.i.bf16 %v597_v13, %v596_v12  ;;  %v600_v18 = vld [vmem:[%s20314_s0 + $0xa9] sm:$0xff]  ;;  %v598_v20 = vld [vmem:[%s20314_s0 + $0x91] sm:$0xff]  ;;  %vm7579_vm12 = vcmask 1043456   ;;  %vm7147_vm13 = vcmask 326656   ;;  %vm7212_vm14 = vcmask 392192  }
   0x6   :  { %v8913_v17 = vpack.i.bf16 %v595_v15, %v594_v14  ;;  %v599_v21 = vld [vmem:[%s20314_s0 + $0x99] sm:$0xff]  ;;  %v8928_v22 = vpack.i.bf16 %v601_v19, %v600_v18  ;;  %v605_v25 = vld [vmem:[%s20314_s0 + $0xe1] sm:$0xff]  ;;  %v603_v27 = vld [vmem:[%s20314_s0 + $0xc9] sm:$0xff]  ;;  %vm7277_vm15 = vcmask 457728  }
   0x7   :  { %v8923_v23 = vpack.i.bf16 %v599_v21, %v598_v20  ;;  %v604_v24 = vld [vmem:[%s20314_s0 + $0xd9] sm:$0xff]  ;;  %v602_v26 = vld [vmem:[%s20314_s0 + $0xc1] sm:$0xff]  ;;  %v608_v30 = vld [vmem:[%s20314_s0 + $0x109] sm:$0xff] }
   0x8   :  { %8909 = vrot.lane.b32.xlu1 %v8908_v10, %s11637_s17  ;;  %v8938_v28 = vpack.i.bf16 %v605_v25, %v604_v24  ;;  %v8933_v29 = vpack.i.bf16 %v603_v27, %v602_v26  ;;  %v609_v31 = vld [vmem:[%s20314_s0 + $0x111] sm:$0xff]  ;;  %v607_v33 = vld [vmem:[%s20314_s0 + $0xf9] sm:$0xff]  ;;  %v613_v37 = vld [vmem:[%s20314_s0 + $0x141] sm:$0xff] }
   0x9   :  { %8899 = vrot.lane.b32.xlu0 %v8898_v11, %s11637_s17  ;;  %v606_v32 = vld [vmem:[%s20314_s0 + $0xf1] sm:$0xff]  ;;  %v8948_v34 = vpack.i.bf16 %v609_v31, %v608_v30  ;;  %v612_v36 = vld [vmem:[%s20314_s0 + $0x139] sm:$0xff]  ;;  %v610_v38 = vld [vmem:[%s20314_s0 + $0x121] sm:$0xff] }
   0xa   :  { %v8943_v35 = vpack.i.bf16 %v607_v33, %v606_v32  ;;  %v611_v39 = vld [vmem:[%s20314_s0 + $0x129] sm:$0xff]  ;;  %v8958_v40 = vpack.i.bf16 %v613_v37, %v612_v36  ;;  %v617_v43 = vld [vmem:[%s20314_s0 + $0x171] sm:$0xff]  ;;  %v615_v45 = vld [vmem:[%s20314_s0 + $0x159] sm:$0xff] }
   0xb   :  { %v8953_v41 = vpack.i.bf16 %v611_v39, %v610_v38  ;;  %v616_v42 = vld [vmem:[%s20314_s0 + $0x169] sm:$0xff]  ;;  %v614_v44 = vld [vmem:[%s20314_s0 + $0x151] sm:$0xff]  ;;  %v619_v51 = vld [vmem:[%s20314_s0 + $0x1b9] sm:$0xff] }
   0xc   :  { %8919 = vrot.lane.b32.xlu1 %v8918_v16, %s11637_s17  ;;  %v8968_v46 = vpack.i.bf16 %v617_v43, %v616_v42  ;;  %v8963_v47 = vpack.i.bf16 %v615_v45, %v614_v44  ;;  %v620_v48 = vld [vmem:[%s20314_s0 + $0x1c9] sm:$0xff]  ;;  %v621_v49 = vld [vmem:[%s20314_s0 + $0x1d1] sm:$0xff]  ;;  %v624_v54 = vld [vmem:[%s20314_s0 + $0x1f9] sm:$0xff] }
   0xd   :  { %8914 = vrot.lane.b32.xlu0 %v8913_v17, %s11637_s17  ;;  %v618_v50 = vld [vmem:[%s20314_s0 + $0x1b1] sm:$0xff]  ;;  %v8978_v52 = vpack.i.bf16 %v621_v49, %v620_v48  ;;  %v625_v55 = vld [vmem:[%s20314_s0 + $0x201] sm:$0xff]  ;;  %v623_v57 = vld [vmem:[%s20314_s0 + $0x1e9] sm:$0xff] }
   0xe   :  { %v8973_v53 = vpack.i.bf16 %v619_v51, %v618_v50  ;;  %v622_v56 = vld [vmem:[%s20314_s0 + $0x1e1] sm:$0xff]  ;;  %v8988_v58 = vpack.i.bf16 %v625_v55, %v624_v54  ;;  %v628_v60 = vld [vmem:[%s20314_s0 + $0x229] sm:$0xff]  ;;  %v629_v61 = vld [vmem:[%s20314_s0 + $0x231] sm:$0xff] }
   0xf   :  { %v8983_v59 = vpack.i.bf16 %v623_v57, %v622_v56  ;;  %v626_v62 = vld [vmem:[%s20314_s0 + $0x211] sm:$0xff]  ;;  %v627_v63 = vld [vmem:[%s20314_s0 + $0x219] sm:$0xff]  ;;  %v8998_v0 = vpack.i.bf16 %v629_v61, %v628_v60  ;;  %v633_v3 = vld [vmem:[%s20314_s0 + $0x261] sm:$0xff] }
  0x10   :  { %8929 = vrot.lane.b32.xlu1 %v8928_v22, %s11637_s17  ;;  %v8993_v1 = vpack.i.bf16 %v627_v63, %v626_v62  ;;  %v632_v2 = vld [vmem:[%s20314_s0 + $0x259] sm:$0xff]  ;;  %v630_v4 = vld [vmem:[%s20314_s0 + $0x241] sm:$0xff]  ;;  %v631_v5 = vld [vmem:[%s20314_s0 + $0x249] sm:$0xff] }
  0x11   :  { %8924 = vrot.lane.b32.xlu0 %v8923_v23, %s11637_s17  ;;  %v9008_v6 = vpack.i.bf16 %v633_v3, %v632_v2  ;;  %v9003_v7 = vpack.i.bf16 %v631_v5, %v630_v4  ;;  %v636_v8 = vld [vmem:[%s20314_s0 + $0x289] sm:$0xff]  ;;  %v637_v9 = vld [vmem:[%s20314_s0 + $0x291] sm:$0xff]  ;;  %v635_v11 = vld [vmem:[%s20314_s0 + $0x279] sm:$0xff] }
  0x12   :  { %v634_v10 = vld [vmem:[%s20314_s0 + $0x271] sm:$0xff]  ;;  %v9018_v12 = vpack.i.bf16 %v637_v9, %v636_v8  ;;  %v640_v14 = vld [vmem:[%s20314_s0 + $0x2b9] sm:$0xff]  ;;  %v641_v15 = vld [vmem:[%s20314_s0 + $0x2c1] sm:$0xff] }
  0x13   :  { %v9013_v13 = vpack.i.bf16 %v635_v11, %v634_v10  ;;  %v638_v16 = vld [vmem:[%s20314_s0 + $0x2a1] sm:$0xff]  ;;  %v639_v17 = vld [vmem:[%s20314_s0 + $0x2a9] sm:$0xff]  ;;  %v9028_v18 = vpack.i.bf16 %v641_v15, %v640_v14  ;;  %v645_v21 = vld [vmem:[%s20314_s0 + $0x2f1] sm:$0xff] }
  0x14   :  { %8939 = vrot.lane.b32.xlu1 %v8938_v28, %s11637_s17  ;;  %v9023_v19 = vpack.i.bf16 %v639_v17, %v638_v16  ;;  %v644_v20 = vld [vmem:[%s20314_s0 + $0x2e9] sm:$0xff]  ;;  %v642_v22 = vld [vmem:[%s20314_s0 + $0x2d1] sm:$0xff]  ;;  %v643_v23 = vld [vmem:[%s20314_s0 + $0x2d9] sm:$0xff] }
  0x15   :  { %8934 = vrot.lane.b32.xlu0 %v8933_v29, %s11637_s17  ;;  %v9038_v24 = vpack.i.bf16 %v645_v21, %v644_v20  ;;  %v9033_v25 = vpack.i.bf16 %v643_v23, %v642_v22  ;;  %v648_v26 = vld [vmem:[%s20314_s0 + $0x319] sm:$0xff]  ;;  %v649_v27 = vld [vmem:[%s20314_s0 + $0x321] sm:$0xff]  ;;  %v647_v29 = vld [vmem:[%s20314_s0 + $0x309] sm:$0xff] }
  0x16   :  { %v646_v28 = vld [vmem:[%s20314_s0 + $0x301] sm:$0xff]  ;;  %v9048_v30 = vpack.i.bf16 %v649_v27, %v648_v26  ;;  %v656_v38 = vld [vmem:[%s20314_s0 + $0x4a] sm:$0xff]  ;;  %v657_v39 = vld [vmem:[%s20314_s0 + $0x52] sm:$0xff] }
  0x17   :  { %v9043_v31 = vpack.i.bf16 %v647_v29, %v646_v28  ;;  %v652_v32 = vld [vmem:[%s20314_s0 + $0x1a] sm:$0xff]  ;;  %v653_v33 = vld [vmem:[%s20314_s0 + $0x22] sm:$0xff]  ;;  %v9068_v42 = vpack.i.bf16 %v657_v39, %v656_v38  ;;  %v659_v49 = vld [vmem:[%s20314_s0 + $0x6a] sm:$0xff] }
  0x18   :  { %8949 = vrot.lane.b32.xlu1 %v8948_v34, %s11637_s17  ;;  %v650_v34 = vld [vmem:[%s20314_s0 + $0x2] sm:$0xff]  ;;  %v9058_v36 = vpack.i.bf16 %v653_v33, %v652_v32  ;;  %v660_v43 = vld [vmem:[%s20314_s0 + $0x7a] sm:$0xff]  ;;  %v665_v54 = vld [vmem:[%s20314_s0 + $0xb2] sm:$0xff] }
  0x19   :  { %8944 = vrot.lane.b32.xlu0 %v8943_v35, %s11637_s17  ;;  %v651_v35 = vld [vmem:[%s20314_s0 + $0xa] sm:$0xff]  ;;  %v661_v45 = vld [vmem:[%s20314_s0 + $0x82] sm:$0xff]  ;;  %v662_v55 = vld [vmem:[%s20314_s0 + $0x92] sm:$0xff] }
  0x1a   :  { %v9053_v37 = vpack.i.bf16 %v651_v35, %v650_v34  ;;  %v658_v48 = vld [vmem:[%s20314_s0 + $0x62] sm:$0xff]  ;;  %v9078_v51 = vpack.i.bf16 %v661_v45, %v660_v43  ;;  %v663_v56 = vld [vmem:[%s20314_s0 + $0x9a] sm:$0xff]  ;;  %v667_v62 = vld [vmem:[%s20314_s0 + $0xca] sm:$0xff] }
  0x1b   :  { %v669_v60 = vld [vmem:[%s20314_s0 + $0xe2] sm:$0xff]  ;;  %v673_v2 = vld [vmem:[%s20314_s0 + $0x112] sm:$0xff]  ;;  %v671_v4 = vld [vmem:[%s20314_s0 + $0xfa] sm:$0xff] }
  0x1c   :  { %8959 = vrot.lane.b32.xlu1 %v8958_v40, %s11637_s17  ;;  %v654_v40 = vld [vmem:[%s20314_s0 + $0x32] sm:$0xff]  ;;  %v666_v61 = vld [vmem:[%s20314_s0 + $0xc2] sm:$0xff]  ;;  %v675_v10 = vld [vmem:[%s20314_s0 + $0x12a] sm:$0xff] }
  0x1d   :  { %8954 = vrot.lane.b32.xlu0 %v8953_v41, %s11637_s17  ;;  %v655_v41 = vld [vmem:[%s20314_s0 + $0x3a] sm:$0xff]  ;;  %v670_v3 = vld [vmem:[%s20314_s0 + $0xf2] sm:$0xff]  ;;  %v677_v8 = vld [vmem:[%s20314_s0 + $0x142] sm:$0xff] }
  0x1e   :  { %v9063_v44 = vpack.i.bf16 %v655_v41, %v654_v40  ;;  %v674_v9 = vld [vmem:[%s20314_s0 + $0x122] sm:$0xff]  ;;  %v681_v14 = vld [vmem:[%s20314_s0 + $0x172] sm:$0xff]  ;;  %v679_v16 = vld [vmem:[%s20314_s0 + $0x15a] sm:$0xff] }
  0x1f   :  { %v678_v15 = vld [vmem:[%s20314_s0 + $0x152] sm:$0xff]  ;;  %v683_v22 = vld [vmem:[%s20314_s0 + $0x1ba] sm:$0xff]  ;;  %v689_v26 = vld [vmem:[%s20314_s0 + $0x202] sm:$0xff] }
  0x20   :  { %8969 = vrot.lane.b32.xlu1 %v8968_v46, %s11637_s17  ;;  %v11949_v46 = vld [vmem:[%s20314_s0 + $0x31] sm:$0xff]  ;;  %v686_v27 = vld [vmem:[%s20314_s0 + $0x1e2] sm:$0xff]  ;;  %v691_v34 = vld [vmem:[%s20314_s0 + $0x21a] sm:$0xff] }
  0x21   :  { %8964 = vrot.lane.b32.xlu0 %v8963_v47, %s11637_s17  ;;  %20750 = vst [vmem:[#allocation3_spill] sm:$0xff] %v11949_v46  ;;  %v11954_v47 = vld [vmem:[%s20314_s0 + $0x39] sm:$0xff]  ;;  %v687_v28 = vld [vmem:[%s20314_s0 + $0x1ea] sm:$0xff]  ;;  %v697_v38 = vld [vmem:[%s20314_s0 + $0x262] sm:$0xff] }
  0x22   :  { %20751 = vst [vmem:[#allocation4_spill] sm:$0xff] %v11954_v47  ;;  %v685_v20 = vld [vmem:[%s20314_s0 + $0x1d2] sm:$0xff]  ;;  %v694_v39 = vld [vmem:[%s20314_s0 + $0x242] sm:$0xff]  ;;  %v695_v40 = vld [vmem:[%s20314_s0 + $0x24a] sm:$0xff] }
  0x23   :  { %v682_v21 = vld [vmem:[%s20314_s0 + $0x1b2] sm:$0xff]  ;;  %v700_v43 = vld [vmem:[%s20314_s0 + $0x28a] sm:$0xff] }
  0x24   :  { %8979 = vrot.lane.b32.xlu1 %v8978_v52, %s11637_s17  ;;  %v9073_v52 = vpack.i.bf16 %v659_v49, %v658_v48  ;;  %v693_v32 = vld [vmem:[%s20314_s0 + $0x232] sm:$0xff]  ;;  %v699_v48 = vld [vmem:[%s20314_s0 + $0x27a] sm:$0xff]  ;;  %v8088_v50 = vld [vmem:[%s20314_s0 + $0x109] sm:$0xff] }
  0x25   :  { %8974 = vrot.lane.b32.xlu0 %v8973_v53, %s11637_s17  ;;  %v664_v53 = vld [vmem:[%s20314_s0 + $0xaa] sm:$0xff]  ;;  %v690_v33 = vld [vmem:[%s20314_s0 + $0x212] sm:$0xff] }
  0x26   :  { %v9088_v57 = vpack.i.bf16 %v665_v54, %v664_v53  ;;  %v698_v45 = vld [vmem:[%s20314_s0 + $0x272] sm:$0xff]  ;;  %v705_v53 = vld [vmem:[%s20314_s0 + $0x2c2] sm:$0xff] }
  0x27   :  { %v702_v54 = vld [vmem:[%s20314_s0 + $0x2a2] sm:$0xff] }
  0x28   :  { %8989 = vrot.lane.b32.xlu1 %v8988_v58, %s11637_s17  ;;  %v9083_v58 = vpack.i.bf16 %v663_v56, %v662_v55  ;;  %v703_v55 = vld [vmem:[%s20314_s0 + $0x2aa] sm:$0xff] }
  0x29   :  { %8984 = vrot.lane.b32.xlu0 %v8983_v59, %s11637_s17  ;;  %v668_v59 = vld [vmem:[%s20314_s0 + $0xda] sm:$0xff] }
  0x2a   :  { %v9098_v63 = vpack.i.bf16 %v669_v60, %v668_v59  ;;  %v709_v59 = vld [vmem:[%s20314_s0 + $0x2f2] sm:$0xff] }
  0x2c   :  { %8999 = vrot.lane.b32.xlu1 %v8998_v0, %s11637_s17  ;;  %v9093_v0 = vpack.i.bf16 %v667_v62, %v666_v61  ;;  %v706_v61 = vld [vmem:[%s20314_s0 + $0x2d2] sm:$0xff]  ;;  %v707_v62 = vld [vmem:[%s20314_s0 + $0x2da] sm:$0xff] }
  0x2d   :  { %8994 = vrot.lane.b32.xlu0 %v8993_v1, %s11637_s17  ;;  %v672_v1 = vld [vmem:[%s20314_s0 + $0x10a] sm:$0xff] }
  0x2e   :  { %v9108_v5 = vpack.i.bf16 %v673_v2, %v672_v1  ;;  %v9193_v1 = vpack.i.bf16 %v707_v62, %v706_v61  ;;  %v712_v2 = vld [vmem:[%s20314_s0 + $0x31a] sm:$0xff] }
  0x30   :  { %9009 = vrot.lane.b32.xlu1 %v9008_v6, %s11637_s17  ;;  %v9103_v6 = vpack.i.bf16 %v671_v4, %v670_v3  ;;  %v713_v3 = vld [vmem:[%s20314_s0 + $0x322] sm:$0xff] }
  0x31   :  { %9004 = vrot.lane.b32.xlu0 %v9003_v7, %s11637_s17  ;;  %v676_v7 = vld [vmem:[%s20314_s0 + $0x13a] sm:$0xff] }
  0x32   :  { %v9118_v11 = vpack.i.bf16 %v677_v8, %v676_v7  ;;  %v9208_v8 = vpack.i.bf16 %v713_v3, %v712_v2  ;;  %v548_v3 = vld [vmem:[%s20314_s0 + $0x138] sm:$0xff] }
  0x34   :  { %9019 = vrot.lane.b32.xlu1 %v9018_v12, %s11637_s17  ;;  %v9113_v12 = vpack.i.bf16 %v675_v10, %v674_v9 }
  0x35   :  { %9014 = vrot.lane.b32.xlu0 %v9013_v13, %s11637_s17  ;;  %v680_v13 = vld [vmem:[%s20314_s0 + $0x16a] sm:$0xff] }
  0x36   :  { %v9128_v17 = vpack.i.bf16 %v681_v14, %v680_v13  ;;  %v524_v14 = vld [vmem:[%s20314_s0 + $0x18] sm:$0xff] }
  0x38   :  { %9029 = vrot.lane.b32.xlu1 %v9028_v18, %s11637_s17  ;;  %v9123_v18 = vpack.i.bf16 %v679_v16, %v678_v15  ;;  %v525_v15 = vld [vmem:[%s20314_s0 + $0x20] sm:$0xff] }
  0x39   :  { %9024 = vrot.lane.b32.xlu0 %v9023_v19, %s11637_s17  ;;  %v684_v19 = vld [vmem:[%s20314_s0 + $0x1ca] sm:$0xff] }
  0x3a   :  { %v9138_v23 = vpack.i.bf16 %v685_v20, %v684_v19  ;;  %v530_v19 = vld [vmem:[%s20314_s0 + $0x60] sm:$0xff]  ;;  %v531_v20 = vld [vmem:[%s20314_s0 + $0x68] sm:$0xff] }
  0x3c   :  { %9039 = vrot.lane.b32.xlu1 %v9038_v24, %s11637_s17  ;;  %v9133_v24 = vpack.i.bf16 %v683_v22, %v682_v21  ;;  %v528_v22 = vld [vmem:[%s20314_s0 + $0x48] sm:$0xff] }
  0x3d   :  { %9034 = vrot.lane.b32.xlu0 %v9033_v25, %s11637_s17  ;;  %v688_v25 = vld [vmem:[%s20314_s0 + $0x1fa] sm:$0xff] }
  0x3e   :  { %v9148_v29 = vpack.i.bf16 %v689_v26, %v688_v25 }
  0x40   :  { %9049 = vrot.lane.b32.xlu1 %v9048_v30, %s11637_s17  ;;  %v9143_v30 = vpack.i.bf16 %v687_v28, %v686_v27  ;;  %v534_v27 = vld [vmem:[%s20314_s0 + $0x90] sm:$0xff]  ;;  %v535_v28 = vld [vmem:[%s20314_s0 + $0x98] sm:$0xff] }
  0x41   :  { %9044 = vrot.lane.b32.xlu0 %v9043_v31, %s11637_s17  ;;  %v692_v31 = vld [vmem:[%s20314_s0 + $0x22a] sm:$0xff]  ;;  %s11639_s17 = smov 12  }
  0x42   :  { %v9158_v35 = vpack.i.bf16 %v693_v32, %v692_v31  ;;  %v533_v31 = vld [vmem:[%s20314_s0 + $0x80] sm:$0xff]  ;;  %v9238_v32 = vpack.i.bf16 %v535_v28, %v534_v27  ;;  %v12318_v27 = vld [vmem:[%s20314_s0 + $0x1d0] sm:$0xff] }
  0x44   :  { %9059 = vrot.lane.b32.xlu1 %v9058_v36, %s11638_s13  ;;  %v9153_v36 = vpack.i.bf16 %v691_v34, %v690_v33 }
  0x45   :  { %9054 = vrot.lane.b32.xlu0 %v9053_v37, %s11638_s13  ;;  %v696_v37 = vld [vmem:[%s20314_s0 + $0x25a] sm:$0xff] }
  0x46   :  { %v9168_v41 = vpack.i.bf16 %v697_v38, %v696_v37  ;;  %v536_v38 = vld [vmem:[%s20314_s0 + $0xa8] sm:$0xff] }
  0x48   :  { %9069 = vrot.lane.b32.xlu1 %v9068_v42, %s11638_s13  ;;  %v9163_v42 = vpack.i.bf16 %v695_v40, %v694_v39  ;;  %v537_v39 = vld [vmem:[%s20314_s0 + $0xb0] sm:$0xff] }
  0x49   :  { %9064 = vrot.lane.b32.xlu0 %v9063_v44, %s11638_s13  ;;  %v701_v44 = vld [vmem:[%s20314_s0 + $0x292] sm:$0xff] }
  0x4a   :  { %v9178_v49 = vpack.i.bf16 %v701_v44, %v700_v43  ;;  %v542_v43 = vld [vmem:[%s20314_s0 + $0xf0] sm:$0xff]  ;;  %v543_v44 = vld [vmem:[%s20314_s0 + $0xf8] sm:$0xff] }
  0x4c   :  { %9079 = vrot.lane.b32.xlu1 %v9078_v51, %s11638_s13  ;;  %v9173_v51 = vpack.i.bf16 %v699_v48, %v698_v45  ;;  %v540_v48 = vld [vmem:[%s20314_s0 + $0xd8] sm:$0xff] }
  0x4d   :  { %9074 = vrot.lane.b32.xlu0 %v9073_v52, %s11638_s13  ;;  %v704_v52 = vld [vmem:[%s20314_s0 + $0x2ba] sm:$0xff] }
  0x4e   :  { %v9188_v56 = vpack.i.bf16 %v705_v53, %v704_v52 }
  0x50   :  { %9089 = vrot.lane.b32.xlu1 %v9088_v57, %s11638_s13  ;;  %v9183_v57 = vpack.i.bf16 %v703_v55, %v702_v54  ;;  %v546_v54 = vld [vmem:[%s20314_s0 + $0x120] sm:$0xff]  ;;  %v547_v55 = vld [vmem:[%s20314_s0 + $0x128] sm:$0xff] }
  0x51   :  { %9084 = vrot.lane.b32.xlu0 %v9083_v58, %s11638_s13  ;;  %v708_v58 = vld [vmem:[%s20314_s0 + $0x2ea] sm:$0xff] }
  0x54   :  { %9099 = vrot.lane.b32.xlu1 %v9098_v63, %s11638_s13 }
  0x55   :  { %9094 = vrot.lane.b32.xlu0 %v9093_v0, %s11638_s13  ;;  %v9198_v0 = vpack.i.bf16 %v709_v59, %v708_v58  ;;  %v545_v58 = vld [vmem:[%s20314_s0 + $0x110] sm:$0xff]  ;;  %v9268_v59 = vpack.i.bf16 %v547_v55, %v546_v54 }
  0x58   :  { %9109 = vrot.lane.b32.xlu1 %v9108_v5, %s11638_s13  ;;  %v710_v5 = vld [vmem:[%s20314_s0 + $0x302] sm:$0xff] }
  0x59   :  { %9104 = vrot.lane.b32.xlu0 %v9103_v6, %s11638_s13  ;;  %v711_v6 = vld [vmem:[%s20314_s0 + $0x30a] sm:$0xff] }
  0x5a   :  { %v9203_v9 = vpack.i.bf16 %v711_v6, %v710_v5  ;;  %v549_v5 = vld [vmem:[%s20314_s0 + $0x140] sm:$0xff] }
  0x5c   :  { %9119 = vrot.lane.b32.xlu1 %v9118_v11, %s11638_s13  ;;  %v526_v11 = vld [vmem:[%s20314_s0 + $0x30] sm:$0xff] }
  0x5d   :  { %9114 = vrot.lane.b32.xlu0 %v9113_v12, %s11638_s13  ;;  %v527_v12 = vld [vmem:[%s20314_s0 + $0x38] sm:$0xff] }
  0x5e   :  { %v9218_v16 = vpack.i.bf16 %v527_v12, %v526_v11  ;;  %v8196_v11 = vld [vmem:[%s20314_s0 + $0x188] sm:$0xff] }
  0x60   :  { %9129 = vrot.lane.b32.xlu1 %v9128_v17, %s11638_s13  ;;  %v9213_v17 = vpack.i.bf16 %v525_v15, %v524_v14  ;;  %v552_v15 = vld [vmem:[%s20314_s0 + $0x168] sm:$0xff] }
  0x61   :  { %9124 = vrot.lane.b32.xlu0 %v9123_v18, %s11638_s13 }
  0x64   :  { %9139 = vrot.lane.b32.xlu1 %v9138_v23, %s11638_s13  ;;  %v529_v23 = vld [vmem:[%s20314_s0 + $0x50] sm:$0xff] }
  0x65   :  { %9134 = vrot.lane.b32.xlu0 %v9133_v24, %s11638_s13  ;;  %v9228_v24 = vpack.i.bf16 %v531_v20, %v530_v19  ;;  %v9223_v25 = vpack.i.bf16 %v529_v23, %v528_v22  ;;  %v558_v22 = vld [vmem:[%s20314_s0 + $0x1e0] sm:$0xff]  ;;  %v559_v23 = vld [vmem:[%s20314_s0 + $0x1e8] sm:$0xff] }
  0x66   :  { %v9298_v28 = vpack.i.bf16 %v559_v23, %v558_v22  ;;  %v578_v22 = vld [vmem:[%s20314_s0 + $0x2d0] sm:$0xff]  ;;  %v579_v23 = vld [vmem:[%s20314_s0 + $0x2d8] sm:$0xff] }
  0x68   :  { %9149 = vrot.lane.b32.xlu1 %v9148_v29, %s11638_s13 }
  0x69   :  { %9144 = vrot.lane.b32.xlu0 %v9143_v30, %s11638_s13  ;;  %v532_v30 = vld [vmem:[%s20314_s0 + $0x78] sm:$0xff] }
  0x6a   :  { %v9233_v33 = vpack.i.bf16 %v533_v31, %v532_v30 }
  0x6c   :  { %9159 = vrot.lane.b32.xlu1 %v9158_v35, %s11638_s13  ;;  %v538_v35 = vld [vmem:[%s20314_s0 + $0xc0] sm:$0xff] }
  0x6d   :  { %9154 = vrot.lane.b32.xlu0 %v9153_v36, %s11638_s13  ;;  %v539_v36 = vld [vmem:[%s20314_s0 + $0xc8] sm:$0xff] }
  0x6e   :  { %v9248_v40 = vpack.i.bf16 %v539_v36, %v538_v35  ;;  %v12337_v36 = vld [vmem:[%s20314_s0 + $0x1f8] sm:$0xff] }
  0x70   :  { %9169 = vrot.lane.b32.xlu1 %v9168_v41, %s11638_s13  ;;  %v9243_v41 = vpack.i.bf16 %v537_v39, %v536_v38  ;;  %v12342_v38 = vld [vmem:[%s20314_s0 + $0x200] sm:$0xff] }
  0x71   :  { %9164 = vrot.lane.b32.xlu0 %v9163_v42, %s11638_s13 }
  0x74   :  { %9179 = vrot.lane.b32.xlu1 %v9178_v49, %s11638_s13  ;;  %v541_v49 = vld [vmem:[%s20314_s0 + $0xe0] sm:$0xff] }
  0x75   :  { %9174 = vrot.lane.b32.xlu0 %v9173_v51, %s11638_s13  ;;  %v9258_v51 = vpack.i.bf16 %v543_v44, %v542_v43  ;;  %v9253_v52 = vpack.i.bf16 %v541_v49, %v540_v48  ;;  %v566_v43 = vld [vmem:[%s20314_s0 + $0x240] sm:$0xff]  ;;  %v567_v44 = vld [vmem:[%s20314_s0 + $0x248] sm:$0xff] }
  0x76   :  { %v12126_v60 = vpop.permute.xlu1 %8904  ;;  %v564_v49 = vld [vmem:[%s20314_s0 + $0x228] sm:$0xff] }
  0x77   :  { %v12134_v63 = vpop.permute.xlu0 %8894 }
  0x78   :  { %9189 = vrot.lane.b32.xlu1 %v9188_v56, %s11638_s13 }
  0x79   :  { %9184 = vrot.lane.b32.xlu0 %v9183_v57, %s11638_s13  ;;  %v544_v57 = vld [vmem:[%s20314_s0 + $0x108] sm:$0xff] }
  0x7a   :  { %v12144_v4 = vpop.permute.xlu1 %8909  ;;  %v9263_v61 = vpack.i.bf16 %v545_v58, %v544_v57  ;;  %v570_v57 = vld [vmem:[%s20314_s0 + $0x270] sm:$0xff]  ;;  %v571_v58 = vld [vmem:[%s20314_s0 + $0x278] sm:$0xff] }
  0x7b   :  { %v12152_v7 = vpop.permute.xlu0 %8899 }
  0x7c   :  { %9199 = vrot.lane.b32.xlu1 %v9198_v0, %s11638_s13  ;;  %v550_v0 = vld [vmem:[%s20314_s0 + $0x150] sm:$0xff] }
  0x7d   :  { %9194 = vrot.lane.b32.xlu0 %v9193_v1, %s11638_s13  ;;  %v551_v1 = vld [vmem:[%s20314_s0 + $0x158] sm:$0xff] }
  0x7e   :  { %v12156_v10 = vpop.permute.xlu1 %8919  ;;  %v9278_v6 = vpack.i.bf16 %v551_v1, %v550_v0  ;;  %v569_v0 = vld [vmem:[%s20314_s0 + $0x260] sm:$0xff]  ;;  %v9328_v1 = vpack.i.bf16 %v571_v58, %v570_v57  ;;  %v8227_v58 = vld [vmem:[%s20314_s0 + $0x330] sm:$0xff] }
  0x7f   :  { %v12164_v13 = vpop.permute.xlu0 %8914 }
  0x80   :  { %20752 = vst [vmem:[#allocation5_spill] sm:$0xff] %v12164_v13  ;;  %9209 = vrot.lane.b32.xlu1 %v9208_v8, %s11638_s13  ;;  %v9273_v8 = vpack.i.bf16 %v549_v5, %v548_v3 }
  0x81   :  { %9204 = vrot.lane.b32.xlu0 %v9203_v9, %s11638_s13  ;;  %v8195_v9 = vld [vmem:[%s20314_s0 + $0x180] sm:$0xff] }
  0x82   :  { %v12174_v18 = vpop.permute.xlu1 %8929 }
  0x83   :  { %20753 = vst [vmem:[#allocation6_spill] sm:$0xff] %v12174_v18  ;;  %v12182_v21 = vpop.permute.xlu0 %8924 }
  0x84   :  { %20754 = vst [vmem:[#allocation7_spill] sm:$0xff] %v12182_v21  ;;  %9219 = vrot.lane.b32.xlu1 %v9218_v16, %s11639_s17  ;;  %v553_v16 = vld [vmem:[%s20314_s0 + $0x170] sm:$0xff] }
  0x85   :  { %9214 = vrot.lane.b32.xlu0 %v9213_v17, %s11639_s17  ;;  %v9288_v17 = vpack.i.bf16 %v8196_v11, %v8195_v9  ;;  %v9283_v19 = vpack.i.bf16 %v553_v16, %v552_v15  ;;  %v572_v11 = vld [vmem:[%s20314_s0 + $0x288] sm:$0xff]  ;;  %v573_v15 = vld [vmem:[%s20314_s0 + $0x290] sm:$0xff] }
  0x86   :  { %v12192_v26 = vpop.permute.xlu1 %8939 }
  0x87   :  { %20755 = vst [vmem:[#allocation8_spill] sm:$0xff] %v12192_v26  ;;  %v12200_v29 = vpop.permute.xlu0 %8934 }
  0x88   :  { %20756 = vst [vmem:[#allocation9_spill] sm:$0xff] %v12200_v29  ;;  %9229 = vrot.lane.b32.xlu1 %v9228_v24, %s11639_s17  ;;  %v8269_v29 = vld [vmem:[%s20314_s0 + $0x22a] sm:$0xff] }
  0x89   :  { %9224 = vrot.lane.b32.xlu0 %v9223_v25, %s11639_s17  ;;  %v12313_v25 = vld [vmem:[%s20314_s0 + $0x1c8] sm:$0xff] }
  0x8a   :  { %v12210_v34 = vpop.permute.xlu1 %8949  ;;  %v9293_v30 = vpack.i.bf16 %v12318_v27, %v12313_v25 }
  0x8b   :  { %20757 = vst [vmem:[#allocation10_spill] sm:$0xff] %v12210_v34  ;;  %v12218_v37 = vpop.permute.xlu0 %8944 }
  0x8c   :  { %20758 = vst [vmem:[#allocation11_spill] sm:$0xff] %v12218_v37  ;;  %9239 = vrot.lane.b32.xlu1 %v9238_v32, %s11639_s17  ;;  %v562_v32 = vld [vmem:[%s20314_s0 + $0x210] sm:$0xff]  ;;  %v8265_v37 = vld [vmem:[%s20314_s0 + $0x1fa] sm:$0xff] }
  0x8d   :  { %9234 = vrot.lane.b32.xlu0 %v9233_v33, %s11639_s17  ;;  %v563_v33 = vld [vmem:[%s20314_s0 + $0x218] sm:$0xff] }
  0x8e   :  { %v12228_v42 = vpop.permute.xlu1 %8959  ;;  %v9308_v39 = vpack.i.bf16 %v563_v33, %v562_v32  ;;  %v577_v32 = vld [vmem:[%s20314_s0 + $0x2c0] sm:$0xff]  ;;  %v9348_v33 = vpack.i.bf16 %v579_v23, %v578_v22  ;;  %v9378_v23 = vpack.i.bf16 %v11954_v47, %v11949_v46 }
  0x8f   :  { %20759 = vst [vmem:[#allocation12_spill] sm:$0xff] %v12228_v42  ;;  %v12236_v45 = vpop.permute.xlu0 %8954  ;;  %v8092_v47 = vld [vmem:[%s20314_s0 + $0x139] sm:$0xff] }
  0x90   :  { %20760 = vst [vmem:[#allocation13_spill] sm:$0xff] %v12236_v45  ;;  %9249 = vrot.lane.b32.xlu1 %v9248_v40, %s11639_s17  ;;  %v9303_v40 = vpack.i.bf16 %v12342_v38, %v12337_v36  ;;  %v8261_v45 = vld [vmem:[%s20314_s0 + $0x1ca] sm:$0xff] }
  0x91   :  { %9244 = vrot.lane.b32.xlu0 %v9243_v41, %s11639_s17 }
  0x92   :  { %v12246_v53 = vpop.permute.xlu1 %8969 }
  0x93   :  { %20761 = vst [vmem:[#allocation14_spill] sm:$0xff] %v12246_v53  ;;  %v12254_v56 = vpop.permute.xlu0 %8964 }
  0x94   :  { %20762 = vst [vmem:[#allocation15_spill] sm:$0xff] %v12254_v56  ;;  %9259 = vrot.lane.b32.xlu1 %v9258_v51, %s11639_s17  ;;  %v565_v51 = vld [vmem:[%s20314_s0 + $0x230] sm:$0xff] }
  0x95   :  { %9254 = vrot.lane.b32.xlu0 %v9253_v52, %s11639_s17  ;;  %v9318_v52 = vpack.i.bf16 %v567_v44, %v566_v43  ;;  %v9313_v54 = vpack.i.bf16 %v565_v51, %v564_v49  ;;  %v582_v43 = vld [vmem:[%s20314_s0 + $0x300] sm:$0xff]  ;;  %v583_v44 = vld [vmem:[%s20314_s0 + $0x308] sm:$0xff] }
  0x96   :  { %v12264_v62 = vpop.permute.xlu1 %8979  ;;  %v580_v51 = vld [vmem:[%s20314_s0 + $0x2e8] sm:$0xff] }
  0x97   :  { %v12272_v2 = vpop.permute.xlu0 %8974 }
  0x98   :  { %20763 = vst [vmem:[#allocation16_spill] sm:$0xff] %v12272_v2  ;;  %9269 = vrot.lane.b32.xlu1 %v9268_v59, %s11639_s17  ;;  %v8124_v2 = vld [vmem:[%s20314_s0 + $0x2e9] sm:$0xff] }
  0x99   :  { %9264 = vrot.lane.b32.xlu0 %v9263_v61, %s11639_s17  ;;  %v568_v61 = vld [vmem:[%s20314_s0 + $0x258] sm:$0xff] }
  0x9a   :  { %v12288_v12 = vpop.permute.xlu1 %8989  ;;  %v9323_v3 = vpack.i.bf16 %v569_v0, %v568_v61  ;;  %v8228_v61 = vld [vmem:[%s20314_s0 + $0x338] sm:$0xff] }
  0x9b   :  { %v12290_v14 = vpop.permute.xlu0 %8984 }
  0x9c   :  { %9279 = vrot.lane.b32.xlu1 %v9278_v6, %s11639_s17  ;;  %v574_v6 = vld [vmem:[%s20314_s0 + $0x2a0] sm:$0xff] }
  0x9d   :  { %9274 = vrot.lane.b32.xlu0 %v9273_v8, %s11639_s17  ;;  %v575_v8 = vld [vmem:[%s20314_s0 + $0x2a8] sm:$0xff] }
  0x9e   :  { %v12300_v20 = vpop.permute.xlu1 %8999  ;;  %v9338_v16 = vpack.i.bf16 %v575_v8, %v574_v6  ;;  %v585_v6 = vld [vmem:[%s20314_s0 + $0x320] sm:$0xff]  ;;  %v9368_v8 = vpack.i.bf16 %v8228_v61, %v8227_v58 }
  0x9f   :  { %v12308_v24 = vpop.permute.xlu0 %8994  ;;  %v8079_v58 = vld [vmem:[%s20314_s0 + $0x99] sm:$0xff] }
  0xa0   :  { %9289 = vrot.lane.b32.xlu1 %v9288_v17, %s11639_s17  ;;  %v9333_v17 = vpack.i.bf16 %v573_v15, %v572_v11 }
  0xa1   :  { %9284 = vrot.lane.b32.xlu0 %v9283_v19, %s11639_s17 }
  0xa2   :  { %v12324_v31 = vpop.permute.xlu1 %9009 }
  0xa3   :  { %v12332_v35 = vpop.permute.xlu0 %9004 }
  0xa4   :  { %9299 = vrot.lane.b32.xlu1 %v9298_v28, %s11639_s17 }
  0xa5   :  { %9294 = vrot.lane.b32.xlu0 %v9293_v30, %s11639_s17  ;;  %v576_v30 = vld [vmem:[%s20314_s0 + $0x2b8] sm:$0xff] }
  0xa6   :  { %v12348_v41 = vpop.permute.xlu1 %9019 }
  0xa7   :  { %v12356_v48 = vpop.permute.xlu0 %9014 }
  0xa8   :  { %9309 = vrot.lane.b32.xlu1 %v9308_v39, %s11639_s17  ;;  %v9343_v39 = vpack.i.bf16 %v577_v32, %v576_v30  ;;  %v8074_v32 = vld [vmem:[%s20314_s0 + $0x61] sm:$0xff] }
  0xa9   :  { %9304 = vrot.lane.b32.xlu0 %v9303_v40, %s11639_s17 }
  0xaa   :  { %v12366_v55 = vpop.permute.xlu1 %9029 }
  0xab   :  { %v12374_v59 = vpop.permute.xlu0 %9024 }
  0xac   :  { %9319 = vrot.lane.b32.xlu1 %v9318_v52, %s11639_s17  ;;  %v581_v52 = vld [vmem:[%s20314_s0 + $0x2f0] sm:$0xff]  ;;  %v9027_v13 = vunpack.i.h.bf16 %v12374_v59 }
  0xad   :  { %9314 = vrot.lane.b32.xlu0 %v9313_v54, %s11639_s17  ;;  %v9358_v54 = vpack.i.bf16 %v583_v44, %v582_v43  ;;  %v9353_v57 = vpack.i.bf16 %v581_v52, %v580_v51  ;;  %v8072_v43 = vld [vmem:[%s20314_s0 + $0x49] sm:$0xff]  ;;  %v8073_v44 = vld [vmem:[%s20314_s0 + $0x51] sm:$0xff] }
  0xae   :  { %v12384_v5 = vpop.permute.xlu1 %9039 }
  0xaf   :  { %v12392_v9 = vpop.permute.xlu0 %9034 }
  0xb0   :  { %9329 = vrot.lane.b32.xlu1 %v9328_v1, %s11639_s17 }
  0xb1   :  { %9324 = vrot.lane.b32.xlu0 %v9323_v3, %s11639_s17  ;;  %v584_v3 = vld [vmem:[%s20314_s0 + $0x318] sm:$0xff] }
  0xb2   :  { %v12402_v19 = vpop.permute.xlu1 %9049  ;;  %v9363_v11 = vpack.i.bf16 %v585_v6, %v584_v3  ;;  %v8076_v3 = vld [vmem:[%s20314_s0 + $0x79] sm:$0xff]  ;;  %v8077_v6 = vld [vmem:[%s20314_s0 + $0x81] sm:$0xff] }
  0xb3   :  { %v12410_v28 = vpop.permute.xlu0 %9044 }
  0xb4   :  { %9339 = vrot.lane.b32.xlu1 %v9338_v16, %s11639_s17  ;;  %v8068_v16 = vld [vmem:[%s20314_s0 + $0x19] sm:$0xff] }
  0xb5   :  { %9334 = vrot.lane.b32.xlu0 %v9333_v17, %s11639_s17  ;;  %v8069_v17 = vld [vmem:[%s20314_s0 + $0x21] sm:$0xff] }
  0xb6   :  { %v12420_v40 = vpop.permute.xlu1 %9059  ;;  %v9373_v30 = vpack.i.bf16 %v8069_v17, %v8068_v16  ;;  %v9393_v16 = vpack.i.bf16 %v8077_v6, %v8076_v3  ;;  %v8082_v17 = vld [vmem:[%s20314_s0 + $0xc1] sm:$0xff]  ;;  %v8084_v3 = vld [vmem:[%s20314_s0 + $0xd9] sm:$0xff] }
  0xb7   :  { %20764 = vst [vmem:[#allocation17_spill] sm:$0xff] %v12420_v40  ;;  %v12428_v49 = vpop.permute.xlu0 %9054  ;;  %v8085_v6 = vld [vmem:[%s20314_s0 + $0xe1] sm:$0xff] }
  0xb8   :  { %20765 = vst [vmem:[#allocation18_spill] sm:$0xff] %v12428_v49  ;;  %9349 = vrot.lane.b32.xlu1 %v9348_v33, %s11639_s17  ;;  %v8075_v33 = vld [vmem:[%s20314_s0 + $0x69] sm:$0xff]  ;;  %v8120_v49 = vld [vmem:[%s20314_s0 + $0x2b9] sm:$0xff] }
  0xb9   :  { %9344 = vrot.lane.b32.xlu0 %v9343_v39, %s11639_s17  ;;  %v9388_v52 = vpack.i.bf16 %v8075_v33, %v8074_v32  ;;  %v8080_v32 = vld [vmem:[%s20314_s0 + $0xa9] sm:$0xff]  ;;  %v8081_v33 = vld [vmem:[%s20314_s0 + $0xb1] sm:$0xff] }
  0xba   :  { %v12444_v0 = vpop.permute.xlu1 %9069 }
  0xbb   :  { %20766 = vst [vmem:[#allocation19_spill] sm:$0xff] %v12444_v0  ;;  %v12446_v1 = vpop.permute.xlu0 %9064 }
  0xbc   :  { %20767 = vst [vmem:[#allocation20_spill] sm:$0xff] %v12446_v1  ;;  %9359 = vrot.lane.b32.xlu1 %v9358_v54, %s11639_s17  ;;  %v9383_v54 = vpack.i.bf16 %v8073_v44, %v8072_v43  ;;  %v8116_v1 = vld [vmem:[%s20314_s0 + $0x289] sm:$0xff] }
  0xbd   :  { %9354 = vrot.lane.b32.xlu0 %v9353_v57, %s11639_s17  ;;  %v8078_v57 = vld [vmem:[%s20314_s0 + $0x91] sm:$0xff] }
  0xbe   :  { %v12456_v15 = vpop.permute.xlu1 %9079 }
  0xbf   :  { %20768 = vst [vmem:[#allocation21_spill] sm:$0xff] %v12456_v15  ;;  %v12464_v22 = vpop.permute.xlu0 %9074 }
  0xc0   :  { %20769 = vst [vmem:[#allocation22_spill] sm:$0xff] %v12464_v22  ;;  %9369 = vrot.lane.b32.xlu1 %v9368_v8, %s11639_s17  ;;  %v8112_v22 = vld [vmem:[%s20314_s0 + $0x259] sm:$0xff] }
  0xc1   :  { %9364 = vrot.lane.b32.xlu0 %v9363_v11, %s11639_s17  ;;  %s11640_s17 = smov 16   ;;  %v9398_v11 = vpack.i.bf16 %v8079_v58, %v8078_v57  ;;  %v8087_v57 = vld [vmem:[%s20314_s0 + $0xf9] sm:$0xff] }
  0xc2   :  { %v12476_v39 = vpop.permute.xlu1 %9089 }
  0xc3   :  { %20770 = vst [vmem:[#allocation23_spill] sm:$0xff] %v12476_v39  ;;  %v12484_v51 = vpop.permute.xlu0 %9084 }
  0xc4   :  { %20771 = vst [vmem:[#allocation24_spill] sm:$0xff] %v12484_v51  ;;  %9379 = vrot.lane.b32.xlu1 %v9378_v23, %s11640_s17  ;;  %v8083_v23 = vld [vmem:[%s20314_s0 + $0xc9] sm:$0xff] }
  0xc5   :  { %9374 = vrot.lane.b32.xlu0 %v9373_v30, %s11640_s17  ;;  %v9408_v44 = vpack.i.bf16 %v8083_v23, %v8082_v17  ;;  %v9413_v17 = vpack.i.bf16 %v8085_v6, %v8084_v3  ;;  %v8090_v23 = vld [vmem:[%s20314_s0 + $0x121] sm:$0xff]  ;;  %v8094_v3 = vld [vmem:[%s20314_s0 + $0x151] sm:$0xff]  ;;  %v8095_v6 = vld [vmem:[%s20314_s0 + $0x159] sm:$0xff] }
  0xc6   :  { %v12494_v61 = vpop.permute.xlu1 %9099  ;;  %v8108_v51 = vld [vmem:[%s20314_s0 + $0x229] sm:$0xff] }
  0xc7   :  { %20772 = vst [vmem:[#allocation25_spill] sm:$0xff] %v12494_v61  ;;  %v12502_v8 = vpop.permute.xlu0 %9094 }
  0xc8   :  { %20773 = vst [vmem:[#allocation26_spill] sm:$0xff] %v12502_v8  ;;  %9389 = vrot.lane.b32.xlu1 %v9388_v52, %s11640_s17  ;;  %v9403_v52 = vpack.i.bf16 %v8081_v33, %v8080_v32  ;;  %v8091_v32 = vld [vmem:[%s20314_s0 + $0x129] sm:$0xff] }
  0xc9   :  { %9384 = vrot.lane.b32.xlu0 %v9383_v54, %s11640_s17  ;;  %v8086_v54 = vld [vmem:[%s20314_s0 + $0xf1] sm:$0xff]  ;;  %v8111_v8 = vld [vmem:[%s20314_s0 + $0x249] sm:$0xff] }
  0xca   :  { %v12512_v30 = vpop.permute.xlu1 %9109 }
  0xcb   :  { %20774 = vst [vmem:[#allocation27_spill] sm:$0xff] %v12512_v30  ;;  %v12520_v43 = vpop.permute.xlu0 %9104  ;;  %v8110_v30 = vld [vmem:[%s20314_s0 + $0x241] sm:$0xff] }
  0xcc   :  { %20775 = vst [vmem:[#allocation28_spill] sm:$0xff] %v12520_v43  ;;  %9399 = vrot.lane.b32.xlu1 %v9398_v11, %s11640_s17 }
  0xcd   :  { %9394 = vrot.lane.b32.xlu0 %v9393_v16, %s11640_s17  ;;  %v9418_v16 = vpack.i.bf16 %v8087_v57, %v8086_v54  ;;  %v9428_v54 = vpack.i.bf16 %v8091_v32, %v8090_v23  ;;  %v8098_v32 = vld [vmem:[%s20314_s0 + $0x181] sm:$0xff] }
  0xce   :  { %v12530_v58 = vpop.permute.xlu1 %9119 }
  0xcf   :  { %20776 = vst [vmem:[#allocation29_spill] sm:$0xff] %v12530_v58  ;;  %v12538_v11 = vpop.permute.xlu0 %9114 }
  0xd0   :  { %20777 = vst [vmem:[#allocation30_spill] sm:$0xff] %v12538_v11  ;;  %9409 = vrot.lane.b32.xlu1 %v9408_v44, %s11640_s17  ;;  %v8089_v44 = vld [vmem:[%s20314_s0 + $0x111] sm:$0xff]  ;;  %v12607_v11 = vld [vmem:[%s20314_s0 + $0x1c9] sm:$0xff] }
  0xd1   :  { %9404 = vrot.lane.b32.xlu0 %v9403_v52, %s11640_s17  ;;  %v9423_v57 = vpack.i.bf16 %v8089_v44, %v8088_v50  ;;  %v9438_v50 = vpack.i.bf16 %v8095_v6, %v8094_v3  ;;  %v8099_v44 = vld [vmem:[%s20314_s0 + $0x189] sm:$0xff]  ;;  %v8102_v6 = vld [vmem:[%s20314_s0 + $0x1e1] sm:$0xff] }
  0xd2   :  { %v12548_v33 = vpop.permute.xlu1 %9129 }
  0xd3   :  { %20778 = vst [vmem:[#allocation31_spill] sm:$0xff] %v12548_v33  ;;  %v12556_v52 = vpop.permute.xlu0 %9124 }
  0xd4   :  { %20779 = vst [vmem:[#allocation32_spill] sm:$0xff] %v12556_v52  ;;  %9419 = vrot.lane.b32.xlu1 %v9418_v16, %s11640_s17  ;;  %v8093_v16 = vld [vmem:[%s20314_s0 + $0x141] sm:$0xff] }
  0xd5   :  { %9414 = vrot.lane.b32.xlu0 %v9413_v17, %s11640_s17  ;;  %v9433_v23 = vpack.i.bf16 %v8093_v16, %v8092_v47  ;;  %v9448_v47 = vpack.i.bf16 %v8099_v44, %v8098_v32  ;;  %v8103_v16 = vld [vmem:[%s20314_s0 + $0x1e9] sm:$0xff]  ;;  %v8106_v44 = vld [vmem:[%s20314_s0 + $0x211] sm:$0xff] }
  0xd6   :  { %v12566_v46 = vpop.permute.xlu1 %9139 }
  0xd7   :  { %v12574_v17 = vpop.permute.xlu0 %9134 }
  0xd8   :  { %20780 = vst [vmem:[#allocation33_spill] sm:$0xff] %v12574_v17  ;;  %9429 = vrot.lane.b32.xlu1 %v9428_v54, %s11640_s17  ;;  %v8096_v17 = vld [vmem:[%s20314_s0 + $0x169] sm:$0xff]  ;;  %v8097_v54 = vld [vmem:[%s20314_s0 + $0x171] sm:$0xff] }
  0xd9   :  { %9424 = vrot.lane.b32.xlu0 %v9423_v57, %s11640_s17  ;;  %v9443_v3 = vpack.i.bf16 %v8097_v54, %v8096_v17  ;;  %v8107_v54 = vld [vmem:[%s20314_s0 + $0x219] sm:$0xff] }
  0xda   :  { %v12584_v52 = vpop.permute.xlu1 %9149 }
  0xdb   :  { %v12592_v57 = vpop.permute.xlu0 %9144 }
  0xdc   :  { %9439 = vrot.lane.b32.xlu1 %v9438_v50, %s11640_s17  ;;  %v12612_v50 = vld [vmem:[%s20314_s0 + $0x1d1] sm:$0xff]  ;;  %v9146_v21 = vunpack.i.l.bf16 %v12592_v57 }
  0xdd   :  { %9434 = vrot.lane.b32.xlu0 %v9433_v23, %s11640_s17  ;;  %v9458_v23 = vpack.i.bf16 %v8103_v16, %v8102_v6  ;;  %v9453_v32 = vpack.i.bf16 %v12612_v50, %v12607_v11  ;;  %v9468_v16 = vpack.i.bf16 %v8107_v54, %v8106_v44  ;;  %v9478_v44 = vpack.i.bf16 %v8111_v8, %v8110_v30  ;;  %v8113_v8 = vld [vmem:[%s20314_s0 + $0x261] sm:$0xff] }
  0xde   :  { %v12602_v33 = vpop.permute.xlu1 %9159 }
  0xdf   :  { %v12614_v17 = vpop.permute.xlu0 %9154 }
  0xe0   :  { %9449 = vrot.lane.b32.xlu1 %v9448_v47, %s11640_s17  ;;  %v8104_v47 = vld [vmem:[%s20314_s0 + $0x1f9] sm:$0xff] }
  0xe1   :  { %9444 = vrot.lane.b32.xlu0 %v9443_v3, %s11640_s17  ;;  %v8105_v3 = vld [vmem:[%s20314_s0 + $0x201] sm:$0xff] }
  0xe2   :  { %v12626_v58 = vpop.permute.xlu1 %9169  ;;  %v9463_v43 = vpack.i.bf16 %v8105_v3, %v8104_v47  ;;  %v8114_v47 = vld [vmem:[%s20314_s0 + $0x271] sm:$0xff]  ;;  %v8115_v3 = vld [vmem:[%s20314_s0 + $0x279] sm:$0xff] }
  0xe3   :  { %v12634_v6 = vpop.permute.xlu0 %9164 }
  0xe4   :  { %9459 = vrot.lane.b32.xlu1 %v9458_v23, %s11640_s17  ;;  %v8109_v23 = vld [vmem:[%s20314_s0 + $0x231] sm:$0xff] }
  0xe5   :  { %9454 = vrot.lane.b32.xlu0 %v9453_v32, %s11640_s17  ;;  %v9473_v54 = vpack.i.bf16 %v8109_v23, %v8108_v51  ;;  %v9488_v51 = vpack.i.bf16 %v8115_v3, %v8114_v47  ;;  %v8119_v23 = vld [vmem:[%s20314_s0 + $0x2a9] sm:$0xff]  ;;  %v8122_v3 = vld [vmem:[%s20314_s0 + $0x2d1] sm:$0xff] }
  0xe6   :  { %v12644_v61 = vpop.permute.xlu1 %9179 }
  0xe7   :  { %v12652_v32 = vpop.permute.xlu0 %9174 }
  0xe8   :  { %9469 = vrot.lane.b32.xlu1 %v9468_v16, %s11640_s17  ;;  %v8118_v16 = vld [vmem:[%s20314_s0 + $0x2a1] sm:$0xff] }
  0xe9   :  { %9464 = vrot.lane.b32.xlu0 %v9463_v43, %s11640_s17  ;;  %v9483_v43 = vpack.i.bf16 %v8113_v8, %v8112_v22  ;;  %v9498_v22 = vpack.i.bf16 %v8119_v23, %v8118_v16  ;;  %v8123_v8 = vld [vmem:[%s20314_s0 + $0x2d9] sm:$0xff]  ;;  %v8126_v23 = vld [vmem:[%s20314_s0 + $0x301] sm:$0xff] }
  0xea   :  { %v12662_v39 = vpop.permute.xlu1 %9189 }
  0xeb   :  { %v12670_v30 = vpop.permute.xlu0 %9184 }
  0xec   :  { %9479 = vrot.lane.b32.xlu1 %v9478_v44, %s11640_s17  ;;  %v8117_v44 = vld [vmem:[%s20314_s0 + $0x291] sm:$0xff] }
  0xed   :  { %9474 = vrot.lane.b32.xlu0 %v9473_v54, %s11640_s17  ;;  %v9493_v47 = vpack.i.bf16 %v8117_v44, %v8116_v1  ;;  %v9508_v1 = vpack.i.bf16 %v8123_v8, %v8122_v3  ;;  %v8127_v44 = vld [vmem:[%s20314_s0 + $0x309] sm:$0xff]  ;;  %v8130_v8 = vld [vmem:[%s20314_s0 + $0x331] sm:$0xff] }
  0xee   :  { %v12680_v15 = vpop.permute.xlu1 %9199 }
  0xef   :  { %v12688_v54 = vpop.permute.xlu0 %9194 }
  0xf0   :  { %9489 = vrot.lane.b32.xlu1 %v9488_v51, %s11640_s17  ;;  %v8121_v51 = vld [vmem:[%s20314_s0 + $0x2c1] sm:$0xff] }
  0xf1   :  { %9484 = vrot.lane.b32.xlu0 %v9483_v43, %s11640_s17  ;;  %v9503_v16 = vpack.i.bf16 %v8121_v51, %v8120_v49  ;;  %v9518_v49 = vpack.i.bf16 %v8127_v44, %v8126_v23  ;;  %v8131_v51 = vld [vmem:[%s20314_s0 + $0x339] sm:$0xff] }
  0xf2   :  { %v12698_v0 = vpop.permute.xlu1 %9209  ;;  %v8231_v44 = vld [vmem:[%s20314_s0 + $0x32] sm:$0xff] }
  0xf3   :  { %v12706_v43 = vpop.permute.xlu0 %9204 }
  0xf4   :  { %9499 = vrot.lane.b32.xlu1 %v9498_v22, %s11640_s17  ;;  %v8125_v22 = vld [vmem:[%s20314_s0 + $0x2f1] sm:$0xff] }
  0xf5   :  { %9494 = vrot.lane.b32.xlu0 %v9493_v47, %s11640_s17  ;;  %v9513_v3 = vpack.i.bf16 %v8125_v22, %v8124_v2  ;;  %v9528_v2 = vpack.i.bf16 %v8131_v51, %v8130_v8  ;;  %v8232_v22 = vld [vmem:[%s20314_s0 + $0x3a] sm:$0xff]  ;;  %v8235_v51 = vld [vmem:[%s20314_s0 + $0x62] sm:$0xff] }
  0xf6   :  { %v12716_v40 = vpop.permute.xlu1 %9219 }
  0xf7   :  { %20781 = vst [vmem:[#allocation34_spill] sm:$0xff] %v12716_v40  ;;  %v12724_v47 = vpop.permute.xlu0 %9214 }
  0xf8   :  { %20782 = vst [vmem:[#allocation35_spill] sm:$0xff] %v12724_v47  ;;  %9509 = vrot.lane.b32.xlu1 %v9508_v1, %s11640_s17  ;;  %v8128_v47 = vld [vmem:[%s20314_s0 + $0x319] sm:$0xff]  ;;  %v8129_v1 = vld [vmem:[%s20314_s0 + $0x321] sm:$0xff] }
  0xf9   :  { %9504 = vrot.lane.b32.xlu0 %v9503_v16, %s11640_s17  ;;  %v9523_v23 = vpack.i.bf16 %v8129_v1, %v8128_v47  ;;  %v9538_v47 = vpack.i.bf16 %v8232_v22, %v8231_v44  ;;  %v8236_v1 = vld [vmem:[%s20314_s0 + $0x6a] sm:$0xff]  ;;  %v8239_v22 = vld [vmem:[%s20314_s0 + $0x92] sm:$0xff] }
  0xfa   :  { %v12734_v40 = vpop.permute.xlu1 %9229 }
  0xfb   :  { %20783 = vst [vmem:[#allocation36_spill] sm:$0xff] %v12734_v40  ;;  %v12742_v16 = vpop.permute.xlu0 %9224 }
  0xfc   :  { %20784 = vst [vmem:[#allocation37_spill] sm:$0xff] %v12742_v16  ;;  %9519 = vrot.lane.b32.xlu1 %v9518_v49, %s11640_s17  ;;  %v8229_v16 = vld [vmem:[%s20314_s0 + $0x1a] sm:$0xff]  ;;  %v8230_v49 = vld [vmem:[%s20314_s0 + $0x22] sm:$0xff] }
  0xfd   :  { %9514 = vrot.lane.b32.xlu0 %v9513_v3, %s11640_s17  ;;  %v9533_v8 = vpack.i.bf16 %v8230_v49, %v8229_v16  ;;  %v9548_v16 = vpack.i.bf16 %v8236_v1, %v8235_v51  ;;  %v8240_v49 = vld [vmem:[%s20314_s0 + $0x9a] sm:$0xff]  ;;  %v8243_v1 = vld [vmem:[%s20314_s0 + $0xc2] sm:$0xff] }
  0xfe   :  { %v12752_v40 = vpop.permute.xlu1 %9239 }
  0xff   :  { %20785 = vst [vmem:[#allocation38_spill] sm:$0xff] %v12752_v40  ;;  %v12760_v3 = vpop.permute.xlu0 %9234 }
 0x100   :  { %20786 = vst [vmem:[#allocation39_spill] sm:$0xff] %v12760_v3  ;;  %9529 = vrot.lane.b32.xlu1 %v9528_v2, %s11640_s17  ;;  %v8233_v3 = vld [vmem:[%s20314_s0 + $0x4a] sm:$0xff]  ;;  %v8234_v2 = vld [vmem:[%s20314_s0 + $0x52] sm:$0xff] }
 0x101   :  { %9524 = vrot.lane.b32.xlu0 %v9523_v23, %s11640_s17  ;;  %v9543_v44 = vpack.i.bf16 %v8234_v2, %v8233_v3  ;;  %v9558_v3 = vpack.i.bf16 %v8240_v49, %v8239_v22  ;;  %v8244_v2 = vld [vmem:[%s20314_s0 + $0xca] sm:$0xff]  ;;  %v8247_v49 = vld [vmem:[%s20314_s0 + $0xf2] sm:$0xff] }
 0x102   :  { %v12770_v40 = vpop.permute.xlu1 %9249 }
 0x103   :  { %20787 = vst [vmem:[#allocation40_spill] sm:$0xff] %v12770_v40  ;;  %v12778_v23 = vpop.permute.xlu0 %9244 }
 0x104   :  { %20788 = vst [vmem:[#allocation41_spill] sm:$0xff] %v12778_v23  ;;  %9539 = vrot.lane.b32.xlu1 %v9538_v47, %s11641_s14  ;;  %v8237_v23 = vld [vmem:[%s20314_s0 + $0x7a] sm:$0xff]  ;;  %v8238_v47 = vld [vmem:[%s20314_s0 + $0x82] sm:$0xff] }
 0x105   :  { %9534 = vrot.lane.b32.xlu0 %v9533_v8, %s11641_s14  ;;  %v9553_v51 = vpack.i.bf16 %v8238_v47, %v8237_v23  ;;  %v9568_v23 = vpack.i.bf16 %v8244_v2, %v8243_v1  ;;  %v8248_v47 = vld [vmem:[%s20314_s0 + $0xfa] sm:$0xff]  ;;  %v8251_v2 = vld [vmem:[%s20314_s0 + $0x122] sm:$0xff] }
 0x106   :  { %v12788_v40 = vpop.permute.xlu1 %9259 }
 0x107   :  { %20789 = vst [vmem:[#allocation42_spill] sm:$0xff] %v12788_v40  ;;  %v12796_v8 = vpop.permute.xlu0 %9254 }
 0x108   :  { %20790 = vst [vmem:[#allocation43_spill] sm:$0xff] %v12796_v8  ;;  %9549 = vrot.lane.b32.xlu1 %v9548_v16, %s11641_s14  ;;  %v8241_v8 = vld [vmem:[%s20314_s0 + $0xaa] sm:$0xff]  ;;  %v8242_v16 = vld [vmem:[%s20314_s0 + $0xb2] sm:$0xff] }
 0x109   :  { %9544 = vrot.lane.b32.xlu0 %v9543_v44, %s11641_s14  ;;  %v9563_v22 = vpack.i.bf16 %v8242_v16, %v8241_v8  ;;  %v9578_v8 = vpack.i.bf16 %v8248_v47, %v8247_v49  ;;  %v8252_v16 = vld [vmem:[%s20314_s0 + $0x12a] sm:$0xff]  ;;  %v8255_v47 = vld [vmem:[%s20314_s0 + $0x152] sm:$0xff] }
 0x10a   :  { %v12806_v40 = vpop.permute.xlu1 %9269 }
 0x10b   :  { %20791 = vst [vmem:[#allocation44_spill] sm:$0xff] %v12806_v40  ;;  %v12814_v44 = vpop.permute.xlu0 %9264 }
 0x10c   :  { %20792 = vst [vmem:[#allocation45_spill] sm:$0xff] %v12814_v44  ;;  %9559 = vrot.lane.b32.xlu1 %v9558_v3, %s11641_s14  ;;  %v8245_v44 = vld [vmem:[%s20314_s0 + $0xda] sm:$0xff]  ;;  %v8246_v3 = vld [vmem:[%s20314_s0 + $0xe2] sm:$0xff] }
 0x10d   :  { %9554 = vrot.lane.b32.xlu0 %v9553_v51, %s11641_s14  ;;  %v9573_v1 = vpack.i.bf16 %v8246_v3, %v8245_v44  ;;  %v9588_v44 = vpack.i.bf16 %v8252_v16, %v8251_v2  ;;  %v8256_v3 = vld [vmem:[%s20314_s0 + $0x15a] sm:$0xff]  ;;  %v8259_v16 = vld [vmem:[%s20314_s0 + $0x182] sm:$0xff] }
 0x10e   :  { %v12824_v40 = vpop.permute.xlu1 %9279 }
 0x10f   :  { %20793 = vst [vmem:[#allocation46_spill] sm:$0xff] %v12824_v40  ;;  %v12832_v51 = vpop.permute.xlu0 %9274 }
 0x110   :  { %20794 = vst [vmem:[#allocation47_spill] sm:$0xff] %v12832_v51  ;;  %9569 = vrot.lane.b32.xlu1 %v9568_v23, %s11641_s14  ;;  %v8249_v51 = vld [vmem:[%s20314_s0 + $0x10a] sm:$0xff]  ;;  %v8250_v23 = vld [vmem:[%s20314_s0 + $0x112] sm:$0xff] }
 0x111   :  { %9564 = vrot.lane.b32.xlu0 %v9563_v22, %s11641_s14  ;;  %v9583_v49 = vpack.i.bf16 %v8250_v23, %v8249_v51  ;;  %v9598_v51 = vpack.i.bf16 %v8256_v3, %v8255_v47  ;;  %v8260_v23 = vld [vmem:[%s20314_s0 + $0x18a] sm:$0xff]  ;;  %v8263_v3 = vld [vmem:[%s20314_s0 + $0x1e2] sm:$0xff] }
 0x112   :  { %v12842_v40 = vpop.permute.xlu1 %9289 }
 0x113   :  { %20795 = vst [vmem:[#allocation48_spill] sm:$0xff] %v12842_v40  ;;  %v12850_v22 = vpop.permute.xlu0 %9284 }
 0x114   :  { %20796 = vst [vmem:[#allocation49_spill] sm:$0xff] %v12850_v22  ;;  %9579 = vrot.lane.b32.xlu1 %v9578_v8, %s11641_s14  ;;  %v8253_v22 = vld [vmem:[%s20314_s0 + $0x13a] sm:$0xff]  ;;  %v8254_v8 = vld [vmem:[%s20314_s0 + $0x142] sm:$0xff] }
 0x115   :  { %9574 = vrot.lane.b32.xlu0 %v9573_v1, %s11641_s14  ;;  %v9593_v2 = vpack.i.bf16 %v8254_v8, %v8253_v22  ;;  %v9608_v22 = vpack.i.bf16 %v8260_v23, %v8259_v16  ;;  %v8264_v8 = vld [vmem:[%s20314_s0 + $0x1ea] sm:$0xff]  ;;  %v8267_v23 = vld [vmem:[%s20314_s0 + $0x212] sm:$0xff] }
 0x116   :  { %v12860_v40 = vpop.permute.xlu1 %9299 }
 0x117   :  { %20797 = vst [vmem:[#allocation50_spill] sm:$0xff] %v12860_v40  ;;  %v12868_v1 = vpop.permute.xlu0 %9294  ;;  %v9161_v40 = vunpack.i.l.bf16 %v12602_v33 }
 0x118   :  { %20798 = vst [vmem:[#allocation51_spill] sm:$0xff] %v12868_v1  ;;  %9589 = vrot.lane.b32.xlu1 %v9588_v44, %s11641_s14  ;;  %v8257_v1 = vld [vmem:[%s20314_s0 + $0x16a] sm:$0xff]  ;;  %v8258_v44 = vld [vmem:[%s20314_s0 + $0x172] sm:$0xff] }
 0x119   :  { %9584 = vrot.lane.b32.xlu0 %v9583_v49, %s11641_s14  ;;  %v9603_v47 = vpack.i.bf16 %v8258_v44, %v8257_v1  ;;  %v9618_v1 = vpack.i.bf16 %v8264_v8, %v8263_v3  ;;  %v8268_v44 = vld [vmem:[%s20314_s0 + $0x21a] sm:$0xff]  ;;  %v8271_v8 = vld [vmem:[%s20314_s0 + $0x242] sm:$0xff] }
 0x11a   :  { %v12878_v56 = vpop.permute.xlu1 %9309 }
 0x11b   :  { %20799 = vst [vmem:[#allocation52_spill] sm:$0xff] %v12878_v56  ;;  %v12886_v49 = vpop.permute.xlu0 %9304 }
 0x11c   :  { %20800 = vst [vmem:[#allocation53_spill] sm:$0xff] %v12886_v49  ;;  %9599 = vrot.lane.b32.xlu1 %v9598_v51, %s11641_s14  ;;  %v8262_v51 = vld [vmem:[%s20314_s0 + $0x1d2] sm:$0xff] }
 0x11d   :  { %9594 = vrot.lane.b32.xlu0 %v9593_v2, %s11641_s14  ;;  %v9613_v16 = vpack.i.bf16 %v8262_v51, %v8261_v45  ;;  %v9628_v45 = vpack.i.bf16 %v8268_v44, %v8267_v23  ;;  %v8272_v51 = vld [vmem:[%s20314_s0 + $0x24a] sm:$0xff]  ;;  %v8275_v44 = vld [vmem:[%s20314_s0 + $0x272] sm:$0xff] }
 0x11e   :  { %v12896_v53 = vpop.permute.xlu1 %9319  ;;  %v8320_v49 = vld [vmem:[%s20314_s0 + $0x170] sm:$0xff] }
 0x11f   :  { %20801 = vst [vmem:[#allocation54_spill] sm:$0xff] %v12896_v53  ;;  %v12904_v2 = vpop.permute.xlu0 %9314  ;;  %v8319_v53 = vld [vmem:[%s20314_s0 + $0x168] sm:$0xff] }
 0x120   :  { %20802 = vst [vmem:[#allocation55_spill] sm:$0xff] %v12904_v2  ;;  %9609 = vrot.lane.b32.xlu1 %v9608_v22, %s11641_s14  ;;  %v8266_v22 = vld [vmem:[%s20314_s0 + $0x202] sm:$0xff]  ;;  %v8902_v2 = vunpack.i.h.bf16 %v12152_v7 }
 0x121   :  { %9604 = vrot.lane.b32.xlu0 %v9603_v47, %s11641_s14  ;;  %v9623_v3 = vpack.i.bf16 %v8266_v22, %v8265_v37  ;;  %v9638_v37 = vpack.i.bf16 %v8272_v51, %v8271_v8  ;;  %v8276_v22 = vld [vmem:[%s20314_s0 + $0x27a] sm:$0xff]  ;;  %v8279_v51 = vld [vmem:[%s20314_s0 + $0x2a2] sm:$0xff] }
 0x122   :  { %v12914_v42 = vpop.permute.xlu1 %9329 }
 0x123   :  { %20803 = vst [vmem:[#allocation56_spill] sm:$0xff] %v12914_v42  ;;  %v12922_v47 = vpop.permute.xlu0 %9324 }
 0x124   :  { %20804 = vst [vmem:[#allocation57_spill] sm:$0xff] %v12922_v47  ;;  %9619 = vrot.lane.b32.xlu1 %v9618_v1, %s11641_s14  ;;  %v8270_v1 = vld [vmem:[%s20314_s0 + $0x232] sm:$0xff] }
 0x125   :  { %9614 = vrot.lane.b32.xlu0 %v9613_v16, %s11641_s14  ;;  %v9633_v23 = vpack.i.bf16 %v8270_v1, %v8269_v29  ;;  %v9648_v29 = vpack.i.bf16 %v8276_v22, %v8275_v44  ;;  %v8280_v1 = vld [vmem:[%s20314_s0 + $0x2aa] sm:$0xff]  ;;  %v8283_v22 = vld [vmem:[%s20314_s0 + $0x2d2] sm:$0xff] }
 0x126   :  { %v12932_v34 = vpop.permute.xlu1 %9339 }
 0x127   :  { %20805 = vst [vmem:[#allocation58_spill] sm:$0xff] %v12932_v34  ;;  %v12940_v16 = vpop.permute.xlu0 %9334  ;;  %v8906_v34 = vunpack.i.l.bf16 %v12126_v60 }
 0x128   :  { %20806 = vst [vmem:[#allocation59_spill] sm:$0xff] %v12940_v16  ;;  %9629 = vrot.lane.b32.xlu1 %v9628_v45, %s11641_s14  ;;  %v8273_v16 = vld [vmem:[%s20314_s0 + $0x25a] sm:$0xff]  ;;  %v8274_v45 = vld [vmem:[%s20314_s0 + $0x262] sm:$0xff] }
 0x129   :  { %9624 = vrot.lane.b32.xlu0 %v9623_v3, %s11641_s14  ;;  %v9643_v8 = vpack.i.bf16 %v8274_v45, %v8273_v16  ;;  %v9658_v16 = vpack.i.bf16 %v8280_v1, %v8279_v51  ;;  %v8284_v45 = vld [vmem:[%s20314_s0 + $0x2da] sm:$0xff]  ;;  %v8287_v1 = vld [vmem:[%s20314_s0 + $0x302] sm:$0xff] }
 0x12a   :  { %v12950_v26 = vpop.permute.xlu1 %9349 }
 0x12b   :  { %20807 = vst [vmem:[#allocation60_spill] sm:$0xff] %v12950_v26  ;;  %v12958_v3 = vpop.permute.xlu0 %9344 }
 0x12c   :  { %20808 = vst [vmem:[#allocation61_spill] sm:$0xff] %v12958_v3  ;;  %9639 = vrot.lane.b32.xlu1 %v9638_v37, %s11641_s14  ;;  %v8277_v3 = vld [vmem:[%s20314_s0 + $0x28a] sm:$0xff]  ;;  %v8278_v37 = vld [vmem:[%s20314_s0 + $0x292] sm:$0xff] }
 0x12d   :  { %9634 = vrot.lane.b32.xlu0 %v9633_v23, %s11641_s14  ;;  %v9653_v44 = vpack.i.bf16 %v8278_v37, %v8277_v3  ;;  %v9668_v3 = vpack.i.bf16 %v8284_v45, %v8283_v22  ;;  %v8288_v37 = vld [vmem:[%s20314_s0 + $0x30a] sm:$0xff]  ;;  %v8291_v45 = vld [vmem:[%s20314_s0 + $0x332] sm:$0xff] }
 0x12e   :  { %v12968_v26 = vpop.permute.xlu1 %9359 }
 0x12f   :  { %20809 = vst [vmem:[#allocation62_spill] sm:$0xff] %v12968_v26  ;;  %v12976_v23 = vpop.permute.xlu0 %9354 }
 0x130   :  { %20810 = vst [vmem:[#allocation63_spill] sm:$0xff] %v12976_v23  ;;  %9649 = vrot.lane.b32.xlu1 %v9648_v29, %s11641_s14  ;;  %v8281_v23 = vld [vmem:[%s20314_s0 + $0x2ba] sm:$0xff]  ;;  %v8282_v29 = vld [vmem:[%s20314_s0 + $0x2c2] sm:$0xff] }
 0x131   :  { %9644 = vrot.lane.b32.xlu0 %v9643_v8, %s11641_s14  ;;  %v9663_v51 = vpack.i.bf16 %v8282_v29, %v8281_v23  ;;  %v9678_v23 = vpack.i.bf16 %v8288_v37, %v8287_v1  ;;  %v8292_v29 = vld [vmem:[%s20314_s0 + $0x33a] sm:$0xff]  ;;  %v8295_v37 = vld [vmem:[%s20314_s0 + $0x48] sm:$0xff] }
 0x132   :  { %v12986_v26 = vpop.permute.xlu1 %9369 }
 0x133   :  { %20811 = vst [vmem:[#allocation64_spill] sm:$0xff] %v12986_v26  ;;  %v12994_v8 = vpop.permute.xlu0 %9364 }
 0x134   :  { %20812 = vst [vmem:[#allocation65_spill] sm:$0xff] %v12994_v8  ;;  %9659 = vrot.lane.b32.xlu1 %v9658_v16, %s11641_s14  ;;  %v8285_v8 = vld [vmem:[%s20314_s0 + $0x2ea] sm:$0xff]  ;;  %v8286_v16 = vld [vmem:[%s20314_s0 + $0x2f2] sm:$0xff] }
 0x135   :  { %9654 = vrot.lane.b32.xlu0 %v9653_v44, %s11641_s14  ;;  %v9673_v22 = vpack.i.bf16 %v8286_v16, %v8285_v8  ;;  %v9688_v8 = vpack.i.bf16 %v8292_v29, %v8291_v45  ;;  %v8296_v16 = vld [vmem:[%s20314_s0 + $0x50] sm:$0xff]  ;;  %v8299_v29 = vld [vmem:[%s20314_s0 + $0x78] sm:$0xff] }
 0x136   :  { %v13004_v26 = vpop.permute.xlu1 %9379 }
 0x137   :  { %20813 = vst [vmem:[#allocation66_spill] sm:$0xff] %v13004_v26  ;;  %v13012_v44 = vpop.permute.xlu0 %9374 }
 0x138   :  { %20814 = vst [vmem:[#allocation67_spill] sm:$0xff] %v13012_v44  ;;  %9669 = vrot.lane.b32.xlu1 %v9668_v3, %s11641_s14  ;;  %v8289_v44 = vld [vmem:[%s20314_s0 + $0x31a] sm:$0xff]  ;;  %v8290_v3 = vld [vmem:[%s20314_s0 + $0x322] sm:$0xff] }
 0x139   :  { %9664 = vrot.lane.b32.xlu0 %v9663_v51, %s11641_s14  ;;  %v9683_v1 = vpack.i.bf16 %v8290_v3, %v8289_v44  ;;  %v9698_v44 = vpack.i.bf16 %v8296_v16, %v8295_v37  ;;  %v8300_v3 = vld [vmem:[%s20314_s0 + $0x80] sm:$0xff]  ;;  %v8303_v16 = vld [vmem:[%s20314_s0 + $0xa8] sm:$0xff] }
 0x13a   :  { %v13022_v26 = vpop.permute.xlu1 %9389 }
 0x13b   :  { %20815 = vst [vmem:[#allocation68_spill] sm:$0xff] %v13022_v26  ;;  %v13030_v51 = vpop.permute.xlu0 %9384 }
 0x13c   :  { %20816 = vst [vmem:[#allocation69_spill] sm:$0xff] %v13030_v51  ;;  %9679 = vrot.lane.b32.xlu1 %v9678_v23, %s11641_s14  ;;  %v8293_v51 = vld [vmem:[%s20314_s0 + $0x30] sm:$0xff]  ;;  %v8294_v23 = vld [vmem:[%s20314_s0 + $0x38] sm:$0xff] }
 0x13d   :  { %9674 = vrot.lane.b32.xlu0 %v9673_v22, %s11641_s14  ;;  %v9693_v45 = vpack.i.bf16 %v8294_v23, %v8293_v51  ;;  %v9708_v51 = vpack.i.bf16 %v8300_v3, %v8299_v29  ;;  %v8304_v23 = vld [vmem:[%s20314_s0 + $0xb0] sm:$0xff]  ;;  %v8307_v3 = vld [vmem:[%s20314_s0 + $0xd8] sm:$0xff] }
 0x13e   :  { %v13040_v26 = vpop.permute.xlu1 %9399 }
 0x13f   :  { %20817 = vst [vmem:[#allocation70_spill] sm:$0xff] %v13040_v26  ;;  %v13048_v22 = vpop.permute.xlu0 %9394 }
 0x140   :  { %20818 = vst [vmem:[#allocation71_spill] sm:$0xff] %v13048_v22  ;;  %9689 = vrot.lane.b32.xlu1 %v9688_v8, %s11641_s14  ;;  %v8297_v22 = vld [vmem:[%s20314_s0 + $0x60] sm:$0xff]  ;;  %v8298_v8 = vld [vmem:[%s20314_s0 + $0x68] sm:$0xff] }
 0x141   :  { %9684 = vrot.lane.b32.xlu0 %v9683_v1, %s11641_s14  ;;  %s11642_s14 = smov 24   ;;  %v9703_v37 = vpack.i.bf16 %v8298_v8, %v8297_v22  ;;  %v9718_v22 = vpack.i.bf16 %v8304_v23, %v8303_v16  ;;  %v8308_v8 = vld [vmem:[%s20314_s0 + $0xe0] sm:$0xff]  ;;  %v8311_v23 = vld [vmem:[%s20314_s0 + $0x108] sm:$0xff] }
 0x142   :  { %v13058_v26 = vpop.permute.xlu1 %9409 }
 0x143   :  { %20819 = vst [vmem:[#allocation72_spill] sm:$0xff] %v13058_v26  ;;  %v13066_v1 = vpop.permute.xlu0 %9404 }
 0x144   :  { %20820 = vst [vmem:[#allocation73_spill] sm:$0xff] %v13066_v1  ;;  %9699 = vrot.lane.b32.xlu1 %v9698_v44, %s11642_s14  ;;  %v8301_v1 = vld [vmem:[%s20314_s0 + $0x90] sm:$0xff]  ;;  %v8302_v44 = vld [vmem:[%s20314_s0 + $0x98] sm:$0xff] }
 0x145   :  { %9694 = vrot.lane.b32.xlu0 %v9693_v45, %s11642_s14  ;;  %v9713_v29 = vpack.i.bf16 %v8302_v44, %v8301_v1  ;;  %v9728_v1 = vpack.i.bf16 %v8308_v8, %v8307_v3  ;;  %v8312_v44 = vld [vmem:[%s20314_s0 + $0x110] sm:$0xff]  ;;  %v8315_v8 = vld [vmem:[%s20314_s0 + $0x138] sm:$0xff] }
 0x146   :  { %v13076_v26 = vpop.permute.xlu1 %9419 }
 0x147   :  { %20821 = vst [vmem:[#allocation74_spill] sm:$0xff] %v13076_v26  ;;  %v13084_v45 = vpop.permute.xlu0 %9414 }
 0x148   :  { %20822 = vst [vmem:[#allocation75_spill] sm:$0xff] %v13084_v45  ;;  %9709 = vrot.lane.b32.xlu1 %v9708_v51, %s11642_s14  ;;  %v8305_v45 = vld [vmem:[%s20314_s0 + $0xc0] sm:$0xff]  ;;  %v8306_v51 = vld [vmem:[%s20314_s0 + $0xc8] sm:$0xff] }
 0x149   :  { %9704 = vrot.lane.b32.xlu0 %v9703_v37, %s11642_s14  ;;  %v9723_v16 = vpack.i.bf16 %v8306_v51, %v8305_v45  ;;  %v9738_v45 = vpack.i.bf16 %v8312_v44, %v8311_v23  ;;  %v8316_v51 = vld [vmem:[%s20314_s0 + $0x140] sm:$0xff]  ;;  %v8896_v23 = vunpack.i.l.bf16 %v12134_v63  ;;  %v8911_v44 = vunpack.i.l.bf16 %v12144_v4 }
 0x14a   :  { %v13094_v26 = vpop.permute.xlu1 %9429  ;;  %v9748_v42 = vpack.i.bf16 %v8316_v51, %v8315_v8  ;;  %v8921_v8 = vunpack.i.l.bf16 %v12156_v10 }
 0x14b   :  { %20823 = vst [vmem:[#allocation76_spill] sm:$0xff] %v13094_v26  ;;  %v13102_v37 = vpop.permute.xlu0 %9424 }
 0x14c   :  { %20824 = vst [vmem:[#allocation77_spill] sm:$0xff] %v13102_v37  ;;  %9719 = vrot.lane.b32.xlu1 %v9718_v22, %s11642_s14  ;;  %v8309_v37 = vld [vmem:[%s20314_s0 + $0xf0] sm:$0xff]  ;;  %v8310_v22 = vld [vmem:[%s20314_s0 + $0xf8] sm:$0xff] }
 0x14d   :  { %9714 = vrot.lane.b32.xlu0 %v9713_v29, %s11642_s14  ;;  %v9733_v3 = vpack.i.bf16 %v8310_v22, %v8309_v37  ;;  %v8314_v37 = vld [vmem:[%s20314_s0 + $0x128] sm:$0xff] }
 0x14e   :  { %v13112_v26 = vpop.permute.xlu1 %9439 }
 0x14f   :  { %20825 = vst [vmem:[#allocation78_spill] sm:$0xff] %v13112_v26  ;;  %v13120_v29 = vpop.permute.xlu0 %9434  ;;  %v8907_v26 = vunpack.i.h.bf16 %v12126_v60  ;;  %v522_v60 = vld [vmem:[%s20314_s0] sm:$0xff] }
 0x150   :  { %20826 = vst [vmem:[#allocation79_spill] sm:$0xff] %v13120_v29  ;;  %9729 = vrot.lane.b32.xlu1 %v9728_v1, %s11642_s14  ;;  %v8313_v1 = vld [vmem:[%s20314_s0 + $0x120] sm:$0xff]  ;;  %v8912_v29 = vunpack.i.h.bf16 %v12144_v4  ;;  %v11461_v4 = vld [vmem:[%s20314_s0 + $0x30] sm:$0xff] }
 0x151   :  { %9724 = vrot.lane.b32.xlu0 %v9723_v16, %s11642_s14  ;;  %v8897_v16 = vunpack.i.h.bf16 %v12134_v63  ;;  %v8901_v63 = vunpack.i.l.bf16 %v12152_v7  ;;  %v11462_v7 = vld [vmem:[%s20314_s0 + $0x38] sm:$0xff] }
 0x152   :  { %v13132_v47 = vpop.permute.xlu1 %9449 }
 0x153   :  { %20827 = vst [vmem:[#allocation80_spill] sm:$0xff] %v13132_v47  ;;  %v13143_v22 = vpop.permute.xlu0 %9444  ;;  %v523_v47 = vld [vmem:[%s20314_s0 + $0x8] sm:$0xff] }
 0x154   :  { %20828 = vst [vmem:[#allocation81_spill] sm:$0xff] %v13143_v22  ;;  %9739 = vrot.lane.b32.xlu1 %v9738_v45, %s11642_s14  ;;  %v9743_v22 = vpack.i.bf16 %v8314_v37, %v8313_v1  ;;  %v13166_v45 = vsel %vm132_vm0, %v11461_v4, %v8906_v34  ;;  %v8317_v1 = vld [vmem:[%s20314_s0 + $0x150] sm:$0xff]  ;;  %v8318_v34 = vld [vmem:[%s20314_s0 + $0x158] sm:$0xff]  ;;  %v13184_v37 = vsel %vm132_vm0, %v522_v60, %v8896_v23 }
 0x155   :  { %9734 = vrot.lane.b32.xlu0 %v9733_v3, %s11642_s14  ;;  %20829 = vst [vmem:[#allocation82_spill] sm:$0xff] %v13166_v45  ;;  %v13172_v3 = vsel %vm132_vm0, %v11462_v7, %v8907_v26  ;;  %20832 = vst [vmem:[#allocation85_spill] sm:$0xff] %v13184_v37  ;;  %v13187_v4 = vsel %vm132_vm0, %v523_v47, %v8897_v16  ;;  %v11463_v26 = vld [vmem:[%s20314_s0 + $0x48] sm:$0xff]  ;;  %v8982_v47 = vunpack.i.h.bf16 %v12264_v62  ;;  %v8981_v16 = vunpack.i.l.bf16 %v12264_v62  ;;  %v8324_v62 = vld [vmem:[%s20314_s0 + $0x1a0] sm:$0xff] }
 0x156   :  { %20830 = vst [vmem:[#allocation83_spill] sm:$0xff] %v13172_v3  ;;  %v13175_v51 = vpop.permute.xlu1 %9459  ;;  %20833 = vst [vmem:[#allocation86_spill] sm:$0xff] %v13187_v4  ;;  %v13193_v7 = vsel %vm132_vm0, %v11463_v26, %v8911_v44  ;;  %v8922_v3 = vunpack.i.h.bf16 %v12156_v10  ;;  %v9758_v60 = vpack.i.bf16 %v8320_v49, %v8319_v53  ;;  %v11465_v10 = vld [vmem:[%s20314_s0 + $0x18] sm:$0xff]  ;;  %v11466_v26 = vld [vmem:[%s20314_s0 + $0x20] sm:$0xff]  ;;  %v9022_v4 = vunpack.i.h.bf16 %v12348_v41 }
 0x157   :  { %20831 = vst [vmem:[#allocation84_spill] sm:$0xff] %v13175_v51  ;;  %20834 = vst [vmem:[#allocation87_spill] sm:$0xff] %v13193_v7  ;;  %v13196_v45 = vpop.permute.xlu0 %9454  ;;  %v11464_v51 = vld [vmem:[%s20314_s0 + $0x50] sm:$0xff]  ;;  %v13211_v44 = vsel %vm132_vm0, %v11465_v10, %v8901_v63  ;;  %v8323_v53 = vld [vmem:[%s20314_s0 + $0x198] sm:$0xff]  ;;  %v8986_v63 = vunpack.i.l.bf16 %v12290_v14  ;;  %v8987_v7 = vunpack.i.h.bf16 %v12290_v14 }
 0x158   :  { %20835 = vst [vmem:[#allocation88_spill] sm:$0xff] %v13196_v45  ;;  %v13202_v23 = vsel %vm132_vm0, %v11464_v51, %v8912_v29  ;;  %9749 = vrot.lane.b32.xlu1 %v9748_v42, %s11642_s14  ;;  %20837 = vst [vmem:[#allocation90_spill] sm:$0xff] %v13211_v44  ;;  %v13217_v29 = vsel %vm132_vm0, %v11466_v26, %v8902_v2  ;;  %v9753_v42 = vpack.i.bf16 %v8318_v34, %v8317_v1  ;;  %v11467_v49 = vld [vmem:[%s20314_s0 + $0x78] sm:$0xff]  ;;  %v8321_v10 = vld [vmem:[%s20314_s0 + $0x180] sm:$0xff] }
 0x159   :  { %20836 = vst [vmem:[#allocation89_spill] sm:$0xff] %v13202_v23  ;;  %20838 = vst [vmem:[#allocation91_spill] sm:$0xff] %v13217_v29  ;;  %9744 = vrot.lane.b32.xlu0 %v9743_v22, %s11642_s14  ;;  %v13231_v2 = vsel %vm132_vm0, %v11467_v49, %v8921_v8  ;;  %v8992_v22 = vunpack.i.h.bf16 %v12288_v12  ;;  %v8991_v1 = vunpack.i.l.bf16 %v12288_v12  ;;  %v8322_v26 = vld [vmem:[%s20314_s0 + $0x188] sm:$0xff]  ;;  %v11468_v8 = vld [vmem:[%s20314_s0 + $0x80] sm:$0xff]  ;;  %v13261_v23 = vsel %vm132_vm0, %v12318_v27, %v8982_v47 }
 0x15a   :  { %20839 = vst [vmem:[#allocation92_spill] sm:$0xff] %v13231_v2  ;;  %v13236_v34 = vpop.permute.xlu1 %9469  ;;  %v13248_v49 = vsel %vm132_vm0, %v11468_v8, %v8922_v3  ;;  %v13257_v2 = vsel %vm132_vm0, %v12313_v25, %v8981_v16  ;;  %v9768_v3 = vpack.i.bf16 %v8324_v62, %v8323_v53  ;;  %v9002_v8 = vunpack.i.h.bf16 %v12300_v20  ;;  %v8327_v25 = vld [vmem:[%s20314_s0 + $0x1f8] sm:$0xff]  ;;  %v8328_v14 = vld [vmem:[%s20314_s0 + $0x200] sm:$0xff]  ;;  %v8326_v53 = vld [vmem:[%s20314_s0 + $0x1e8] sm:$0xff] }
 0x15b   :  { %20840 = vst [vmem:[#allocation93_spill] sm:$0xff] %v13236_v34  ;;  %20841 = vst [vmem:[#allocation94_spill] sm:$0xff] %v13248_v49  ;;  %v13253_v45 = vpop.permute.xlu0 %9464  ;;  %v9001_v51 = vunpack.i.l.bf16 %v12300_v20  ;;  %v8996_v12 = vunpack.i.l.bf16 %v12308_v24  ;;  %v9763_v49 = vpack.i.bf16 %v8322_v26, %v8321_v10  ;;  %v13277_v27 = vsel %vm132_vm0, %v12337_v36, %v8991_v1  ;;  %v11469_v36 = vld [vmem:[%s20314_s0 + $0x1e0] sm:$0xff]  ;;  %v11470_v10 = vld [vmem:[%s20314_s0 + $0x1e8] sm:$0xff] }
 0x15c   :  { %20842 = vst [vmem:[#allocation95_spill] sm:$0xff] %v13253_v45  ;;  %9759 = vrot.lane.b32.xlu1 %v9758_v60, %s11642_s14  ;;  %v13281_v20 = vsel %vm132_vm0, %v12342_v38, %v8992_v22  ;;  %v8997_v47 = vunpack.i.h.bf16 %v12308_v24  ;;  %v9011_v16 = vunpack.i.l.bf16 %v12324_v31  ;;  %v13297_v38 = vsel %vm132_vm0, %v11469_v36, %v8986_v63  ;;  %v11472_v37 = vld [vmem:[%s20314_s0 + $0x230] sm:$0xff] }
 0x15d   :  { %9754 = vrot.lane.b32.xlu0 %v9753_v42, %s11642_s14  ;;  %v8325_v42 = vld [vmem:[%s20314_s0 + $0x1e0] sm:$0xff]  ;;  %v9012_v24 = vunpack.i.h.bf16 %v12324_v31  ;;  %v9007_v62 = vunpack.i.h.bf16 %v12332_v35  ;;  %v9006_v22 = vunpack.i.l.bf16 %v12332_v35  ;;  %v13308_v26 = vsel %vm132_vm0, %v11470_v10, %v8987_v7  ;;  %v11471_v35 = vld [vmem:[%s20314_s0 + $0x228] sm:$0xff] }
 0x15e   :  { %v13285_v60 = vpop.permute.xlu1 %9479  ;;  %v9021_v63 = vunpack.i.l.bf16 %v12348_v41  ;;  %v9778_v31 = vpack.i.bf16 %v8328_v14, %v8327_v25  ;;  %v13317_v36 = vsel %vm132_vm0, %v11471_v35, %v9001_v51  ;;  %v13323_v7 = vsel %vm132_vm0, %v11472_v37, %v9002_v8  ;;  %v11473_v41 = vld [vmem:[%s20314_s0 + $0x210] sm:$0xff]  ;;  %v8331_v51 = vld [vmem:[%s20314_s0 + $0x228] sm:$0xff]  ;;  %v11474_v37 = vld [vmem:[%s20314_s0 + $0x218] sm:$0xff] }
 0x15f   :  { %20843 = vst [vmem:[#allocation96_spill] sm:$0xff] %v13285_v60  ;;  %v13302_v1 = vpop.permute.xlu0 %9474  ;;  %v9773_v25 = vpack.i.bf16 %v8326_v53, %v8325_v42  ;;  %v8332_v14 = vld [vmem:[%s20314_s0 + $0x230] sm:$0xff]  ;;  %v13342_v8 = vsel %vm132_vm0, %v11474_v37, %v8997_v47  ;;  %v9017_v42 = vunpack.i.h.bf16 %v12356_v48  ;;  %v9016_v53 = vunpack.i.l.bf16 %v12356_v48  ;;  %v8330_v47 = vld [vmem:[%s20314_s0 + $0x218] sm:$0xff]  ;;  %v11477_v48 = vld [vmem:[%s20314_s0 + $0x240] sm:$0xff] }
 0x160   :  { %20844 = vst [vmem:[#allocation97_spill] sm:$0xff] %v13302_v1  ;;  %9769 = vrot.lane.b32.xlu1 %v9768_v3, %s11642_s14  ;;  %v13329_v3 = vsel %vm132_vm0, %v11473_v41, %v8996_v12  ;;  %v8329_v35 = vld [vmem:[%s20314_s0 + $0x210] sm:$0xff]  ;;  %v11476_v41 = vld [vmem:[%s20314_s0 + $0x260] sm:$0xff]  ;;  %v13370_v37 = vsel %vm132_vm0, %v11477_v48, %v9006_v22  ;;  %v9031_v44 = vunpack.i.l.bf16 %v12366_v55  ;;  %v9047_v45 = vunpack.i.h.bf16 %v12410_v28 }
 0x161   :  { %9764 = vrot.lane.b32.xlu0 %v9763_v49, %s11642_s14  ;;  %v11475_v49 = vld [vmem:[%s20314_s0 + $0x258] sm:$0xff]  ;;  %v11480_v22 = vld [vmem:[%s20314_s0 + $0x290] sm:$0xff]  ;;  %v11484_v1 = vld [vmem:[%s20314_s0 + $0x2c0] sm:$0xff]  ;;  %v9151_v34 = vunpack.i.l.bf16 %v12584_v52 }
 0x162   :  { %v13348_v12 = vsel %vm132_vm0, %v11475_v49, %v9011_v16  ;;  %v13352_v10 = vpop.permute.xlu1 %9489  ;;  %v13364_v16 = vsel %vm132_vm0, %v11476_v41, %v9012_v24  ;;  %v11478_v49 = vld [vmem:[%s20314_s0 + $0x248] sm:$0xff]  ;;  %v13391_v48 = vsel %vm132_vm0, %v11480_v22, %v9022_v4  ;;  %v8335_v4 = vld [vmem:[%s20314_s0 + $0x258] sm:$0xff] }
 0x163   :  { %20845 = vst [vmem:[#allocation98_spill] sm:$0xff] %v13352_v10  ;;  %v13376_v29 = vsel %vm132_vm0, %v11478_v49, %v9007_v62  ;;  %v13379_v18 = vpop.permute.xlu0 %9484  ;;  %v11479_v24 = vld [vmem:[%s20314_s0 + $0x288] sm:$0xff]  ;;  %v9032_v62 = vunpack.i.h.bf16 %v12366_v55  ;;  %v9788_v49 = vpack.i.bf16 %v8332_v14, %v8331_v51  ;;  %v9041_v10 = vunpack.i.l.bf16 %v12384_v5  ;;  %v8336_v55 = vld [vmem:[%s20314_s0 + $0x260] sm:$0xff]  ;;  %v11483_v22 = vld [vmem:[%s20314_s0 + $0x2b8] sm:$0xff] }
 0x164   :  { %20846 = vst [vmem:[#allocation99_spill] sm:$0xff] %v13379_v18  ;;  %v13385_v41 = vsel %vm132_vm0, %v11479_v24, %v9021_v63  ;;  %9779 = vrot.lane.b32.xlu1 %v9778_v31, %s11642_s14  ;;  %v9026_v18 = vunpack.i.l.bf16 %v12374_v59  ;;  %v9783_v63 = vpack.i.bf16 %v8330_v47, %v8329_v35  ;;  %v11481_v31 = vld [vmem:[%s20314_s0 + $0x270] sm:$0xff]  ;;  %v9042_v14 = vunpack.i.h.bf16 %v12384_v5  ;;  %v8333_v24 = vld [vmem:[%s20314_s0 + $0x240] sm:$0xff] }
 0x165   :  { %9774 = vrot.lane.b32.xlu0 %v9773_v25, %s11642_s14  ;;  %v13409_v59 = vsel %vm132_vm0, %v11481_v31, %v9016_v53  ;;  %v11482_v25 = vld [vmem:[%s20314_s0 + $0x278] sm:$0xff]  ;;  %v9036_v35 = vunpack.i.l.bf16 %v12392_v9  ;;  %v8334_v53 = vld [vmem:[%s20314_s0 + $0x248] sm:$0xff]  ;;  %v9037_v5 = vunpack.i.h.bf16 %v12392_v9  ;;  %v9052_v31 = vunpack.i.h.bf16 %v12402_v19 }
 0x166   :  { %v13415_v51 = vsel %vm132_vm0, %v11482_v25, %v9017_v42  ;;  %v13419_v47 = vpop.permute.xlu1 %9499  ;;  %v13431_v42 = vsel %vm132_vm0, %v11483_v22, %v9031_v44  ;;  %v9051_v25 = vunpack.i.l.bf16 %v12402_v19  ;;  %v13442_v60 = vsel %vm132_vm0, %v11484_v1, %v9032_v62  ;;  %v11485_v19 = vld [vmem:[%s20314_s0 + $0x2a0] sm:$0xff] }
 0x167   :  { %20847 = vst [vmem:[#allocation100_spill] sm:$0xff] %v13419_v47  ;;  %v13436_v47 = vpop.permute.xlu0 %9494  ;;  %v9046_v44 = vunpack.i.l.bf16 %v12410_v28  ;;  %v9798_v9 = vpack.i.bf16 %v8336_v55, %v8335_v4  ;;  %v13451_v22 = vsel %vm132_vm0, %v11485_v19, %v9026_v18  ;;  %v11487_v28 = vld [vmem:[%s20314_s0 + $0x2e8] sm:$0xff]  ;;  %v8340_v4 = vld [vmem:[%s20314_s0 + $0x290] sm:$0xff] }
 0x168   :  { %20848 = vst [vmem:[#allocation101_spill] sm:$0xff] %v13436_v47  ;;  %9789 = vrot.lane.b32.xlu1 %v9788_v49, %s11642_s14  ;;  %v11486_v47 = vld [vmem:[%s20314_s0 + $0x2a8] sm:$0xff]  ;;  %v13463_v62 = vsel %vm132_vm0, %v11487_v28, %v9041_v10  ;;  %v9793_v49 = vpack.i.bf16 %v8334_v53, %v8333_v24  ;;  %v11489_v10 = vld [vmem:[%s20314_s0 + $0x2d0] sm:$0xff]  ;;  %v9141_v24 = vunpack.i.l.bf16 %v12566_v46  ;;  %v11490_v28 = vld [vmem:[%s20314_s0 + $0x2d8] sm:$0xff] }
 0x169   :  { %v13457_v1 = vsel %vm132_vm0, %v11486_v47, %v9027_v13  ;;  %9784 = vrot.lane.b32.xlu0 %v9783_v63, %s11642_s14  ;;  %v8339_v18 = vld [vmem:[%s20314_s0 + $0x288] sm:$0xff]  ;;  %v11488_v13 = vld [vmem:[%s20314_s0 + $0x2f0] sm:$0xff]  ;;  %v13482_v63 = vsel %vm132_vm0, %v11489_v10, %v9036_v35  ;;  %v9142_v47 = vunpack.i.h.bf16 %v12566_v46  ;;  %v13498_v35 = vsel %vm132_vm0, %v11490_v28, %v9037_v5  ;;  %v11491_v46 = vld [vmem:[%s20314_s0 + $0x318] sm:$0xff] }
 0x16a   :  { %v13476_v55 = vsel %vm132_vm0, %v11488_v13, %v9042_v14  ;;  %v13486_v53 = vpop.permute.xlu1 %9509  ;;  %v8337_v19 = vld [vmem:[%s20314_s0 + $0x270] sm:$0xff]  ;;  %v8338_v14 = vld [vmem:[%s20314_s0 + $0x278] sm:$0xff]  ;;  %v13504_v13 = vsel %vm132_vm0, %v11491_v46, %v9051_v25  ;;  %v11492_v10 = vld [vmem:[%s20314_s0 + $0x320] sm:$0xff] }
 0x16b   :  { %20849 = vst [vmem:[#allocation102_spill] sm:$0xff] %v13486_v53  ;;  %v13510_v53 = vsel %vm132_vm0, %v11492_v10, %v9052_v31  ;;  %v13513_v56 = vpop.permute.xlu0 %9504  ;;  %v11493_v5 = vld [vmem:[%s20314_s0 + $0x300] sm:$0xff]  ;;  %v11494_v25 = vld [vmem:[%s20314_s0 + $0x308] sm:$0xff]  ;;  %v9152_v31 = vunpack.i.h.bf16 %v12584_v52  ;;  %v9808_v10 = vpack.i.bf16 %v8340_v4, %v8339_v18 }
 0x16c   :  { %20850 = vst [vmem:[#allocation103_spill] sm:$0xff] %v13513_v56  ;;  %v13519_v28 = vsel %vm132_vm0, %v11493_v5, %v9046_v44  ;;  %v13525_v46 = vsel %vm132_vm0, %v11494_v25, %v9047_v45  ;;  %9799 = vrot.lane.b32.xlu1 %v9798_v9, %s11642_s14  ;;  %v9147_v56 = vunpack.i.h.bf16 %v12592_v57  ;;  %v9803_v44 = vpack.i.bf16 %v8338_v14, %v8337_v19  ;;  %v8343_v5 = vld [vmem:[%s20314_s0 + $0x2b8] sm:$0xff]  ;;  %v8344_v52 = vld [vmem:[%s20314_s0 + $0x2c0] sm:$0xff]  ;;  %v8342_v19 = vld [vmem:[%s20314_s0 + $0x2a8] sm:$0xff] }
 0x16d   :  { %9794 = vrot.lane.b32.xlu0 %v9793_v49, %s11642_s14  ;;  %v13541_v45 = vsel %vm3147_vm1, %v13257_v2, %v9141_v24  ;;  %v13545_v57 = vsel %vm3147_vm1, %v13261_v23, %v9142_v47  ;;  %v9162_v9 = vunpack.i.h.bf16 %v12602_v33  ;;  %v9156_v49 = vunpack.i.l.bf16 %v12614_v17  ;;  %v8341_v4 = vld [vmem:[%s20314_s0 + $0x2a0] sm:$0xff] }
 0x16e   :  { %v13549_v18 = vpop.permute.xlu1 %9519  ;;  %v13559_v2 = vsel %vm3147_vm1, %v13277_v27, %v9151_v34  ;;  %v9157_v23 = vunpack.i.h.bf16 %v12614_v17  ;;  %v9172_v33 = vunpack.i.h.bf16 %v12626_v58  ;;  %v9171_v47 = vunpack.i.l.bf16 %v12626_v58 }
 0x16f   :  { %20851 = vst [vmem:[#allocation104_spill] sm:$0xff] %v13549_v18  ;;  %v13564_v24 = vpop.permute.xlu0 %9514  ;;  %v13568_v14 = vsel %vm3147_vm1, %v13281_v20, %v9152_v31  ;;  %v9167_v25 = vunpack.i.h.bf16 %v12634_v6  ;;  %v9166_v18 = vunpack.i.l.bf16 %v12634_v6  ;;  %v9818_v34 = vpack.i.bf16 %v8344_v52, %v8343_v5  ;;  %v8347_v6 = vld [vmem:[%s20314_s0 + $0x2e8] sm:$0xff]  ;;  %v8345_v31 = vld [vmem:[%s20314_s0 + $0x2d0] sm:$0xff]  ;;  %v124_v5 = vld [vmem:[%s20315_s1] sm:$0x3] }
 0x170   :  { %20852 = vst [vmem:[#allocation105_spill] sm:$0xff] %v13564_v24  ;;  %9809 = vrot.lane.b32.xlu1 %v9808_v10, %s11642_s14  ;;  %v13575_v17 = vsel %vm3147_vm1, %v13297_v38, %v9146_v21  ;;  %v13579_v58 = vsel %vm3147_vm1, %v13308_v26, %v9147_v56  ;;  %v13583_v27 = vsel %vm3147_vm1, %v13317_v36, %v9161_v40  ;;  %v8348_v21 = vld [vmem:[%s20314_s0 + $0x2f0] sm:$0xff]  ;;  %v9182_v40 = vunpack.i.h.bf16 %v12644_v61  ;;  %v8346_v10 = vld [vmem:[%s20314_s0 + $0x2d8] sm:$0xff] }
 0x171   :  { %9804 = vrot.lane.b32.xlu0 %v9803_v44, %s11642_s14  ;;  %v9813_v20 = vpack.i.bf16 %v8342_v19, %v8341_v4  ;;  %v13594_v38 = vsel %vm3147_vm1, %v13323_v7, %v9162_v9  ;;  %v13598_v56 = vsel %vm3147_vm1, %v13329_v3, %v9156_v49  ;;  %v9181_v26 = vunpack.i.l.bf16 %v12644_v61  ;;  %8877 = vmatprep.subr.msk.bf16.mxu1 %vm229_vm2, %v124_v5  ;;  %v13932_v24 = vld [vmem:[%s20314_s0 + $0x169] sm:$0xff] }
 0x172   :  { %v13602_v36 = vpop.permute.xlu1 %9529  ;;  %v13612_v7 = vsel %vm3147_vm1, %v13342_v8, %v9157_v23  ;;  %v13616_v3 = vsel %vm3147_vm1, %v13348_v12, %v9171_v47  ;;  %v13620_v61 = vsel %vm3147_vm1, %v13364_v16, %v9172_v33  ;;  %v13629_v52 = vsel %vm3147_vm1, %v13370_v37, %v9166_v18  ;;  %v13644_v37 = vld [vmem:[%s20314_s0 + $0x318] sm:$0xff]  ;;  %v13665_v47 = vld [vmem:[%s20314_s0 + $0x300] sm:$0xff]  ;;  %8876 = vmatprep.subr.msk.bf16.mxu0 %vm229_vm2, %v124_v5 }
 0x173   :  { %20853 = vst [vmem:[#allocation106_spill] sm:$0xff] %v13602_v36  ;;  %v13622_v44 = vpop.permute.xlu0 %9524  ;;  %v13633_v8 = vsel %vm3147_vm1, %v13376_v29, %v9167_v25  ;;  %v9828_v12 = vpack.i.bf16 %v8348_v21, %v8347_v6  ;;  %v231_v16 = vsel %vm229_vm2, %v124_v5, 0  ;;  %v9177_v9 = vunpack.i.h.bf16 %v12652_v32  ;;  %v8352_v29 = vld [vmem:[%s20314_s0 + $0x320] sm:$0xff]  ;;  %20870 = vst [vmem:[#allocation121_spill] sm:$0xff] %v13932_v24 }
 0x174   :  { %20854 = vst [vmem:[#allocation107_spill] sm:$0xff] %v13622_v44  ;;  %9819 = vrot.lane.b32.xlu1 %v9818_v34, %s11642_s14  ;;  %v9176_v49 = vunpack.i.l.bf16 %v12652_v32  ;;  %v9823_v4 = vpack.i.bf16 %v8346_v10, %v8345_v31  ;;  %8875 = vmatpush3.bf16.msra.mxu1 %v231_v16  ;;  %v108_v18 = vpack.c.bf16 %v12612_v50, %v12607_v11  ;;  %v9191_v23 = vunpack.i.l.bf16 %v12662_v39  ;;  %v13670_v11 = vld [vmem:[%s20314_s0 + $0x308] sm:$0xff]  ;;  %v13699_v10 = vld [vmem:[%s20314_s0 + $0x350] sm:$0xff] }
 0x175   :  { %9814 = vrot.lane.b32.xlu0 %v9813_v20, %s11642_s14  ;;  %v13653_v19 = vsel %vm3147_vm1, %v13385_v41, %v9181_v26  ;;  %v13657_v32 = vsel %vm3147_vm1, %v13391_v48, %v9182_v40  ;;  %v11495_v50 = vld [vmem:[%s20314_s0 + $0x1e1] sm:$0xff]  ;;  %v11496_v41 = vld [vmem:[%s20314_s0 + $0x1e9] sm:$0xff]  ;;  %v9192_v25 = vunpack.i.h.bf16 %v12662_v39  ;;  %v9187_v34 = vunpack.i.h.bf16 %v12670_v30  ;;  %8665 = vmatpush3.bf16.msra.mxu0 %v231_v16 }
 0x176   :  { %v13660_v33 = vpop.permute.xlu1 %9539  ;;  %v109_v48 = vpack.c.bf16 %v11496_v41, %v11495_v50  ;;  %v9186_v20 = vunpack.i.l.bf16 %v12670_v30  ;;  %v9201_v6 = vunpack.i.l.bf16 %v12680_v15  ;;  %8698 = vmatprep.mubr.msk.bf16.mxu1 %vm132_vm0, %v108_v18  ;;  %v9202_v40 = vunpack.i.h.bf16 %v12680_v15  ;;  %v13694_v30 = vld [vmem:[%s20314_s0 + $0x348] sm:$0xff]  ;;  %v13704_v15 = vld [vmem:[%s20314_s0 + $0x330] sm:$0xff] }
 0x177   :  { %20855 = vst [vmem:[#allocation108_spill] sm:$0xff] %v13660_v33  ;;  %v13683_v21 = vpop.permute.xlu0 %9534  ;;  %v9197_v26 = vunpack.i.h.bf16 %v12688_v54  ;;  %v9196_v31 = vunpack.i.l.bf16 %v12688_v54  ;;  %v9838_v39 = vpack.i.bf16 %v8352_v29, %v13644_v37  ;;  %v13709_v54 = vsel %vm3147_vm1, %v13409_v59, %v9176_v49  ;;  %v13719_v37 = vld [vmem:[%s20314_s0 + $0x338] sm:$0xff]  ;;  %v13724_v29 = vld [vmem:[%s20314_s0 + $0x49] sm:$0xff]  ;;  %v13903_v36 = vld [vmem:[%s20314_s0 + $0x141] sm:$0xff] }
 0x178   :  { %20856 = vst [vmem:[#allocation109_spill] sm:$0xff] %v13683_v21  ;;  %9829 = vrot.lane.b32.xlu1 %v9828_v12, %s11642_s14  ;;  %8699 = vmatmul.mubr.msk.bf16.vlgmr.msra.gmra.mxu1 %vm132_vm0, %v109_v48  ;;  %v9212_v5 = vunpack.i.h.bf16 %v12698_v0  ;;  %v9211_v12 = vunpack.i.l.bf16 %v12698_v0  ;;  %v9833_v16 = vpack.i.bf16 %v13670_v11, %v13665_v47  ;;  %v13729_v59 = vld [vmem:[%s20314_s0 + $0x51] sm:$0xff]  ;;  %v13733_v0 = vsel %vm3147_vm1, %v13415_v51, %v9177_v9  ;;  %v13751_v51 = vld [vmem:[%s20314_s0 + $0x39] sm:$0xff] }
 0x179   :  { %9824 = vrot.lane.b32.xlu0 %v9823_v4, %s11642_s14  ;;  %v13737_v49 = vsel %vm3147_vm1, %v13431_v42, %v9191_v23  ;;  %v9207_v4 = vunpack.i.h.bf16 %v12706_v43  ;;  %v9206_v18 = vunpack.i.l.bf16 %v12706_v43  ;;  %v13746_v11 = vld [vmem:[%s20314_s0 + $0x31] sm:$0xff]  ;;  %v13756_v42 = vld [vmem:[%s20314_s0 + $0x79] sm:$0xff]  ;;  %v13761_v43 = vld [vmem:[%s20314_s0 + $0x81] sm:$0xff]  ;;  %v13765_v9 = vsel %vm3147_vm1, %v13442_v60, %v9192_v25 }
 0x17a   :  { %v13741_v47 = vpop.permute.xlu1 %9549  ;;  %v13769_v23 = vsel %vm3147_vm1, %v13451_v22, %v9186_v20  ;;  %v13773_v50 = vsel %vm3147_vm1, %v13457_v1, %v9187_v34  ;;  %v13777_v41 = vsel %vm3147_vm1, %v13463_v62, %v9201_v6  ;;  %v13789_v60 = vld [vmem:[%s20314_s0 + $0x69] sm:$0xff]  ;;  %v13799_v1 = vld [vmem:[%s20314_s0 + $0xb1] sm:$0xff]  ;;  %v13809_v25 = vld [vmem:[%s20314_s0 + $0x99] sm:$0xff]  ;;  %v13813_v34 = vsel %vm3147_vm1, %v13476_v55, %v9202_v40 }
 0x17b   :  { %20857 = vst [vmem:[#allocation110_spill] sm:$0xff] %v13741_v47  ;;  %v13779_v48 = vpop.permute.xlu0 %9544  ;;  %v13784_v47 = vld [vmem:[%s20314_s0 + $0x61] sm:$0xff]  ;;  %v13794_v22 = vld [vmem:[%s20314_s0 + $0xa9] sm:$0xff]  ;;  %v13804_v62 = vld [vmem:[%s20314_s0 + $0x91] sm:$0xff]  ;;  %v13817_v20 = vsel %vm3147_vm1, %v13482_v63, %v9196_v31  ;;  %v13821_v6 = vsel %vm3147_vm1, %v13498_v35, %v9197_v26  ;;  %v13858_v31 = vsel %vm3147_vm1, %v13504_v13, %v9211_v12  ;;  %v13890_v12 = vsel %vm3147_vm1, %v13519_v28, %v9206_v18 }
 0x17c   :  { %20858 = vst [vmem:[#allocation111_spill] sm:$0xff] %v13779_v48  ;;  %9839 = vrot.lane.b32.xlu1 %v9838_v39, %s11642_s14  ;;  %v9848_v48 = vpack.i.bf16 %v13699_v10, %v13694_v30  ;;  %v13829_v21 = vld [vmem:[%s20314_s0 + $0xd9] sm:$0xff]  ;;  %v13834_v55 = vld [vmem:[%s20314_s0 + $0xe1] sm:$0xff]  ;;  %v13844_v35 = vld [vmem:[%s20314_s0 + $0xc9] sm:$0xff]  ;;  %v13862_v39 = vsel %vm3147_vm1, %v13510_v53, %v9212_v5  ;;  %v9843_v30 = vpack.i.bf16 %v13719_v37, %v13704_v15 }
 0x17d   :  { %v13839_v63 = vld [vmem:[%s20314_s0 + $0xc1] sm:$0xff]  ;;  %v13849_v40 = vld [vmem:[%s20314_s0 + $0x109] sm:$0xff]  ;;  %v13854_v26 = vld [vmem:[%s20314_s0 + $0x111] sm:$0xff]  ;;  %20860 = vst [vmem:[#allocation113_spill] sm:$0xff] %v13858_v31  ;;  %9834 = vrot.lane.b32.xlu0 %v9833_v16, %s11642_s14  ;;  %v13894_v16 = vsel %vm3147_vm1, %v13525_v46, %v9207_v4  ;;  %v9858_v44 = vpack.i.bf16 %v13729_v59, %v13724_v29 }
 0x17e   :  { %20859 = vst [vmem:[#allocation112_spill] sm:$0xff] %v13849_v40  ;;  %20861 = vst [vmem:[#allocation114_spill] sm:$0xff] %v13862_v39  ;;  %v13870_v10 = vld [vmem:[%s20314_s0 + $0xf1] sm:$0xff]  ;;  %v13875_v33 = vld [vmem:[%s20314_s0 + $0xf9] sm:$0xff]  ;;  %v13896_v37 = vpop.permute.xlu1 %9559 }
 0x17f   :  { %20862 = vst [vmem:[#allocation115_spill] sm:$0xff] %v13870_v10  ;;  %v13880_v53 = vld [vmem:[%s20314_s0 + $0x139] sm:$0xff]  ;;  %v11498_v15 = vld [vmem:[%s20314_s0 + $0x201] sm:$0xff]  ;;  %20863 = vst [vmem:[#allocation116_spill] sm:$0xff] %v13890_v12 }
 0x180   :  { %v11497_v13 = vld [vmem:[%s20314_s0 + $0x1f9] sm:$0xff]  ;;  %20864 = vst [vmem:[#allocation117_spill] sm:$0xff] %v13894_v16  ;;  %20865 = vst [vmem:[#allocation118_spill] sm:$0xff] %v13896_v37  ;;  %v13913_v28 = vld [vmem:[%s20314_s0 + $0x129] sm:$0xff]  ;;  %v13923_v37 = vpop.permute.xlu0 %9554  ;;  %v9853_v16 = vpack.i.bf16 %v13751_v51, %v13746_v11  ;;  %9849 = vrot.lane.b32.xlu1 %v9848_v48, %s11642_s14 }
 0x181   :  { %v110_v5 = vpack.c.bf16 %v11498_v15, %v11497_v13  ;;  %v13908_v13 = vld [vmem:[%s20314_s0 + $0x121] sm:$0xff]  ;;  %20867 = vst [vmem:[#allocation120_spill] sm:$0xff] %v13913_v28  ;;  %v11499_v46 = vld [vmem:[%s20314_s0 + $0x211] sm:$0xff]  ;;  %v11500_v29 = vld [vmem:[%s20314_s0 + $0x219] sm:$0xff]  ;;  %9844 = vrot.lane.b32.xlu0 %v9843_v30, %s11642_s14 }
 0x182   :  { %20866 = vst [vmem:[#allocation119_spill] sm:$0xff] %v13908_v13  ;;  %v111_v59 = vpack.c.bf16 %v11500_v29, %v11499_v46  ;;  %v20868_v4 = vld [vmem:[#allocation50_spill] sm:$0xff]  ;;  %v11453_v29 = vld [vmem:[%s20316_s3 + $0x10] ss:$0 sps:$4 sm:$0x33]  }
 0x183   :  { %v9302_v18 = vunpack.i.h.bf16 %v20868_v4  ;;  %v9301_v15 = vunpack.i.l.bf16 %v20868_v4  ;;  %20869 = vst [vmem:[#allocation50_spill] sm:$0xff] %v13923_v37  ;;  %v13937_v46 = vld [vmem:[%s20314_s0 + $0x171] sm:$0xff]  ;;  %8702 = vmatprep.mubr.msk.bf16.mxu1 %vm132_vm0, %v110_v5  ;;  %8878 = vmatprep.subr.msk.bf16.mxu1 %vm229_vm2, %v11453_v29  ;;  %v3759_v30 = vsel %vm229_vm2, %v11453_v29, 0  ;;  %v20875_v5 = vld [vmem:[#allocation52_spill] sm:$0xff]  ;;  %v13973_v4 = vpop.permute.xlu1 %9569  ;;  %v14043_v13 = vld [vmem:[%s20314_s0 + $0x1f9] sm:$0xff]  ;;  %vm7482_vm2 = vcmask 588800  }
 0x184   :  { %20871 = vst [vmem:[#allocation122_spill] sm:$0xff] %v13937_v46  ;;  %8703 = vmatmul.mubr.msk.bf16.gmra.mxu1 %vm132_vm0, %v111_v59  ;;  %v13962_v12 = vld [vmem:[%s20314_s0 + $0x151] sm:$0xff]  ;;  %v13967_v59 = vld [vmem:[%s20314_s0 + $0x159] sm:$0xff]  ;;  %v9312_v37 = vunpack.i.h.bf16 %v20875_v5  ;;  %v9311_v51 = vunpack.i.l.bf16 %v20875_v5  ;;  %20876 = vst [vmem:[#allocation52_spill] sm:$0xff] %v13973_v4  ;;  %v13988_v5 = vpop.permute.xlu0 %9564  ;;  %9859 = vrot.lane.b32.xlu1 %v9858_v44, %s11643_s12 }
 0x185   :  { %20873 = vst [vmem:[#allocation123_spill] sm:$0xff] %v13962_v12  ;;  %20874 = vst [vmem:[#allocation124_spill] sm:$0xff] %v13967_v59  ;;  %8731 = vmatpush3.bf16.msra.mxu1 %v3759_v30  ;;  %v13981_v39 = vsel %vm3212_vm3, %v13541_v45, %v9301_v15  ;;  %v13985_v29 = vsel %vm3212_vm3, %v13545_v57, %v9302_v18  ;;  %v20877_v31 = vld [vmem:[#allocation53_spill] sm:$0xff]  ;;  %v20879_v10 = vld [vmem:[#allocation54_spill] sm:$0xff]  ;;  %9854 = vrot.lane.b32.xlu0 %v9853_v16, %s11643_s12 }
 0x186   :  { %v9306_v40 = vunpack.i.l.bf16 %v20877_v31  ;;  %20878 = vst [vmem:[#allocation53_spill] sm:$0xff] %v13988_v5  ;;  %v9307_v48 = vunpack.i.h.bf16 %v20877_v31  ;;  %v9322_v11 = vunpack.i.h.bf16 %v20879_v10  ;;  %v14002_v18 = vld [vmem:[%s20314_s0 + $0x199] sm:$0xff]  ;;  %v9321_v15 = vunpack.i.l.bf16 %v20879_v10  ;;  %v14011_v44 = vld [vmem:[%s20314_s0 + $0x1a1] sm:$0xff]  ;;  %v14021_v10 = vld [vmem:[%s20314_s0 + $0x189] sm:$0xff] }
 0x187   :  { %v20880_v30 = vld [vmem:[#allocation55_spill] sm:$0xff]  ;;  %v11502_v16 = vld [vmem:[%s20314_s0 + $0x231] sm:$0xff]  ;;  %v14031_v5 = vsel %vm3212_vm3, %v13559_v2, %v9311_v51  ;;  %v14035_v12 = vsel %vm3212_vm3, %v13568_v14, %v9312_v37  ;;  %v20883_v59 = vld [vmem:[#allocation56_spill] sm:$0xff]  ;;  %v14038_v46 = vpop.permute.xlu1 %9579 }
 0x188   :  { %v9317_v31 = vunpack.i.h.bf16 %v20880_v30  ;;  %v9316_v4 = vunpack.i.l.bf16 %v20880_v30  ;;  %v14016_v57 = vld [vmem:[%s20314_s0 + $0x181] sm:$0xff]  ;;  %v11501_v30 = vld [vmem:[%s20314_s0 + $0x229] sm:$0xff]  ;;  %20881 = vst [vmem:[#allocation54_spill] sm:$0xff] %v14031_v5  ;;  %20882 = vst [vmem:[#allocation55_spill] sm:$0xff] %v14035_v12  ;;  %v9331_v24 = vunpack.i.l.bf16 %v20883_v59  ;;  %v14053_v14 = vsel %vm3212_vm3, %v13575_v17, %v9306_v40  ;;  %v14058_v5 = vpop.permute.xlu0 %9574 }
 0x189   :  { %v112_v45 = vpack.c.bf16 %v11502_v16, %v11501_v30  ;;  %20884 = vst [vmem:[#allocation56_spill] sm:$0xff] %v14038_v46  ;;  %v11503_v30 = vld [vmem:[%s20314_s0 + $0x241] sm:$0xff]  ;;  %v11504_v2 = vld [vmem:[%s20314_s0 + $0x249] sm:$0xff]  ;;  %20885 = vst [vmem:[#allocation125_spill] sm:$0xff] %v14053_v14  ;;  %v9332_v37 = vunpack.i.h.bf16 %v20883_v59  ;;  %v14078_v40 = vsel %vm3212_vm3, %v13579_v58, %v9307_v48  ;;  %v14097_v58 = vsel %vm3212_vm3, %v13583_v27, %v9321_v15 }
 0x18a   :  { %v113_v51 = vpack.c.bf16 %v11504_v2, %v11503_v30  ;;  %v20886_v16 = vld [vmem:[#allocation57_spill] sm:$0xff]  ;;  %v14063_v12 = vld [vmem:[%s20314_s0 + $0x201] sm:$0xff]  ;;  %v20888_v59 = vld [vmem:[#allocation58_spill] sm:$0xff]  ;;  %v14109_v48 = vsel %vm3212_vm3, %v13612_v7, %v9317_v31  ;;  %v14132_v7 = vsel %vm3212_vm3, %v13616_v3, %v9331_v24 }
 0x18b   :  { %v9327_v46 = vunpack.i.h.bf16 %v20886_v16  ;;  %v9326_v28 = vunpack.i.l.bf16 %v20886_v16  ;;  %20887 = vst [vmem:[#allocation57_spill] sm:$0xff] %v14058_v5  ;;  %v14068_v30 = vld [vmem:[%s20314_s0 + $0x1e1] sm:$0xff]  ;;  %v14073_v17 = vld [vmem:[%s20314_s0 + $0x1e9] sm:$0xff]  ;;  %8706 = vmatprep.mubr.msk.bf16.mxu1 %vm132_vm0, %v112_v45  ;;  %v9341_v2 = vunpack.i.l.bf16 %v20888_v59  ;;  %v20889_v16 = vpack.i.bf16 %v13761_v43, %v13756_v42  ;;  %v14118_v27 = vld [vmem:[%s20314_s0 + $0x231] sm:$0xff] }
 0x18c   :  { %v14092_v45 = vld [vmem:[%s20314_s0 + $0x229] sm:$0xff]  ;;  %8707 = vmatmul.mubr.msk.bf16.gmra.mxu1 %vm132_vm0, %v113_v51  ;;  %v14101_v42 = vsel %vm3212_vm3, %v13594_v38, %v9322_v11  ;;  %v14105_v43 = vsel %vm3212_vm3, %v13598_v56, %v9316_v4  ;;  %v20891_v51 = vpack.i.bf16 %v13789_v60, %v13784_v47  ;;  %v14123_v38 = vld [vmem:[%s20314_s0 + $0x211] sm:$0xff]  ;;  %v14128_v56 = vld [vmem:[%s20314_s0 + $0x219] sm:$0xff]  ;;  %v9342_v47 = vunpack.i.h.bf16 %v20888_v59  ;;  %v14135_v60 = vpop.permute.xlu1 %9589 }
 0x18d   :  { %9869 = vrot.lane.b32.xlu1 %v20889_v16, %s11643_s12  ;;  %20890 = vst [vmem:[#allocation58_spill] sm:$0xff] %v14092_v45  ;;  %20892 = vst [vmem:[#allocation126_spill] sm:$0xff] %v14123_v38  ;;  %v14143_v15 = vsel %vm3212_vm3, %v13620_v61, %v9332_v37  ;;  %v14147_v31 = vsel %vm3212_vm3, %v13629_v52, %v9326_v28  ;;  %v14151_v24 = vsel %vm3212_vm3, %v13633_v8, %v9327_v46  ;;  %v20895_v3 = vld [vmem:[#allocation59_spill] sm:$0xff]  ;;  %v14154_v16 = vpop.permute.xlu0 %9584  ;;  %v20901_v11 = vld [vmem:[#allocation62_spill] sm:$0xff] }
 0x18e   :  { %9864 = vrot.lane.b32.xlu0 %v20891_v51, %s11643_s12  ;;  %20893 = vst [vmem:[#allocation127_spill] sm:$0xff] %v14128_v56  ;;  %20894 = vst [vmem:[#allocation128_spill] sm:$0xff] %v14135_v60  ;;  %v9336_v59 = vunpack.i.l.bf16 %v20895_v3  ;;  %v14158_v51 = vsel %vm3212_vm3, %v13653_v19, %v9341_v2  ;;  %v9337_v4 = vunpack.i.h.bf16 %v20895_v3  ;;  %v20897_v61 = vpack.i.bf16 %v13799_v1, %v13794_v22  ;;  %v14172_v28 = vld [vmem:[%s20314_s0 + $0x259] sm:$0xff]  ;;  %v20898_v19 = vld [vmem:[#allocation60_spill] sm:$0xff] }
 0x18f   :  { %20896 = vst [vmem:[#allocation59_spill] sm:$0xff] %v14154_v16  ;;  %v9352_v46 = vunpack.i.h.bf16 %v20898_v19  ;;  %v9351_v37 = vunpack.i.l.bf16 %v20898_v19  ;;  %v20899_v2 = vld [vmem:[#allocation61_spill] sm:$0xff]  ;;  %v20900_v22 = vpack.i.bf16 %v13809_v25, %v13804_v62  ;;  %v14184_v1 = vld [vmem:[%s20314_s0 + $0x261] sm:$0xff]  ;;  %v11505_v62 = vld [vmem:[%s20314_s0 + $0x259] sm:$0xff]  ;;  %v14204_v8 = vsel %vm3212_vm3, %v13657_v32, %v9342_v47 }
 0x190   :  { %v9346_v3 = vunpack.i.l.bf16 %v20899_v2  ;;  %v14194_v19 = vld [vmem:[%s20314_s0 + $0x249] sm:$0xff]  ;;  %v11506_v25 = vld [vmem:[%s20314_s0 + $0x261] sm:$0xff]  ;;  %v9347_v52 = vunpack.i.h.bf16 %v20899_v2  ;;  %v9361_v14 = vunpack.i.l.bf16 %v20901_v11  ;;  %v14208_v5 = vpop.permute.xlu1 %9599  ;;  %v11507_v60 = vld [vmem:[%s20314_s0 + $0x271] sm:$0xff]  ;;  %v14223_v2 = vsel %vm3212_vm3, %v13709_v54, %v9336_v59 }
 0x191   :  { %9879 = vrot.lane.b32.xlu1 %v20897_v61, %s11643_s12  ;;  %v14189_v61 = vld [vmem:[%s20314_s0 + $0x241] sm:$0xff]  ;;  %20902 = vst [vmem:[#allocation60_spill] sm:$0xff] %v14208_v5  ;;  %v14213_v16 = vld [vmem:[%s20314_s0 + $0x289] sm:$0xff]  ;;  %v11508_v32 = vld [vmem:[%s20314_s0 + $0x279] sm:$0xff]  ;;  %v14228_v56 = vpop.permute.xlu0 %9594  ;;  %v20908_v59 = vpack.i.bf16 %v13834_v55, %v13829_v21  ;;  %v14270_v21 = vsel %vm3212_vm3, %v13765_v9, %v9352_v46 }
 0x192   :  { %9874 = vrot.lane.b32.xlu0 %v20900_v22, %s11643_s12  ;;  %v114_v22 = vpack.c.bf16 %v11506_v25, %v11505_v62  ;;  %20903 = vst [vmem:[#allocation61_spill] sm:$0xff] %v14213_v16  ;;  %v115_v47 = vpack.c.bf16 %v11508_v32, %v11507_v60  ;;  %v9362_v62 = vunpack.i.h.bf16 %v20901_v11  ;;  %v20904_v25 = vld [vmem:[#allocation63_spill] sm:$0xff]  ;;  %20905 = vst [vmem:[#allocation62_spill] sm:$0xff] %v14228_v56  ;;  %v14233_v45 = vld [vmem:[%s20314_s0 + $0x291] sm:$0xff] }
 0x193   :  { %v9357_v5 = vunpack.i.h.bf16 %v20904_v25  ;;  %v9356_v38 = vunpack.i.l.bf16 %v20904_v25  ;;  %v14238_v60 = vld [vmem:[%s20314_s0 + $0x271] sm:$0xff]  ;;  %v14243_v54 = vld [vmem:[%s20314_s0 + $0x279] sm:$0xff]  ;;  %v14248_v11 = vsel %vm3212_vm3, %v13733_v0, %v9337_v4  ;;  %v14266_v0 = vsel %vm3212_vm3, %v13737_v49, %v9351_v37  ;;  %v20910_v4 = vld [vmem:[#allocation64_spill] sm:$0xff] }
 0x194   :  { %20906 = vst [vmem:[#allocation63_spill] sm:$0xff] %v14238_v60  ;;  %20907 = vst [vmem:[#allocation129_spill] sm:$0xff] %v14243_v54  ;;  %8710 = vmatprep.mubr.msk.bf16.mxu1 %vm132_vm0, %v114_v22  ;;  %v14261_v22 = vld [vmem:[%s20314_s0 + $0x2b9] sm:$0xff]  ;;  %v14274_v55 = vsel %vm3212_vm3, %v13769_v23, %v9346_v3  ;;  %v20911_v25 = vpack.i.bf16 %v13844_v35, %v13839_v63  ;;  %v14284_v49 = vld [vmem:[%s20314_s0 + $0x2c1] sm:$0xff]  ;;  %v14298_v46 = vsel %vm3212_vm3, %v13773_v50, %v9347_v52  ;;  %v14304_v35 = vpop.permute.xlu1 %9609 }
 0x195   :  { %9889 = vrot.lane.b32.xlu1 %v20908_v59, %s11643_s12  ;;  %20909 = vst [vmem:[#allocation130_spill] sm:$0xff] %v14261_v22  ;;  %8711 = vmatmul.mubr.msk.bf16.gmra.mxu1 %vm132_vm0, %v115_v47  ;;  %v9371_v59 = vunpack.i.l.bf16 %v20910_v4  ;;  %20912 = vst [vmem:[#allocation64_spill] sm:$0xff] %v14284_v49  ;;  %v14289_v9 = vld [vmem:[%s20314_s0 + $0x2a1] sm:$0xff]  ;;  %v14294_v23 = vld [vmem:[%s20314_s0 + $0x2a9] sm:$0xff]  ;;  %v14302_v63 = vsel %vm3212_vm3, %v13777_v41, %v9361_v14  ;;  %v14315_v50 = vsel %vm3212_vm3, %v13813_v34, %v9362_v62 }
 0x196   :  { %9884 = vrot.lane.b32.xlu0 %v20911_v25, %s11643_s12  ;;  %20913 = vst [vmem:[#allocation131_spill] sm:$0xff] %v14289_v9  ;;  %20914 = vst [vmem:[#allocation132_spill] sm:$0xff] %v14294_v23  ;;  %v11454_v47 = vld [vmem:[%s20316_s3 + $0x8] sm:$0xff]   ;;  %v14319_v41 = vsel %vm3212_vm3, %v13817_v20, %v9356_v38  ;;  %v14323_v14 = vsel %vm3212_vm3, %v13821_v6, %v9357_v5  ;;  %v9372_v52 = vunpack.i.h.bf16 %v20910_v4  ;;  %v14326_v25 = vpop.permute.xlu0 %9604  ;;  %v20920_v5 = vld [vmem:[#allocation113_spill] sm:$0xff] }
 0x197   :  { %20915 = vst [vmem:[#allocation133_spill] sm:$0xff] %v14304_v35  ;;  %20916 = vst [vmem:[#allocation134_spill] sm:$0xff] %v14326_v25  ;;  %v20917_v3 = vld [vmem:[#allocation84_spill] sm:$0xff]  ;;  %8732 = vmatprep.subr.bf16.mxu1 %v11454_v47  ;;  %v14340_v38 = vsel %vm3212_vm3, %v20920_v5, %v9371_v59  ;;  %v20922_v4 = vld [vmem:[#allocation93_spill] sm:$0xff] }
 0x198   :  { %v9462_v37 = vunpack.i.h.bf16 %v20917_v3  ;;  %v9461_v32 = vunpack.i.l.bf16 %v20917_v3  ;;  %v20918_v34 = vld [vmem:[#allocation112_spill] sm:$0xff]  ;;  %20921 = vst [vmem:[#allocation84_spill] sm:$0xff] %v14340_v38  ;;  %v9472_v25 = vunpack.i.h.bf16 %v20922_v4  ;;  %v9471_v3 = vunpack.i.l.bf16 %v20922_v4  ;;  %v20923_v35 = vld [vmem:[#allocation115_spill] sm:$0xff]  ;;  %8733 = vmatpush3.bf16.msra.mxu1 %v11454_v47  ;;  %v9620_v9 = vpop.permute.xlu1 %9619  ;;  %v20927_v23 = vld [vmem:[#allocation97_spill] sm:$0xff] }
 0x199   :  { %v20919_v62 = vpack.i.bf16 %v13854_v26, %v20918_v34  ;;  %v20924_v26 = vpack.i.bf16 %v13875_v33, %v20923_v35  ;;  %v11509_v34 = vld [vmem:[%s20314_s0 + $0x289] sm:$0xff]  ;;  %v20925_v5 = vld [vmem:[#allocation95_spill] sm:$0xff]  ;;  %v9621_v22 = vunpack.i.l.bf16 %v9620_v9 }
 0x19a   :  { %v9467_v6 = vunpack.i.h.bf16 %v20925_v5  ;;  %v9466_v20 = vunpack.i.l.bf16 %v20925_v5  ;;  %v20926_v4 = vld [vmem:[#allocation96_spill] sm:$0xff]  ;;  %v14365_v49 = vpop.permute.xlu0 %9614  ;;  %v20928_v5 = vld [vmem:[#allocation114_spill] sm:$0xff]  ;;  %v20929_v60 = vld [vmem:[#allocation65_spill] sm:$0xff]  ;;  %v3313_v16 = vsel %vm3277_vm4, %v13985_v29, %v9462_v37 }
 0x19b   :  { %9899 = vrot.lane.b32.xlu1 %v20919_v62, %s11643_s12  ;;  %9894 = vrot.lane.b32.xlu0 %v20924_v26, %s11643_s12  ;;  %v11510_v62 = vld [vmem:[%s20314_s0 + $0x291] sm:$0xff]  ;;  %v9482_v56 = vunpack.i.h.bf16 %v20926_v4  ;;  %v11511_v33 = vld [vmem:[%s20314_s0 + $0x2a1] sm:$0xff]  ;;  %v9481_v26 = vunpack.i.l.bf16 %v20926_v4  ;;  %v14370_v38 = vsel %vm3212_vm3, %v20928_v5, %v9372_v52  ;;  %v9367_v54 = vunpack.i.h.bf16 %v20929_v60 }
 0x19c   :  { %v116_v59 = vpack.c.bf16 %v11510_v62, %v11509_v34  ;;  %v11512_v35 = vld [vmem:[%s20314_s0 + $0x2a9] sm:$0xff]  ;;  %v9477_v34 = vunpack.i.h.bf16 %v20927_v23  ;;  %v9622_v62 = vunpack.i.h.bf16 %v9620_v9  ;;  %v3312_v4 = vsel %vm3277_vm4, %v13981_v39, %v9461_v32  ;;  %v20932_v52 = vld [vmem:[#allocation54_spill] sm:$0xff]  ;;  %v20936_v32 = vld [vmem:[#allocation119_spill] sm:$0xff] }
 0x19d   :  { %v117_v47 = vpack.c.bf16 %v11512_v35, %v11511_v33  ;;  %v20930_v9 = vpack.i.bf16 %v13903_v36, %v13880_v53  ;;  %v3316_v35 = vsel %vm3277_vm4, %v20932_v52, %v9471_v3  ;;  %v14387_v5 = vsel %vm3342_vm5, %v3312_v4, %v9621_v22  ;;  %v20935_v39 = vld [vmem:[#allocation120_spill] sm:$0xff]  ;;  %v20938_v53 = vld [vmem:[#allocation125_spill] sm:$0xff]  ;;  %v20939_v52 = vld [vmem:[#allocation98_spill] sm:$0xff] }
 0x19e   :  { %8714 = vmatprep.mubr.msk.bf16.mxu1 %vm132_vm0, %v116_v59  ;;  %v20931_v59 = vld [vmem:[#allocation55_spill] sm:$0xff]  ;;  %20933 = vst [vmem:[#allocation112_spill] sm:$0xff] %v14387_v5  ;;  %v14390_v29 = vsel %vm3342_vm5, %v3313_v16, %v9622_v62  ;;  %v20937_v37 = vpack.i.bf16 %v20935_v39, %v20936_v32  ;;  %v3315_v36 = vsel %vm3277_vm4, %v14078_v40, %v9467_v6  ;;  %v9476_v22 = vunpack.i.l.bf16 %v20927_v23 }
 0x19f   :  { %9909 = vrot.lane.b32.xlu1 %v20930_v9, %s11643_s12  ;;  %8715 = vmatmul.mubr.msk.bf16.gmra.mxu1 %vm132_vm0, %v117_v47  ;;  %v3317_v33 = vsel %vm3277_vm4, %v20931_v59, %v9472_v25  ;;  %20934 = vst [vmem:[#allocation113_spill] sm:$0xff] %v14390_v29  ;;  %v3314_v25 = vsel %vm3277_vm4, %v20938_v53, %v9466_v20  ;;  %v9630_v47 = vpop.permute.xlu1 %9629  ;;  %v9625_v59 = vpop.permute.xlu0 %9624  ;;  %v9492_v40 = vunpack.i.h.bf16 %v20939_v52  ;;  %v9491_v6 = vunpack.i.l.bf16 %v20939_v52  ;;  %v20943_v32 = vld [vmem:[#allocation99_spill] sm:$0xff] }
 0x1a0   :  { %9904 = vrot.lane.b32.xlu0 %v20937_v37, %s11643_s12  ;;  %v3321_v3 = vsel %vm3277_vm4, %v14101_v42, %v9482_v56  ;;  %v3320_v16 = vsel %vm3277_vm4, %v14097_v58, %v9481_v26  ;;  %v3319_v62 = vsel %vm3277_vm4, %v14109_v48, %v9477_v34  ;;  %v9632_v4 = vunpack.i.h.bf16 %v9630_v47  ;;  %v20940_v42 = vld [vmem:[#allocation122_spill] sm:$0xff]  ;;  %v20941_v56 = vld [vmem:[#allocation121_spill] sm:$0xff]  ;;  %v20946_v26 = vld [vmem:[#allocation124_spill] sm:$0xff] }
 0x1a1   :  { %v9631_v9 = vunpack.i.l.bf16 %v9630_v47  ;;  %v9627_v20 = vunpack.i.h.bf16 %v9625_v59  ;;  %v9626_v39 = vunpack.i.l.bf16 %v9625_v59  ;;  %v20942_v23 = vpack.i.bf16 %v20940_v42, %v20941_v56  ;;  %v20947_v34 = vld [vmem:[#allocation123_spill] sm:$0xff]  ;;  %v11515_v42 = vld [vmem:[%s20314_s0 + $0x2d1] sm:$0xff] }
 0x1a2   :  { %v9487_v37 = vunpack.i.h.bf16 %v20943_v32  ;;  %v14418_v48 = vsel %vm3342_vm5, %v3317_v33, %v9632_v4  ;;  %v20948_v53 = vpack.i.bf16 %v20946_v26, %v20947_v34  ;;  %v11513_v47 = vld [vmem:[%s20314_s0 + $0x2b9] sm:$0xff]  ;;  %v11514_v59 = vld [vmem:[%s20314_s0 + $0x2c1] sm:$0xff]  ;;  %v3318_v26 = vsel %vm3277_vm4, %v14105_v43, %v9476_v22 }
 0x1a3   :  { %9919 = vrot.lane.b32.xlu1 %v20942_v23, %s11643_s12  ;;  %v14415_v58 = vsel %vm3342_vm5, %v3316_v35, %v9631_v9  ;;  %20945 = vst [vmem:[#allocation115_spill] sm:$0xff] %v14418_v48  ;;  %v118_v52 = vpack.c.bf16 %v11514_v59, %v11513_v47  ;;  %v9486_v35 = vunpack.i.l.bf16 %v20943_v32  ;;  %v14432_v9 = vsel %vm3342_vm5, %v3314_v25, %v9626_v39  ;;  %v9640_v4 = vpop.permute.xlu1 %9639  ;;  %v11516_v56 = vld [vmem:[%s20314_s0 + $0x2d9] sm:$0xff]  ;;  %v20951_v32 = vld [vmem:[#allocation100_spill] sm:$0xff] }
 0x1a4   :  { %20944 = vst [vmem:[#allocation93_spill] sm:$0xff] %v14415_v58  ;;  %9914 = vrot.lane.b32.xlu0 %v20948_v53, %s11643_s12  ;;  %20949 = vst [vmem:[#allocation95_spill] sm:$0xff] %v14432_v9  ;;  %v14435_v33 = vsel %vm3342_vm5, %v3315_v36, %v9627_v20  ;;  %v119_v23 = vpack.c.bf16 %v11516_v56, %v11515_v42  ;;  %v9502_v34 = vunpack.i.h.bf16 %v20951_v32  ;;  %v9642_v25 = vunpack.i.h.bf16 %v9640_v4  ;;  %v9635_v53 = vpop.permute.xlu0 %9634  ;;  %v21043_v48 = vld [vmem:[#allocation82_spill] sm:$0xff]  ;;  %v21044_v29 = vld [vmem:[#allocation83_spill] sm:$0xff] }
 0x1a5   :  { %20950 = vst [vmem:[#allocation96_spill] sm:$0xff] %v14435_v33  ;;  %v9641_v39 = vunpack.i.l.bf16 %v9640_v4  ;;  %8718 = vmatprep.mubr.msk.bf16.mxu1 %vm132_vm0, %v118_v52  ;;  %v3325_v36 = vsel %vm3277_vm4, %v14143_v15, %v9492_v40  ;;  %v9501_v20 = vunpack.i.l.bf16 %v20951_v32  ;;  %v9637_v47 = vunpack.i.h.bf16 %v9635_v53 }
 0x1a6   :  { %v9636_v59 = vunpack.i.l.bf16 %v9635_v53  ;;  %v20952_v42 = vpack.i.bf16 %v14011_v44, %v14002_v18  ;;  %v3324_v43 = vsel %vm3277_vm4, %v14132_v7, %v9491_v6  ;;  %v3323_v22 = vsel %vm3277_vm4, %v14151_v24, %v9487_v37  ;;  %v20956_v44 = vld [vmem:[#allocation101_spill] sm:$0xff] }
 0x1a7   :  { %8719 = vmatmul.mubr.msk.bf16.gmra.mxu1 %vm132_vm0, %v119_v23  ;;  %v14460_v52 = vsel %vm3342_vm5, %v3320_v16, %v9641_v39  ;;  %v14463_v15 = vsel %vm3342_vm5, %v3321_v3, %v9642_v25  ;;  %v20955_v40 = vpack.i.bf16 %v14021_v10, %v14016_v57  ;;  %v3322_v18 = vsel %vm3277_vm4, %v14147_v31, %v9486_v35  ;;  %v9650_v16 = vpop.permute.xlu1 %9649  ;;  %v20959_v35 = vld [vmem:[#allocation102_spill] sm:$0xff]  ;;  %v11517_v25 = vld [vmem:[%s20314_s0 + $0x2e9] sm:$0xff]  ;;  %v20964_v39 = vld [vmem:[#allocation103_spill] sm:$0xff] }
 0x1a8   :  { %9929 = vrot.lane.b32.xlu1 %v20952_v42, %s11643_s12  ;;  %20953 = vst [vmem:[#allocation97_spill] sm:$0xff] %v14460_v52  ;;  %20954 = vst [vmem:[#allocation114_spill] sm:$0xff] %v14463_v15  ;;  %v9497_v4 = vunpack.i.h.bf16 %v20956_v44  ;;  %v14473_v7 = vsel %vm3342_vm5, %v3318_v26, %v9636_v59  ;;  %v14476_v24 = vsel %vm3342_vm5, %v3319_v62, %v9637_v47  ;;  %v9496_v6 = vunpack.i.l.bf16 %v20956_v44  ;;  %v9645_v10 = vpop.permute.xlu0 %9644  ;;  %v21041_v52 = vld [vmem:[#allocation23_spill] sm:$0xff] }
 0x1a9   :  { %9924 = vrot.lane.b32.xlu0 %v20955_v40, %s11643_s12  ;;  %20957 = vst [vmem:[#allocation65_spill] sm:$0xff] %v14473_v7  ;;  %20958 = vst [vmem:[#allocation55_spill] sm:$0xff] %v14476_v24  ;;  %v3329_v3 = vsel %vm3277_vm4, %v14204_v8, %v9502_v34  ;;  %v9652_v37 = vunpack.i.h.bf16 %v9650_v16  ;;  %v9651_v57 = vunpack.i.l.bf16 %v9650_v16  ;;  %v3328_v31 = vsel %vm3277_vm4, %v14158_v51, %v9501_v20  ;;  %v20967_v16 = vld [vmem:[#allocation104_spill] sm:$0xff]  ;;  %v21034_v7 = vld [vmem:[#allocation85_spill] sm:$0xff] }
 0x1aa   :  { %v9512_v56 = vunpack.i.h.bf16 %v20959_v35  ;;  %v9647_v23 = vunpack.i.h.bf16 %v9645_v10  ;;  %v9646_v26 = vunpack.i.l.bf16 %v9645_v10  ;;  %v20960_v62 = vpack.i.bf16 %v14063_v12, %v14043_v13  ;;  %v11518_v12 = vld [vmem:[%s20314_s0 + $0x2f1] sm:$0xff] }
 0x1ab   :  { %v9511_v32 = vunpack.i.l.bf16 %v20959_v35  ;;  %v14490_v8 = vsel %vm3342_vm5, %v3324_v43, %v9651_v57  ;;  %v14493_v34 = vsel %vm3342_vm5, %v3325_v36, %v9652_v37  ;;  %v20963_v51 = vpack.i.bf16 %v14073_v17, %v14068_v30  ;;  %v9660_v47 = vpop.permute.xlu1 %9659  ;;  %v11519_v30 = vld [vmem:[%s20314_s0 + $0x301] sm:$0xff]  ;;  %v11520_v17 = vld [vmem:[%s20314_s0 + $0x309] sm:$0xff]  ;;  %v20968_v35 = vld [vmem:[#allocation58_spill] sm:$0xff] }
 0x1ac   :  { %9939 = vrot.lane.b32.xlu1 %v20960_v62, %s11643_s12  ;;  %20961 = vst [vmem:[#allocation54_spill] sm:$0xff] %v14490_v8  ;;  %20962 = vst [vmem:[#allocation120_spill] sm:$0xff] %v14493_v34  ;;  %v120_v13 = vpack.c.bf16 %v11518_v12, %v11517_v25  ;;  %v9507_v53 = vunpack.i.h.bf16 %v20964_v39  ;;  %v14507_v20 = vsel %vm3342_vm5, %v3322_v18, %v9646_v26  ;;  %v9662_v40 = vunpack.i.h.bf16 %v9660_v47  ;;  %v20972_v26 = vld [vmem:[#allocation127_spill] sm:$0xff]  ;;  %v20973_v62 = vld [vmem:[#allocation126_spill] sm:$0xff] }
 0x1ad   :  { %9934 = vrot.lane.b32.xlu0 %v20963_v51, %s11643_s12  ;;  %20965 = vst [vmem:[#allocation119_spill] sm:$0xff] %v14507_v20  ;;  %v14510_v36 = vsel %vm3342_vm5, %v3323_v22, %v9647_v23  ;;  %v121_v59 = vpack.c.bf16 %v11520_v17, %v11519_v30  ;;  %v3327_v42 = vsel %vm3277_vm4, %v14248_v11, %v9497_v4  ;;  %v9661_v18 = vunpack.i.l.bf16 %v9660_v47  ;;  %v9655_v22 = vpop.permute.xlu0 %9654  ;;  %v21031_v34 = vld [vmem:[#allocation20_spill] sm:$0xff] }
 0x1ae   :  { %20966 = vst [vmem:[#allocation125_spill] sm:$0xff] %v14510_v36  ;;  %v3326_v43 = vsel %vm3277_vm4, %v14223_v2, %v9496_v6  ;;  %8722 = vmatprep.mubr.msk.bf16.mxu1 %vm132_vm0, %v120_v13  ;;  %v9506_v44 = vunpack.i.l.bf16 %v20964_v39  ;;  %v9522_v37 = vunpack.i.h.bf16 %v20967_v16  ;;  %v9657_v57 = vunpack.i.h.bf16 %v9655_v22 }
 0x1af   :  { %v9656_v10 = vunpack.i.l.bf16 %v9655_v22  ;;  %v20969_v23 = vpack.i.bf16 %v14118_v27, %v20968_v35  ;;  %8723 = vmatmul.mubr.msk.bf16.gmra.mxu1 %vm132_vm0, %v121_v59  ;;  %v3333_v2 = vsel %vm3277_vm4, %v14270_v21, %v9512_v56  ;;  %v3332_v11 = vsel %vm3277_vm4, %v14266_v0, %v9511_v32  ;;  %v20977_v56 = vld [vmem:[#allocation105_spill] sm:$0xff] }
 0x1b0   :  { %v14535_v4 = vsel %vm3342_vm5, %v3328_v31, %v9661_v18  ;;  %v14538_v6 = vsel %vm3342_vm5, %v3329_v3, %v9662_v40  ;;  %v20974_v51 = vpack.i.bf16 %v20972_v26, %v20973_v62  ;;  %v3331_v27 = vsel %vm3277_vm4, %v14298_v46, %v9507_v53  ;;  %v9670_v31 = vpop.permute.xlu1 %9669  ;;  %v11455_v3 = vld [vmem:[%s20316_s3] sm:$0xff]  }
 0x1b1   :  { %9949 = vrot.lane.b32.xlu1 %v20969_v23, %s11643_s12  ;;  %20970 = vst [vmem:[#allocation98_spill] sm:$0xff] %v14535_v4  ;;  %20971 = vst [vmem:[#allocation122_spill] sm:$0xff] %v14538_v6  ;;  %v9521_v25 = vunpack.i.l.bf16 %v20967_v16  ;;  %v14548_v21 = vsel %vm3342_vm5, %v3326_v43, %v9656_v10  ;;  %v14551_v0 = vsel %vm3342_vm5, %v3327_v42, %v9657_v57  ;;  %v9517_v32 = vunpack.i.h.bf16 %v20977_v56  ;;  %v9665_v46 = vpop.permute.xlu0 %9664  ;;  %v11524_v16 = vld [vmem:[%s20314_s0 + $0x339] sm:$0xff] }
 0x1b2   :  { %9944 = vrot.lane.b32.xlu0 %v20974_v51, %s11643_s12  ;;  %20975 = vst [vmem:[#allocation121_spill] sm:$0xff] %v14548_v21  ;;  %20976 = vst [vmem:[#allocation99_spill] sm:$0xff] %v14551_v0  ;;  %v9516_v12 = vunpack.i.l.bf16 %v20977_v56  ;;  %v9672_v13 = vunpack.i.h.bf16 %v9670_v31  ;;  %v9671_v39 = vunpack.i.l.bf16 %v9670_v31  ;;  %v3330_v53 = vsel %vm3277_vm4, %v14274_v55, %v9506_v44  ;;  %8734 = vmatprep.subr.bf16.mxu1 %v11455_v3  ;;  %v8409_v31 = vld [vmem:[%s20314_s0 + $0x2d1] sm:$0xff]  ;;  %v20987_v56 = vld [vmem:[#allocation107_spill] sm:$0xff] }
 0x1b3   :  { %v3337_v47 = vsel %vm3277_vm4, %v14315_v50, %v9522_v37  ;;  %v9667_v30 = vunpack.i.h.bf16 %v9665_v46  ;;  %v9666_v17 = vunpack.i.l.bf16 %v9665_v46  ;;  %v20978_v59 = vpack.i.bf16 %v14184_v1, %v14172_v28  ;;  %8735 = vmatpush3.bf16.msra.mxu1 %v11455_v3  ;;  %v11521_v28 = vld [vmem:[%s20314_s0 + $0x319] sm:$0xff]  ;;  %v11522_v1 = vld [vmem:[%s20314_s0 + $0x321] sm:$0xff] }
 0x1b4   :  { %v9366_v42 = vunpack.i.l.bf16 %v20929_v60  ;;  %v14568_v43 = vsel %vm3342_vm5, %v3332_v11, %v9671_v39  ;;  %v14571_v40 = vsel %vm3342_vm5, %v3333_v2, %v9672_v13  ;;  %v20981_v55 = vpack.i.bf16 %v14194_v19, %v14189_v61  ;;  %v9680_v61 = vpop.permute.xlu1 %9679  ;;  %v11523_v19 = vld [vmem:[%s20314_s0 + $0x331] sm:$0xff]  ;;  %v8411_v2 = vld [vmem:[%s20314_s0 + $0x2e9] sm:$0xff]  ;;  %v8410_v3 = vld [vmem:[%s20314_s0 + $0x2d9] sm:$0xff] }
 0x1b5   :  { %9959 = vrot.lane.b32.xlu1 %v20978_v59, %s11643_s12  ;;  %20979 = vst [vmem:[#allocation124_spill] sm:$0xff] %v14568_v43  ;;  %20980 = vst [vmem:[#allocation123_spill] sm:$0xff] %v14571_v40  ;;  %v122_v50 = vpack.c.bf16 %v11522_v1, %v11521_v28  ;;  %v3336_v18 = vsel %vm3277_vm4, %v14302_v63, %v9521_v25  ;;  %v14586_v22 = vsel %vm3342_vm5, %v3330_v53, %v9666_v17  ;;  %v9675_v23 = vpop.permute.xlu0 %9674  ;;  %v20984_v11 = vld [vmem:[#allocation106_spill] sm:$0xff]  ;;  %v20990_v39 = vld [vmem:[#allocation129_spill] sm:$0xff] }
 0x1b6   :  { %9954 = vrot.lane.b32.xlu0 %v20981_v55, %s11643_s12  ;;  %20982 = vst [vmem:[#allocation100_spill] sm:$0xff] %v14586_v22  ;;  %v14589_v44 = vsel %vm3342_vm5, %v3331_v27, %v9667_v30  ;;  %v123_v37 = vpack.c.bf16 %v11524_v16, %v11523_v19  ;;  %v3335_v57 = vsel %vm3277_vm4, %v14323_v14, %v9517_v32  ;;  %v9682_v10 = vunpack.i.h.bf16 %v9680_v61  ;;  %v20985_v14 = vld [vmem:[#allocation61_spill] sm:$0xff]  ;;  %v20991_v46 = vld [vmem:[#allocation63_spill] sm:$0xff]  ;;  %v20993_v30 = vld [vmem:[#allocation116_spill] sm:$0xff] }
 0x1b7   :  { %20983 = vst [vmem:[#allocation101_spill] sm:$0xff] %v14589_v44  ;;  %v3334_v63 = vsel %vm3277_vm4, %v14319_v41, %v9516_v12  ;;  %v9681_v35 = vunpack.i.l.bf16 %v9680_v61  ;;  %8726 = vmatprep.mubr.msk.bf16.mxu1 %vm132_vm0, %v122_v50  ;;  %v9532_v26 = vunpack.i.h.bf16 %v20984_v11  ;;  %v9531_v62 = vunpack.i.l.bf16 %v20984_v11  ;;  %v8412_v41 = vld [vmem:[%s20314_s0 + $0x2f1] sm:$0xff]  ;;  %v11541_v44 = vld [vmem:[%s20314_s0 + $0x120] sm:$0xff] }
 0x1b8   :  { %v9677_v51 = vunpack.i.h.bf16 %v9675_v23  ;;  %v9676_v27 = vunpack.i.l.bf16 %v9675_v23  ;;  %v20986_v25 = vpack.i.bf16 %v14233_v45, %v20985_v14  ;;  %8727 = vmatmul.mubr.msk.bf16.gmra.mxu1 %vm132_vm0, %v123_v37  ;;  %v9527_v32 = vunpack.i.h.bf16 %v20987_v56  ;;  %v20994_v59 = vld [vmem:[#allocation117_spill] sm:$0xff]  ;;  %v20997_v37 = vld [vmem:[#allocation84_spill] sm:$0xff]  ;;  %v21027_v0 = vld [vmem:[#allocation18_spill] sm:$0xff] }
 0x1b9   :  { %v9526_v12 = vunpack.i.l.bf16 %v20987_v56  ;;  %v14624_v45 = vsel %vm3342_vm5, %v3336_v18, %v9681_v35  ;;  %v14627_v13 = vsel %vm3342_vm5, %v3337_v47, %v9682_v10  ;;  %v20992_v53 = vpack.i.bf16 %v20990_v39, %v20991_v46  ;;  %v9690_v47 = vpop.permute.xlu1 %9689  ;;  %v9685_v61 = vpop.permute.xlu0 %9684  ;;  %v20999_v35 = vld [vmem:[#allocation130_spill] sm:$0xff]  ;;  %v8416_v14 = vld [vmem:[%s20314_s0 + $0x321] sm:$0xff]  ;;  %v8414_v46 = vld [vmem:[%s20314_s0 + $0x309] sm:$0xff] }
 0x1ba   :  { %9969 = vrot.lane.b32.xlu1 %v20986_v25, %s11643_s12  ;;  %20988 = vst [vmem:[#allocation102_spill] sm:$0xff] %v14624_v45  ;;  %20989 = vst [vmem:[#allocation103_spill] sm:$0xff] %v14627_v13  ;;  %v3273_v17 = vsel %vm3212_vm3, %v20993_v30, %v9366_v42  ;;  %v3274_v55 = vsel %vm3212_vm3, %v20994_v59, %v9367_v54  ;;  %v14640_v28 = vsel %vm3342_vm5, %v3334_v63, %v9676_v27  ;;  %v20998_v63 = vld [vmem:[#allocation64_spill] sm:$0xff]  ;;  %v8415_v27 = vld [vmem:[%s20314_s0 + $0x319] sm:$0xff] }
 0x1bb   :  { %9964 = vrot.lane.b32.xlu0 %v20992_v53, %s11643_s12  ;;  %20995 = vst [vmem:[#allocation104_spill] sm:$0xff] %v14640_v28  ;;  %v14643_v1 = vsel %vm3342_vm5, %v3335_v57, %v9677_v51  ;;  %v9692_v50 = vunpack.i.h.bf16 %v9690_v47  ;;  %v9691_v18 = vunpack.i.l.bf16 %v9690_v47  ;;  %v9988_v19 = vpack.i.bf16 %v8412_v41, %v8411_v2  ;;  %v21006_v25 = vld [vmem:[#allocation7_spill] sm:$0xff]  ;;  %v21010_v30 = vld [vmem:[#allocation5_spill] sm:$0xff]  ;;  %v21024_v28 = vld [vmem:[#allocation16_spill] sm:$0xff] }
 0x1bc   :  { %20996 = vst [vmem:[#allocation58_spill] sm:$0xff] %v14643_v1  ;;  %v9983_v16 = vpack.i.bf16 %v8410_v3, %v8409_v31  ;;  %v3341_v42 = vsel %vm3277_vm4, %v14370_v38, %v9532_v26  ;;  %v3340_v60 = vsel %vm3277_vm4, %v20997_v37, %v9531_v62  ;;  %v9687_v10 = vunpack.i.h.bf16 %v9685_v61  ;;  %v21003_v38 = vld [vmem:[#allocation132_spill] sm:$0xff]  ;;  %v21004_v26 = vld [vmem:[#allocation131_spill] sm:$0xff] }
 0x1bd   :  { %v9686_v54 = vunpack.i.l.bf16 %v9685_v61  ;;  %v21000_v23 = vpack.i.bf16 %v20998_v63, %v20999_v35  ;;  %v3339_v57 = vsel %vm3277_vm4, %v3274_v55, %v9527_v32  ;;  %v3338_v11 = vsel %vm3277_vm4, %v3273_v17, %v9526_v12  ;;  %v21007_v31 = vld [vmem:[#allocation8_spill] sm:$0xff]  ;;  %v14679_v12 = vpop.permute.xlu1 %9699  ;;  %v11525_v53 = vld [vmem:[%s20314_s0 + $0x60] sm:$0xff]  ;;  %v21013_v61 = vld [vmem:[#allocation9_spill] sm:$0xff]  ;;  %v14705_v37 = vpop.permute.xlu0 %9694 }
 0x1be   :  { %v14656_v2 = vsel %vm3342_vm5, %v3340_v60, %v9691_v18  ;;  %v14659_v51 = vsel %vm3342_vm5, %v3341_v42, %v9692_v50  ;;  %v21005_v62 = vpack.i.bf16 %v21003_v38, %v21004_v26  ;;  %v8926_v41 = vunpack.i.l.bf16 %v21006_v25  ;;  %v8413_v39 = vld [vmem:[%s20314_s0 + $0x301] sm:$0xff]  ;;  %v11528_v35 = vld [vmem:[%s20314_s0 + $0xb0] sm:$0xff]  ;;  %v21017_v26 = vld [vmem:[#allocation10_spill] sm:$0xff] }
 0x1bf   :  { %9979 = vrot.lane.b32.xlu1 %v21000_v23, %s11643_s12  ;;  %21001 = vst [vmem:[#allocation127_spill] sm:$0xff] %v14656_v2  ;;  %21002 = vst [vmem:[#allocation126_spill] sm:$0xff] %v14659_v51  ;;  %v8941_v3 = vunpack.i.l.bf16 %v21007_v31  ;;  %v14674_v56 = vsel %vm3342_vm5, %v3338_v11, %v9686_v54  ;;  %v14677_v32 = vsel %vm3342_vm5, %v3339_v57, %v9687_v10  ;;  %v21011_v17 = vunpack.i.l.bf16 %v21010_v30  ;;  %v11526_v55 = vld [vmem:[%s20314_s0 + $0x68] sm:$0xff]  ;;  %v21014_v10 = vld [vmem:[#allocation6_spill] sm:$0xff] }
 0x1c0   :  { %9974 = vrot.lane.b32.xlu0 %v21005_v62, %s11643_s12  ;;  %21008 = vst [vmem:[#allocation105_spill] sm:$0xff] %v14674_v56  ;;  %21009 = vst [vmem:[#allocation106_spill] sm:$0xff] %v14677_v32  ;;  %v21012_v47 = vunpack.i.h.bf16 %v21010_v30  ;;  %v8942_v18 = vunpack.i.h.bf16 %v21007_v31  ;;  %v8936_v42 = vunpack.i.l.bf16 %v21013_v61  ;;  %v11527_v60 = vld [vmem:[%s20314_s0 + $0xa8] sm:$0xff]  ;;  %v21015_v54 = vunpack.i.l.bf16 %v21014_v10  ;;  %v11536_v56 = vld [vmem:[%s20314_s0 + $0x110] sm:$0xff] }
 0x1c1   :  { %v14693_v59 = vsel %vm132_vm0, %v11525_v53, %v21011_v17  ;;  %v21016_v23 = vunpack.i.h.bf16 %v21014_v10  ;;  %v8937_v11 = vunpack.i.h.bf16 %v21013_v61  ;;  %v9998_v38 = vpack.i.bf16 %v8416_v14, %v8415_v27  ;;  %v21018_v53 = vld [vmem:[#allocation11_spill] sm:$0xff]  ;;  %v8417_v10 = vld [vmem:[%s20314_s0 + $0x331] sm:$0xff] }
 0x1c2   :  { %v14701_v50 = vsel %vm132_vm0, %v11526_v55, %v21012_v47  ;;  %v14713_v63 = vsel %vm132_vm0, %v11527_v60, %v21015_v54  ;;  %v8952_v62 = vunpack.i.h.bf16 %v21017_v26  ;;  %v8951_v31 = vunpack.i.l.bf16 %v21017_v26  ;;  %v8419_v55 = vld [vmem:[%s20314_s0 + $0x349] sm:$0xff]  ;;  %v8420_v47 = vld [vmem:[%s20314_s0 + $0x351] sm:$0xff]  ;;  %v11532_v54 = vld [vmem:[%s20314_s0 + $0xe0] sm:$0xff] }
 0x1c3   :  { %v14721_v57 = vsel %vm132_vm0, %v11528_v35, %v21016_v23  ;;  %9989 = vrot.lane.b32.xlu1 %v9988_v19, %s11643_s12  ;;  %v8946_v30 = vunpack.i.l.bf16 %v21018_v53  ;;  %v9993_v17 = vpack.i.bf16 %v8414_v46, %v8413_v39  ;;  %v11529_v19 = vld [vmem:[%s20314_s0 + $0x90] sm:$0xff]  ;;  %v21019_v14 = vunpack.i.h.bf16 %v21006_v25  ;;  %v11531_v46 = vld [vmem:[%s20314_s0 + $0xd8] sm:$0xff]  ;;  %v21020_v26 = vld [vmem:[#allocation12_spill] sm:$0xff] }
 0x1c4   :  { %9984 = vrot.lane.b32.xlu0 %v9983_v16, %s11643_s12  ;;  %v14739_v27 = vsel %vm132_vm0, %v11529_v19, %v8926_v41  ;;  %v11530_v16 = vld [vmem:[%s20314_s0 + $0x98] sm:$0xff]  ;;  %v14753_v61 = vsel %vm132_vm0, %v11531_v46, %v8941_v3  ;;  %v8947_v60 = vunpack.i.h.bf16 %v21018_v53  ;;  %v14756_v41 = vpop.permute.xlu1 %9709  ;;  %v14768_v35 = vsel %vm132_vm0, %v11532_v54, %v8942_v18  ;;  %v11533_v3 = vld [vmem:[%s20314_s0 + $0xc0] sm:$0xff]  ;;  %v21021_v46 = vld [vmem:[#allocation13_spill] sm:$0xff] }
 0x1c5   :  { %v14747_v39 = vsel %vm132_vm0, %v11530_v16, %v21019_v14  ;;  %v8418_v25 = vld [vmem:[%s20314_s0 + $0x339] sm:$0xff]  ;;  %v14774_v23 = vsel %vm132_vm0, %v11533_v3, %v8936_v42  ;;  %v8962_v53 = vunpack.i.h.bf16 %v21020_v26  ;;  %v8961_v19 = vunpack.i.l.bf16 %v21020_v26  ;;  %v14778_v16 = vpop.permute.xlu0 %9704  ;;  %v11534_v14 = vld [vmem:[%s20314_s0 + $0xc8] sm:$0xff] }
 0x1c6   :  { %v14784_v18 = vsel %vm132_vm0, %v11534_v14, %v8937_v11  ;;  %v8957_v54 = vunpack.i.h.bf16 %v21021_v46  ;;  %v8956_v32 = vunpack.i.l.bf16 %v21021_v46  ;;  %v10008_v42 = vpack.i.bf16 %v8420_v47, %v8419_v55  ;;  %v11535_v3 = vld [vmem:[%s20314_s0 + $0x108] sm:$0xff]  ;;  %v11537_v14 = vld [vmem:[%s20314_s0 + $0xf0] sm:$0xff]  ;;  %v8422_v51 = vld [vmem:[%s20314_s0 + $0x3a] sm:$0xff] }
 0x1c7   :  { %9999 = vrot.lane.b32.xlu1 %v9998_v38, %s11643_s12  ;;  %v14793_v26 = vsel %vm132_vm0, %v11535_v3, %v8951_v31  ;;  %v14799_v11 = vsel %vm132_vm0, %v11536_v56, %v8952_v62  ;;  %v14805_v38 = vsel %vm132_vm0, %v11537_v14, %v8946_v30  ;;  %v10003_v55 = vpack.i.bf16 %v8418_v25, %v8417_v10  ;;  %v8423_v31 = vld [vmem:[%s20314_s0 + $0x4a] sm:$0xff]  ;;  %v8424_v47 = vld [vmem:[%s20314_s0 + $0x52] sm:$0xff]  ;;  %v21023_v10 = vld [vmem:[#allocation15_spill] sm:$0xff] }
 0x1c8   :  { %9994 = vrot.lane.b32.xlu0 %v9993_v17, %s11643_s12  ;;  %v11538_v56 = vld [vmem:[%s20314_s0 + $0xf8] sm:$0xff]  ;;  %v8966_v25 = vunpack.i.l.bf16 %v21023_v10  ;;  %v14823_v3 = vpop.permute.xlu1 %9719  ;;  %v8967_v1 = vunpack.i.h.bf16 %v21023_v10  ;;  %v8976_v13 = vunpack.i.l.bf16 %v21024_v28  ;;  %v8977_v10 = vunpack.i.h.bf16 %v21024_v28 }
 0x1c9   :  { %v14818_v62 = vsel %vm132_vm0, %v11538_v56, %v8947_v60  ;;  %v21022_v30 = vld [vmem:[#allocation14_spill] sm:$0xff]  ;;  %v14845_v45 = vpop.permute.xlu0 %9714  ;;  %v10018_v22 = vpack.i.bf16 %v8424_v47, %v8423_v31  ;;  %v11543_v31 = vld [vmem:[%s20314_s0 + $0x168] sm:$0xff]  ;;  %v9057_v21 = vunpack.i.h.bf16 %v21027_v0  ;;  %v9067_v8 = vunpack.i.h.bf16 %v21031_v34 }
 0x1ca   :  { %v8972_v46 = vunpack.i.h.bf16 %v21022_v30  ;;  %v8971_v17 = vunpack.i.l.bf16 %v21022_v30  ;;  %v8421_v14 = vld [vmem:[%s20314_s0 + $0x32] sm:$0xff]  ;;  %v11540_v30 = vld [vmem:[%s20314_s0 + $0x140] sm:$0xff]  ;;  %21025 = vst [vmem:[#allocation61_spill] sm:$0xff] %v14845_v45  ;;  %v9066_v24 = vunpack.i.l.bf16 %v21031_v34  ;;  %v8431_v34 = vld [vmem:[%s20314_s0 + $0xaa] sm:$0xff]  ;;  %v9091_v33 = vunpack.i.l.bf16 %v21041_v52 }
 0x1cb   :  { %v11539_v60 = vld [vmem:[%s20314_s0 + $0x138] sm:$0xff]  ;;  %v14841_v2 = vsel %vm132_vm0, %v11540_v30, %v8962_v53  ;;  %v554_v30 = vld [vmem:[%s20314_s0 + $0x1b0] sm:$0xff]  ;;  %10009 = vrot.lane.b32.xlu1 %v10008_v42, %s11643_s12  ;;  %v10013_v28 = vpack.i.bf16 %v8422_v51, %v8421_v14  ;;  %v8428_v42 = vld [vmem:[%s20314_s0 + $0x82] sm:$0xff]  ;;  %v14975_v5 = vsel %vm3147_vm1, %v21044_v29, %v9067_v8 }
 0x1cc   :  { %v14835_v56 = vsel %vm132_vm0, %v11539_v60, %v8961_v19  ;;  %v14851_v19 = vsel %vm132_vm0, %v11541_v44, %v8956_v32  ;;  %v11542_v60 = vld [vmem:[%s20314_s0 + $0x128] sm:$0xff]  ;;  %v555_v44 = vld [vmem:[%s20314_s0 + $0x1b8] sm:$0xff]  ;;  %v21026_v32 = vld [vmem:[#allocation17_spill] sm:$0xff]  ;;  %10004 = vrot.lane.b32.xlu0 %v10003_v55, %s11643_s12  ;;  %v14881_v47 = vsel %vm132_vm0, %v11543_v31, %v8971_v17  ;;  %v14896_v6 = vpop.permute.xlu1 %9729  ;;  %v14971_v58 = vsel %vm3147_vm1, %v21043_v48, %v9066_v24  ;;  %s11647_s12 = smov 48  }
 0x1cd   :  { %v14857_v53 = vsel %vm132_vm0, %v11542_v60, %v8957_v54  ;;  %v9062_v40 = vunpack.i.h.bf16 %v21026_v32  ;;  %v9061_v43 = vunpack.i.l.bf16 %v21026_v32  ;;  %v9056_v54 = vunpack.i.l.bf16 %v21027_v0  ;;  %v8427_v60 = vld [vmem:[%s20314_s0 + $0x7a] sm:$0xff]  ;;  %v11544_v55 = vld [vmem:[%s20314_s0 + $0x170] sm:$0xff]  ;;  %21028 = vst [vmem:[#allocation107_spill] sm:$0xff] %v14896_v6  ;;  %v8425_v17 = vld [vmem:[%s20314_s0 + $0x62] sm:$0xff]  ;;  %v14915_v36 = vpop.permute.xlu0 %9724 }
 0x1ce   :  { %v14887_v51 = vsel %vm132_vm0, %v11544_v55, %v8972_v46  ;;  %v11545_v14 = vld [vmem:[%s20314_s0 + $0x150] sm:$0xff]  ;;  %v11546_v31 = vld [vmem:[%s20314_s0 + $0x158] sm:$0xff]  ;;  %v21029_v0 = vld [vmem:[#allocation19_spill] sm:$0xff]  ;;  %21030 = vst [vmem:[#allocation129_spill] sm:$0xff] %v14915_v36  ;;  %v14918_v20 = vsel %vm132_vm0, %v555_v44, %v8977_v10 }
 0x1cf   :  { %v14893_v32 = vsel %vm132_vm0, %v11545_v14, %v8966_v25  ;;  %v8426_v46 = vld [vmem:[%s20314_s0 + $0x6a] sm:$0xff]  ;;  %v14908_v55 = vsel %vm132_vm0, %v11546_v31, %v8967_v1  ;;  %v14911_v25 = vsel %vm132_vm0, %v554_v30, %v8976_v13  ;;  %v9072_v14 = vunpack.i.h.bf16 %v21029_v0  ;;  %10019 = vrot.lane.b32.xlu1 %v10018_v22, %s11644_s18  ;;  %v21032_v31 = vld [vmem:[#allocation90_spill] sm:$0xff]  ;;  %v21033_v30 = vld [vmem:[#allocation91_spill] sm:$0xff] }
 0x1d0   :  { %v9071_v4 = vunpack.i.l.bf16 %v21029_v0  ;;  %v10028_v1 = vpack.i.bf16 %v8428_v42, %v8427_v60  ;;  %v14925_v13 = vsel %vm3147_vm1, %v21032_v31, %v9061_v43  ;;  %v14929_v0 = vsel %vm3147_vm1, %v21033_v30, %v9062_v40  ;;  %10014 = vrot.lane.b32.xlu0 %v10013_v28, %s11644_s18  ;;  %v8432_v43 = vld [vmem:[%s20314_s0 + $0xb2] sm:$0xff]  ;;  %v14949_v28 = vpop.permute.xlu1 %9739  ;;  %v21039_v30 = vld [vmem:[#allocation87_spill] sm:$0xff] }
 0x1d1   :  { %v14933_v10 = vsel %vm3147_vm1, %v21034_v7, %v9056_v54  ;;  %v10023_v44 = vpack.i.bf16 %v8426_v46, %v8425_v17  ;;  %v21035_v22 = vld [vmem:[#allocation86_spill] sm:$0xff]  ;;  %v21036_v40 = vld [vmem:[#allocation21_spill] sm:$0xff]  ;;  %21038 = vst [vmem:[#allocation63_spill] sm:$0xff] %v14949_v28  ;;  %v14967_v9 = vpop.permute.xlu0 %9734  ;;  %v8436_v29 = vld [vmem:[%s20314_s0 + $0xe2] sm:$0xff] }
 0x1d2   :  { %v14944_v60 = vsel %vm3147_vm1, %v21035_v22, %v9057_v21  ;;  %v9082_v42 = vunpack.i.h.bf16 %v21036_v40  ;;  %v9081_v7 = vunpack.i.l.bf16 %v21036_v40  ;;  %v21037_v54 = vld [vmem:[#allocation22_spill] sm:$0xff]  ;;  %v14959_v21 = vsel %vm3147_vm1, %v21039_v30, %v9071_v4  ;;  %v21040_v22 = vld [vmem:[#allocation89_spill] sm:$0xff]  ;;  %21042 = vst [vmem:[#allocation116_spill] sm:$0xff] %v14967_v9  ;;  %v21045_v30 = vld [vmem:[#allocation24_spill] sm:$0xff] }
 0x1d3   :  { %v9076_v31 = vunpack.i.l.bf16 %v21037_v54  ;;  %v8429_v17 = vld [vmem:[%s20314_s0 + $0x92] sm:$0xff]  ;;  %v8430_v46 = vld [vmem:[%s20314_s0 + $0x9a] sm:$0xff]  ;;  %v14963_v15 = vsel %vm3147_vm1, %v21040_v22, %v9072_v14  ;;  %v9077_v40 = vunpack.i.h.bf16 %v21037_v54  ;;  %v9092_v4 = vunpack.i.h.bf16 %v21041_v52  ;;  %10029 = vrot.lane.b32.xlu1 %v10028_v1, %s11644_s18  ;;  %v21047_v52 = vld [vmem:[#allocation92_spill] sm:$0xff] }
 0x1d4   :  { %v10038_v14 = vpack.i.bf16 %v8432_v43, %v8431_v34  ;;  %v9087_v22 = vunpack.i.h.bf16 %v21045_v30  ;;  %v9086_v54 = vunpack.i.l.bf16 %v21045_v30  ;;  %v21046_v28 = vld [vmem:[#allocation25_spill] sm:$0xff]  ;;  %10024 = vrot.lane.b32.xlu0 %v10023_v44, %s11644_s18  ;;  %v10033_v9 = vpack.i.bf16 %v8430_v46, %v8429_v17  ;;  %v8435_v48 = vld [vmem:[%s20314_s0 + $0xda] sm:$0xff]  ;;  %v15002_v43 = vpop.permute.xlu1 %9749  ;;  %v8433_v17 = vld [vmem:[%s20314_s0 + $0xc2] sm:$0xff] }
 0x1d5   :  { %v9101_v36 = vunpack.i.l.bf16 %v21046_v28  ;;  %v14991_v24 = vsel %vm3147_vm1, %v21047_v52, %v9081_v7  ;;  %v21048_v8 = vld [vmem:[#allocation94_spill] sm:$0xff]  ;;  %v14999_v44 = vsel %vm3147_vm1, %v14693_v59, %v9076_v31  ;;  %v9102_v34 = vunpack.i.h.bf16 %v21046_v28  ;;  %21049 = vst [vmem:[#allocation117_spill] sm:$0xff] %v15002_v43  ;;  %v8434_v7 = vld [vmem:[%s20314_s0 + $0xca] sm:$0xff]  ;;  %v15020_v30 = vpop.permute.xlu0 %9744 }
 0x1d6   :  { %v14995_v1 = vsel %vm3147_vm1, %v21048_v8, %v9082_v42  ;;  %v15012_v42 = vsel %vm3147_vm1, %v14701_v50, %v9077_v40  ;;  %v15016_v59 = vsel %vm3147_vm1, %v14713_v63, %v9091_v33  ;;  %v21050_v31 = vld [vmem:[#allocation26_spill] sm:$0xff]  ;;  %21051 = vst [vmem:[#allocation84_spill] sm:$0xff] %v15020_v30  ;;  %v15024_v52 = vsel %vm3147_vm1, %v14721_v57, %v9092_v4  ;;  %v21052_v8 = vld [vmem:[#allocation27_spill] sm:$0xff]  ;;  %v8439_v4 = vld [vmem:[%s20314_s0 + $0x10a] sm:$0xff] }
 0x1d7   :  { %v9097_v28 = vunpack.i.h.bf16 %v21050_v31  ;;  %v9096_v46 = vunpack.i.l.bf16 %v21050_v31  ;;  %v9112_v43 = vunpack.i.h.bf16 %v21052_v8  ;;  %v9111_v6 = vunpack.i.l.bf16 %v21052_v8  ;;  %10039 = vrot.lane.b32.xlu1 %v10038_v14, %s11644_s18  ;;  %v21059_v30 = vld [vmem:[#allocation32_spill] sm:$0xff] }
 0x1d8   :  { %v10048_v50 = vpack.i.bf16 %v8436_v29, %v8435_v48  ;;  %v15031_v33 = vsel %vm3147_vm1, %v14739_v27, %v9086_v54  ;;  %v15035_v63 = vsel %vm3147_vm1, %v14747_v39, %v9087_v22  ;;  %v15039_v40 = vsel %vm3147_vm1, %v14753_v61, %v9101_v36  ;;  %10034 = vrot.lane.b32.xlu0 %v10033_v9, %s11644_s18  ;;  %v8440_v27 = vld [vmem:[%s20314_s0 + $0x112] sm:$0xff]  ;;  %v21053_v39 = vld [vmem:[#allocation28_spill] sm:$0xff]  ;;  %v15055_v9 = vpop.permute.xlu1 %9759  ;;  %v8438_v29 = vld [vmem:[%s20314_s0 + $0xfa] sm:$0xff] }
 0x1d9   :  { %v10043_v57 = vpack.i.bf16 %v8434_v7, %v8433_v17  ;;  %v15050_v14 = vsel %vm3147_vm1, %v14768_v35, %v9102_v34  ;;  %v9107_v22 = vunpack.i.h.bf16 %v21053_v39  ;;  %v9106_v36 = vunpack.i.l.bf16 %v21053_v39  ;;  %v21054_v61 = vld [vmem:[#allocation29_spill] sm:$0xff]  ;;  %21055 = vst [vmem:[#allocation64_spill] sm:$0xff] %v15055_v9  ;;  %v21056_v7 = vld [vmem:[#allocation30_spill] sm:$0xff]  ;;  %v15073_v8 = vpop.permute.xlu0 %9754 }
 0x1da   :  { %v9121_v54 = vunpack.i.l.bf16 %v21054_v61  ;;  %v8437_v48 = vld [vmem:[%s20314_s0 + $0xf2] sm:$0xff]  ;;  %v15065_v35 = vsel %vm3147_vm1, %v14774_v23, %v9096_v46  ;;  %v15069_v34 = vsel %vm3147_vm1, %v14784_v18, %v9097_v28  ;;  %v9122_v17 = vunpack.i.h.bf16 %v21054_v61  ;;  %21057 = vst [vmem:[#allocation130_spill] sm:$0xff] %v15073_v8  ;;  %v21058_v28 = vld [vmem:[#allocation31_spill] sm:$0xff] }
 0x1db   :  { %v9116_v31 = vunpack.i.l.bf16 %v21056_v7  ;;  %v15077_v39 = vsel %vm3147_vm1, %v14793_v26, %v9111_v6  ;;  %v15081_v9 = vsel %vm3147_vm1, %v14799_v11, %v9112_v43  ;;  %v9117_v23 = vunpack.i.h.bf16 %v21056_v7  ;;  %10049 = vrot.lane.b32.xlu1 %v10048_v50, %s11644_s18  ;;  %v8443_v6 = vld [vmem:[%s20314_s0 + $0x13a] sm:$0xff]  ;;  %v8444_v26 = vld [vmem:[%s20314_s0 + $0x142] sm:$0xff] }
 0x1dc   :  { %v10058_v18 = vpack.i.bf16 %v8440_v27, %v8439_v4  ;;  %v9132_v46 = vunpack.i.h.bf16 %v21058_v28  ;;  %v9131_v61 = vunpack.i.l.bf16 %v21058_v28  ;;  %v9126_v45 = vunpack.i.l.bf16 %v21059_v30  ;;  %10044 = vrot.lane.b32.xlu0 %v10043_v57, %s11644_s18  ;;  %v15108_v4 = vpop.permute.xlu1 %9769  ;;  %v8441_v27 = vld [vmem:[%s20314_s0 + $0x122] sm:$0xff] }
 0x1dd   :  { %v10053_v8 = vpack.i.bf16 %v8438_v29, %v8437_v48  ;;  %v15097_v11 = vsel %vm3147_vm1, %v14805_v38, %v9106_v36  ;;  %v15101_v43 = vsel %vm3147_vm1, %v14818_v62, %v9107_v22  ;;  %v15105_v50 = vsel %vm3147_vm1, %v14835_v56, %v9121_v54  ;;  %21060 = vst [vmem:[#allocation132_spill] sm:$0xff] %v15108_v4  ;;  %v8442_v38 = vld [vmem:[%s20314_s0 + $0x12a] sm:$0xff]  ;;  %v15126_v54 = vpop.permute.xlu0 %9764  ;;  %v21063_v29 = vld [vmem:[#allocation34_spill] sm:$0xff]  ;;  %v21070_v4 = vld [vmem:[#allocation39_spill] sm:$0xff] }
 0x1de   :  { %v9127_v57 = vunpack.i.h.bf16 %v21059_v30  ;;  %v15118_v62 = vsel %vm3147_vm1, %v14841_v2, %v9122_v17  ;;  %v15122_v56 = vsel %vm3147_vm1, %v14851_v19, %v9116_v31  ;;  %v21061_v22 = vld [vmem:[#allocation33_spill] sm:$0xff]  ;;  %21062 = vst [vmem:[#allocation131_spill] sm:$0xff] %v15126_v54  ;;  %v15130_v48 = vsel %vm3147_vm1, %v14857_v53, %v9117_v23 }
 0x1df   :  { %v9137_v30 = vunpack.i.h.bf16 %v21061_v22  ;;  %v9136_v36 = vunpack.i.l.bf16 %v21061_v22  ;;  %v9222_v7 = vunpack.i.h.bf16 %v21063_v29  ;;  %v9221_v28 = vunpack.i.l.bf16 %v21063_v29  ;;  %10059 = vrot.lane.b32.xlu1 %v10058_v18, %s11644_s18  ;;  %v8447_v23 = vld [vmem:[%s20314_s0 + $0x16a] sm:$0xff] }
 0x1e0   :  { %v10068_v2 = vpack.i.bf16 %v8444_v26, %v8443_v6  ;;  %v15137_v19 = vsel %vm3147_vm1, %v14881_v47, %v9131_v61  ;;  %v15141_v17 = vsel %vm3147_vm1, %v14887_v51, %v9132_v46  ;;  %v15145_v31 = vsel %vm3147_vm1, %v14893_v32, %v9126_v45  ;;  %10054 = vrot.lane.b32.xlu0 %v10053_v8, %s11644_s18  ;;  %v8448_v47 = vld [vmem:[%s20314_s0 + $0x172] sm:$0xff]  ;;  %v21064_v51 = vld [vmem:[#allocation35_spill] sm:$0xff]  ;;  %v21065_v32 = vld [vmem:[#allocation36_spill] sm:$0xff]  ;;  %v15161_v8 = vpop.permute.xlu1 %9779 }
 0x1e1   :  { %v10063_v53 = vpack.i.bf16 %v8442_v38, %v8441_v27  ;;  %v15156_v18 = vsel %vm3147_vm1, %v14908_v55, %v9127_v57  ;;  %v9217_v46 = vunpack.i.h.bf16 %v21064_v51  ;;  %v9216_v45 = vunpack.i.l.bf16 %v21064_v51  ;;  %21066 = vst [vmem:[#allocation7_spill] sm:$0xff] %v15161_v8  ;;  %v8445_v6 = vld [vmem:[%s20314_s0 + $0x152] sm:$0xff]  ;;  %v8446_v26 = vld [vmem:[%s20314_s0 + $0x15a] sm:$0xff]  ;;  %v15179_v29 = vpop.permute.xlu0 %9774 }
 0x1e2   :  { %v9231_v61 = vunpack.i.l.bf16 %v21065_v32  ;;  %v15171_v55 = vsel %vm3147_vm1, %v14911_v25, %v9136_v36  ;;  %v15175_v57 = vsel %vm3147_vm1, %v14918_v20, %v9137_v30  ;;  %v9232_v27 = vunpack.i.h.bf16 %v21065_v32  ;;  %v21067_v38 = vld [vmem:[#allocation37_spill] sm:$0xff]  ;;  %21068 = vst [vmem:[#allocation8_spill] sm:$0xff] %v15179_v29  ;;  %v21069_v30 = vld [vmem:[#allocation38_spill] sm:$0xff] }
 0x1e3   :  { %v9226_v22 = vunpack.i.l.bf16 %v21067_v38  ;;  %v15183_v51 = vsel %vm3212_vm3, %v14925_v13, %v9221_v28  ;;  %v15187_v54 = vsel %vm3212_vm3, %v14929_v0, %v9222_v7  ;;  %v9227_v25 = vunpack.i.h.bf16 %v21067_v38  ;;  %10069 = vrot.lane.b32.xlu1 %v10068_v2, %s11644_s18  ;;  %v8451_v13 = vld [vmem:[%s20314_s0 + $0x19a] sm:$0xff]  ;;  %v8452_v0 = vld [vmem:[%s20314_s0 + $0x1a2] sm:$0xff] }
 0x1e4   :  { %v10078_v20 = vpack.i.bf16 %v8448_v47, %v8447_v23  ;;  %v9242_v36 = vunpack.i.h.bf16 %v21069_v30  ;;  %v9241_v32 = vunpack.i.l.bf16 %v21069_v30  ;;  %v9236_v8 = vunpack.i.l.bf16 %v21070_v4  ;;  %10064 = vrot.lane.b32.xlu0 %v10063_v53, %s11644_s18  ;;  %v15214_v23 = vpop.permute.xlu1 %9789  ;;  %v8449_v47 = vld [vmem:[%s20314_s0 + $0x182] sm:$0xff] }
 0x1e5   :  { %v10073_v29 = vpack.i.bf16 %v8446_v26, %v8445_v6  ;;  %v15203_v7 = vsel %vm3212_vm3, %v14933_v10, %v9216_v45  ;;  %v15207_v28 = vsel %vm3212_vm3, %v14944_v60, %v9217_v46  ;;  %v15211_v2 = vsel %vm3212_vm3, %v14959_v21, %v9231_v61  ;;  %21071 = vst [vmem:[#allocation5_spill] sm:$0xff] %v15214_v23  ;;  %v8450_v10 = vld [vmem:[%s20314_s0 + $0x18a] sm:$0xff]  ;;  %v15232_v61 = vpop.permute.xlu0 %9784 }
 0x1e6   :  { %v9237_v53 = vunpack.i.h.bf16 %v21070_v4  ;;  %v15224_v60 = vsel %vm3212_vm3, %v14963_v15, %v9232_v27  ;;  %v15228_v21 = vsel %vm3212_vm3, %v14971_v58, %v9226_v22  ;;  %v21072_v46 = vld [vmem:[#allocation40_spill] sm:$0xff]  ;;  %21073 = vst [vmem:[#allocation9_spill] sm:$0xff] %v15232_v61  ;;  %v15236_v6 = vsel %vm3212_vm3, %v14975_v5, %v9227_v25  ;;  %v21074_v26 = vld [vmem:[#allocation41_spill] sm:$0xff]  ;;  %v8455_v25 = vld [vmem:[%s20314_s0 + $0x1fa] sm:$0xff] }
 0x1e7   :  { %v9252_v4 = vunpack.i.h.bf16 %v21072_v46  ;;  %v9251_v45 = vunpack.i.l.bf16 %v21072_v46  ;;  %v9247_v38 = vunpack.i.h.bf16 %v21074_v26  ;;  %v9246_v30 = vunpack.i.l.bf16 %v21074_v26  ;;  %10079 = vrot.lane.b32.xlu1 %v10078_v20, %s11644_s18  ;;  %v21081_v61 = vld [vmem:[#allocation46_spill] sm:$0xff] }
 0x1e8   :  { %v10088_v15 = vpack.i.bf16 %v8452_v0, %v8451_v13  ;;  %v15243_v58 = vsel %vm3212_vm3, %v14991_v24, %v9241_v32  ;;  %v15247_v27 = vsel %vm3212_vm3, %v14995_v1, %v9242_v36  ;;  %v15251_v22 = vsel %vm3212_vm3, %v14999_v44, %v9236_v8  ;;  %10074 = vrot.lane.b32.xlu0 %v10073_v29, %s11644_s18  ;;  %v8456_v24 = vld [vmem:[%s20314_s0 + $0x202] sm:$0xff]  ;;  %v21075_v1 = vld [vmem:[#allocation42_spill] sm:$0xff]  ;;  %v15267_v29 = vpop.permute.xlu1 %9799  ;;  %v8454_v0 = vld [vmem:[%s20314_s0 + $0x1ea] sm:$0xff] }
 0x1e9   :  { %v10083_v5 = vpack.i.bf16 %v8450_v10, %v8449_v47  ;;  %v15262_v20 = vsel %vm3212_vm3, %v15012_v42, %v9237_v53  ;;  %v9262_v36 = vunpack.i.h.bf16 %v21075_v1  ;;  %v9261_v44 = vunpack.i.l.bf16 %v21075_v1  ;;  %v21076_v8 = vld [vmem:[#allocation43_spill] sm:$0xff]  ;;  %21077 = vst [vmem:[#allocation6_spill] sm:$0xff] %v15267_v29  ;;  %v21078_v10 = vld [vmem:[#allocation44_spill] sm:$0xff]  ;;  %v15285_v26 = vpop.permute.xlu0 %9794 }
 0x1ea   :  { %v9256_v32 = vunpack.i.l.bf16 %v21076_v8  ;;  %v8453_v13 = vld [vmem:[%s20314_s0 + $0x1e2] sm:$0xff]  ;;  %v15277_v42 = vsel %vm3212_vm3, %v15016_v59, %v9251_v45  ;;  %v15281_v53 = vsel %vm3212_vm3, %v15024_v52, %v9252_v4  ;;  %v9257_v47 = vunpack.i.h.bf16 %v21076_v8  ;;  %21079 = vst [vmem:[#allocation10_spill] sm:$0xff] %v15285_v26  ;;  %v21080_v4 = vld [vmem:[#allocation45_spill] sm:$0xff] }
 0x1eb   :  { %v9271_v46 = vunpack.i.l.bf16 %v21078_v10  ;;  %v15289_v1 = vsel %vm3212_vm3, %v15031_v33, %v9246_v30  ;;  %v15293_v29 = vsel %vm3212_vm3, %v15035_v63, %v9247_v38  ;;  %v9272_v59 = vunpack.i.h.bf16 %v21078_v10  ;;  %10089 = vrot.lane.b32.xlu1 %v10088_v15, %s11644_s18  ;;  %v8459_v33 = vld [vmem:[%s20314_s0 + $0x22a] sm:$0xff]  ;;  %v8460_v63 = vld [vmem:[%s20314_s0 + $0x232] sm:$0xff] }
 0x1ec   :  { %v10098_v52 = vpack.i.bf16 %v8456_v24, %v8455_v25  ;;  %v9267_v45 = vunpack.i.h.bf16 %v21080_v4  ;;  %v9266_v8 = vunpack.i.l.bf16 %v21080_v4  ;;  %v9281_v23 = vunpack.i.l.bf16 %v21081_v61  ;;  %10084 = vrot.lane.b32.xlu0 %v10083_v5, %s11644_s18  ;;  %v15320_v25 = vpop.permute.xlu1 %9809  ;;  %v8457_v24 = vld [vmem:[%s20314_s0 + $0x212] sm:$0xff] }
 0x1ed   :  { %v10093_v26 = vpack.i.bf16 %v8454_v0, %v8453_v13  ;;  %v15309_v38 = vsel %vm3212_vm3, %v15039_v40, %v9261_v44  ;;  %v15313_v30 = vsel %vm3212_vm3, %v15050_v14, %v9262_v36  ;;  %v15317_v15 = vsel %vm3212_vm3, %v15065_v35, %v9256_v32  ;;  %21082 = vst [vmem:[#allocation11_spill] sm:$0xff] %v15320_v25  ;;  %v8458_v40 = vld [vmem:[%s20314_s0 + $0x21a] sm:$0xff]  ;;  %v15338_v32 = vpop.permute.xlu0 %9804  ;;  %v21085_v0 = vld [vmem:[#allocation48_spill] sm:$0xff] }
 0x1ee   :  { %v9282_v5 = vunpack.i.h.bf16 %v21081_v61  ;;  %v15330_v14 = vsel %vm3212_vm3, %v15069_v34, %v9257_v47  ;;  %v15334_v35 = vsel %vm3212_vm3, %v15077_v39, %v9271_v46  ;;  %v21083_v36 = vld [vmem:[#allocation47_spill] sm:$0xff]  ;;  %21084 = vst [vmem:[#allocation12_spill] sm:$0xff] %v15338_v32  ;;  %v15342_v13 = vsel %vm3212_vm3, %v15081_v9, %v9272_v59  ;;  %v21092_v32 = vld [vmem:[#allocation68_spill] sm:$0xff] }
 0x1ef   :  { %v9277_v61 = vunpack.i.h.bf16 %v21083_v36  ;;  %v9276_v44 = vunpack.i.l.bf16 %v21083_v36  ;;  %v9292_v10 = vunpack.i.h.bf16 %v21085_v0  ;;  %v9291_v4 = vunpack.i.l.bf16 %v21085_v0  ;;  %10099 = vrot.lane.b32.xlu1 %v10098_v52, %s11644_s18  ;;  %v8463_v59 = vld [vmem:[%s20314_s0 + $0x25a] sm:$0xff] }
 0x1f0   :  { %v10108_v34 = vpack.i.bf16 %v8460_v63, %v8459_v33  ;;  %v15349_v39 = vsel %vm3212_vm3, %v15097_v11, %v9266_v8  ;;  %v15353_v47 = vsel %vm3212_vm3, %v15101_v43, %v9267_v45  ;;  %v15357_v46 = vsel %vm3212_vm3, %v15105_v50, %v9281_v23  ;;  %10094 = vrot.lane.b32.xlu0 %v10093_v26, %s11644_s18  ;;  %v8464_v11 = vld [vmem:[%s20314_s0 + $0x262] sm:$0xff]  ;;  %v21086_v43 = vld [vmem:[#allocation49_spill] sm:$0xff]  ;;  %v15373_v26 = vpop.permute.xlu1 %9819 }
 0x1f1   :  { %v10103_v9 = vpack.i.bf16 %v8458_v40, %v8457_v24  ;;  %v15368_v52 = vsel %vm3212_vm3, %v15118_v62, %v9282_v5  ;;  %v9287_v45 = vunpack.i.h.bf16 %v21086_v43  ;;  %v9286_v50 = vunpack.i.l.bf16 %v21086_v43  ;;  %v21087_v23 = vld [vmem:[#allocation51_spill] sm:$0xff]  ;;  %21088 = vst [vmem:[#allocation13_spill] sm:$0xff] %v15373_v26  ;;  %v8462_v63 = vld [vmem:[%s20314_s0 + $0x24a] sm:$0xff]  ;;  %v21089_v40 = vld [vmem:[#allocation66_spill] sm:$0xff]  ;;  %v15391_v0 = vpop.permute.xlu0 %9814 }
 0x1f2   :  { %v9296_v8 = vunpack.i.l.bf16 %v21087_v23  ;;  %v8461_v33 = vld [vmem:[%s20314_s0 + $0x242] sm:$0xff]  ;;  %v15383_v62 = vsel %vm3212_vm3, %v15122_v56, %v9276_v44  ;;  %v15387_v5 = vsel %vm3212_vm3, %v15130_v48, %v9277_v61  ;;  %v9297_v24 = vunpack.i.h.bf16 %v21087_v23  ;;  %21090 = vst [vmem:[#allocation14_spill] sm:$0xff] %v15391_v0 }
 0x1f3   :  { %v9382_v36 = vunpack.i.h.bf16 %v21089_v40  ;;  %v15395_v43 = vsel %vm3212_vm3, %v15137_v19, %v9291_v4  ;;  %v15399_v26 = vsel %vm3212_vm3, %v15141_v17, %v9292_v10  ;;  %v9381_v56 = vunpack.i.l.bf16 %v21089_v40  ;;  %10109 = vrot.lane.b32.xlu1 %v10108_v34, %s11644_s18  ;;  %v21091_v61 = vld [vmem:[#allocation67_spill] sm:$0xff]  ;;  %v8467_v19 = vld [vmem:[%s20314_s0 + $0x28a] sm:$0xff]  ;;  %v8468_v17 = vld [vmem:[%s20314_s0 + $0x292] sm:$0xff] }
 0x1f4   :  { %v10118_v48 = vpack.i.bf16 %v8464_v11, %v8463_v59  ;;  %v9377_v44 = vunpack.i.h.bf16 %v21091_v61  ;;  %v9376_v23 = vunpack.i.l.bf16 %v21091_v61  ;;  %v9392_v25 = vunpack.i.h.bf16 %v21092_v32  ;;  %10104 = vrot.lane.b32.xlu0 %v10103_v9, %s11644_s18  ;;  %v15426_v59 = vpop.permute.xlu1 %9829  ;;  %v8465_v11 = vld [vmem:[%s20314_s0 + $0x272] sm:$0xff] }
 0x1f5   :  { %v10113_v0 = vpack.i.bf16 %v8462_v63, %v8461_v33  ;;  %v15415_v10 = vsel %vm3212_vm3, %v15145_v31, %v9286_v50  ;;  %v15419_v4 = vsel %vm3212_vm3, %v15156_v18, %v9287_v45  ;;  %v15423_v34 = vsel %vm3212_vm3, %v15171_v55, %v9296_v8  ;;  %21093 = vst [vmem:[#allocation15_spill] sm:$0xff] %v15426_v59  ;;  %v8466_v31 = vld [vmem:[%s20314_s0 + $0x27a] sm:$0xff]  ;;  %v21094_v45 = vld [vmem:[#allocation69_spill] sm:$0xff]  ;;  %v15444_v8 = vpop.permute.xlu0 %9824 }
 0x1f6   :  { %v9391_v9 = vunpack.i.l.bf16 %v21092_v32  ;;  %v15436_v18 = vsel %vm3212_vm3, %v15175_v57, %v9297_v24  ;;  %v15440_v55 = vsel %vm3277_vm4, %v15187_v54, %v9382_v36  ;;  %v9387_v32 = vunpack.i.h.bf16 %v21094_v45  ;;  %21095 = vst [vmem:[#allocation16_spill] sm:$0xff] %v15444_v8  ;;  %v21096_v63 = vld [vmem:[#allocation70_spill] sm:$0xff]  ;;  %v21103_v8 = vld [vmem:[#allocation75_spill] sm:$0xff] }
 0x1f7   :  { %v9386_v50 = vunpack.i.l.bf16 %v21094_v45  ;;  %v15448_v33 = vsel %vm3277_vm4, %v15183_v51, %v9381_v56  ;;  %v9402_v40 = vunpack.i.h.bf16 %v21096_v63  ;;  %v9401_v61 = vunpack.i.l.bf16 %v21096_v63  ;;  %10119 = vrot.lane.b32.xlu1 %v10118_v48, %s11644_s18  ;;  %v8471_v56 = vld [vmem:[%s20314_s0 + $0x2ba] sm:$0xff] }
 0x1f8   :  { %v10128_v57 = vpack.i.bf16 %v8468_v17, %v8467_v19  ;;  %v15455_v54 = vsel %vm3277_vm4, %v15207_v28, %v9377_v44  ;;  %v15459_v24 = vsel %vm3277_vm4, %v15203_v7, %v9376_v23  ;;  %v15463_v36 = vsel %vm3277_vm4, %v15224_v60, %v9392_v25  ;;  %10114 = vrot.lane.b32.xlu0 %v10113_v0, %s11644_s18  ;;  %v8472_v28 = vld [vmem:[%s20314_s0 + $0x2c2] sm:$0xff]  ;;  %v15479_v0 = vpop.permute.xlu1 %9839  ;;  %v8470_v17 = vld [vmem:[%s20314_s0 + $0x2aa] sm:$0xff] }
 0x1f9   :  { %v10123_v51 = vpack.i.bf16 %v8466_v31, %v8465_v11  ;;  %v15474_v48 = vsel %vm3277_vm4, %v15211_v2, %v9391_v9  ;;  %v21097_v7 = vld [vmem:[#allocation71_spill] sm:$0xff]  ;;  %v21098_v25 = vld [vmem:[#allocation72_spill] sm:$0xff]  ;;  %21099 = vst [vmem:[#allocation17_spill] sm:$0xff] %v15479_v0  ;;  %v15489_v2 = vsel %vm3277_vm4, %v15236_v6, %v9387_v32  ;;  %v15493_v9 = vsel %vm3277_vm4, %v15228_v21, %v9386_v50  ;;  %v21100_v31 = vld [vmem:[#allocation73_spill] sm:$0xff]  ;;  %v15497_v63 = vpop.permute.xlu0 %9834 }
 0x1fa   :  { %v9397_v44 = vunpack.i.h.bf16 %v21097_v7  ;;  %v9396_v60 = vunpack.i.l.bf16 %v21097_v7  ;;  %v9412_v23 = vunpack.i.h.bf16 %v21098_v25  ;;  %v8469_v19 = vld [vmem:[%s20314_s0 + $0x2a2] sm:$0xff]  ;;  %v9411_v11 = vunpack.i.l.bf16 %v21098_v25  ;;  %21101 = vst [vmem:[#allocation18_spill] sm:$0xff] %v15497_v63  ;;  %v21102_v32 = vld [vmem:[#allocation74_spill] sm:$0xff] }
 0x1fb   :  { %v9407_v45 = vunpack.i.h.bf16 %v21100_v31  ;;  %v15501_v7 = vsel %vm3277_vm4, %v15247_v27, %v9402_v40  ;;  %v15505_v0 = vsel %vm3277_vm4, %v15243_v58, %v9401_v61  ;;  %v9406_v6 = vunpack.i.l.bf16 %v21100_v31  ;;  %10129 = vrot.lane.b32.xlu1 %v10128_v57, %s11644_s18  ;;  %v8475_v27 = vld [vmem:[%s20314_s0 + $0x2ea] sm:$0xff]  ;;  %v8476_v58 = vld [vmem:[%s20314_s0 + $0x2f2] sm:$0xff] }
 0x1fc   :  { %v10138_v21 = vpack.i.bf16 %v8472_v28, %v8471_v56  ;;  %v9422_v50 = vunpack.i.h.bf16 %v21102_v32  ;;  %v9421_v25 = vunpack.i.l.bf16 %v21102_v32  ;;  %v9417_v59 = vunpack.i.h.bf16 %v21103_v8  ;;  %10124 = vrot.lane.b32.xlu0 %v10123_v51, %s11644_s18  ;;  %v15532_v56 = vpop.permute.xlu1 %9849  ;;  %v8473_v28 = vld [vmem:[%s20314_s0 + $0x2d2] sm:$0xff] }
 0x1fd   :  { %v10133_v63 = vpack.i.bf16 %v8470_v17, %v8469_v19  ;;  %v15521_v40 = vsel %vm3277_vm4, %v15262_v20, %v9397_v44  ;;  %v15525_v61 = vsel %vm3277_vm4, %v15251_v22, %v9396_v60  ;;  %v15529_v57 = vsel %vm3277_vm4, %v15281_v53, %v9412_v23  ;;  %21104 = vst [vmem:[#allocation19_spill] sm:$0xff] %v15532_v56  ;;  %v8474_v20 = vld [vmem:[%s20314_s0 + $0x2da] sm:$0xff]  ;;  %v21105_v44 = vld [vmem:[#allocation76_spill] sm:$0xff]  ;;  %v15550_v23 = vpop.permute.xlu0 %9844  ;;  %v21107_v17 = vld [vmem:[#allocation77_spill] sm:$0xff] }
 0x1fe   :  { %v9416_v51 = vunpack.i.l.bf16 %v21103_v8  ;;  %v15542_v22 = vsel %vm3277_vm4, %v15277_v42, %v9411_v11  ;;  %v15546_v53 = vsel %vm3277_vm4, %v15293_v29, %v9407_v45  ;;  %v9432_v8 = vunpack.i.h.bf16 %v21105_v44  ;;  %21106 = vst [vmem:[#allocation20_spill] sm:$0xff] %v15550_v23  ;;  %v21114_v23 = vld [vmem:[#allocation88_spill] sm:$0xff] }
 0x1ff   :  { %v9431_v60 = vunpack.i.l.bf16 %v21105_v44  ;;  %v15554_v19 = vsel %vm3277_vm4, %v15289_v1, %v9406_v6  ;;  %v9427_v31 = vunpack.i.h.bf16 %v21107_v17  ;;  %v9426_v32 = vunpack.i.l.bf16 %v21107_v17  ;;  %10139 = vrot.lane.b32.xlu1 %v10138_v21, %s11644_s18  ;;  %v8479_v6 = vld [vmem:[%s20314_s0 + $0x31a] sm:$0xff] }
 0x200   :  { %v10148_v42 = vpack.i.bf16 %v8476_v58, %v8475_v27  ;;  %v15561_v29 = vsel %vm3277_vm4, %v15313_v30, %v9422_v50  ;;  %v15565_v11 = vsel %vm3277_vm4, %v15309_v38, %v9421_v25  ;;  %v15569_v45 = vsel %vm3277_vm4, %v15330_v14, %v9417_v59  ;;  %10134 = vrot.lane.b32.xlu0 %v10133_v63, %s11644_s18  ;;  %v8480_v30 = vld [vmem:[%s20314_s0 + $0x322] sm:$0xff]  ;;  %v21108_v38 = vld [vmem:[#allocation78_spill] sm:$0xff]  ;;  %v15585_v63 = vpop.permute.xlu1 %9859  ;;  %v8478_v58 = vld [vmem:[%s20314_s0 + $0x30a] sm:$0xff] }
 0x201   :  { %v10143_v1 = vpack.i.bf16 %v8474_v20, %v8473_v28  ;;  %v15580_v21 = vsel %vm3277_vm4, %v15317_v15, %v9416_v51  ;;  %v9442_v50 = vunpack.i.h.bf16 %v21108_v38  ;;  %v9441_v14 = vunpack.i.l.bf16 %v21108_v38  ;;  %v21109_v59 = vld [vmem:[#allocation79_spill] sm:$0xff]  ;;  %21110 = vst [vmem:[#allocation90_spill] sm:$0xff] %v15585_v63  ;;  %v21111_v20 = vld [vmem:[#allocation80_spill] sm:$0xff]  ;;  %v15603_v17 = vpop.permute.xlu0 %9854 }
 0x202   :  { %v9437_v25 = vunpack.i.h.bf16 %v21109_v59  ;;  %v8477_v27 = vld [vmem:[%s20314_s0 + $0x302] sm:$0xff]  ;;  %v15595_v15 = vsel %vm3277_vm4, %v15342_v13, %v9432_v8  ;;  %v15599_v51 = vsel %vm3277_vm4, %v15334_v35, %v9431_v60  ;;  %v9436_v28 = vunpack.i.l.bf16 %v21109_v59  ;;  %21112 = vst [vmem:[#allocation91_spill] sm:$0xff] %v15603_v17  ;;  %v21113_v8 = vld [vmem:[#allocation81_spill] sm:$0xff] }
 0x203   :  { %v9452_v44 = vunpack.i.h.bf16 %v21111_v20  ;;  %v15607_v38 = vsel %vm3277_vm4, %v15353_v47, %v9427_v31  ;;  %v15611_v63 = vsel %vm3277_vm4, %v15349_v39, %v9426_v32  ;;  %v9451_v13 = vunpack.i.l.bf16 %v21111_v20  ;;  %10149 = vrot.lane.b32.xlu1 %v10148_v42, %s11644_s18  ;;  %v8483_v47 = vld [vmem:[%s20314_s0 + $0x34a] sm:$0xff]  ;;  %v8484_v39 = vld [vmem:[%s20314_s0 + $0x352] sm:$0xff] }
 0x204   :  { %v10158_v35 = vpack.i.bf16 %v8480_v30, %v8479_v6  ;;  %v9447_v60 = vunpack.i.h.bf16 %v21113_v8  ;;  %v9446_v59 = vunpack.i.l.bf16 %v21113_v8  ;;  %v9457_v56 = vunpack.i.h.bf16 %v21114_v23  ;;  %10144 = vrot.lane.b32.xlu0 %v10143_v1, %s11644_s18  ;;  %v15638_v6 = vpop.permute.xlu1 %9869  ;;  %v8481_v30 = vld [vmem:[%s20314_s0 + $0x332] sm:$0xff] }
 0x205   :  { %v10153_v17 = vpack.i.bf16 %v8478_v58, %v8477_v27  ;;  %v15627_v31 = vsel %vm3277_vm4, %v15368_v52, %v9442_v50  ;;  %v15631_v32 = vsel %vm3277_vm4, %v15357_v46, %v9441_v14  ;;  %v15635_v42 = vsel %vm3277_vm4, %v15387_v5, %v9437_v25  ;;  %v8482_v52 = vld [vmem:[%s20314_s0 + $0x33a] sm:$0xff]  ;;  %v21115_v50 = vld [vmem:[#allocation108_spill] sm:$0xff]  ;;  %v15656_v25 = vpop.permute.xlu0 %9864  ;;  %v21116_v58 = vld [vmem:[#allocation109_spill] sm:$0xff] }
 0x206   :  { %v9456_v1 = vunpack.i.l.bf16 %v21114_v23  ;;  %v15648_v46 = vsel %vm3277_vm4, %v15383_v62, %v9436_v28  ;;  %v15652_v5 = vsel %vm3277_vm4, %v15399_v26, %v9452_v44  ;;  %v9542_v23 = vunpack.i.h.bf16 %v21115_v50 }
 0x207   :  { %v9541_v14 = vunpack.i.l.bf16 %v21115_v50  ;;  %v15660_v27 = vsel %vm3277_vm4, %v15395_v43, %v9451_v13  ;;  %v9537_v20 = vunpack.i.h.bf16 %v21116_v58  ;;  %v9536_v8 = vunpack.i.l.bf16 %v21116_v58  ;;  %10159 = vrot.lane.b32.xlu1 %v10158_v35, %s11644_s18  ;;  %v21117_v35 = vld [vmem:[#allocation110_spill] sm:$0xff] }
 0x208   :  { %v10168_v62 = vpack.i.bf16 %v8484_v39, %v8483_v47  ;;  %v15667_v26 = vsel %vm3277_vm4, %v15419_v4, %v9447_v60  ;;  %v15671_v28 = vsel %vm3277_vm4, %v15415_v10, %v9446_v59  ;;  %v15675_v44 = vsel %vm3277_vm4, %v15436_v18, %v9457_v56  ;;  %10154 = vrot.lane.b32.xlu0 %v10153_v17, %s11644_s18  ;;  %v21118_v60 = vld [vmem:[#allocation111_spill] sm:$0xff]  ;;  %v15685_v50 = vpop.permute.xlu1 %9879 }
 0x209   :  { %v10163_v43 = vpack.i.bf16 %v8482_v52, %v8481_v30  ;;  %v15680_v13 = vsel %vm3277_vm4, %v15423_v34, %v9456_v1  ;;  %v9552_v47 = vunpack.i.h.bf16 %v21117_v35  ;;  %v9551_v4 = vunpack.i.l.bf16 %v21117_v35  ;;  %21119 = vst [vmem:[#allocation85_spill] sm:$0xff] %v15685_v50  ;;  %v21120_v34 = vld [vmem:[#allocation118_spill] sm:$0xff]  ;;  %v15697_v59 = vpop.permute.xlu0 %9874 }
 0x20a   :  { %v9546_v39 = vunpack.i.l.bf16 %v21118_v60  ;;  %v15689_v10 = vsel %vm3342_vm5, %v15448_v33, %v9541_v14  ;;  %v15693_v18 = vsel %vm3342_vm5, %v15440_v55, %v9542_v23  ;;  %v9547_v56 = vunpack.i.h.bf16 %v21118_v60  ;;  %v21121_v52 = vld [vmem:[#allocation50_spill] sm:$0xff]  ;;  %v21122_v23 = vld [vmem:[#allocation52_spill] sm:$0xff]  ;;  %v21123_v60 = vld [vmem:[#allocation53_spill] sm:$0xff] }
 0x20b   :  { %v9561_v17 = vunpack.i.l.bf16 %v21120_v34  ;;  %v15701_v1 = vsel %vm3342_vm5, %v15459_v24, %v9536_v8  ;;  %v15705_v30 = vsel %vm3342_vm5, %v15455_v54, %v9537_v20  ;;  %v9562_v33 = vunpack.i.h.bf16 %v21120_v34  ;;  %10169 = vrot.lane.b32.xlu1 %v10168_v62, %s11644_s18 }
 0x20c   :  { %v9556_v14 = vunpack.i.l.bf16 %v21121_v52  ;;  %v9557_v55 = vunpack.i.h.bf16 %v21121_v52  ;;  %v9572_v58 = vunpack.i.h.bf16 %v21122_v23  ;;  %v9571_v35 = vunpack.i.l.bf16 %v21122_v23  ;;  %10164 = vrot.lane.b32.xlu0 %v10163_v43, %s11644_s18  ;;  %v15728_v62 = vpop.permute.xlu1 %9889  ;;  %v21124_v43 = vld [vmem:[#allocation56_spill] sm:$0xff]  ;;  %v21127_v23 = vld [vmem:[#allocation59_spill] sm:$0xff] }
 0x20d   :  { %v9566_v50 = vunpack.i.l.bf16 %v21123_v60  ;;  %v15717_v54 = vsel %vm3342_vm5, %v15474_v48, %v9551_v4  ;;  %v15721_v24 = vsel %vm3342_vm5, %v15463_v36, %v9552_v47  ;;  %v15725_v20 = vsel %vm3342_vm5, %v15493_v9, %v9546_v39  ;;  %v15740_v47 = vpop.permute.xlu0 %9884 }
 0x20e   :  { %v9567_v8 = vunpack.i.h.bf16 %v21123_v60  ;;  %v15732_v34 = vsel %vm3342_vm5, %v15489_v2, %v9547_v56  ;;  %v15736_v48 = vsel %vm3342_vm5, %v15505_v0, %v9561_v17  ;;  %v9582_v4 = vunpack.i.h.bf16 %v21124_v43  ;;  %v21125_v2 = vld [vmem:[#allocation57_spill] sm:$0xff] }
 0x20f   :  { %v9581_v36 = vunpack.i.l.bf16 %v21124_v43  ;;  %v15744_v9 = vsel %vm3342_vm5, %v15501_v7, %v9562_v33  ;;  %v15748_v39 = vsel %vm3342_vm5, %v15525_v61, %v9556_v14  ;;  %v9577_v56 = vunpack.i.h.bf16 %v21125_v2  ;;  %v21126_v14 = vld [vmem:[#allocation128_spill] sm:$0xff] }
 0x210   :  { %v9576_v52 = vunpack.i.l.bf16 %v21125_v2  ;;  %v15754_v0 = vsel %vm3342_vm5, %v15521_v40, %v9557_v55  ;;  %v15758_v17 = vsel %vm3342_vm5, %v15542_v22, %v9571_v35  ;;  %v15762_v7 = vsel %vm3342_vm5, %v15529_v57, %v9572_v58  ;;  %v15775_v35 = vpop.permute.xlu1 %9899 }
 0x211   :  { %v15766_v61 = vsel %vm3342_vm5, %v15554_v19, %v9566_v50  ;;  %v15770_v33 = vsel %vm3342_vm5, %v15546_v53, %v9567_v8  ;;  %v9592_v40 = vunpack.i.h.bf16 %v21126_v14  ;;  %v9591_v55 = vunpack.i.l.bf16 %v21126_v14  ;;  %21128 = vst [vmem:[#allocation86_spill] sm:$0xff] %v15775_v35  ;;  %v21129_v53 = vld [vmem:[#allocation60_spill] sm:$0xff]  ;;  %v15787_v60 = vpop.permute.xlu0 %9894  ;;  %v21133_v35 = vld [vmem:[#allocation134_spill] sm:$0xff] }
 0x212   :  { %v9586_v22 = vunpack.i.l.bf16 %v21127_v23  ;;  %v15779_v57 = vsel %vm3342_vm5, %v15565_v11, %v9581_v36  ;;  %v15783_v19 = vsel %vm3342_vm5, %v15561_v29, %v9582_v4  ;;  %v9587_v50 = vunpack.i.h.bf16 %v21127_v23  ;;  %21130 = vst [vmem:[#allocation21_spill] sm:$0xff] %v15787_v60  ;;  %v21131_v36 = vld [vmem:[#allocation62_spill] sm:$0xff]  ;;  %v21132_v4 = vld [vmem:[#allocation133_spill] sm:$0xff] }
 0x213   :  { %v9601_v58 = vunpack.i.l.bf16 %v21129_v53  ;;  %v15791_v8 = vsel %vm3342_vm5, %v15580_v21, %v9576_v52  ;;  %v15795_v43 = vsel %vm3342_vm5, %v15569_v45, %v9577_v56  ;;  %v9602_v11 = vunpack.i.h.bf16 %v21129_v53 }
 0x214   :  { %v9596_v2 = vunpack.i.l.bf16 %v21131_v36  ;;  %v9597_v29 = vunpack.i.h.bf16 %v21131_v36  ;;  %v9612_v14 = vunpack.i.h.bf16 %v21132_v4  ;;  %v9611_v23 = vunpack.i.l.bf16 %v21132_v4  ;;  %v15816_v53 = vpop.permute.xlu1 %9909 }
 0x215   :  { %v9606_v60 = vunpack.i.l.bf16 %v21133_v35  ;;  %v15805_v21 = vsel %vm3342_vm5, %v15599_v51, %v9591_v55  ;;  %v15809_v45 = vsel %vm3342_vm5, %v15595_v15, %v9592_v40  ;;  %v15813_v56 = vsel %vm3342_vm5, %v15611_v63, %v9586_v22  ;;  %v15828_v40 = vpop.permute.xlu0 %9904 }
 0x216   :  { %v9607_v52 = vunpack.i.h.bf16 %v21133_v35  ;;  %v15820_v36 = vsel %vm3342_vm5, %v15607_v38, %v9587_v50  ;;  %v15824_v51 = vsel %vm3342_vm5, %v15631_v32, %v9601_v58  ;;  %v9617_v55 = vunpack.i.h.bf16 %v14365_v49  ;;  %21134 = vst [vmem:[#allocation22_spill] sm:$0xff] %v15828_v40 }
 0x217   :  { %v9616_v15 = vunpack.i.l.bf16 %v14365_v49  ;;  %v15832_v63 = vsel %vm3342_vm5, %v15627_v31, %v9602_v11  ;;  %v15836_v22 = vsel %vm3342_vm5, %v15648_v46, %v9596_v2  ;;  %v9702_v38 = vunpack.i.h.bf16 %v14679_v12 }
 0x218   :  { %v9701_v35 = vunpack.i.l.bf16 %v14679_v12  ;;  %v15842_v32 = vsel %vm3342_vm5, %v15635_v42, %v9597_v29  ;;  %v15846_v49 = vsel %vm3342_vm5, %v15660_v27, %v9611_v23  ;;  %v15850_v31 = vsel %vm3342_vm5, %v15652_v5, %v9612_v14  ;;  %v15863_v27 = vpop.permute.xlu1 %9919  ;;  %v21138_v23 = vld [vmem:[#allocation107_spill] sm:$0xff] }
 0x219   :  { %v15854_v46 = vsel %vm3342_vm5, %v15671_v28, %v9606_v60  ;;  %v15858_v50 = vsel %vm3342_vm5, %v15667_v26, %v9607_v52  ;;  %v9697_v12 = vunpack.i.h.bf16 %v14705_v37  ;;  %v9696_v42 = vunpack.i.l.bf16 %v14705_v37  ;;  %21135 = vst [vmem:[#allocation87_spill] sm:$0xff] %v15863_v27  ;;  %v15875_v11 = vpop.permute.xlu0 %9914 }
 0x21a   :  { %v9711_v58 = vunpack.i.l.bf16 %v14756_v41  ;;  %v15867_v5 = vsel %vm3342_vm5, %v15680_v13, %v9616_v15  ;;  %v15871_v28 = vsel %vm3342_vm5, %v15675_v44, %v9617_v55  ;;  %v9712_v60 = vunpack.i.h.bf16 %v14756_v41  ;;  %21136 = vst [vmem:[#allocation89_spill] sm:$0xff] %v15875_v11  ;;  %v21137_v41 = vld [vmem:[#allocation61_spill] sm:$0xff]  ;;  %v21156_v11 = vld [vmem:[#allocation6_spill] sm:$0xff] }
 0x21b   :  { %v9706_v26 = vunpack.i.l.bf16 %v14778_v16  ;;  %v15879_v37 = vsel %vm3407_vm6, %v15689_v10, %v9701_v35  ;;  %v15883_v2 = vsel %vm3407_vm6, %v15693_v18, %v9702_v38  ;;  %v9707_v13 = vunpack.i.h.bf16 %v14778_v16  ;;  %v21140_v38 = vld [vmem:[#allocation129_spill] sm:$0xff] }
 0x21c   :  { %v9721_v29 = vunpack.i.l.bf16 %v14823_v3  ;;  %v9722_v44 = vunpack.i.h.bf16 %v14823_v3  ;;  %v9717_v4 = vunpack.i.h.bf16 %v21137_v41  ;;  %v9716_v14 = vunpack.i.l.bf16 %v21137_v41  ;;  %v15904_v55 = vpop.permute.xlu1 %9929 }
 0x21d   :  { %v9731_v52 = vunpack.i.l.bf16 %v21138_v23  ;;  %v15893_v10 = vsel %vm3407_vm6, %v15701_v1, %v9696_v42  ;;  %v15897_v18 = vsel %vm3407_vm6, %v15705_v30, %v9697_v12  ;;  %v15901_v16 = vsel %vm3407_vm6, %v15717_v54, %v9711_v58  ;;  %21139 = vst [vmem:[#allocation23_spill] sm:$0xff] %v15904_v55  ;;  %v15916_v12 = vpop.permute.xlu0 %9924 }
 0x21e   :  { %v9732_v3 = vunpack.i.h.bf16 %v21138_v23  ;;  %v15908_v15 = vsel %vm3407_vm6, %v15721_v24, %v9712_v60  ;;  %v15912_v1 = vsel %vm3407_vm6, %v15725_v20, %v9706_v26  ;;  %v9727_v35 = vunpack.i.h.bf16 %v21140_v38  ;;  %21141 = vst [vmem:[#allocation82_spill] sm:$0xff] %v15916_v12  ;;  %v21142_v24 = vld [vmem:[#allocation7_spill] sm:$0xff] }
 0x21f   :  { %v9726_v30 = vunpack.i.l.bf16 %v21140_v38  ;;  %v15920_v54 = vsel %vm3407_vm6, %v15732_v34, %v9707_v13  ;;  %v15924_v42 = vsel %vm3407_vm6, %v15736_v48, %v9721_v29  ;;  %v9782_v58 = vunpack.i.h.bf16 %v21142_v24  ;;  %v21144_v29 = vld [vmem:[#allocation63_spill] sm:$0xff]  ;;  %v21148_v38 = vld [vmem:[#allocation113_spill] sm:$0xff] }
 0x220   :  { %v9781_v60 = vunpack.i.l.bf16 %v21142_v24  ;;  %v15930_v20 = vsel %vm3407_vm6, %v15744_v9, %v9722_v44  ;;  %v15934_v26 = vsel %vm3407_vm6, %v15748_v39, %v9716_v14  ;;  %v15938_v34 = vsel %vm3407_vm6, %v15754_v0, %v9717_v4  ;;  %v21145_v9 = vld [vmem:[#allocation5_spill] sm:$0xff]  ;;  %v9940_v39 = vpop.permute.xlu1 %9939 }
 0x221   :  { %v15942_v48 = vsel %vm3407_vm6, %v15758_v17, %v9731_v52  ;;  %v15946_v13 = vsel %vm3407_vm6, %v15762_v7, %v9732_v3  ;;  %v9741_v41 = vunpack.i.l.bf16 %v21144_v29  ;;  %v9792_v44 = vunpack.i.h.bf16 %v21145_v9  ;;  %v15959_v52 = vpop.permute.xlu0 %9934  ;;  %v21147_v7 = vld [vmem:[#allocation112_spill] sm:$0xff] }
 0x222   :  { %21143 = vst [vmem:[#allocation83_spill] sm:$0xff] %v15946_v13  ;;  %v9791_v23 = vunpack.i.l.bf16 %v21145_v9  ;;  %v15953_v14 = vsel %vm3407_vm6, %v15766_v61, %v9726_v30  ;;  %v15957_v0 = vsel %vm3407_vm6, %v15770_v33, %v9727_v35  ;;  %v9942_v17 = vunpack.i.h.bf16 %v9940_v39  ;;  %21146 = vst [vmem:[#allocation24_spill] sm:$0xff] %v15959_v52  ;;  %v21149_v9 = vld [vmem:[#allocation9_spill] sm:$0xff]  ;;  %v21150_v30 = vld [vmem:[#allocation116_spill] sm:$0xff] }
 0x223   :  { %v9941_v4 = vunpack.i.l.bf16 %v9940_v39  ;;  %v3442_v3 = vsel %vm3407_vm6, %v21147_v7, %v9781_v60  ;;  %v3443_v24 = vsel %vm3407_vm6, %v21148_v38, %v9782_v58  ;;  %v9787_v12 = vunpack.i.h.bf16 %v21149_v9  ;;  %v21154_v39 = vld [vmem:[#allocation93_spill] sm:$0xff]  ;;  %v21155_v38 = vld [vmem:[#allocation115_spill] sm:$0xff] }
 0x224   :  { %v9786_v55 = vunpack.i.l.bf16 %v21149_v9  ;;  %v15973_v35 = vsel %vm3472_vm7, %v3443_v24, %v9942_v17  ;;  %v15977_v60 = vsel %vm3407_vm6, %v15779_v57, %v9741_v41  ;;  %v3446_v7 = vsel %vm3407_vm6, %v21154_v39, %v9791_v23  ;;  %v9950_v61 = vpop.permute.xlu1 %9949  ;;  %v21158_v41 = vld [vmem:[#allocation96_spill] sm:$0xff]  ;;  %v21159_v23 = vld [vmem:[#allocation10_spill] sm:$0xff] }
 0x225   :  { %v15970_v33 = vsel %vm3472_vm7, %v3442_v3, %v9941_v4  ;;  %21152 = vst [vmem:[#allocation92_spill] sm:$0xff] %v15973_v35  ;;  %21153 = vst [vmem:[#allocation94_spill] sm:$0xff] %v15977_v60  ;;  %v3447_v9 = vsel %vm3407_vm6, %v21155_v38, %v9792_v44  ;;  %v9802_v52 = vunpack.i.h.bf16 %v21156_v11  ;;  %v9801_v4 = vunpack.i.l.bf16 %v21156_v11  ;;  %v9945_v24 = vpop.permute.xlu0 %9944  ;;  %v21157_v35 = vld [vmem:[#allocation95_spill] sm:$0xff] }
 0x226   :  { %21151 = vst [vmem:[#allocation25_spill] sm:$0xff] %v15970_v33  ;;  %v9952_v3 = vunpack.i.h.bf16 %v9950_v61  ;;  %v9951_v17 = vunpack.i.l.bf16 %v9950_v61  ;;  %v3444_v57 = vsel %vm3407_vm6, %v21157_v35, %v9786_v55  ;;  %v3445_v58 = vsel %vm3407_vm6, %v21158_v41, %v9787_v12  ;;  %v21162_v61 = vld [vmem:[#allocation11_spill] sm:$0xff] }
 0x227   :  { %v9947_v33 = vunpack.i.h.bf16 %v9945_v24  ;;  %v9946_v27 = vunpack.i.l.bf16 %v9945_v24  ;;  %v9797_v39 = vunpack.i.h.bf16 %v21159_v23  ;;  %v9796_v44 = vunpack.i.l.bf16 %v21159_v23  ;;  %v21165_v24 = vld [vmem:[#allocation97_spill] sm:$0xff]  ;;  %v21166_v23 = vld [vmem:[#allocation114_spill] sm:$0xff] }
 0x228   :  { %v15993_v38 = vsel %vm3472_vm7, %v3446_v7, %v9951_v17  ;;  %v15996_v11 = vsel %vm3472_vm7, %v3447_v9, %v9952_v3  ;;  %v9812_v60 = vunpack.i.h.bf16 %v21162_v61  ;;  %v9811_v40 = vunpack.i.l.bf16 %v21162_v61  ;;  %v9960_v35 = vpop.permute.xlu1 %9959 }
 0x229   :  { %21160 = vst [vmem:[#allocation26_spill] sm:$0xff] %v15993_v38  ;;  %21161 = vst [vmem:[#allocation27_spill] sm:$0xff] %v15996_v11  ;;  %v16001_v55 = vsel %vm3472_vm7, %v3444_v57, %v9946_v27  ;;  %v16004_v12 = vsel %vm3472_vm7, %v3445_v58, %v9947_v33  ;;  %v3450_v41 = vsel %vm3407_vm6, %v21165_v24, %v9801_v4  ;;  %v9962_v17 = vunpack.i.h.bf16 %v9960_v35  ;;  %v9955_v3 = vpop.permute.xlu0 %9954  ;;  %v21167_v11 = vld [vmem:[#allocation12_spill] sm:$0xff]  ;;  %v21168_v57 = vld [vmem:[#allocation65_spill] sm:$0xff] }
 0x22a   :  { %21163 = vst [vmem:[#allocation28_spill] sm:$0xff] %v16001_v55  ;;  %21164 = vst [vmem:[#allocation29_spill] sm:$0xff] %v16004_v12  ;;  %v3451_v7 = vsel %vm3407_vm6, %v21166_v23, %v9802_v52  ;;  %v9961_v9 = vunpack.i.l.bf16 %v9960_v35  ;;  %v9807_v38 = vunpack.i.h.bf16 %v21167_v11  ;;  %v9806_v61 = vunpack.i.l.bf16 %v21167_v11  ;;  %v21169_v58 = vld [vmem:[#allocation55_spill] sm:$0xff]  ;;  %v21172_v35 = vld [vmem:[#allocation54_spill] sm:$0xff] }
 0x22b   :  { %v9957_v13 = vunpack.i.h.bf16 %v9955_v3  ;;  %v9956_v27 = vunpack.i.l.bf16 %v9955_v3  ;;  %v3448_v33 = vsel %vm3407_vm6, %v21168_v57, %v9796_v44  ;;  %v3449_v12 = vsel %vm3407_vm6, %v21169_v58, %v9797_v39  ;;  %v21173_v23 = vld [vmem:[#allocation120_spill] sm:$0xff]  ;;  %v21176_v39 = vld [vmem:[#allocation13_spill] sm:$0xff] }
 0x22c   :  { %v16017_v4 = vsel %vm3472_vm7, %v3450_v41, %v9961_v9  ;;  %v16020_v52 = vsel %vm3472_vm7, %v3451_v7, %v9962_v17  ;;  %v3454_v24 = vsel %vm3407_vm6, %v21172_v35, %v9811_v40  ;;  %v3455_v11 = vsel %vm3407_vm6, %v21173_v23, %v9812_v60  ;;  %v9970_v57 = vpop.permute.xlu1 %9969  ;;  %v21178_v35 = vld [vmem:[#allocation125_spill] sm:$0xff] }
 0x22d   :  { %21170 = vst [vmem:[#allocation30_spill] sm:$0xff] %v16017_v4  ;;  %21171 = vst [vmem:[#allocation31_spill] sm:$0xff] %v16020_v52  ;;  %v16027_v3 = vsel %vm3472_vm7, %v3448_v33, %v9956_v27  ;;  %v16030_v44 = vsel %vm3472_vm7, %v3449_v12, %v9957_v13  ;;  %v9822_v58 = vunpack.i.h.bf16 %v21176_v39  ;;  %v9821_v41 = vunpack.i.l.bf16 %v21176_v39  ;;  %v9965_v17 = vpop.permute.xlu0 %9964  ;;  %v21177_v52 = vld [vmem:[#allocation119_spill] sm:$0xff]  ;;  %v21179_v33 = vld [vmem:[#allocation14_spill] sm:$0xff] }
 0x22e   :  { %21174 = vst [vmem:[#allocation32_spill] sm:$0xff] %v16027_v3  ;;  %21175 = vst [vmem:[#allocation33_spill] sm:$0xff] %v16030_v44  ;;  %v9972_v9 = vunpack.i.h.bf16 %v9970_v57  ;;  %v9971_v7 = vunpack.i.l.bf16 %v9970_v57  ;;  %v3452_v40 = vsel %vm3407_vm6, %v21177_v52, %v9806_v61  ;;  %v3453_v60 = vsel %vm3407_vm6, %v21178_v35, %v9807_v38  ;;  %v21182_v57 = vld [vmem:[#allocation15_spill] sm:$0xff] }
 0x22f   :  { %v9967_v23 = vunpack.i.h.bf16 %v9965_v17  ;;  %v9966_v27 = vunpack.i.l.bf16 %v9965_v17  ;;  %v9817_v3 = vunpack.i.h.bf16 %v21179_v33  ;;  %v9816_v13 = vunpack.i.l.bf16 %v21179_v33  ;;  %v21184_v17 = vld [vmem:[#allocation98_spill] sm:$0xff] }
 0x230   :  { %v16041_v12 = vsel %vm3472_vm7, %v3454_v24, %v9971_v7  ;;  %v16044_v39 = vsel %vm3472_vm7, %v3455_v11, %v9972_v9  ;;  %v9832_v44 = vunpack.i.h.bf16 %v21182_v57  ;;  %v9831_v4 = vunpack.i.l.bf16 %v21182_v57  ;;  %v21185_v33 = vld [vmem:[#allocation122_spill] sm:$0xff] }
 0x231   :  { %21180 = vst [vmem:[#allocation34_spill] sm:$0xff] %v16041_v12  ;;  %21181 = vst [vmem:[#allocation35_spill] sm:$0xff] %v16044_v39  ;;  %v16049_v61 = vsel %vm3472_vm7, %v3452_v40, %v9966_v27  ;;  %v16052_v38 = vsel %vm3472_vm7, %v3453_v60, %v9967_v23  ;;  %v9980_v52 = vpop.permute.xlu1 %9979  ;;  %v3458_v35 = vsel %vm3407_vm6, %v21184_v17, %v9821_v41  ;;  %v21186_v39 = vld [vmem:[#allocation16_spill] sm:$0xff]  ;;  %v21187_v27 = vld [vmem:[#allocation121_spill] sm:$0xff] }
 0x232   :  { %21183 = vst [vmem:[#allocation36_spill] sm:$0xff] %v16052_v38  ;;  %v3459_v24 = vsel %vm3407_vm6, %v21185_v33, %v9822_v58  ;;  %v9982_v7 = vunpack.i.h.bf16 %v9980_v52  ;;  %v9981_v11 = vunpack.i.l.bf16 %v9980_v52  ;;  %v9975_v9 = vpop.permute.xlu0 %9974  ;;  %v9827_v12 = vunpack.i.h.bf16 %v21186_v39  ;;  %v21188_v23 = vld [vmem:[#allocation99_spill] sm:$0xff]  ;;  %v21191_v52 = vld [vmem:[#allocation124_spill] sm:$0xff] }
 0x233   :  { %v9826_v57 = vunpack.i.l.bf16 %v21186_v39  ;;  %v9977_v55 = vunpack.i.h.bf16 %v9975_v9  ;;  %v9976_v40 = vunpack.i.l.bf16 %v9975_v9  ;;  %v3456_v60 = vsel %vm3407_vm6, %v21187_v27, %v9816_v13  ;;  %v21192_v33 = vld [vmem:[#allocation123_spill] sm:$0xff] }
 0x234   :  { %v3457_v38 = vsel %vm3407_vm6, %v21188_v23, %v9817_v3  ;;  %v16065_v41 = vsel %vm3472_vm7, %v3458_v35, %v9981_v11  ;;  %v16068_v58 = vsel %vm3472_vm7, %v3459_v24, %v9982_v7  ;;  %v3462_v17 = vsel %vm3407_vm6, %v21191_v52, %v9831_v4  ;;  %v21195_v3 = vld [vmem:[#allocation17_spill] sm:$0xff] }
 0x235   :  { %21189 = vst [vmem:[#allocation37_spill] sm:$0xff] %v16065_v41  ;;  %21190 = vst [vmem:[#allocation38_spill] sm:$0xff] %v16068_v58  ;;  %v3463_v39 = vsel %vm3407_vm6, %v21192_v33, %v9832_v44  ;;  %v16075_v9 = vsel %vm3472_vm7, %v3456_v60, %v9976_v40  ;;  %v16078_v13 = vsel %vm3472_vm7, %v3457_v38, %v9977_v55  ;;  %v9990_v27 = vpop.permute.xlu1 %9989  ;;  %v9842_v23 = vunpack.i.h.bf16 %v21195_v3  ;;  %v21196_v58 = vld [vmem:[#allocation100_spill] sm:$0xff]  ;;  %v21197_v52 = vld [vmem:[#allocation101_spill] sm:$0xff] }
 0x236   :  { %21193 = vst [vmem:[#allocation39_spill] sm:$0xff] %v16075_v9  ;;  %21194 = vst [vmem:[#allocation40_spill] sm:$0xff] %v16078_v13  ;;  %v9841_v35 = vunpack.i.l.bf16 %v21195_v3  ;;  %v9992_v11 = vunpack.i.h.bf16 %v9990_v27  ;;  %v9991_v24 = vunpack.i.l.bf16 %v9990_v27  ;;  %v9985_v7 = vpop.permute.xlu0 %9984  ;;  %v3460_v4 = vsel %vm3407_vm6, %v21196_v58, %v9826_v57  ;;  %v21198_v60 = vld [vmem:[#allocation18_spill] sm:$0xff]  ;;  %v21201_v27 = vld [vmem:[#allocation19_spill] sm:$0xff] }
 0x237   :  { %v3461_v44 = vsel %vm3407_vm6, %v21197_v52, %v9827_v12  ;;  %v9987_v33 = vunpack.i.h.bf16 %v9985_v7  ;;  %v9986_v40 = vunpack.i.l.bf16 %v9985_v7  ;;  %v9837_v9 = vunpack.i.h.bf16 %v21198_v60  ;;  %v21204_v7 = vld [vmem:[#allocation102_spill] sm:$0xff] }
 0x238   :  { %v9836_v55 = vunpack.i.l.bf16 %v21198_v60  ;;  %v16089_v38 = vsel %vm3472_vm7, %v3462_v17, %v9991_v24  ;;  %v16092_v3 = vsel %vm3472_vm7, %v3463_v39, %v9992_v11  ;;  %v9852_v13 = vunpack.i.h.bf16 %v21201_v27  ;;  %v21205_v17 = vld [vmem:[#allocation103_spill] sm:$0xff] }
 0x239   :  { %21199 = vst [vmem:[#allocation41_spill] sm:$0xff] %v16089_v38  ;;  %21200 = vst [vmem:[#allocation42_spill] sm:$0xff] %v16092_v3  ;;  %v9851_v41 = vunpack.i.l.bf16 %v21201_v27  ;;  %v16097_v57 = vsel %vm3472_vm7, %v3460_v4, %v9986_v40  ;;  %v16100_v12 = vsel %vm3472_vm7, %v3461_v44, %v9987_v33  ;;  %v10000_v58 = vpop.permute.xlu1 %9999  ;;  %v3466_v52 = vsel %vm3407_vm6, %v21204_v7, %v9841_v35  ;;  %v21206_v3 = vld [vmem:[#allocation20_spill] sm:$0xff]  ;;  %v21208_v33 = vld [vmem:[#allocation58_spill] sm:$0xff] }
 0x23a   :  { %21202 = vst [vmem:[#allocation43_spill] sm:$0xff] %v16097_v57  ;;  %21203 = vst [vmem:[#allocation44_spill] sm:$0xff] %v16100_v12  ;;  %v3467_v24 = vsel %vm3407_vm6, %v21205_v17, %v9842_v23  ;;  %v10002_v39 = vunpack.i.h.bf16 %v10000_v58  ;;  %v10001_v11 = vunpack.i.l.bf16 %v10000_v58  ;;  %v9995_v60 = vpop.permute.xlu0 %9994  ;;  %v9847_v38 = vunpack.i.h.bf16 %v21206_v3  ;;  %v21207_v57 = vld [vmem:[#allocation104_spill] sm:$0xff]  ;;  %v21210_v58 = vld [vmem:[#allocation127_spill] sm:$0xff] }
 0x23b   :  { %v9846_v27 = vunpack.i.l.bf16 %v21206_v3  ;;  %v9997_v4 = vunpack.i.h.bf16 %v9995_v60  ;;  %v9996_v40 = vunpack.i.l.bf16 %v9995_v60  ;;  %v3464_v44 = vsel %vm3407_vm6, %v21207_v57, %v9836_v55  ;;  %v21211_v17 = vld [vmem:[#allocation126_spill] sm:$0xff] }
 0x23c   :  { %v3465_v12 = vsel %vm3407_vm6, %v21208_v33, %v9837_v9  ;;  %v16113_v35 = vsel %vm3472_vm7, %v3466_v52, %v10001_v11  ;;  %v16116_v23 = vsel %vm3472_vm7, %v3467_v24, %v10002_v39  ;;  %v3470_v7 = vsel %vm3407_vm6, %v21210_v58, %v9851_v41  ;;  %v21213_v9 = vld [vmem:[#allocation90_spill] sm:$0xff] }
 0x23d   :  { %21209 = vst [vmem:[#allocation45_spill] sm:$0xff] %v16116_v23  ;;  %v3471_v3 = vsel %vm3407_vm6, %v21211_v17, %v9852_v13  ;;  %v16123_v60 = vsel %vm3472_vm7, %v3464_v44, %v9996_v40  ;;  %v16126_v55 = vsel %vm3472_vm7, %v3465_v12, %v9997_v4  ;;  %v10010_v57 = vpop.permute.xlu1 %10009  ;;  %v9862_v52 = vunpack.i.h.bf16 %v21213_v9  ;;  %v21214_v23 = vld [vmem:[#allocation105_spill] sm:$0xff]  ;;  %v21215_v58 = vld [vmem:[#allocation106_spill] sm:$0xff]  ;;  %v21216_v17 = vld [vmem:[#allocation91_spill] sm:$0xff] }
 0x23e   :  { %21212 = vst [vmem:[#allocation46_spill] sm:$0xff] %v16126_v55  ;;  %v9861_v11 = vunpack.i.l.bf16 %v21213_v9  ;;  %v10012_v24 = vunpack.i.h.bf16 %v10010_v57  ;;  %v10011_v39 = vunpack.i.l.bf16 %v10010_v57  ;;  %v10005_v33 = vpop.permute.xlu0 %10004  ;;  %v3468_v41 = vsel %vm3407_vm6, %v21214_v23, %v9846_v27 }
 0x23f   :  { %v3469_v13 = vsel %vm3407_vm6, %v21215_v58, %v9847_v38  ;;  %v10007_v40 = vunpack.i.h.bf16 %v10005_v33  ;;  %v10006_v44 = vunpack.i.l.bf16 %v10005_v33  ;;  %v9857_v12 = vunpack.i.h.bf16 %v21216_v17 }
 0x240   :  { %v9856_v4 = vunpack.i.l.bf16 %v21216_v17  ;;  %v16137_v55 = vsel %vm3472_vm7, %v3470_v7, %v10011_v39  ;;  %v16140_v9 = vsel %vm3472_vm7, %v3471_v3, %v10012_v24  ;;  %v21217_v57 = vunpack.i.h.bf16 %v21144_v29 }
 0x241   :  { %v21218_v38 = vunpack.i.l.bf16 %v21150_v30  ;;  %v16155_v33 = vsel %vm3472_vm7, %v3468_v41, %v10006_v44  ;;  %v16158_v7 = vsel %vm3472_vm7, %v3469_v13, %v10007_v40  ;;  %v10020_v3 = vpop.permute.xlu1 %10019  ;;  %v3475_v29 = vsel %vm3472_vm7, %v15879_v37, %v9861_v11 }
 0x242   :  { %v16146_v27 = vsel %vm3407_vm6, %v15783_v19, %v21217_v57  ;;  %21219 = vst [vmem:[#allocation47_spill] sm:$0xff] %v16158_v7  ;;  %v3476_v19 = vsel %vm3472_vm7, %v15883_v2, %v9862_v52  ;;  %v10022_v24 = vunpack.i.h.bf16 %v10020_v3  ;;  %v10021_v39 = vunpack.i.l.bf16 %v10020_v3  ;;  %v10015_v58 = vpop.permute.xlu0 %10014  ;;  %v21220_v2 = vld [vmem:[#allocation117_spill] sm:$0xff] }
 0x243   :  { %v16152_v23 = vsel %vm3407_vm6, %v15791_v8, %v21218_v38  ;;  %v9867_v17 = vunpack.i.h.bf16 %v15656_v25  ;;  %v9866_v8 = vunpack.i.l.bf16 %v15656_v25  ;;  %v10017_v57 = vunpack.i.h.bf16 %v10015_v58 }
 0x244   :  { %v10016_v41 = vunpack.i.l.bf16 %v10015_v58  ;;  %v3473_v13 = vsel %vm3472_vm7, %v15893_v10, %v9856_v4  ;;  %v3474_v40 = vsel %vm3472_vm7, %v15897_v18, %v9857_v12  ;;  %v3540_v37 = vsel %vm3537_vm8, %v3475_v29, %v10021_v39 }
 0x245   :  { %v3541_v11 = vsel %vm3537_vm8, %v3476_v19, %v10022_v24  ;;  %v9752_v52 = vunpack.i.h.bf16 %v21220_v2  ;;  %v3539_v3 = vsel %vm3537_vm8, %v3474_v40, %v10017_v57  ;;  %v10030_v25 = vpop.permute.xlu1 %10029  ;;  %v9751_v58 = vunpack.i.l.bf16 %v21220_v2 }
 0x246   :  { %v3603_v44 = vpack.c.bf16 %v3541_v11, %v3540_v37  ;;  %v3538_v38 = vsel %vm3537_vm8, %v3473_v13, %v10016_v41  ;;  %v9872_v7 = vunpack.i.h.bf16 %v15638_v6  ;;  %v9871_v10 = vunpack.i.l.bf16 %v15638_v6  ;;  %v10025_v4 = vpop.permute.xlu0 %10024 }
 0x247   :  { %v3602_v18 = vpack.c.bf16 %v3539_v3, %v3538_v38  ;;  %v3477_v12 = vsel %vm3472_vm7, %v15912_v1, %v9866_v8  ;;  %v3478_v29 = vsel %vm3472_vm7, %v15920_v54, %v9867_v17  ;;  %v10027_v19 = vunpack.i.h.bf16 %v10025_v4  ;;  %v21222_v1 = vld [vmem:[#allocation84_spill] sm:$0xff] }
 0x248   :  { %v10026_v24 = vunpack.i.l.bf16 %v10025_v4  ;;  %v9877_v39 = vunpack.i.h.bf16 %v15697_v59  ;;  %v9876_v57 = vunpack.i.l.bf16 %v15697_v59  ;;  %v10032_v41 = vunpack.i.h.bf16 %v10030_v25 }
 0x249   :  { %v10031_v13 = vunpack.i.l.bf16 %v10030_v25  ;;  %8736 = vmatprep.mubr.msk.bf16.mxu1 %vm3661_vm9, %v3602_v18  ;;  %v21221_v6 = vunpack.i.h.bf16 %v21150_v30  ;;  %v9746_v8 = vunpack.i.l.bf16 %v21222_v1  ;;  %v3543_v17 = vsel %vm3537_vm8, %v3478_v29, %v10027_v19  ;;  %v10040_v37 = vpop.permute.xlu1 %10039 }
 0x24a   :  { %v3542_v54 = vsel %vm3537_vm8, %v3477_v12, %v10026_v24  ;;  %8737 = vmatmul.mubr.msk.bf16.vlgmr.msra.gmra.mxu1 %vm3661_vm9, %v3603_v44  ;;  %v16197_v59 = vsel %vm3407_vm6, %v15805_v21, %v9751_v58  ;;  %v16201_v30 = vsel %vm3407_vm6, %v15809_v45, %v9752_v52  ;;  %v10035_v11 = vpop.permute.xlu0 %10034  ;;  %v3479_v38 = vsel %vm3472_vm7, %v15901_v16, %v9871_v10  ;;  %v21223_v10 = vld [vmem:[#allocation64_spill] sm:$0xff]  ;;  %v21224_v12 = vld [vmem:[#allocation130_spill] sm:$0xff]  ;;  %v21225_v24 = vld [vmem:[#allocation85_spill] sm:$0xff] }
 0x24b   :  { %v16189_v40 = vsel %vm3407_vm6, %v15795_v43, %v21221_v6  ;;  %v9747_v43 = vunpack.i.h.bf16 %v21222_v1  ;;  %v3604_v2 = vpack.c.bf16 %v3543_v17, %v3542_v54  ;;  %v3480_v3 = vsel %vm3472_vm7, %v15908_v15, %v9872_v7  ;;  %v21226_v17 = vld [vmem:[#allocation132_spill] sm:$0xff] }
 0x24c   :  { %v10037_v44 = vunpack.i.h.bf16 %v10035_v11  ;;  %v10036_v25 = vunpack.i.l.bf16 %v10035_v11  ;;  %v3481_v21 = vsel %vm3472_vm7, %v15934_v26, %v9876_v57  ;;  %v3482_v58 = vsel %vm3472_vm7, %v15938_v34, %v9877_v39 }
 0x24d   :  { %v3544_v45 = vsel %vm3537_vm8, %v3479_v38, %v10031_v13  ;;  %v3545_v52 = vsel %vm3537_vm8, %v3480_v3, %v10032_v41  ;;  %8740 = vmatprep.mubr.msk.bf16.mxu1 %vm3661_vm9, %v3604_v2  ;;  %v16217_v16 = vsel %vm3407_vm6, %v15813_v56, %v9746_v8  ;;  %v9761_v15 = vunpack.i.l.bf16 %v21223_v10  ;;  %v16222_v26 = vpop.permute.xlu1 %10049 }
 0x24e   :  { %v3546_v7 = vsel %vm3537_vm8, %v3481_v21, %v10036_v25  ;;  %v3547_v4 = vsel %vm3537_vm8, %v3482_v58, %v10037_v44  ;;  %v16226_v34 = vsel %vm3407_vm6, %v15820_v36, %v9747_v43  ;;  %v9762_v18 = vunpack.i.h.bf16 %v21223_v10  ;;  %v10045_v56 = vpop.permute.xlu0 %10044 }
 0x24f   :  { %v9757_v29 = vunpack.i.h.bf16 %v21224_v12  ;;  %v9756_v19 = vunpack.i.l.bf16 %v21224_v12  ;;  %v9882_v39 = vunpack.i.h.bf16 %v21225_v24  ;;  %v9881_v57 = vunpack.i.l.bf16 %v21225_v24 }
 0x250   :  { %v9887_v41 = vunpack.i.h.bf16 %v15740_v47  ;;  %v3605_v13 = vpack.c.bf16 %v3545_v52, %v3544_v45  ;;  %v9886_v6 = vunpack.i.l.bf16 %v15740_v47  ;;  %v10042_v1 = vunpack.i.h.bf16 %v10040_v37 }
 0x251   :  { %v10041_v8 = vunpack.i.l.bf16 %v10040_v37  ;;  %v3606_v36 = vpack.c.bf16 %v3547_v4, %v3546_v7  ;;  %v16237_v54 = vsel %vm3407_vm6, %v15824_v51, %v9761_v15  ;;  %v9771_v43 = vunpack.i.l.bf16 %v21226_v17  ;;  %v16241_v38 = vpop.permute.xlu1 %10059  ;;  %v21227_v51 = vld [vmem:[#allocation131_spill] sm:$0xff]  ;;  %v21228_v7 = vld [vmem:[#allocation8_spill] sm:$0xff] }
 0x252   :  { %v10047_v11 = vunpack.i.h.bf16 %v10045_v56  ;;  %v10046_v2 = vunpack.i.l.bf16 %v10045_v56  ;;  %8741 = vmatmul.mubr.msk.bf16.gmra.mxu1 %vm3661_vm9, %v3605_v13  ;;  %v16245_v3 = vsel %vm3407_vm6, %v15832_v63, %v9762_v18  ;;  %v16249_v47 = vsel %vm3407_vm6, %v15836_v22, %v9756_v19  ;;  %v10055_v25 = vpop.permute.xlu0 %10054  ;;  %v21229_v56 = vld [vmem:[#allocation21_spill] sm:$0xff] }
 0x253   :  { %v9772_v37 = vunpack.i.h.bf16 %v21226_v17  ;;  %v9766_v44 = vunpack.i.l.bf16 %v21227_v51  ;;  %8744 = vmatprep.mubr.msk.bf16.mxu1 %vm3661_vm9, %v3606_v36  ;;  %v16256_v21 = vsel %vm3407_vm6, %v15842_v32, %v9757_v29  ;;  %v9767_v58 = vunpack.i.h.bf16 %v21227_v51 }
 0x254   :  { %v3483_v63 = vsel %vm3472_vm7, %v15924_v42, %v9881_v57  ;;  %v3484_v22 = vsel %vm3472_vm7, %v15930_v20, %v9882_v39  ;;  %v3485_v45 = vsel %vm3472_vm7, %v15953_v14, %v9886_v6  ;;  %v3486_v52 = vsel %vm3472_vm7, %v15957_v0, %v9887_v41 }
 0x255   :  { %v3548_v10 = vsel %vm3537_vm8, %v3483_v63, %v10041_v8  ;;  %v3549_v15 = vsel %vm3537_vm8, %v3484_v22, %v10042_v1  ;;  %v16271_v32 = vsel %vm3407_vm6, %v15846_v49, %v9771_v43  ;;  %v9776_v4 = vunpack.i.l.bf16 %v21228_v7  ;;  %v16276_v18 = vpop.permute.xlu1 %10069  ;;  %v21230_v1 = vld [vmem:[#allocation86_spill] sm:$0xff] }
 0x256   :  { %v3550_v42 = vsel %vm3537_vm8, %v3485_v45, %v10046_v2  ;;  %v3551_v20 = vsel %vm3537_vm8, %v3486_v52, %v10047_v11  ;;  %v16280_v14 = vsel %vm3407_vm6, %v15850_v31, %v9772_v37  ;;  %v16284_v0 = vsel %vm3407_vm6, %v15854_v46, %v9766_v44  ;;  %v16288_v29 = vpop.permute.xlu0 %10064  ;;  %v21231_v2 = vld [vmem:[#allocation83_spill] sm:$0xff]  ;;  %v21233_v45 = vld [vmem:[#allocation94_spill] sm:$0xff] }
 0x257   :  { %v9777_v12 = vunpack.i.h.bf16 %v21228_v7  ;;  %v9891_v49 = vunpack.i.l.bf16 %v15728_v62  ;;  %v9892_v19 = vunpack.i.h.bf16 %v15728_v62  ;;  %v9897_v24 = vunpack.i.h.bf16 %v21229_v56 }
 0x258   :  { %v9896_v39 = vunpack.i.l.bf16 %v21229_v56  ;;  %v3607_v57 = vpack.c.bf16 %v3549_v15, %v3548_v10  ;;  %v16295_v31 = vsel %vm3407_vm6, %v15858_v50, %v9767_v58  ;;  %v10052_v46 = vunpack.i.h.bf16 %v16222_v26  ;;  %v21234_v10 = vld [vmem:[#allocation87_spill] sm:$0xff] }
 0x259   :  { %v10051_v41 = vunpack.i.l.bf16 %v16222_v26  ;;  %v3608_v13 = vpack.c.bf16 %v3551_v20, %v3550_v42  ;;  %v16301_v6 = vsel %vm3407_vm6, %v15867_v5, %v9776_v4  ;;  %v9901_v62 = vunpack.i.l.bf16 %v21230_v1  ;;  %v16305_v17 = vpop.permute.xlu1 %10079  ;;  %v21235_v20 = vld [vmem:[#allocation89_spill] sm:$0xff] }
 0x25a   :  { %v10057_v8 = vunpack.i.h.bf16 %v10055_v25  ;;  %v10056_v36 = vunpack.i.l.bf16 %v10055_v25  ;;  %8745 = vmatmul.mubr.msk.bf16.gmra.mxu1 %vm3661_vm9, %v3607_v57  ;;  %v16309_v50 = vsel %vm3407_vm6, %v15871_v28, %v9777_v12  ;;  %v3487_v26 = vsel %vm3472_vm7, %v15942_v48, %v9891_v49  ;;  %v16315_v11 = vpop.permute.xlu0 %10074  ;;  %v21232_v48 = vld [vmem:[#allocation22_spill] sm:$0xff] }
 0x25b   :  { %v9902_v43 = vunpack.i.h.bf16 %v21230_v1  ;;  %v9911_v5 = vunpack.i.l.bf16 %v15816_v53  ;;  %8748 = vmatprep.mubr.msk.bf16.mxu1 %vm3661_vm9, %v3608_v13  ;;  %v3488_v37 = vsel %vm3472_vm7, %v21231_v2, %v9892_v19  ;;  %v3489_v51 = vsel %vm3472_vm7, %v16152_v23, %v9896_v39  ;;  %v21236_v13 = vld [vmem:[#allocation23_spill] sm:$0xff] }
 0x25c   :  { %v3490_v28 = vsel %vm3472_vm7, %v16189_v40, %v9897_v24  ;;  %v9912_v44 = vunpack.i.h.bf16 %v15816_v53  ;;  %v9907_v25 = vunpack.i.h.bf16 %v21232_v48  ;;  %v9906_v58 = vunpack.i.l.bf16 %v21232_v48 }
 0x25d   :  { %v3552_v63 = vsel %vm3537_vm8, %v3487_v26, %v10051_v41  ;;  %v3553_v22 = vsel %vm3537_vm8, %v3488_v37, %v10052_v46  ;;  %v3491_v52 = vsel %vm3472_vm7, %v21233_v45, %v9901_v62  ;;  %v9921_v15 = vunpack.i.l.bf16 %v21234_v10  ;;  %v16334_v40 = vpop.permute.xlu1 %10089 }
 0x25e   :  { %v3554_v23 = vsel %vm3537_vm8, %v3489_v51, %v10056_v36  ;;  %v3555_v7 = vsel %vm3537_vm8, %v3490_v28, %v10057_v8  ;;  %v3492_v53 = vsel %vm3472_vm7, %v16146_v27, %v9902_v43  ;;  %v16340_v4 = vsel %vm3472_vm7, %v16197_v59, %v9911_v5  ;;  %v16344_v49 = vpop.permute.xlu0 %10084  ;;  %v21238_v51 = vld [vmem:[#allocation25_spill] sm:$0xff] }
 0x25f   :  { %v9922_v42 = vunpack.i.h.bf16 %v21234_v10  ;;  %v9917_v12 = vunpack.i.h.bf16 %v21235_v20  ;;  %v9916_v19 = vunpack.i.l.bf16 %v21235_v20  ;;  %v10062_v56 = vunpack.i.h.bf16 %v16241_v38  ;;  %v21240_v20 = vld [vmem:[#allocation26_spill] sm:$0xff] }
 0x260   :  { %v10061_v24 = vunpack.i.l.bf16 %v16241_v38  ;;  %v3609_v39 = vpack.c.bf16 %v3553_v22, %v3552_v63  ;;  %v3496_v27 = vsel %vm3472_vm7, %v16201_v30, %v9912_v44  ;;  %v3493_v59 = vsel %vm3472_vm7, %v16217_v16, %v9906_v58  ;;  %v21239_v44 = vld [vmem:[#allocation92_spill] sm:$0xff] }
 0x261   :  { %v3494_v57 = vsel %vm3472_vm7, %v16226_v34, %v9907_v25  ;;  %v3610_v46 = vpack.c.bf16 %v3555_v7, %v3554_v23  ;;  %v16357_v41 = vsel %vm3472_vm7, %v16237_v54, %v9921_v15  ;;  %v9931_v1 = vunpack.i.l.bf16 %v21236_v13  ;;  %v10100_v30 = vpop.permute.xlu1 %10099 }
 0x262   :  { %v10067_v62 = vunpack.i.h.bf16 %v16288_v29  ;;  %v10066_v38 = vunpack.i.l.bf16 %v16288_v29  ;;  %8749 = vmatmul.mubr.msk.bf16.gmra.mxu1 %vm3661_vm9, %v3609_v39  ;;  %v16365_v16 = vsel %vm3472_vm7, %v16245_v3, %v9922_v42  ;;  %v9932_v34 = vunpack.i.h.bf16 %v21236_v13  ;;  %v16368_v26 = vpop.permute.xlu0 %10094  ;;  %v21237_v3 = vld [vmem:[#allocation82_spill] sm:$0xff]  ;;  %v21242_v39 = vld [vmem:[#allocation28_spill] sm:$0xff] }
 0x263   :  { %v10102_v8 = vunpack.i.h.bf16 %v10100_v30  ;;  %v10101_v36 = vunpack.i.l.bf16 %v10100_v30  ;;  %8752 = vmatprep.mubr.msk.bf16.mxu1 %vm3661_vm9, %v3610_v46  ;;  %v3497_v54 = vsel %vm3472_vm7, %v16249_v47, %v9916_v19  ;;  %v3498_v29 = vsel %vm3472_vm7, %v16256_v21, %v9917_v12  ;;  %v21241_v19 = vld [vmem:[#allocation27_spill] sm:$0xff] }
 0x264   :  { %v3556_v43 = vsel %vm3537_vm8, %v3491_v52, %v10061_v24  ;;  %v3557_v5 = vsel %vm3537_vm8, %v3492_v53, %v10062_v56  ;;  %v9927_v2 = vunpack.i.h.bf16 %v21237_v3  ;;  %v9926_v37 = vunpack.i.l.bf16 %v21237_v3  ;;  %v21244_v3 = vld [vmem:[#allocation30_spill] sm:$0xff] }
 0x265   :  { %v16381_v28 = vsel %vm3537_vm8, %v21238_v51, %v10101_v36  ;;  %v16385_v48 = vsel %vm3537_vm8, %v21239_v44, %v10102_v8  ;;  %v16389_v47 = vsel %vm3472_vm7, %v16271_v32, %v9931_v1  ;;  %v3558_v21 = vsel %vm3537_vm8, %v3493_v59, %v10066_v38  ;;  %v10110_v58 = vpop.permute.xlu1 %10109  ;;  %v21245_v51 = vld [vmem:[#allocation31_spill] sm:$0xff] }
 0x266   :  { %v3559_v25 = vsel %vm3537_vm8, %v3494_v57, %v10067_v62  ;;  %v3619_v63 = vpack.c.bf16 %v16385_v48, %v16381_v28  ;;  %v16397_v22 = vsel %vm3472_vm7, %v16280_v14, %v9932_v34  ;;  %v10112_v45 = vunpack.i.h.bf16 %v10110_v58  ;;  %v10105_v10 = vpop.permute.xlu0 %10104 }
 0x267   :  { %v10111_v52 = vunpack.i.l.bf16 %v10110_v58  ;;  %v3611_v15 = vpack.c.bf16 %v3557_v5, %v3556_v43  ;;  %v10072_v23 = vunpack.i.h.bf16 %v16276_v18  ;;  %v10071_v32 = vunpack.i.l.bf16 %v16276_v18  ;;  %v21243_v18 = vld [vmem:[#allocation29_spill] sm:$0xff] }
 0x268   :  { %v10107_v7 = vunpack.i.h.bf16 %v10105_v10  ;;  %v10106_v53 = vunpack.i.l.bf16 %v10105_v10  ;;  %v10076_v42 = vunpack.i.l.bf16 %v16315_v11  ;;  %v16408_v14 = vsel %vm3537_vm8, %v21241_v19, %v10112_v45  ;;  %v21249_v19 = vld [vmem:[#allocation35_spill] sm:$0xff] }
 0x269   :  { %v16404_v12 = vsel %vm3537_vm8, %v21240_v20, %v10111_v52  ;;  %v3612_v56 = vpack.c.bf16 %v3559_v25, %v3558_v21  ;;  %v10077_v24 = vunpack.i.h.bf16 %v16315_v11  ;;  %v10120_v46 = vpop.permute.xlu1 %10119  ;;  %v3501_v1 = vsel %vm3472_vm7, %v16284_v0, %v9926_v37  ;;  %v21247_v25 = vld [vmem:[#allocation33_spill] sm:$0xff] }
 0x26a   :  { %v16413_v59 = vsel %vm3537_vm8, %v21242_v39, %v10106_v53  ;;  %v16417_v57 = vsel %vm3537_vm8, %v21243_v18, %v10107_v7  ;;  %8753 = vmatmul.mubr.msk.bf16.gmra.mxu1 %vm3661_vm9, %v3611_v15  ;;  %v3621_v13 = vpack.c.bf16 %v16408_v14, %v16404_v12  ;;  %v10122_v62 = vunpack.i.h.bf16 %v10120_v46  ;;  %v10115_v11 = vpop.permute.xlu0 %10114 }
 0x26b   :  { %v10121_v38 = vunpack.i.l.bf16 %v10120_v46  ;;  %8756 = vmatprep.mubr.msk.bf16.mxu1 %vm3661_vm9, %v3612_v56  ;;  %v3620_v30 = vpack.c.bf16 %v16417_v57, %v16413_v59  ;;  %v3560_v34 = vsel %vm3537_vm8, %v16340_v4, %v10071_v32  ;;  %v3561_v8 = vsel %vm3537_vm8, %v3496_v27, %v10072_v23  ;;  %v21246_v4 = vld [vmem:[#allocation32_spill] sm:$0xff] }
 0x26c   :  { %v10117_v36 = vunpack.i.h.bf16 %v10115_v11  ;;  %v10116_v43 = vunpack.i.l.bf16 %v10115_v11  ;;  %v3502_v5 = vsel %vm3472_vm7, %v16295_v31, %v9927_v2  ;;  %v3562_v0 = vsel %vm3537_vm8, %v3497_v54, %v10076_v42  ;;  %v21248_v42 = vld [vmem:[#allocation34_spill] sm:$0xff]  ;;  %v21251_v11 = vld [vmem:[#allocation24_spill] sm:$0xff] }
 0x26d   :  { %v16435_v37 = vsel %vm3537_vm8, %v21244_v3, %v10121_v38  ;;  %v16439_v44 = vsel %vm3537_vm8, %v21245_v51, %v10122_v62  ;;  %v3563_v21 = vsel %vm3537_vm8, %v3498_v29, %v10077_v24  ;;  %v10130_v31 = vpop.permute.xlu1 %10129  ;;  %v3613_v10 = vpack.c.bf16 %v3561_v8, %v3560_v34 }
 0x26e   :  { %v16444_v27 = vsel %vm3537_vm8, %v21246_v4, %v10116_v43  ;;  %v16448_v58 = vsel %vm3537_vm8, %v21247_v25, %v10117_v36  ;;  %v3623_v54 = vpack.c.bf16 %v16439_v44, %v16435_v37  ;;  %v10132_v2 = vunpack.i.h.bf16 %v10130_v31  ;;  %v10125_v52 = vpop.permute.xlu0 %10124  ;;  %v21252_v25 = vld [vmem:[#allocation37_spill] sm:$0xff] }
 0x26f   :  { %v10131_v45 = vunpack.i.l.bf16 %v10130_v31  ;;  %v3622_v15 = vpack.c.bf16 %v16448_v58, %v16444_v27  ;;  %v10082_v29 = vunpack.i.h.bf16 %v16305_v17  ;;  %v10081_v23 = vunpack.i.l.bf16 %v16305_v17  ;;  %v21250_v17 = vld [vmem:[#allocation36_spill] sm:$0xff] }
 0x270   :  { %v10127_v32 = vunpack.i.h.bf16 %v10125_v52  ;;  %v10126_v7 = vunpack.i.l.bf16 %v10125_v52  ;;  %v10086_v53 = vunpack.i.l.bf16 %v16344_v49  ;;  %v16463_v56 = vsel %vm3537_vm8, %v21249_v19, %v10132_v2  ;;  %v21253_v2 = vld [vmem:[#allocation38_spill] sm:$0xff] }
 0x271   :  { %v16459_v20 = vsel %vm3537_vm8, %v21248_v42, %v10131_v45  ;;  %v3614_v24 = vpack.c.bf16 %v3563_v21, %v3562_v0  ;;  %v10087_v39 = vunpack.i.h.bf16 %v16344_v49  ;;  %v10140_v62 = vpop.permute.xlu1 %10139  ;;  %v9937_v34 = vunpack.i.h.bf16 %v21251_v11 }
 0x272   :  { %v16468_v18 = vsel %vm3537_vm8, %v16049_v61, %v10126_v7  ;;  %v16472_v46 = vsel %vm3537_vm8, %v21250_v17, %v10127_v32  ;;  %8757 = vmatmul.mubr.msk.bf16.gmra.mxu1 %vm3661_vm9, %v3613_v10  ;;  %v3625_v38 = vpack.c.bf16 %v16463_v56, %v16459_v20  ;;  %v10142_v8 = vunpack.i.h.bf16 %v10140_v62  ;;  %v10135_v43 = vpop.permute.xlu0 %10134 }
 0x273   :  { %v10141_v36 = vunpack.i.l.bf16 %v10140_v62  ;;  %8760 = vmatprep.mubr.msk.bf16.mxu1 %vm3661_vm9, %v3614_v24  ;;  %v3624_v61 = vpack.c.bf16 %v16472_v46, %v16468_v18  ;;  %v3564_v49 = vsel %vm3537_vm8, %v16357_v41, %v10081_v23  ;;  %v3565_v0 = vsel %vm3537_vm8, %v16365_v16, %v10082_v29  ;;  %v21254_v41 = vld [vmem:[#allocation39_spill] sm:$0xff]  ;;  %v21255_v16 = vld [vmem:[#allocation40_spill] sm:$0xff] }
 0x274   :  { %v10137_v3 = vunpack.i.h.bf16 %v10135_v43  ;;  %v10136_v51 = vunpack.i.l.bf16 %v10135_v43  ;;  %v9936_v21 = vunpack.i.l.bf16 %v21251_v11  ;;  %v3566_v4 = vsel %vm3537_vm8, %v3501_v1, %v10086_v53  ;;  %v21256_v11 = vld [vmem:[#allocation41_spill] sm:$0xff] }
 0x275   :  { %v16489_v31 = vsel %vm3537_vm8, %v21252_v25, %v10141_v36  ;;  %v16493_v45 = vsel %vm3537_vm8, %v21253_v2, %v10142_v8  ;;  %v3567_v52 = vsel %vm3537_vm8, %v3502_v5, %v10087_v39  ;;  %v10150_v23 = vpop.permute.xlu1 %10149  ;;  %v3615_v42 = vpack.c.bf16 %v3565_v0, %v3564_v49  ;;  %v21257_v36 = vld [vmem:[#allocation42_spill] sm:$0xff] }
 0x276   :  { %v16498_v10 = vsel %vm3537_vm8, %v21254_v41, %v10136_v51  ;;  %v16502_v29 = vsel %vm3537_vm8, %v21255_v16, %v10137_v3  ;;  %v3627_v1 = vpack.c.bf16 %v16493_v45, %v16489_v31  ;;  %v10152_v32 = vunpack.i.h.bf16 %v10150_v23  ;;  %v10145_v53 = vpop.permute.xlu0 %10144  ;;  %v21258_v3 = vld [vmem:[#allocation43_spill] sm:$0xff] }
 0x277   :  { %v10151_v7 = vunpack.i.l.bf16 %v10150_v23  ;;  %v3626_v19 = vpack.c.bf16 %v16502_v29, %v16498_v10  ;;  %v10092_v5 = vunpack.i.h.bf16 %v16334_v40  ;;  %v10091_v24 = vunpack.i.l.bf16 %v16334_v40  ;;  %v21259_v40 = vld [vmem:[#allocation44_spill] sm:$0xff] }
 0x278   :  { %v10147_v39 = vunpack.i.h.bf16 %v10145_v53  ;;  %v10146_v17 = vunpack.i.l.bf16 %v10145_v53  ;;  %v10096_v62 = vunpack.i.l.bf16 %v16368_v26  ;;  %v16517_v43 = vsel %vm3537_vm8, %v21257_v36, %v10152_v32 }
 0x279   :  { %v16513_v8 = vsel %vm3537_vm8, %v21256_v11, %v10151_v7  ;;  %v3616_v49 = vpack.c.bf16 %v3567_v52, %v3566_v4  ;;  %v10097_v0 = vunpack.i.h.bf16 %v16368_v26  ;;  %v10160_v2 = vpop.permute.xlu1 %10159  ;;  %v3505_v16 = vsel %vm3472_vm7, %v16301_v6, %v9936_v21 }
 0x27a   :  { %v16522_v51 = vsel %vm3537_vm8, %v21258_v3, %v10146_v17  ;;  %v16526_v25 = vsel %vm3537_vm8, %v21259_v40, %v10147_v39  ;;  %8761 = vmatmul.mubr.msk.bf16.gmra.mxu1 %vm3661_vm9, %v3615_v42  ;;  %v3629_v41 = vpack.c.bf16 %v16517_v43, %v16513_v8  ;;  %v10162_v4 = vunpack.i.h.bf16 %v10160_v2  ;;  %v10155_v26 = vpop.permute.xlu0 %10154  ;;  %v21260_v17 = vld [vmem:[#allocation45_spill] sm:$0xff] }
 0x27b   :  { %v10161_v52 = vunpack.i.l.bf16 %v10160_v2  ;;  %8764 = vmatprep.mubr.msk.bf16.mxu1 %vm3661_vm9, %v3616_v49  ;;  %v3628_v23 = vpack.c.bf16 %v16526_v25, %v16522_v51  ;;  %v3506_v32 = vsel %vm3472_vm7, %v16309_v50, %v9937_v34  ;;  %v3568_v7 = vsel %vm3537_vm8, %v16389_v47, %v10091_v24  ;;  %v21261_v34 = vld [vmem:[#allocation46_spill] sm:$0xff] }
 0x27c   :  { %v10157_v53 = vunpack.i.h.bf16 %v10155_v26  ;;  %v10156_v42 = vunpack.i.l.bf16 %v10155_v26  ;;  %v3569_v39 = vsel %vm3537_vm8, %v16397_v22, %v10092_v5  ;;  %v3570_v6 = vsel %vm3537_vm8, %v3505_v16, %v10096_v62 }
 0x27d   :  { %v16545_v21 = vsel %vm3537_vm8, %v16113_v35, %v10161_v52  ;;  %v16549_v11 = vsel %vm3537_vm8, %v21260_v17, %v10162_v4  ;;  %v3571_v50 = vsel %vm3537_vm8, %v3506_v32, %v10097_v0  ;;  %v10170_v22 = vpop.permute.xlu1 %10169  ;;  %v3617_v40 = vpack.c.bf16 %v3569_v39, %v3568_v7  ;;  %v21262_v52 = vld [vmem:[#allocation47_spill] sm:$0xff] }
 0x27e   :  { %v16554_v47 = vsel %vm3537_vm8, %v16123_v60, %v10156_v42  ;;  %v16558_v24 = vsel %vm3537_vm8, %v21261_v34, %v10157_v53  ;;  %v3631_v5 = vpack.c.bf16 %v16549_v11, %v16545_v21  ;;  %v10172_v35 = vunpack.i.h.bf16 %v10170_v22  ;;  %v10165_v36 = vpop.permute.xlu0 %10164  ;;  %v16878_v53 = vld [vmem:[%s20317_s4] ss:$0 sm:$0xff]  ;;  %s11646_s4 = smov 40  }
 0x27f   :  { %v10171_v62 = vunpack.i.l.bf16 %v10170_v22  ;;  %v3630_v49 = vpack.c.bf16 %v16558_v24, %v16554_v47  ;;  %v10167_v3 = vunpack.i.h.bf16 %v10165_v36  ;;  %v10166_v0 = vunpack.i.l.bf16 %v10165_v36 }
 0x280   :  { %v16570_v2 = vsel %vm3537_vm8, %v16140_v9, %v10172_v35  ;;  %v3618_v16 = vpack.c.bf16 %v3571_v50, %v3570_v6  ;;  %v16594_v9 = vpop.f32.mrf.mxu1 }
 0x281   :  { %v16566_v60 = vsel %vm3537_vm8, %v16137_v55, %v10171_v62  ;;  %v16574_v4 = vsel %vm3537_vm8, %v16155_v33, %v10166_v0  ;;  %v16578_v26 = vsel %vm3537_vm8, %v21262_v52, %v10167_v3  ;;  %21263 = vst [vmem:[#allocation48_spill] sm:$0xff] %v16594_v9  ;;  %v11645_v33 = vmov 0.0  }
 0x282   :  { %8765 = vmatmul.mubr.msk.bf16.gmra.mxu1 %vm3661_vm9, %v3617_v40  ;;  %v3633_v32 = vpack.c.bf16 %v16570_v2, %v16566_v60  ;;  %v3632_v55 = vpack.c.bf16 %v16578_v26, %v16574_v4  ;;  %4114 = vst.msk [vmem:[#allocation2] sm:$0xff] %vm3147_vm1, %v11645_v33  ;;  %4115 = vst.msk [vmem:[#allocation2 + $0x8] sm:$0xff] %vm3147_vm1, %v11645_v33  ;;  %v16744_v28 = vpop.f32.mrf.mxu1 }
 0x283   :  { %8768 = vmatprep.mubr.msk.bf16.mxu1 %vm3661_vm9, %v3618_v16  ;;  %4117 = vst.msk [vmem:[#allocation2 + $0x10] sm:$0x3] %vm4116_vm10, %v11645_v33  ;;  %4120 = vst.msk [vmem:[#allocation2 + $0x1c0] sm:$0x3] %vm4116_vm10, %v11645_v33 }
 0x284   :  { %4118 = vst.msk [vmem:[#allocation2 + $0x1b0] sm:$0xff] %vm3147_vm1, %v11645_v33  ;;  %4119 = vst.msk [vmem:[#allocation2 + $0x1b8] sm:$0xff] %vm3147_vm1, %v11645_v33  ;;  %v16770_v48 = vpop.f32.mrf.mxu1 }
 0x285   :  { %4122 = vst.msk [vmem:[#allocation2 + $0x198] sm:$0xff] %vm3147_vm1, %v11645_v33  ;;  %4123 = vst.msk [vmem:[#allocation2 + $0x1a0] sm:$0xff] %vm3147_vm1, %v11645_v33 }
 0x286   :  { %4124 = vst.msk [vmem:[#allocation2 + $0x1a8] sm:$0x3] %vm4116_vm10, %v11645_v33  ;;  %4127 = vst.msk [vmem:[#allocation2 + $0x358] sm:$0x3] %vm4116_vm10, %v11645_v33 }
 0x287   :  { %4125 = vst.msk [vmem:[#allocation2 + $0x348] sm:$0xff] %vm3147_vm1, %v11645_v33  ;;  %4126 = vst.msk [vmem:[#allocation2 + $0x350] sm:$0xff] %vm3147_vm1, %v11645_v33 }
 0x288   :  { %4130 = vst.msk [vmem:[#allocation2 + $0x18] sm:$0x1] %vm4128_vm11, %v11645_v33  ;;  %4131 = vst.msk [vmem:[#allocation2 + $0x30] sm:$0x1] %vm4128_vm11, %v11645_v33 }
 0x289   :  { %4132 = vst.msk [vmem:[#allocation2 + $0x48] sm:$0x1] %vm4128_vm11, %v11645_v33  ;;  %4133 = vst.msk [vmem:[#allocation2 + $0x60] sm:$0x1] %vm4128_vm11, %v11645_v33 }
 0x28a   :  { %8769 = vmatmul.mubr.msk.bf16.gmra.mxu1 %vm3661_vm9, %v3619_v63  ;;  %4134 = vst.msk [vmem:[#allocation2 + $0x78] sm:$0x1] %vm4128_vm11, %v11645_v33  ;;  %4135 = vst.msk [vmem:[#allocation2 + $0x90] sm:$0x1] %vm4128_vm11, %v11645_v33  ;;  %v4330_v63 = vld [vmem:[#allocation2 + $0x1] sm:$0xff]  ;;  %v4331_v59 = vld [vmem:[#allocation2 + $0x9] sm:$0xff] }
 0x28b   :  { %8772 = vmatprep.mubr.msk.bf16.mxu1 %vm3661_vm9, %v3620_v30  ;;  %4136 = vst.msk [vmem:[#allocation2 + $0xa8] sm:$0x1] %vm4128_vm11, %v11645_v33  ;;  %4137 = vst.msk [vmem:[#allocation2 + $0xc0] sm:$0x1] %vm4128_vm11, %v11645_v33  ;;  %v10173_v57 = vpack.i.bf16 %v4331_v59, %v4330_v63  ;;  %v16772_v30 = vpop.f32.mrf.mxu1 }
 0x28c   :  { %4138 = vst.msk [vmem:[#allocation2 + $0xd8] sm:$0x1] %vm4128_vm11, %v11645_v33  ;;  %4139 = vst.msk [vmem:[#allocation2 + $0xf0] sm:$0x1] %vm4128_vm11, %v11645_v33 }
 0x28d   :  { %4140 = vst.msk [vmem:[#allocation2 + $0x108] sm:$0x1] %vm4128_vm11, %v11645_v33  ;;  %4141 = vst.msk [vmem:[#allocation2 + $0x120] sm:$0x1] %vm4128_vm11, %v11645_v33  ;;  %10174 = vrot.lane.b32.xlu0 %v10173_v57, %s11638_s13  ;;  %v16783_v12 = vpop.f32.mrf.mxu1 }
 0x28e   :  { %4142 = vst.msk [vmem:[#allocation2 + $0x138] sm:$0x1] %vm4128_vm11, %v11645_v33  ;;  %4143 = vst.msk [vmem:[#allocation2 + $0x150] sm:$0x1] %vm4128_vm11, %v11645_v33 }
 0x28f   :  { %4144 = vst.msk [vmem:[#allocation2 + $0x168] sm:$0x1] %vm4128_vm11, %v11645_v33  ;;  %4145 = vst.msk [vmem:[#allocation2 + $0x180] sm:$0x1] %vm4128_vm11, %v11645_v33  ;;  %v16785_v14 = vpop.f32.mrf.mxu1 }
 0x290   :  { %4148 = vst.msk [vmem:[#allocation2 + $0x1c8] sm:$0x1] %vm4128_vm11, %v11645_v33  ;;  %4149 = vst.msk [vmem:[#allocation2 + $0x1e0] sm:$0x1] %vm4128_vm11, %v11645_v33 }
 0x291   :  { %4150 = vst.msk [vmem:[#allocation2 + $0x1f8] sm:$0x1] %vm4128_vm11, %v11645_v33  ;;  %4151 = vst.msk [vmem:[#allocation2 + $0x210] sm:$0x1] %vm4128_vm11, %v11645_v33 }
 0x292   :  { %4152 = vst.msk [vmem:[#allocation2 + $0x228] sm:$0x1] %vm4128_vm11, %v11645_v33  ;;  %4153 = vst.msk [vmem:[#allocation2 + $0x240] sm:$0x1] %vm4128_vm11, %v11645_v33  ;;  %8773 = vmatmul.mubr.msk.bf16.gmra.mxu1 %vm3661_vm9, %v3621_v13  ;;  %v16795_v13 = vpop.f32.mrf.mxu1 }
 0x293   :  { %4154 = vst.msk [vmem:[#allocation2 + $0x258] sm:$0x1] %vm4128_vm11, %v11645_v33  ;;  %4155 = vst.msk [vmem:[#allocation2 + $0x270] sm:$0x1] %vm4128_vm11, %v11645_v33  ;;  %8776 = vmatprep.mubr.msk.bf16.mxu1 %vm3661_vm9, %v3622_v15 }
 0x294   :  { %4156 = vst.msk [vmem:[#allocation2 + $0x288] sm:$0x1] %vm4128_vm11, %v11645_v33  ;;  %4157 = vst.msk [vmem:[#allocation2 + $0x2a0] sm:$0x1] %vm4128_vm11, %v11645_v33  ;;  %v16797_v37 = vpop.f32.mrf.mxu1 }
 0x295   :  { %4158 = vst.msk [vmem:[#allocation2 + $0x2b8] sm:$0x1] %vm4128_vm11, %v11645_v33  ;;  %4159 = vst.msk [vmem:[#allocation2 + $0x2d0] sm:$0x1] %vm4128_vm11, %v11645_v33 }
 0x296   :  { %4160 = vst.msk [vmem:[#allocation2 + $0x2e8] sm:$0x1] %vm4128_vm11, %v11645_v33  ;;  %4161 = vst.msk [vmem:[#allocation2 + $0x300] sm:$0x1] %vm4128_vm11, %v11645_v33  ;;  %v16807_v44 = vpop.f32.mrf.mxu1 }
 0x297   :  { %4162 = vst.msk [vmem:[#allocation2 + $0x318] sm:$0x1] %vm4128_vm11, %v11645_v33  ;;  %4163 = vst.msk [vmem:[#allocation2 + $0x330] sm:$0x1] %vm4128_vm11, %v11645_v33 }
 0x298   :  { %4166 = vst.msk [vmem:[#allocation2 + $0x29] sm:$0x1] %vm4128_vm11, %v11645_v33  ;;  %4167 = vst.msk [vmem:[#allocation2 + $0x41] sm:$0x1] %vm4128_vm11, %v11645_v33  ;;  %v16809_v27 = vpop.f32.mrf.mxu1 }
 0x299   :  { %4168 = vst.msk [vmem:[#allocation2 + $0x59] sm:$0x1] %vm4128_vm11, %v11645_v33  ;;  %4169 = vst.msk [vmem:[#allocation2 + $0x71] sm:$0x1] %vm4128_vm11, %v11645_v33 }
 0x29a   :  { %4170 = vst.msk [vmem:[#allocation2 + $0x89] sm:$0x1] %vm4128_vm11, %v11645_v33  ;;  %4171 = vst.msk [vmem:[#allocation2 + $0xa1] sm:$0x1] %vm4128_vm11, %v11645_v33  ;;  %8777 = vmatmul.mubr.msk.bf16.gmra.mxu1 %vm3661_vm9, %v3623_v54  ;;  %v16819_v58 = vpop.f32.mrf.mxu1 }
 0x29b   :  { %4172 = vst.msk [vmem:[#allocation2 + $0xb9] sm:$0x1] %vm4128_vm11, %v11645_v33  ;;  %4173 = vst.msk [vmem:[#allocation2 + $0xd1] sm:$0x1] %vm4128_vm11, %v11645_v33  ;;  %8780 = vmatprep.mubr.msk.bf16.mxu1 %vm3661_vm9, %v3624_v61 }
 0x29c   :  { %4174 = vst.msk [vmem:[#allocation2 + $0xe9] sm:$0x1] %vm4128_vm11, %v11645_v33  ;;  %4175 = vst.msk [vmem:[#allocation2 + $0x101] sm:$0x1] %vm4128_vm11, %v11645_v33  ;;  %v16821_v54 = vpop.f32.mrf.mxu1 }
 0x29d   :  { %4176 = vst.msk [vmem:[#allocation2 + $0x119] sm:$0x1] %vm4128_vm11, %v11645_v33  ;;  %4177 = vst.msk [vmem:[#allocation2 + $0x131] sm:$0x1] %vm4128_vm11, %v11645_v33 }
 0x29e   :  { %4178 = vst.msk [vmem:[#allocation2 + $0x149] sm:$0x1] %vm4128_vm11, %v11645_v33  ;;  %4179 = vst.msk [vmem:[#allocation2 + $0x161] sm:$0x1] %vm4128_vm11, %v11645_v33  ;;  %v16831_v15 = vpop.f32.mrf.mxu1 }
 0x29f   :  { %4180 = vst.msk [vmem:[#allocation2 + $0x179] sm:$0x1] %vm4128_vm11, %v11645_v33  ;;  %4181 = vst.msk [vmem:[#allocation2 + $0x191] sm:$0x1] %vm4128_vm11, %v11645_v33 }
 0x2a0   :  { %4184 = vst.msk [vmem:[#allocation2 + $0x1d9] sm:$0x1] %vm4128_vm11, %v11645_v33  ;;  %4185 = vst.msk [vmem:[#allocation2 + $0x1f1] sm:$0x1] %vm4128_vm11, %v11645_v33  ;;  %v16833_v20 = vpop.f32.mrf.mxu1 }
 0x2a1   :  { %4186 = vst.msk [vmem:[#allocation2 + $0x209] sm:$0x1] %vm4128_vm11, %v11645_v33  ;;  %4187 = vst.msk [vmem:[#allocation2 + $0x221] sm:$0x1] %vm4128_vm11, %v11645_v33 }
 0x2a2   :  { %4188 = vst.msk [vmem:[#allocation2 + $0x239] sm:$0x1] %vm4128_vm11, %v11645_v33  ;;  %4189 = vst.msk [vmem:[#allocation2 + $0x251] sm:$0x1] %vm4128_vm11, %v11645_v33  ;;  %8781 = vmatmul.mubr.msk.bf16.gmra.mxu1 %vm3661_vm9, %v3625_v38  ;;  %v16839_v56 = vpop.f32.mrf.mxu1 }
 0x2a3   :  { %4190 = vst.msk [vmem:[#allocation2 + $0x269] sm:$0x1] %vm4128_vm11, %v11645_v33  ;;  %4191 = vst.msk [vmem:[#allocation2 + $0x281] sm:$0x1] %vm4128_vm11, %v11645_v33  ;;  %8784 = vmatprep.mubr.msk.bf16.mxu1 %vm3661_vm9, %v3626_v19 }
 0x2a4   :  { %4192 = vst.msk [vmem:[#allocation2 + $0x299] sm:$0x1] %vm4128_vm11, %v11645_v33  ;;  %4193 = vst.msk [vmem:[#allocation2 + $0x2b1] sm:$0x1] %vm4128_vm11, %v11645_v33  ;;  %v16841_v18 = vpop.f32.mrf.mxu1 }
 0x2a5   :  { %4194 = vst.msk [vmem:[#allocation2 + $0x2c9] sm:$0x1] %vm4128_vm11, %v11645_v33  ;;  %4195 = vst.msk [vmem:[#allocation2 + $0x2e1] sm:$0x1] %vm4128_vm11, %v11645_v33 }
 0x2a6   :  { %4196 = vst.msk [vmem:[#allocation2 + $0x2f9] sm:$0x1] %vm4128_vm11, %v11645_v33  ;;  %4197 = vst.msk [vmem:[#allocation2 + $0x311] sm:$0x1] %vm4128_vm11, %v11645_v33  ;;  %v16843_v46 = vpop.f32.mrf.mxu1 }
 0x2a7   :  { %4198 = vst.msk [vmem:[#allocation2 + $0x329] sm:$0x1] %vm4128_vm11, %v11645_v33  ;;  %4199 = vst.msk [vmem:[#allocation2 + $0x341] sm:$0x1] %vm4128_vm11, %v11645_v33 }
 0x2a8   :  { %21264 = vst [vmem:[#allocation49_spill] sm:$0xff] %v16744_v28  ;;  %4129 = vst.msk [vmem:[#allocation2] sm:$0x1] %vm4128_vm11, %v11645_v33  ;;  %v16845_v38 = vpop.f32.mrf.mxu1 }
 0x2a9   :  { %4146 = vst.msk [vmem:[#allocation2 + $0x198] sm:$0x1] %vm4128_vm11, %v11645_v33  ;;  %4147 = vst.msk [vmem:[#allocation2 + $0x1b0] sm:$0x1] %vm4128_vm11, %v11645_v33 }
 0x2aa   :  { %4164 = vst.msk [vmem:[#allocation2 + $0x348] sm:$0x1] %vm4128_vm11, %v11645_v33  ;;  %4165 = vst.msk [vmem:[#allocation2 + $0x11] sm:$0x1] %vm4128_vm11, %v11645_v33  ;;  %8785 = vmatmul.mubr.msk.bf16.gmra.mxu1 %vm3661_vm9, %v3627_v1  ;;  %v16847_v61 = vpop.f32.mrf.mxu1 }
 0x2ab   :  { %4182 = vst.msk [vmem:[#allocation2 + $0x1a9] sm:$0x1] %vm4128_vm11, %v11645_v33  ;;  %4183 = vst.msk [vmem:[#allocation2 + $0x1c1] sm:$0x1] %vm4128_vm11, %v11645_v33  ;;  %8788 = vmatprep.mubr.msk.bf16.mxu1 %vm3661_vm9, %v3628_v23 }
 0x2ac   :  { %4200 = vst.msk [vmem:[#allocation2 + $0x359] sm:$0x1] %vm4128_vm11, %v11645_v33  ;;  %21265 = vst [vmem:[#allocation51_spill] sm:$0xff] %v16770_v48  ;;  %v16849_v31 = vpop.f32.mrf.mxu1 }
 0x2ad   :  { %21266 = vst [vmem:[#allocation66_spill] sm:$0xff] %v16772_v30  ;;  %21267 = vst [vmem:[#allocation67_spill] sm:$0xff] %v16783_v12 }
 0x2ae   :  { %21268 = vst [vmem:[#allocation68_spill] sm:$0xff] %v16785_v14  ;;  %21269 = vst [vmem:[#allocation69_spill] sm:$0xff] %v16795_v13  ;;  %v16851_v45 = vpop.f32.mrf.mxu1 }
 0x2af   :  { %21270 = vst [vmem:[#allocation70_spill] sm:$0xff] %v16797_v37  ;;  %21271 = vst [vmem:[#allocation71_spill] sm:$0xff] %v16807_v44 }
 0x2b0   :  { %21272 = vst [vmem:[#allocation72_spill] sm:$0xff] %v16809_v27  ;;  %21273 = vst [vmem:[#allocation73_spill] sm:$0xff] %v16819_v58  ;;  %v16853_v10 = vpop.f32.mrf.mxu1 }
 0x2b1   :  { %21274 = vst [vmem:[#allocation74_spill] sm:$0xff] %v16821_v54  ;;  %21275 = vst [vmem:[#allocation75_spill] sm:$0xff] %v16831_v15 }
 0x2b2   :  { %8789 = vmatmul.mubr.msk.bf16.gmra.mxu1 %vm3661_vm9, %v3629_v41  ;;  %21276 = vst [vmem:[#allocation76_spill] sm:$0xff] %v16833_v20  ;;  %21277 = vst [vmem:[#allocation77_spill] sm:$0xff] %v16839_v56  ;;  %v16855_v29 = vpop.f32.mrf.mxu1 }
 0x2b3   :  { %8792 = vmatprep.mubr.msk.bf16.mxu1 %vm3661_vm9, %v3630_v49  ;;  %21278 = vst [vmem:[#allocation78_spill] sm:$0xff] %v16841_v18  ;;  %21279 = vst [vmem:[#allocation79_spill] sm:$0xff] %v16843_v46 }
 0x2b4   :  { %21280 = vst [vmem:[#allocation80_spill] sm:$0xff] %v16845_v38  ;;  %21281 = vst [vmem:[#allocation81_spill] sm:$0xff] %v16847_v61  ;;  %v16857_v1 = vpop.f32.mrf.mxu1 }
 0x2b5   :  { %21282 = vst [vmem:[#allocation88_spill] sm:$0xff] %v16849_v31  ;;  %21283 = vst [vmem:[#allocation108_spill] sm:$0xff] %v16851_v45 }
 0x2b6   :  { %21284 = vst [vmem:[#allocation109_spill] sm:$0xff] %v16853_v10  ;;  %21285 = vst [vmem:[#allocation110_spill] sm:$0xff] %v16855_v29  ;;  %v16859_v19 = vpop.f32.mrf.mxu1 }
 0x2b7   :  { %21286 = vst [vmem:[#allocation111_spill] sm:$0xff] %v16857_v1  ;;  %21287 = vst [vmem:[#allocation118_spill] sm:$0xff] %v16859_v19 }
 0x2b8   :  { %v16861_v8 = vpop.f32.mrf.mxu1 }
 0x2b9   :  { %21288 = vst [vmem:[#allocation50_spill] sm:$0xff] %v16861_v8 }
 0x2ba   :  { %8793 = vmatmul.mubr.msk.bf16.gmra.mxu1 %vm3661_vm9, %v3631_v5  ;;  %v16863_v43 = vpop.f32.mrf.mxu1 }
 0x2bb   :  { %8796 = vmatprep.mubr.msk.bf16.mxu1 %vm3661_vm9, %v3632_v55  ;;  %21289 = vst [vmem:[#allocation52_spill] sm:$0xff] %v16863_v43 }
 0x2bc   :  { %v16865_v51 = vpop.f32.mrf.mxu1 }
 0x2bd   :  { %21290 = vst [vmem:[#allocation53_spill] sm:$0xff] %v16865_v51 }
 0x2be   :  { %v16867_v25 = vpop.f32.mrf.mxu1 }
 0x2bf   :  { %21291 = vst [vmem:[#allocation56_spill] sm:$0xff] %v16867_v25 }
 0x2c0   :  { %v16869_v41 = vpop.f32.mrf.mxu1 }
 0x2c1   :  { %21292 = vst [vmem:[#allocation57_spill] sm:$0xff] %v16869_v41 }
 0x2c2   :  { %8797 = vmatmul.mubr.msk.bf16.gmra.mxu1 %vm3661_vm9, %v3633_v32  ;;  %v16871_v23 = vpop.f32.mrf.mxu1 }
 0x2c3   :  { %21293 = vst [vmem:[#allocation128_spill] sm:$0xff] %v16871_v23 }
 0x2c4   :  { %v16873_v7 = vpop.f32.mrf.mxu1 }
 0x2c5   :  { %21294 = vst [vmem:[#allocation59_spill] sm:$0xff] %v16873_v7 }
 0x30a   :  { %v8738_v42 = vpop.f32.mrf.mxu1 }
 0x30b   :  { %v3804_v39 = vadd.f32 %v8738_v42, %v16878_v53 }
 0x30c   :  { %v3795_v6 = vpop.f32.mrf.mxu1 }
 0x30d   :  { %v4052_v21 = vmax.f32 %v3804_v39, 0.0  ;;  %v3796_v17 = vadd.f32 %v16878_v53, %v3795_v6 }
 0x30e   :  { %v8739_v11 = vpop.f32.mrf.mxu1 }
 0x30f   :  { %4204 = vst.msk [vmem:[#allocation2 + $0x31] sm:$0xff] %vm3147_vm1, %v4052_v21  ;;  %v4050_v50 = vmax.f32 %v3796_v17, 0.0  ;;  %v3807_v47 = vadd.f32 %v8739_v11, %v16878_v53 }
 0x310   :  { %v3798_v34 = vpop.f32.mrf.mxu1 }
 0x311   :  { %4202 = vst.msk [vmem:[#allocation2 + $0x19] sm:$0xff] %vm3147_vm1, %v4050_v50  ;;  %v4053_v24 = vmax.f32 %v3807_v47, 0.0  ;;  %v3799_v22 = vadd.f32 %v16878_v53, %v3798_v34 }
 0x312   :  { %v8742_v5 = vpop.f32.mrf.mxu1 }
 0x313   :  { %4205 = vst.msk [vmem:[#allocation2 + $0x39] sm:$0xff] %vm3147_vm1, %v4053_v24  ;;  %v4051_v35 = vmax.f32 %v3799_v22, 0.0  ;;  %v3820_v62 = vadd.f32 %v8742_v5, %v16878_v53 }
 0x314   :  { %v3811_v36 = vpop.f32.mrf.mxu1 }
 0x315   :  { %4203 = vst.msk [vmem:[#allocation2 + $0x21] sm:$0xff] %vm3147_vm1, %v4051_v35  ;;  %v4056_v49 = vmax.f32 %v3820_v62, 0.0  ;;  %v3812_v3 = vadd.f32 %v16878_v53, %v3811_v36 }
 0x316   :  { %v8743_v0 = vpop.f32.mrf.mxu1  ;;  %v4334_v26 = vld [vmem:[#allocation2 + $0x31] sm:$0xff] }
 0x317   :  { %4208 = vst.msk [vmem:[#allocation2 + $0x61] sm:$0xff] %vm3147_vm1, %v4056_v49  ;;  %v4054_v40 = vmax.f32 %v3812_v3, 0.0  ;;  %v3823_v60 = vadd.f32 %v8743_v0, %v16878_v53 }
 0x318   :  { %v3814_v2 = vpop.f32.mrf.mxu1  ;;  %v4332_v57 = vld [vmem:[#allocation2 + $0x19] sm:$0xff] }
 0x319   :  { %4206 = vst.msk [vmem:[#allocation2 + $0x49] sm:$0xff] %vm3147_vm1, %v4054_v40  ;;  %v4057_v16 = vmax.f32 %v3823_v60, 0.0  ;;  %v3815_v4 = vadd.f32 %v16878_v53, %v3814_v2  ;;  %v4522_v18 = vld [vmem:[#allocation2 + $0x19] sm:$0xff] }
 0x31a   :  { %v8746_v52 = vpop.f32.mrf.mxu1  ;;  %v4335_v32 = vld [vmem:[#allocation2 + $0x39] sm:$0xff] }
 0x31b   :  { %4209 = vst.msk [vmem:[#allocation2 + $0x69] sm:$0xff] %vm3147_vm1, %v4057_v16  ;;  %v4055_v55 = vmax.f32 %v3815_v4, 0.0  ;;  %v3836_v33 = vadd.f32 %v8746_v52, %v16878_v53  ;;  %v10183_v63 = vpack.i.bf16 %v4335_v32, %v4334_v26  ;;  %v4525_v54 = vld [vmem:[#allocation2 + $0x39] sm:$0xff] }
 0x31c   :  { %v3827_v59 = vpop.f32.mrf.mxu1  ;;  %v4333_v42 = vld [vmem:[#allocation2 + $0x21] sm:$0xff] }
 0x31d   :  { %4207 = vst.msk [vmem:[#allocation2 + $0x51] sm:$0xff] %vm3147_vm1, %v4055_v55  ;;  %v4060_v39 = vmax.f32 %v3836_v33, 0.0  ;;  %v3828_v6 = vadd.f32 %v16878_v53, %v3827_v59  ;;  %10184 = vrot.lane.b32.xlu0 %v10183_v63, %s11638_s13  ;;  %v10178_v21 = vpack.i.bf16 %v4333_v42, %v4332_v57 }
 0x31e   :  { %v8747_v17 = vpop.f32.mrf.mxu1  ;;  %v4338_v5 = vld [vmem:[#allocation2 + $0x61] sm:$0xff] }
 0x31f   :  { %4212 = vst.msk [vmem:[#allocation2 + $0x91] sm:$0xff] %vm3147_vm1, %v4060_v39  ;;  %v4058_v11 = vmax.f32 %v3828_v6, 0.0  ;;  %v3839_v50 = vadd.f32 %v8747_v17, %v16878_v53  ;;  %10179 = vrot.lane.b32.xlu1 %v10178_v21, %s11638_s13 }
 0x320   :  { %v3830_v47 = vpop.f32.mrf.mxu1  ;;  %v4336_v0 = vld [vmem:[#allocation2 + $0x49] sm:$0xff] }
 0x321   :  { %4210 = vst.msk [vmem:[#allocation2 + $0x79] sm:$0xff] %vm3147_vm1, %v4058_v11  ;;  %v4061_v34 = vmax.f32 %v3839_v50, 0.0  ;;  %v3831_v24 = vadd.f32 %v16878_v53, %v3830_v47 }
 0x322   :  { %v8750_v22 = vpop.f32.mrf.mxu1  ;;  %v4339_v35 = vld [vmem:[#allocation2 + $0x69] sm:$0xff] }
 0x323   :  { %4213 = vst.msk [vmem:[#allocation2 + $0x99] sm:$0xff] %vm3147_vm1, %v4061_v34  ;;  %v4059_v62 = vmax.f32 %v3831_v24, 0.0  ;;  %v3852_v36 = vadd.f32 %v8750_v22, %v16878_v53  ;;  %v10193_v49 = vpack.i.bf16 %v4339_v35, %v4338_v5  ;;  %v4529_v27 = vld [vmem:[#allocation2 + $0x69] sm:$0xff] }
 0x324   :  { %v3843_v3 = vpop.f32.mrf.mxu1  ;;  %v4337_v40 = vld [vmem:[#allocation2 + $0x51] sm:$0xff] }
 0x325   :  { %4211 = vst.msk [vmem:[#allocation2 + $0x81] sm:$0xff] %vm3147_vm1, %v4059_v62  ;;  %v4064_v60 = vmax.f32 %v3852_v36, 0.0  ;;  %v3844_v2 = vadd.f32 %v16878_v53, %v3843_v3  ;;  %10194 = vrot.lane.b32.xlu0 %v10193_v49, %s11638_s13  ;;  %v10188_v16 = vpack.i.bf16 %v4337_v40, %v4336_v0  ;;  %v4527_v56 = vld [vmem:[#allocation2 + $0x51] sm:$0xff] }
 0x326   :  { %v8751_v4 = vpop.f32.mrf.mxu1  ;;  %v4342_v59 = vld [vmem:[#allocation2 + $0x91] sm:$0xff] }
 0x327   :  { %4216 = vst.msk [vmem:[#allocation2 + $0xc1] sm:$0xff] %vm3147_vm1, %v4064_v60  ;;  %v4062_v52 = vmax.f32 %v3844_v2, 0.0  ;;  %v3855_v26 = vadd.f32 %v8751_v4, %v16878_v53  ;;  %10189 = vrot.lane.b32.xlu1 %v10188_v16, %s11638_s13 }
 0x328   :  { %v3846_v32 = vpop.f32.mrf.mxu1  ;;  %v4340_v17 = vld [vmem:[#allocation2 + $0x79] sm:$0xff] }
 0x329   :  { %4214 = vst.msk [vmem:[#allocation2 + $0xa9] sm:$0xff] %vm3147_vm1, %v4062_v52  ;;  %v4065_v55 = vmax.f32 %v3855_v26, 0.0  ;;  %v3847_v33 = vadd.f32 %v16878_v53, %v3846_v32 }
 0x32a   :  { %v8754_v63 = vpop.f32.mrf.mxu1  ;;  %v4343_v57 = vld [vmem:[#allocation2 + $0x99] sm:$0xff] }
 0x32b   :  { %4217 = vst.msk [vmem:[#allocation2 + $0xc9] sm:$0xff] %vm3147_vm1, %v4065_v55  ;;  %v4063_v42 = vmax.f32 %v3847_v33, 0.0  ;;  %v3868_v39 = vadd.f32 %v8754_v63, %v16878_v53  ;;  %v10203_v6 = vpack.i.bf16 %v4343_v57, %v4342_v59  ;;  %v4533_v37 = vld [vmem:[#allocation2 + $0x99] sm:$0xff] }
 0x32c   :  { %v3859_v21 = vpop.f32.mrf.mxu1  ;;  %v4341_v11 = vld [vmem:[#allocation2 + $0x81] sm:$0xff] }
 0x32d   :  { %4215 = vst.msk [vmem:[#allocation2 + $0xb1] sm:$0xff] %vm3147_vm1, %v4063_v42  ;;  %v4068_v50 = vmax.f32 %v3868_v39, 0.0  ;;  %v3860_v47 = vadd.f32 %v16878_v53, %v3859_v21  ;;  %10204 = vrot.lane.b32.xlu0 %v10203_v6, %s11638_s13  ;;  %v10198_v34 = vpack.i.bf16 %v4341_v11, %v4340_v17  ;;  %v4531_v15 = vld [vmem:[#allocation2 + $0x81] sm:$0xff] }
 0x32e   :  { %v8755_v24 = vpop.f32.mrf.mxu1  ;;  %v4346_v3 = vld [vmem:[#allocation2 + $0xc1] sm:$0xff] }
 0x32f   :  { %4220 = vst.msk [vmem:[#allocation2 + $0xf1] sm:$0xff] %vm3147_vm1, %v4068_v50  ;;  %v4066_v22 = vmax.f32 %v3860_v47, 0.0  ;;  %v3871_v5 = vadd.f32 %v8755_v24, %v16878_v53  ;;  %10199 = vrot.lane.b32.xlu1 %v10198_v34, %s11638_s13 }
 0x330   :  { %v3862_v35 = vpop.f32.mrf.mxu1  ;;  %v4344_v4 = vld [vmem:[#allocation2 + $0xa9] sm:$0xff] }
 0x331   :  { %4218 = vst.msk [vmem:[#allocation2 + $0xd9] sm:$0xff] %vm3147_vm1, %v4066_v22  ;;  %v4069_v62 = vmax.f32 %v3871_v5, 0.0  ;;  %v3863_v36 = vadd.f32 %v16878_v53, %v3862_v35 }
 0x332   :  { %v8758_v49 = vpop.f32.mrf.mxu1  ;;  %v4347_v0 = vld [vmem:[#allocation2 + $0xc9] sm:$0xff] }
 0x333   :  { %4221 = vst.msk [vmem:[#allocation2 + $0xf9] sm:$0xff] %vm3147_vm1, %v4069_v62  ;;  %v4067_v40 = vmax.f32 %v3863_v36, 0.0  ;;  %v3884_v60 = vadd.f32 %v8758_v49, %v16878_v53  ;;  %v10213_v2 = vpack.i.bf16 %v4347_v0, %v4346_v3  ;;  %v4537_v14 = vld [vmem:[#allocation2 + $0xc9] sm:$0xff] }
 0x334   :  { %v3875_v16 = vpop.f32.mrf.mxu1  ;;  %v4345_v52 = vld [vmem:[#allocation2 + $0xb1] sm:$0xff] }
 0x335   :  { %4219 = vst.msk [vmem:[#allocation2 + $0xe1] sm:$0xff] %vm3147_vm1, %v4067_v40  ;;  %v4072_v26 = vmax.f32 %v3884_v60, 0.0  ;;  %v3876_v32 = vadd.f32 %v16878_v53, %v3875_v16  ;;  %10214 = vrot.lane.b32.xlu0 %v10213_v2, %s11638_s13  ;;  %v10208_v55 = vpack.i.bf16 %v4345_v52, %v4344_v4  ;;  %v4535_v58 = vld [vmem:[#allocation2 + $0xb1] sm:$0xff] }
 0x336   :  { %v8759_v33 = vpop.f32.mrf.mxu1  ;;  %v4350_v21 = vld [vmem:[#allocation2 + $0xf1] sm:$0xff] }
 0x337   :  { %4224 = vst.msk [vmem:[#allocation2 + $0x121] sm:$0xff] %vm3147_vm1, %v4072_v26  ;;  %v4070_v63 = vmax.f32 %v3876_v32, 0.0  ;;  %v3887_v59 = vadd.f32 %v8759_v33, %v16878_v53  ;;  %10209 = vrot.lane.b32.xlu1 %v10208_v55, %s11638_s13 }
 0x338   :  { %v3878_v57 = vpop.f32.mrf.mxu1  ;;  %v4348_v24 = vld [vmem:[#allocation2 + $0xd9] sm:$0xff] }
 0x339   :  { %4222 = vst.msk [vmem:[#allocation2 + $0x109] sm:$0xff] %vm3147_vm1, %v4070_v63  ;;  %v4073_v42 = vmax.f32 %v3887_v59, 0.0  ;;  %v3879_v39 = vadd.f32 %v16878_v53, %v3878_v57 }
 0x33a   :  { %v8762_v6 = vpop.f32.mrf.mxu1  ;;  %v4351_v17 = vld [vmem:[#allocation2 + $0xf9] sm:$0xff] }
 0x33b   :  { %4225 = vst.msk [vmem:[#allocation2 + $0x129] sm:$0xff] %vm3147_vm1, %v4073_v42  ;;  %v4071_v11 = vmax.f32 %v3879_v39, 0.0  ;;  %v3900_v50 = vadd.f32 %v8762_v6, %v16878_v53  ;;  %v10223_v47 = vpack.i.bf16 %v4351_v17, %v4350_v21  ;;  %v4541_v30 = vld [vmem:[#allocation2 + $0xf9] sm:$0xff] }
 0x33c   :  { %v3891_v34 = vpop.f32.mrf.mxu1  ;;  %v4349_v22 = vld [vmem:[#allocation2 + $0xe1] sm:$0xff] }
 0x33d   :  { %4223 = vst.msk [vmem:[#allocation2 + $0x111] sm:$0xff] %vm3147_vm1, %v4071_v11  ;;  %v4076_v5 = vmax.f32 %v3900_v50, 0.0  ;;  %v3892_v35 = vadd.f32 %v16878_v53, %v3891_v34  ;;  %10224 = vrot.lane.b32.xlu0 %v10223_v47, %s11638_s13  ;;  %v10218_v62 = vpack.i.bf16 %v4349_v22, %v4348_v24  ;;  %v4362_v47 = vld [vmem:[#allocation2 + $0x1b1] sm:$0xff]  ;;  %v4539_v44 = vld [vmem:[#allocation2 + $0xe1] sm:$0xff] }
 0x33e   :  { %v8763_v36 = vpop.f32.mrf.mxu1  ;;  %v4354_v16 = vld [vmem:[#allocation2 + $0x121] sm:$0xff] }
 0x33f   :  { %4228 = vst.msk [vmem:[#allocation2 + $0x151] sm:$0xff] %vm3147_vm1, %v4076_v5  ;;  %v4074_v49 = vmax.f32 %v3892_v35, 0.0  ;;  %v3903_v3 = vadd.f32 %v8763_v36, %v16878_v53  ;;  %10219 = vrot.lane.b32.xlu1 %v10218_v62, %s11638_s13  ;;  %v4363_v5 = vld [vmem:[#allocation2 + $0x1b9] sm:$0xff] }
 0x340   :  { %v3894_v0 = vpop.f32.mrf.mxu1  ;;  %v4352_v33 = vld [vmem:[#allocation2 + $0x109] sm:$0xff] }
 0x341   :  { %4226 = vst.msk [vmem:[#allocation2 + $0x139] sm:$0xff] %vm3147_vm1, %v4074_v49  ;;  %v4077_v40 = vmax.f32 %v3903_v3, 0.0  ;;  %v3895_v60 = vadd.f32 %v16878_v53, %v3894_v0 }
 0x342   :  { %v8766_v2 = vpop.f32.mrf.mxu1  ;;  %v4355_v4 = vld [vmem:[#allocation2 + $0x129] sm:$0xff] }
 0x343   :  { %4229 = vst.msk [vmem:[#allocation2 + $0x159] sm:$0xff] %vm3147_vm1, %v4077_v40  ;;  %v4075_v52 = vmax.f32 %v3895_v60, 0.0  ;;  %v3916_v26 = vadd.f32 %v8766_v2, %v16878_v53  ;;  %v10233_v32 = vpack.i.bf16 %v4355_v4, %v4354_v16  ;;  %v10253_v16 = vpack.i.bf16 %v4363_v5, %v4362_v47  ;;  %v4545_v28 = vld [vmem:[#allocation2 + $0x129] sm:$0xff] }
 0x344   :  { %v3907_v55 = vpop.f32.mrf.mxu1  ;;  %v4353_v63 = vld [vmem:[#allocation2 + $0x111] sm:$0xff] }
 0x345   :  { %4227 = vst.msk [vmem:[#allocation2 + $0x141] sm:$0xff] %vm3147_vm1, %v4075_v52  ;;  %v4080_v59 = vmax.f32 %v3916_v26, 0.0  ;;  %v3908_v57 = vadd.f32 %v16878_v53, %v3907_v55  ;;  %10234 = vrot.lane.b32.xlu0 %v10233_v32, %s11638_s13  ;;  %v10228_v42 = vpack.i.bf16 %v4353_v63, %v4352_v33  ;;  %v4543_v13 = vld [vmem:[#allocation2 + $0x111] sm:$0xff] }
 0x346   :  { %v8767_v39 = vpop.f32.mrf.mxu1  ;;  %v4358_v24 = vld [vmem:[#allocation2 + $0x151] sm:$0xff] }
 0x347   :  { %4232 = vst.msk [vmem:[#allocation2 + $0x181] sm:$0xff] %vm3147_vm1, %v4080_v59  ;;  %v4078_v6 = vmax.f32 %v3908_v57, 0.0  ;;  %v3919_v21 = vadd.f32 %v8767_v39, %v16878_v53  ;;  %10229 = vrot.lane.b32.xlu1 %v10228_v42, %s11638_s13 }
 0x348   :  { %v3910_v17 = vpop.f32.mrf.mxu1  ;;  %v4356_v3 = vld [vmem:[#allocation2 + $0x139] sm:$0xff] }
 0x349   :  { %4230 = vst.msk [vmem:[#allocation2 + $0x169] sm:$0xff] %vm3147_vm1, %v4078_v6  ;;  %v4081_v11 = vmax.f32 %v3919_v21, 0.0  ;;  %v3911_v50 = vadd.f32 %v16878_v53, %v3910_v17 }
 0x34a   :  { %v8770_v34 = vpop.f32.mrf.mxu1  ;;  %v4359_v22 = vld [vmem:[#allocation2 + $0x159] sm:$0xff] }
 0x34b   :  { %4233 = vst.msk [vmem:[#allocation2 + $0x189] sm:$0xff] %vm3147_vm1, %v4081_v11  ;;  %v4079_v35 = vmax.f32 %v3911_v50, 0.0  ;;  %v3932_v62 = vadd.f32 %v8770_v34, %v16878_v53  ;;  %v10243_v36 = vpack.i.bf16 %v4359_v22, %v4358_v24 }
 0x34c   :  { %v3923_v49 = vpop.f32.mrf.mxu1  ;;  %v4357_v0 = vld [vmem:[#allocation2 + $0x141] sm:$0xff] }
 0x34d   :  { %4231 = vst.msk [vmem:[#allocation2 + $0x171] sm:$0xff] %vm3147_vm1, %v4079_v35  ;;  %v4084_v40 = vmax.f32 %v3932_v62, 0.0  ;;  %v3924_v60 = vadd.f32 %v16878_v53, %v3923_v49  ;;  %10244 = vrot.lane.b32.xlu0 %v10243_v36, %s11638_s13  ;;  %v10238_v2 = vpack.i.bf16 %v4357_v0, %v4356_v3  ;;  %v4547_v12 = vld [vmem:[#allocation2 + $0x141] sm:$0xff] }
 0x34e   :  { %v8771_v4 = vpop.f32.mrf.mxu1 }
 0x34f   :  { %4236 = vst.msk [vmem:[#allocation2 + $0x1e1] sm:$0xff] %vm3147_vm1, %v4084_v40  ;;  %v4082_v52 = vmax.f32 %v3924_v60, 0.0  ;;  %v3935_v26 = vadd.f32 %v8771_v4, %v16878_v53  ;;  %10239 = vrot.lane.b32.xlu1 %v10238_v2, %s11638_s13 }
 0x350   :  { %v3926_v32 = vpop.f32.mrf.mxu1  ;;  %v4360_v39 = vld [vmem:[#allocation2 + $0x169] sm:$0xff] }
 0x351   :  { %4234 = vst.msk [vmem:[#allocation2 + $0x1c9] sm:$0xff] %vm3147_vm1, %v4082_v52  ;;  %v4085_v55 = vmax.f32 %v3935_v26, 0.0  ;;  %v3927_v33 = vadd.f32 %v16878_v53, %v3926_v32  ;;  %10254 = vrot.lane.b32.xlu0 %v10253_v16, %s11638_s13 }
 0x352   :  { %v8774_v63 = vpop.f32.mrf.mxu1 }
 0x353   :  { %4237 = vst.msk [vmem:[#allocation2 + $0x1e9] sm:$0xff] %vm3147_vm1, %v4085_v55  ;;  %v4083_v59 = vmax.f32 %v3927_v33, 0.0  ;;  %v3948_v57 = vadd.f32 %v8774_v63, %v16878_v53 }
 0x354   :  { %v3939_v42 = vpop.f32.mrf.mxu1  ;;  %v4361_v6 = vld [vmem:[#allocation2 + $0x171] sm:$0xff] }
 0x355   :  { %4235 = vst.msk [vmem:[#allocation2 + $0x1d1] sm:$0xff] %vm3147_vm1, %v4083_v59  ;;  %v4088_v21 = vmax.f32 %v3948_v57, 0.0  ;;  %v3940_v17 = vadd.f32 %v16878_v53, %v3939_v42  ;;  %v10248_v11 = vpack.i.bf16 %v4361_v6, %v4360_v39  ;;  %v4551_v48 = vld [vmem:[#allocation2 + $0x171] sm:$0xff] }
 0x356   :  { %v8775_v50 = vpop.f32.mrf.mxu1  ;;  %v4366_v62 = vld [vmem:[#allocation2 + $0x1e1] sm:$0xff] }
 0x357   :  { %4240 = vst.msk [vmem:[#allocation2 + $0x211] sm:$0xff] %vm3147_vm1, %v4088_v21  ;;  %v4086_v47 = vmax.f32 %v3940_v17, 0.0  ;;  %v3951_v34 = vadd.f32 %v8775_v50, %v16878_v53  ;;  %10249 = vrot.lane.b32.xlu1 %v10248_v11, %s11638_s13 }
 0x358   :  { %v3942_v24 = vpop.f32.mrf.mxu1  ;;  %v4364_v60 = vld [vmem:[#allocation2 + $0x1c9] sm:$0xff] }
 0x359   :  { %4238 = vst.msk [vmem:[#allocation2 + $0x1f9] sm:$0xff] %vm3147_vm1, %v4086_v47  ;;  %v4089_v22 = vmax.f32 %v3951_v34, 0.0  ;;  %v3943_v5 = vadd.f32 %v16878_v53, %v3942_v24 }
 0x35a   :  { %v8778_v35 = vpop.f32.mrf.mxu1  ;;  %v4367_v36 = vld [vmem:[#allocation2 + $0x1e9] sm:$0xff] }
 0x35b   :  { %4241 = vst.msk [vmem:[#allocation2 + $0x219] sm:$0xff] %vm3147_vm1, %v4089_v22  ;;  %v4087_v49 = vmax.f32 %v3943_v5, 0.0  ;;  %v3964_v3 = vadd.f32 %v8778_v35, %v16878_v53  ;;  %v10263_v0 = vpack.i.bf16 %v4367_v36, %v4366_v62 }
 0x35c   :  { %v3955_v40 = vpop.f32.mrf.mxu1  ;;  %v4365_v2 = vld [vmem:[#allocation2 + $0x1d1] sm:$0xff] }
 0x35d   :  { %4239 = vst.msk [vmem:[#allocation2 + $0x201] sm:$0xff] %vm3147_vm1, %v4087_v49  ;;  %v4092_v16 = vmax.f32 %v3964_v3, 0.0  ;;  %v3956_v4 = vadd.f32 %v16878_v53, %v3955_v40  ;;  %10264 = vrot.lane.b32.xlu0 %v10263_v0, %s11638_s13  ;;  %v10258_v52 = vpack.i.bf16 %v4365_v2, %v4364_v60  ;;  %v4555_v9 = vld [vmem:[#allocation2 + $0x1d1] sm:$0xff] }
 0x35e   :  { %v8779_v26 = vpop.f32.mrf.mxu1  ;;  %v4370_v42 = vld [vmem:[#allocation2 + $0x211] sm:$0xff] }
 0x35f   :  { %4244 = vst.msk [vmem:[#allocation2 + $0x241] sm:$0xff] %vm3147_vm1, %v4092_v16  ;;  %v4090_v32 = vmax.f32 %v3956_v4, 0.0  ;;  %v3967_v55 = vadd.f32 %v8779_v26, %v16878_v53  ;;  %10259 = vrot.lane.b32.xlu1 %v10258_v52, %s11638_s13 }
 0x360   :  { %v3958_v33 = vpop.f32.mrf.mxu1  ;;  %v4368_v50 = vld [vmem:[#allocation2 + $0x1f9] sm:$0xff] }
 0x361   :  { %4242 = vst.msk [vmem:[#allocation2 + $0x229] sm:$0xff] %vm3147_vm1, %v4090_v32  ;;  %v4093_v63 = vmax.f32 %v3967_v55, 0.0  ;;  %v3959_v59 = vadd.f32 %v16878_v53, %v3958_v33 }
 0x362   :  { %v8782_v57 = vpop.f32.mrf.mxu1  ;;  %v4371_v39 = vld [vmem:[#allocation2 + $0x219] sm:$0xff] }
 0x363   :  { %4245 = vst.msk [vmem:[#allocation2 + $0x249] sm:$0xff] %vm3147_vm1, %v4093_v63  ;;  %v4091_v6 = vmax.f32 %v3959_v59, 0.0  ;;  %v3980_v21 = vadd.f32 %v8782_v57, %v16878_v53  ;;  %v10273_v17 = vpack.i.bf16 %v4371_v39, %v4370_v42 }
 0x364   :  { %v3971_v11 = vpop.f32.mrf.mxu1  ;;  %v4369_v47 = vld [vmem:[#allocation2 + $0x201] sm:$0xff] }
 0x365   :  { %4243 = vst.msk [vmem:[#allocation2 + $0x231] sm:$0xff] %vm3147_vm1, %v4091_v6  ;;  %v4096_v34 = vmax.f32 %v3980_v21, 0.0  ;;  %v3972_v24 = vadd.f32 %v16878_v53, %v3971_v11  ;;  %10274 = vrot.lane.b32.xlu0 %v10273_v17, %s11638_s13  ;;  %v10268_v22 = vpack.i.bf16 %v4369_v47, %v4368_v50 }
 0x366   :  { %v8783_v5 = vpop.f32.mrf.mxu1  ;;  %v4374_v40 = vld [vmem:[#allocation2 + $0x241] sm:$0xff] }
 0x367   :  { %4248 = vst.msk [vmem:[#allocation2 + $0x271] sm:$0xff] %vm3147_vm1, %v4096_v34  ;;  %v4094_v35 = vmax.f32 %v3972_v24, 0.0  ;;  %v3983_v62 = vadd.f32 %v8783_v5, %v16878_v53  ;;  %10269 = vrot.lane.b32.xlu1 %v10268_v22, %s11638_s13 }
 0x368   :  { %v3974_v36 = vpop.f32.mrf.mxu1  ;;  %v4372_v26 = vld [vmem:[#allocation2 + $0x229] sm:$0xff] }
 0x369   :  { %4246 = vst.msk [vmem:[#allocation2 + $0x259] sm:$0xff] %vm3147_vm1, %v4094_v35  ;;  %v4097_v49 = vmax.f32 %v3983_v62, 0.0  ;;  %v3975_v3 = vadd.f32 %v16878_v53, %v3974_v36 }
 0x36a   :  { %v8786_v0 = vpop.f32.mrf.mxu1  ;;  %v4375_v60 = vld [vmem:[#allocation2 + $0x249] sm:$0xff] }
 0x36b   :  { %4249 = vst.msk [vmem:[#allocation2 + $0x279] sm:$0xff] %vm3147_vm1, %v4097_v49  ;;  %v4095_v2 = vmax.f32 %v3975_v3, 0.0  ;;  %v3996_v16 = vadd.f32 %v8786_v0, %v16878_v53  ;;  %v10283_v4 = vpack.i.bf16 %v4375_v60, %v4374_v40 }
 0x36c   :  { %v3987_v52 = vpop.f32.mrf.mxu1  ;;  %v4373_v32 = vld [vmem:[#allocation2 + $0x231] sm:$0xff] }
 0x36d   :  { %4247 = vst.msk [vmem:[#allocation2 + $0x261] sm:$0xff] %vm3147_vm1, %v4095_v2  ;;  %v4100_v55 = vmax.f32 %v3996_v16, 0.0  ;;  %v3988_v33 = vadd.f32 %v16878_v53, %v3987_v52  ;;  %10284 = vrot.lane.b32.xlu0 %v10283_v4, %s11638_s13  ;;  %v10278_v63 = vpack.i.bf16 %v4373_v32, %v4372_v26 }
 0x36e   :  { %v8787_v59 = vpop.f32.mrf.mxu1  ;;  %v4378_v11 = vld [vmem:[#allocation2 + $0x271] sm:$0xff] }
 0x36f   :  { %4252 = vst.msk [vmem:[#allocation2 + $0x2a1] sm:$0xff] %vm3147_vm1, %v4100_v55  ;;  %v4098_v57 = vmax.f32 %v3988_v33, 0.0  ;;  %v3999_v42 = vadd.f32 %v8787_v59, %v16878_v53  ;;  %10279 = vrot.lane.b32.xlu1 %v10278_v63, %s11638_s13 }
 0x370   :  { %v3990_v39 = vpop.f32.mrf.mxu1  ;;  %v4376_v5 = vld [vmem:[#allocation2 + $0x259] sm:$0xff] }
 0x371   :  { %4250 = vst.msk [vmem:[#allocation2 + $0x289] sm:$0xff] %vm3147_vm1, %v4098_v57  ;;  %v4101_v6 = vmax.f32 %v3999_v42, 0.0  ;;  %v3991_v21 = vadd.f32 %v16878_v53, %v3990_v39 }
 0x372   :  { %v8790_v17 = vpop.f32.mrf.mxu1  ;;  %v4379_v50 = vld [vmem:[#allocation2 + $0x279] sm:$0xff] }
 0x373   :  { %4253 = vst.msk [vmem:[#allocation2 + $0x2a9] sm:$0xff] %vm3147_vm1, %v4101_v6  ;;  %v4099_v47 = vmax.f32 %v3991_v21, 0.0  ;;  %v4012_v34 = vadd.f32 %v8790_v17, %v16878_v53  ;;  %v10293_v24 = vpack.i.bf16 %v4379_v50, %v4378_v11 }
 0x374   :  { %v4003_v22 = vpop.f32.mrf.mxu1  ;;  %v4377_v35 = vld [vmem:[#allocation2 + $0x261] sm:$0xff] }
 0x375   :  { %4251 = vst.msk [vmem:[#allocation2 + $0x291] sm:$0xff] %vm3147_vm1, %v4099_v47  ;;  %v4104_v62 = vmax.f32 %v4012_v34, 0.0  ;;  %v4004_v36 = vadd.f32 %v16878_v53, %v4003_v22  ;;  %10294 = vrot.lane.b32.xlu0 %v10293_v24, %s11638_s13  ;;  %v10288_v49 = vpack.i.bf16 %v4377_v35, %v4376_v5 }
 0x376   :  { %v8791_v3 = vpop.f32.mrf.mxu1  ;;  %v4382_v52 = vld [vmem:[#allocation2 + $0x2a1] sm:$0xff] }
 0x377   :  { %4256 = vst.msk [vmem:[#allocation2 + $0x2d1] sm:$0xff] %vm3147_vm1, %v4104_v62  ;;  %v4102_v0 = vmax.f32 %v4004_v36, 0.0  ;;  %v4015_v40 = vadd.f32 %v8791_v3, %v16878_v53  ;;  %10289 = vrot.lane.b32.xlu1 %v10288_v49, %s11638_s13 }
 0x378   :  { %v4006_v60 = vpop.f32.mrf.mxu1  ;;  %v4380_v59 = vld [vmem:[#allocation2 + $0x289] sm:$0xff] }
 0x379   :  { %4254 = vst.msk [vmem:[#allocation2 + $0x2b9] sm:$0xff] %vm3147_vm1, %v4102_v0  ;;  %v4105_v2 = vmax.f32 %v4015_v40, 0.0  ;;  %v4007_v16 = vadd.f32 %v16878_v53, %v4006_v60 }
 0x37a   :  { %v8794_v4 = vpop.f32.mrf.mxu1  ;;  %v4383_v26 = vld [vmem:[#allocation2 + $0x2a9] sm:$0xff] }
 0x37b   :  { %4257 = vst.msk [vmem:[#allocation2 + $0x2d9] sm:$0xff] %vm3147_vm1, %v4105_v2  ;;  %v4103_v32 = vmax.f32 %v4007_v16, 0.0  ;;  %v4028_v55 = vadd.f32 %v8794_v4, %v16878_v53  ;;  %v10303_v33 = vpack.i.bf16 %v4383_v26, %v4382_v52 }
 0x37c   :  { %v4019_v63 = vpop.f32.mrf.mxu1  ;;  %v4381_v57 = vld [vmem:[#allocation2 + $0x291] sm:$0xff] }
 0x37d   :  { %4255 = vst.msk [vmem:[#allocation2 + $0x2c1] sm:$0xff] %vm3147_vm1, %v4103_v32  ;;  %v4108_v42 = vmax.f32 %v4028_v55, 0.0  ;;  %v4020_v39 = vadd.f32 %v16878_v53, %v4019_v63  ;;  %10304 = vrot.lane.b32.xlu0 %v10303_v33, %s11638_s13  ;;  %v10298_v6 = vpack.i.bf16 %v4381_v57, %v4380_v59  ;;  %v4394_v33 = vld [vmem:[#allocation2 + $0x2] sm:$0xff]  ;;  %v4395_v57 = vld [vmem:[#allocation2 + $0xa] sm:$0xff] }
 0x37e   :  { %v8795_v21 = vpop.f32.mrf.mxu1  ;;  %v4386_v22 = vld [vmem:[#allocation2 + $0x2d1] sm:$0xff] }
 0x37f   :  { %4260 = vst.msk [vmem:[#allocation2 + $0x301] sm:$0xff] %vm3147_vm1, %v4108_v42  ;;  %v4106_v17 = vmax.f32 %v4020_v39, 0.0  ;;  %v4031_v11 = vadd.f32 %v8795_v21, %v16878_v53  ;;  %10299 = vrot.lane.b32.xlu1 %v10298_v6, %s11638_s13 }
 0x380   :  { %v4022_v50 = vpop.f32.mrf.mxu1  ;;  %v4384_v3 = vld [vmem:[#allocation2 + $0x2b9] sm:$0xff] }
 0x381   :  { %4258 = vst.msk [vmem:[#allocation2 + $0x2e9] sm:$0xff] %vm3147_vm1, %v4106_v17  ;;  %v4109_v47 = vmax.f32 %v4031_v11, 0.0  ;;  %v4023_v34 = vadd.f32 %v16878_v53, %v4022_v50  ;;  %v10333_v11 = vpack.i.bf16 %v4395_v57, %v4394_v33  ;;  %v4398_v50 = vld [vmem:[#allocation2 + $0x32] sm:$0xff] }
 0x382   :  { %v8798_v24 = vpop.f32.mrf.mxu1  ;;  %v4387_v5 = vld [vmem:[#allocation2 + $0x2d9] sm:$0xff] }
 0x383   :  { %4261 = vst.msk [vmem:[#allocation2 + $0x309] sm:$0xff] %vm3147_vm1, %v4109_v47  ;;  %v4107_v35 = vmax.f32 %v4023_v34, 0.0  ;;  %v4044_v62 = vadd.f32 %v8798_v24, %v16878_v53  ;;  %v10313_v36 = vpack.i.bf16 %v4387_v5, %v4386_v22  ;;  %v4402_v34 = vld [vmem:[#allocation2 + $0x62] sm:$0xff]  ;;  %v4403_v5 = vld [vmem:[#allocation2 + $0x6a] sm:$0xff] }
 0x384   :  { %v4035_v49 = vpop.f32.mrf.mxu1  ;;  %v4385_v0 = vld [vmem:[#allocation2 + $0x2c1] sm:$0xff] }
 0x385   :  { %4259 = vst.msk [vmem:[#allocation2 + $0x2f1] sm:$0xff] %vm3147_vm1, %v4107_v35  ;;  %v4112_v40 = vmax.f32 %v4044_v62, 0.0  ;;  %v4036_v60 = vadd.f32 %v16878_v53, %v4035_v49  ;;  %10314 = vrot.lane.b32.xlu0 %v10313_v36, %s11638_s13  ;;  %v10308_v2 = vpack.i.bf16 %v4385_v0, %v4384_v3  ;;  %v4396_v62 = vld [vmem:[#allocation2 + $0x1a] sm:$0xff]  ;;  %v4397_v36 = vld [vmem:[#allocation2 + $0x22] sm:$0xff]  ;;  %v10353_v49 = vpack.i.bf16 %v4403_v5, %v4402_v34  ;;  %v4406_v3 = vld [vmem:[#allocation2 + $0x92] sm:$0xff] }
 0x386   :  { %v8799_v16 = vpop.f32.mrf.mxu1  ;;  %v4390_v63 = vld [vmem:[#allocation2 + $0x301] sm:$0xff]  ;;  %v4422_v34 = vld [vmem:[#allocation2 + $0x152] sm:$0xff] }
 0x387   :  { %4264 = vst.msk [vmem:[#allocation2 + $0x331] sm:$0xff] %vm3147_vm1, %v4112_v40  ;;  %v4110_v4 = vmax.f32 %v4036_v60, 0.0  ;;  %v4047_v52 = vadd.f32 %v8799_v16, %v16878_v53  ;;  %10309 = vrot.lane.b32.xlu1 %v10308_v2, %s11638_s13  ;;  %v4407_v0 = vld [vmem:[#allocation2 + $0x9a] sm:$0xff]  ;;  %v10338_v40 = vpack.i.bf16 %v4397_v36, %v4396_v62  ;;  %v4400_v60 = vld [vmem:[#allocation2 + $0x4a] sm:$0xff]  ;;  %v4401_v2 = vld [vmem:[#allocation2 + $0x52] sm:$0xff] }
 0x388   :  { %v4038_v26 = vpop.f32.mrf.mxu1  ;;  %v4388_v6 = vld [vmem:[#allocation2 + $0x2e9] sm:$0xff]  ;;  %v10363_v16 = vpack.i.bf16 %v4407_v0, %v4406_v3  ;;  %v4426_v5 = vld [vmem:[#allocation2 + $0x1b2] sm:$0xff]  ;;  %v4427_v36 = vld [vmem:[#allocation2 + $0x1ba] sm:$0xff] }
 0x389   :  { %4262 = vst.msk [vmem:[#allocation2 + $0x319] sm:$0xff] %vm3147_vm1, %v4110_v4  ;;  %v4113_v32 = vmax.f32 %v4047_v52, 0.0  ;;  %v4039_v55 = vadd.f32 %v16878_v53, %v4038_v26  ;;  %v4399_v53 = vld [vmem:[#allocation2 + $0x3a] sm:$0xff]  ;;  %v4410_v4 = vld [vmem:[#allocation2 + $0xc2] sm:$0xff]  ;;  %v4411_v52 = vld [vmem:[#allocation2 + $0xca] sm:$0xff]  ;;  %v10348_v26 = vpack.i.bf16 %v4401_v2, %v4400_v60  ;;  %v10413_v0 = vpack.i.bf16 %v4427_v36, %v4426_v5  ;;  %v17060_v5 = vpop.permute.xlu0 %10174 }
 0x38a   :  { %v4391_v59 = vld [vmem:[#allocation2 + $0x309] sm:$0xff]  ;;  %v10343_v47 = vpack.i.bf16 %v4399_v53, %v4398_v50  ;;  %v10373_v33 = vpack.i.bf16 %v4411_v52, %v4410_v4  ;;  %v4412_v50 = vld [vmem:[#allocation2 + $0xda] sm:$0xff]  ;;  %v4417_v62 = vld [vmem:[#allocation2 + $0x112] sm:$0xff] }
 0x38b   :  { %4265 = vst.msk [vmem:[#allocation2 + $0x339] sm:$0xff] %vm3147_vm1, %v4113_v32  ;;  %v4111_v42 = vmax.f32 %v4039_v55, 0.0  ;;  %v10323_v39 = vpack.i.bf16 %v4391_v59, %v4390_v63  ;;  %v4404_v32 = vld [vmem:[#allocation2 + $0x7a] sm:$0xff]  ;;  %v4405_v55 = vld [vmem:[#allocation2 + $0x82] sm:$0xff]  ;;  %v4414_v63 = vld [vmem:[#allocation2 + $0xf2] sm:$0xff] }
 0x38c   :  { %v4389_v21 = vld [vmem:[#allocation2 + $0x2f1] sm:$0xff]  ;;  %v4415_v59 = vld [vmem:[#allocation2 + $0xfa] sm:$0xff]  ;;  %v10358_v57 = vpack.i.bf16 %v4405_v55, %v4404_v32  ;;  %v4413_v53 = vld [vmem:[#allocation2 + $0xe2] sm:$0xff] }
 0x38d   :  { %4263 = vst.msk [vmem:[#allocation2 + $0x321] sm:$0xff] %vm3147_vm1, %v4111_v42  ;;  %10324 = vrot.lane.b32.xlu0 %v10323_v39, %s11638_s13  ;;  %v10318_v17 = vpack.i.bf16 %v4389_v21, %v4388_v6  ;;  %v4408_v42 = vld [vmem:[#allocation2 + $0xaa] sm:$0xff]  ;;  %v4409_v39 = vld [vmem:[#allocation2 + $0xb2] sm:$0xff]  ;;  %v10383_v6 = vpack.i.bf16 %v4415_v59, %v4414_v63  ;;  %v4418_v21 = vld [vmem:[#allocation2 + $0x122] sm:$0xff] }
 0x38e   :  { %v4421_v60 = vld [vmem:[#allocation2 + $0x142] sm:$0xff]  ;;  %v4424_v52 = vld [vmem:[#allocation2 + $0x16a] sm:$0xff]  ;;  %v4434_v55 = vld [vmem:[#allocation2 + $0x212] sm:$0xff] }
 0x38f   :  { %10319 = vrot.lane.b32.xlu1 %v10318_v17, %s11638_s13  ;;  %v4419_v17 = vld [vmem:[#allocation2 + $0x12a] sm:$0xff]  ;;  %v4430_v2 = vld [vmem:[#allocation2 + $0x1e2] sm:$0xff] }
 0x390   :  { %v4392_v24 = vld [vmem:[#allocation2 + $0x319] sm:$0xff]  ;;  %v4428_v59 = vld [vmem:[#allocation2 + $0x1ca] sm:$0xff] }
 0x391   :  { %10334 = vrot.lane.b32.xlu0 %v10333_v11, %s11640_s17  ;;  %v10368_v11 = vpack.i.bf16 %v4409_v39, %v4408_v42  ;;  %v4438_v39 = vld [vmem:[#allocation2 + $0x242] sm:$0xff]  ;;  %v4447_v36 = vld [vmem:[#allocation2 + $0x2aa] sm:$0xff]  ;;  %v4328_v38 = vld [vmem:[#allocation2 + $0x318] sm:$0xff] }
 0x392   :  { %v4521_v20 = vld [vmem:[#allocation2 + $0x338] sm:$0xff] }
 0x394   :  { %v4393_v22 = vld [vmem:[#allocation2 + $0x321] sm:$0xff] }
 0x395   :  { %10344 = vrot.lane.b32.xlu0 %v10343_v47, %s11640_s17  ;;  %v10328_v35 = vpack.i.bf16 %v4393_v22, %v4392_v24  ;;  %v10393_v47 = vpack.i.bf16 %v4419_v17, %v4418_v21  ;;  %v4423_v24 = vld [vmem:[#allocation2 + $0x15a] sm:$0xff]  ;;  %v10378_v22 = vpack.i.bf16 %v4413_v53, %v4412_v50  ;;  %v4442_v53 = vld [vmem:[#allocation2 + $0x272] sm:$0xff] }
 0x396   :  { %v4432_v17 = vld [vmem:[#allocation2 + $0x1fa] sm:$0xff] }
 0x397   :  { %10329 = vrot.lane.b32.xlu1 %v10328_v35, %s11638_s13  ;;  %v4416_v35 = vld [vmem:[#allocation2 + $0x10a] sm:$0xff] }
 0x398   :  { %v10388_v3 = vpack.i.bf16 %v4417_v62, %v4416_v35  ;;  %v4446_v62 = vld [vmem:[#allocation2 + $0x2a2] sm:$0xff] }
 0x399   :  { %10354 = vrot.lane.b32.xlu0 %v10353_v49, %s11640_s17  ;;  %v10403_v49 = vpack.i.bf16 %v4423_v24, %v4422_v34  ;;  %v4436_v24 = vld [vmem:[#allocation2 + $0x22a] sm:$0xff] }
 0x39b   :  { %10339 = vrot.lane.b32.xlu1 %v10338_v40, %s11640_s17  ;;  %v4420_v40 = vld [vmem:[#allocation2 + $0x13a] sm:$0xff] }
 0x39c   :  { %v10398_v4 = vpack.i.bf16 %v4421_v60, %v4420_v40  ;;  %v10463_v40 = vpack.i.bf16 %v4447_v36, %v4446_v62  ;;  %v4450_v60 = vld [vmem:[#allocation2 + $0x2d2] sm:$0xff]  ;;  %v4272_v36 = vld [vmem:[#allocation2 + $0x48] sm:$0xff] }
 0x39d   :  { %10364 = vrot.lane.b32.xlu0 %v10363_v16, %s11640_s17  ;;  %v4431_v16 = vld [vmem:[#allocation2 + $0x1ea] sm:$0xff] }
 0x39e   :  { %v10423_v32 = vpack.i.bf16 %v4431_v16, %v4430_v2  ;;  %v4451_v2 = vld [vmem:[#allocation2 + $0x2da] sm:$0xff]  ;;  %v17065_v16 = vpop.permute.xlu0 %10184 }
 0x39f   :  { %10349 = vrot.lane.b32.xlu1 %v10348_v26, %s11640_s17  ;;  %v4425_v26 = vld [vmem:[#allocation2 + $0x172] sm:$0xff] }
 0x3a0   :  { %v10408_v63 = vpack.i.bf16 %v4425_v26, %v4424_v52  ;;  %v4444_v52 = vld [vmem:[#allocation2 + $0x28a] sm:$0xff]  ;;  %v4445_v26 = vld [vmem:[#allocation2 + $0x292] sm:$0xff] }
 0x3a1   :  { %10374 = vrot.lane.b32.xlu0 %v10373_v33, %s11640_s17  ;;  %v4435_v33 = vld [vmem:[#allocation2 + $0x21a] sm:$0xff] }
 0x3a2   :  { %v10433_v42 = vpack.i.bf16 %v4435_v33, %v4434_v55  ;;  %v4454_v55 = vld [vmem:[#allocation2 + $0x302] sm:$0xff]  ;;  %v4455_v33 = vld [vmem:[#allocation2 + $0x30a] sm:$0xff] }
 0x3a3   :  { %10359 = vrot.lane.b32.xlu1 %v10358_v57, %s11640_s17  ;;  %v4429_v57 = vld [vmem:[#allocation2 + $0x1d2] sm:$0xff] }
 0x3a4   :  { %v10418_v21 = vpack.i.bf16 %v4429_v57, %v4428_v59  ;;  %v10458_v59 = vpack.i.bf16 %v4445_v26, %v4444_v52  ;;  %v4448_v57 = vld [vmem:[#allocation2 + $0x2ba] sm:$0xff] }
 0x3a5   :  { %10384 = vrot.lane.b32.xlu0 %v10383_v6, %s11640_s17  ;;  %v4439_v6 = vld [vmem:[#allocation2 + $0x24a] sm:$0xff]  ;;  %v4271_v52 = vld [vmem:[#allocation2 + $0x38] sm:$0xff] }
 0x3a6   :  { %v10443_v50 = vpack.i.bf16 %v4439_v6, %v4438_v39  ;;  %v10483_v39 = vpack.i.bf16 %v4455_v33, %v4454_v55  ;;  %v4269_v6 = vld [vmem:[#allocation2 + $0x20] sm:$0xff]  ;;  %v4276_v26 = vld [vmem:[#allocation2 + $0x78] sm:$0xff]  ;;  %v4270_v55 = vld [vmem:[#allocation2 + $0x30] sm:$0xff] }
 0x3a7   :  { %10369 = vrot.lane.b32.xlu1 %v10368_v11, %s11640_s17  ;;  %v4433_v11 = vld [vmem:[#allocation2 + $0x202] sm:$0xff]  ;;  %v4281_v33 = vld [vmem:[#allocation2 + $0xb0] sm:$0xff] }
 0x3a8   :  { %v10428_v34 = vpack.i.bf16 %v4433_v11, %v4432_v17 }
 0x3a9   :  { %10394 = vrot.lane.b32.xlu0 %v10393_v47, %s11640_s17  ;;  %v4443_v47 = vld [vmem:[#allocation2 + $0x27a] sm:$0xff] }
 0x3aa   :  { %v10453_v35 = vpack.i.bf16 %v4443_v47, %v4442_v53  ;;  %v4452_v53 = vld [vmem:[#allocation2 + $0x2ea] sm:$0xff]  ;;  %v4453_v47 = vld [vmem:[#allocation2 + $0x2f2] sm:$0xff] }
 0x3ab   :  { %10379 = vrot.lane.b32.xlu1 %v10378_v22, %s11640_s17  ;;  %v4437_v22 = vld [vmem:[#allocation2 + $0x232] sm:$0xff]  ;;  %v10478_v62 = vpack.i.bf16 %v4453_v47, %v4452_v53  ;;  %v4285_v53 = vld [vmem:[#allocation2 + $0xe0] sm:$0xff] }
 0x3ad   :  { %10404 = vrot.lane.b32.xlu0 %v10403_v49, %s11640_s17  ;;  %v10438_v49 = vpack.i.bf16 %v4437_v22, %v4436_v24  ;;  %v4273_v24 = vld [vmem:[#allocation2 + $0x50] sm:$0xff] }
 0x3af   :  { %10389 = vrot.lane.b32.xlu1 %v10388_v3, %s11640_s17  ;;  %v4440_v3 = vld [vmem:[#allocation2 + $0x25a] sm:$0xff] }
 0x3b1   :  { %10414 = vrot.lane.b32.xlu0 %v10413_v0, %s11640_s17  ;;  %v4441_v0 = vld [vmem:[#allocation2 + $0x262] sm:$0xff] }
 0x3b3   :  { %10399 = vrot.lane.b32.xlu1 %v10398_v4, %s11640_s17  ;;  %v10448_v4 = vpack.i.bf16 %v4441_v0, %v4440_v3  ;;  %v4457_v3 = vld [vmem:[#allocation2 + $0x322] sm:$0xff]  ;;  %v10503_v0 = vpack.i.bf16 %v4273_v24, %v4272_v36  ;;  %v4284_v36 = vld [vmem:[#allocation2 + $0xd8] sm:$0xff] }
 0x3b5   :  { %10424 = vrot.lane.b32.xlu0 %v10423_v32, %s11640_s17  ;;  %v10473_v32 = vpack.i.bf16 %v4451_v2, %v4450_v60 }
 0x3b7   :  { %10409 = vrot.lane.b32.xlu1 %v10408_v63, %s11640_s17  ;;  %v17069_v63 = vpop.permute.xlu0 %10194 }
 0x3b9   :  { %10434 = vrot.lane.b32.xlu0 %v10433_v42, %s11640_s17  ;;  %v4449_v42 = vld [vmem:[#allocation2 + $0x2c2] sm:$0xff] }
 0x3ba   :  { %v10468_v11 = vpack.i.bf16 %v4449_v42, %v4448_v57  ;;  %v10498_v42 = vpack.i.bf16 %v4271_v52, %v4270_v55 }
 0x3bb   :  { %10419 = vrot.lane.b32.xlu1 %v10418_v21, %s11640_s17  ;;  %v17073_v21 = vpop.permute.xlu1 %10179  ;;  %v17075_v17 = vpop.permute.xlu0 %10204 }
 0x3bd   :  { %10444 = vrot.lane.b32.xlu0 %v10443_v50, %s11640_s17  ;;  %v4268_v50 = vld [vmem:[#allocation2 + $0x18] sm:$0xff] }
 0x3bf   :  { %10429 = vrot.lane.b32.xlu1 %v10428_v34, %s11640_s17  ;;  %v10493_v34 = vpack.i.bf16 %v4269_v6, %v4268_v50  ;;  %v17079_v22 = vpop.permute.xlu1 %10189  ;;  %v4280_v6 = vld [vmem:[#allocation2 + $0xa8] sm:$0xff]  ;;  %v4274_v50 = vld [vmem:[#allocation2 + $0x60] sm:$0xff] }
 0x3c1   :  { %10454 = vrot.lane.b32.xlu0 %v10453_v35, %s11640_s17  ;;  %v17081_v35 = vpop.permute.xlu0 %10214 }
 0x3c3   :  { %10439 = vrot.lane.b32.xlu1 %v10438_v49, %s11640_s17  ;;  %v4456_v49 = vld [vmem:[#allocation2 + $0x31a] sm:$0xff]  ;;  %v17085_v60 = vpop.permute.xlu1 %10199 }
 0x3c5   :  { %10464 = vrot.lane.b32.xlu0 %v10463_v40, %s11640_s17  ;;  %v4277_v40 = vld [vmem:[#allocation2 + $0x80] sm:$0xff]  ;;  %v17087_v2 = vpop.permute.xlu0 %10224 }
 0x3c7   :  { %10449 = vrot.lane.b32.xlu1 %v10448_v4, %s11640_s17  ;;  %v10488_v4 = vpack.i.bf16 %v4457_v3, %v4456_v49  ;;  %v10533_v49 = vpack.i.bf16 %v4285_v53, %v4284_v36  ;;  %v4278_v3 = vld [vmem:[#allocation2 + $0x90] sm:$0xff] }
 0x3c8   :  { %v4297_v36 = vld [vmem:[#allocation2 + $0x170] sm:$0xff] }
 0x3c9   :  { %10474 = vrot.lane.b32.xlu0 %v10473_v32, %s11640_s17  ;;  %v10513_v32 = vpack.i.bf16 %v4277_v40, %v4276_v26  ;;  %v17093_v57 = vpop.permute.xlu0 %10234  ;;  %v4283_v26 = vld [vmem:[#allocation2 + $0xc8] sm:$0xff] }
 0x3cb   :  { %10459 = vrot.lane.b32.xlu1 %v10458_v59, %s11640_s17  ;;  %v17091_v59 = vpop.permute.xlu1 %10209 }
 0x3cd   :  { %10484 = vrot.lane.b32.xlu0 %v10483_v39, %s11640_s17  ;;  %v4275_v39 = vld [vmem:[#allocation2 + $0x68] sm:$0xff] }
 0x3ce   :  { %v10508_v24 = vpack.i.bf16 %v4275_v39, %v4274_v50  ;;  %v4292_v50 = vld [vmem:[#allocation2 + $0x138] sm:$0xff] }
 0x3cf   :  { %10469 = vrot.lane.b32.xlu1 %v10468_v11, %s11640_s17  ;;  %v10523_v11 = vpack.i.bf16 %v4281_v33, %v4280_v6  ;;  %v17097_v47 = vpop.permute.xlu1 %10219  ;;  %v4282_v33 = vld [vmem:[#allocation2 + $0xc0] sm:$0xff] }
 0x3d0   :  { %v10528_v6 = vpack.i.bf16 %v4283_v26, %v4282_v33  ;;  %v4301_v33 = vld [vmem:[#allocation2 + $0x1d0] sm:$0xff] }
 0x3d1   :  { %10494 = vrot.lane.b32.xlu0 %v10493_v34, %s11642_s14  ;;  %v17099_v34 = vpop.permute.xlu0 %10244 }
 0x3d3   :  { %10479 = vrot.lane.b32.xlu1 %v10478_v62, %s11640_s17  ;;  %v4279_v62 = vld [vmem:[#allocation2 + $0x98] sm:$0xff]  ;;  %v17103_v40 = vpop.permute.xlu1 %10229 }
 0x3d4   :  { %v10518_v52 = vpack.i.bf16 %v4279_v62, %v4278_v3  ;;  %v4286_v62 = vld [vmem:[#allocation2 + $0xf0] sm:$0xff] }
 0x3d5   :  { %10504 = vrot.lane.b32.xlu0 %v10503_v0, %s11642_s14  ;;  %v4289_v0 = vld [vmem:[#allocation2 + $0x110] sm:$0xff] }
 0x3d7   :  { %10489 = vrot.lane.b32.xlu1 %v10488_v4, %s11640_s17  ;;  %v17105_v4 = vpop.permute.xlu0 %10254  ;;  %v17109_v39 = vpop.permute.xlu1 %10239 }
 0x3d9   :  { %10514 = vrot.lane.b32.xlu0 %v10513_v32, %s11642_s14  ;;  %v4288_v32 = vld [vmem:[#allocation2 + $0x108] sm:$0xff] }
 0x3da   :  { %v10543_v55 = vpack.i.bf16 %v4289_v0, %v4288_v32  ;;  %v4291_v0 = vld [vmem:[#allocation2 + $0x128] sm:$0xff] }
 0x3db   :  { %10499 = vrot.lane.b32.xlu1 %v10498_v42, %s11642_s14  ;;  %v4293_v42 = vld [vmem:[#allocation2 + $0x140] sm:$0xff]  ;;  %v17112_v53 = vpop.permute.xlu0 %10264 }
 0x3dc   :  { %21295 = vst [vmem:[#allocation60_spill] sm:$0xff] %v17112_v53  ;;  %v17697_v53 = vld [vmem:[#allocation2 + $0x200] sm:$0xff] }
 0x3dd   :  { %10524 = vrot.lane.b32.xlu0 %v10523_v11, %s11642_s14  ;;  %v4287_v11 = vld [vmem:[#allocation2 + $0xf8] sm:$0xff]  ;;  %21425 = vst [vmem:[#allocation162_spill] sm:$0xff] %v17697_v53 }
 0x3de   :  { %v10538_v3 = vpack.i.bf16 %v4287_v11, %v4286_v62  ;;  %v4305_v62 = vld [vmem:[#allocation2 + $0x200] sm:$0xff] }
 0x3df   :  { %10509 = vrot.lane.b32.xlu1 %v10508_v24, %s11642_s14  ;;  %v10553_v24 = vpack.i.bf16 %v4293_v42, %v4292_v50  ;;  %v17118_v32 = vpop.permute.xlu0 %10274  ;;  %v4300_v50 = vld [vmem:[#allocation2 + $0x1c8] sm:$0xff]  ;;  %v17807_v53 = vld [vmem:[#allocation2 + $0x21a] sm:$0xff] }
 0x3e0   :  { %21297 = vst [vmem:[#allocation133_spill] sm:$0xff] %v17118_v32  ;;  %v10573_v11 = vpack.i.bf16 %v4301_v33, %v4300_v50  ;;  %v4308_v50 = vld [vmem:[#allocation2 + $0x228] sm:$0xff]  ;;  %v10191_v32 = vunpack.i.l.bf16 %v17079_v22  ;;  %21457 = vst [vmem:[#allocation194_spill] sm:$0xff] %v17807_v53 }
 0x3e1   :  { %10534 = vrot.lane.b32.xlu0 %v10533_v49, %s11642_s14  ;;  %v17115_v49 = vpop.permute.xlu1 %10249  ;;  %v17968_v53 = vld [vmem:[#allocation2 + $0x2aa] sm:$0xff] }
 0x3e2   :  { %21296 = vst [vmem:[#allocation62_spill] sm:$0xff] %v17115_v49  ;;  %v10182_v49 = vunpack.i.h.bf16 %v17073_v21  ;;  %21502 = vst [vmem:[#allocation236_spill] sm:$0xff] %v17968_v53 }
 0x3e3   :  { %10519 = vrot.lane.b32.xlu1 %v10518_v52, %s11642_s14  ;;  %v4296_v52 = vld [vmem:[#allocation2 + $0x168] sm:$0xff]  ;;  %v17124_v23 = vpop.permute.xlu0 %10284 }
 0x3e4   :  { %v10563_v26 = vpack.i.bf16 %v4297_v36, %v4296_v52  ;;  %21299 = vst [vmem:[#allocation61_spill] sm:$0xff] %v17124_v23  ;;  %v4489_v52 = vld [vmem:[#allocation2 + $0x188] sm:$0xff]  ;;  %v17678_v23 = vld [vmem:[#allocation2 + $0x151] sm:$0xff] }
 0x3e5   :  { %10544 = vrot.lane.b32.xlu0 %v10543_v55, %s11642_s14  ;;  %v4290_v55 = vld [vmem:[#allocation2 + $0x120] sm:$0xff]  ;;  %v17121_v7 = vpop.permute.xlu1 %10259  ;;  %21419 = vst [vmem:[#allocation156_spill] sm:$0xff] %v17678_v23 }
 0x3e6   :  { %21298 = vst [vmem:[#allocation134_spill] sm:$0xff] %v17121_v7  ;;  %v10548_v42 = vpack.i.bf16 %v4291_v0, %v4290_v55  ;;  %v4488_v55 = vld [vmem:[#allocation2 + $0x180] sm:$0xff]  ;;  %v17693_v7 = vld [vmem:[#allocation2 + $0x188] sm:$0xff] }
 0x3e7   :  { %10529 = vrot.lane.b32.xlu1 %v10528_v6, %s11642_s14  ;;  %v4295_v6 = vld [vmem:[#allocation2 + $0x158] sm:$0xff]  ;;  %v17130_v25 = vpop.permute.xlu0 %10294  ;;  %v10568_v33 = vpack.i.bf16 %v4489_v52, %v4488_v55  ;;  %v4317_v55 = vld [vmem:[#allocation2 + $0x290] sm:$0xff]  ;;  %21423 = vst [vmem:[#allocation160_spill] sm:$0xff] %v17693_v7 }
 0x3e8   :  { %21301 = vst [vmem:[#allocation129_spill] sm:$0xff] %v17130_v25  ;;  %v17674_v25 = vld [vmem:[#allocation2 + $0x169] sm:$0xff]  ;;  %v17744_v23 = vld [vmem:[#allocation2 + $0x1f9] sm:$0xff] }
 0x3e9   :  { %10554 = vrot.lane.b32.xlu0 %v10553_v24, %s11642_s14  ;;  %v4294_v24 = vld [vmem:[#allocation2 + $0x150] sm:$0xff]  ;;  %v17127_v41 = vpop.permute.xlu1 %10269  ;;  %21417 = vst [vmem:[#allocation154_spill] sm:$0xff] %v17674_v25  ;;  %21438 = vst [vmem:[#allocation175_spill] sm:$0xff] %v17744_v23  ;;  %v17770_v25 = vld [vmem:[#allocation2 + $0x218] sm:$0xff] }
 0x3ea   :  { %21300 = vst [vmem:[#allocation107_spill] sm:$0xff] %v17127_v41  ;;  %v10558_v36 = vpack.i.bf16 %v4295_v6, %v4294_v24  ;;  %v4313_v24 = vld [vmem:[#allocation2 + $0x260] sm:$0xff]  ;;  %21448 = vst [vmem:[#allocation185_spill] sm:$0xff] %v17770_v25  ;;  %v17787_v7 = vld [vmem:[#allocation2 + $0x232] sm:$0xff] }
 0x3eb   :  { %10539 = vrot.lane.b32.xlu1 %v10538_v3, %s11642_s14  ;;  %v4304_v3 = vld [vmem:[#allocation2 + $0x1f8] sm:$0xff]  ;;  %21451 = vst [vmem:[#allocation188_spill] sm:$0xff] %v17787_v7  ;;  %v11584_v23 = vld [vmem:[#allocation2 + $0x48] sm:$0xff] }
 0x3ec   :  { %v10583_v0 = vpack.i.bf16 %v4305_v62, %v4304_v3  ;;  %v4312_v3 = vld [vmem:[#allocation2 + $0x258] sm:$0xff] }
 0x3ed   :  { %10564 = vrot.lane.b32.xlu0 %v10563_v26, %s11642_s14  ;;  %v4309_v26 = vld [vmem:[#allocation2 + $0x230] sm:$0xff]  ;;  %v17133_v51 = vpop.permute.xlu1 %10279  ;;  %v10603_v52 = vpack.i.bf16 %v4313_v24, %v4312_v3  ;;  %v4320_v3 = vld [vmem:[#allocation2 + $0x2b8] sm:$0xff] }
 0x3ee   :  { %21302 = vst [vmem:[#allocation7_spill] sm:$0xff] %v17133_v51  ;;  %v10593_v6 = vpack.i.bf16 %v4309_v26, %v4308_v50  ;;  %v4316_v50 = vld [vmem:[#allocation2 + $0x288] sm:$0xff]  ;;  %v17676_v51 = vld [vmem:[#allocation2 + $0x150] sm:$0xff]  ;;  %v17680_v41 = vld [vmem:[#allocation2 + $0x159] sm:$0xff] }
 0x3ef   :  { %10549 = vrot.lane.b32.xlu1 %v10548_v42, %s11642_s14  ;;  %v4303_v42 = vld [vmem:[#allocation2 + $0x1e8] sm:$0xff]  ;;  %v17136_v43 = vpop.permute.xlu0 %10304  ;;  %21418 = vst [vmem:[#allocation155_spill] sm:$0xff] %v17676_v51  ;;  %21420 = vst [vmem:[#allocation157_spill] sm:$0xff] %v17680_v41  ;;  %v10196_v51 = vunpack.i.l.bf16 %v17069_v63  ;;  %v17746_v41 = vld [vmem:[#allocation2 + $0x1e0] sm:$0xff] }
 0x3f0   :  { %21303 = vst [vmem:[#allocation63_spill] sm:$0xff] %v17136_v43  ;;  %v17635_v43 = vld [vmem:[#allocation2 + $0x139] sm:$0xff]  ;;  %21439 = vst [vmem:[#allocation176_spill] sm:$0xff] %v17746_v41 }
 0x3f1   :  { %10574 = vrot.lane.b32.xlu0 %v10573_v11, %s11642_s14  ;;  %v4302_v11 = vld [vmem:[#allocation2 + $0x1e0] sm:$0xff]  ;;  %v17139_v8 = vpop.permute.xlu1 %10289  ;;  %21407 = vst [vmem:[#allocation144_spill] sm:$0xff] %v17635_v43  ;;  %v17714_v43 = vld [vmem:[#allocation2 + $0x18a] sm:$0xff] }
 0x3f2   :  { %21304 = vst [vmem:[#allocation5_spill] sm:$0xff] %v17139_v8  ;;  %v10578_v62 = vpack.i.bf16 %v4303_v42, %v4302_v11  ;;  %v10613_v42 = vpack.i.bf16 %v4317_v55, %v4316_v50  ;;  %v4321_v11 = vld [vmem:[#allocation2 + $0x2c0] sm:$0xff]  ;;  %v4324_v50 = vld [vmem:[#allocation2 + $0x2e8] sm:$0xff]  ;;  %21430 = vst [vmem:[#allocation167_spill] sm:$0xff] %v17714_v43 }
 0x3f3   :  { %10559 = vrot.lane.b32.xlu1 %v10558_v36, %s11642_s14  ;;  %v4307_v36 = vld [vmem:[#allocation2 + $0x218] sm:$0xff]  ;;  %v17868_v43 = vld [vmem:[#allocation2 + $0x288] sm:$0xff] }
 0x3f4   :  { %21474 = vst [vmem:[#allocation209_spill] sm:$0xff] %v17868_v43  ;;  %v17962_v43 = vld [vmem:[#allocation2 + $0x2a1] sm:$0xff] }
 0x3f5   :  { %10584 = vrot.lane.b32.xlu0 %v10583_v0, %s11642_s14  ;;  %v4306_v0 = vld [vmem:[#allocation2 + $0x210] sm:$0xff]  ;;  %v17145_v1 = vpop.permute.xlu1 %10299  ;;  %21499 = vst [vmem:[#allocation233_spill] sm:$0xff] %v17962_v43  ;;  %v18040_v43 = vld [vmem:[#allocation2 + $0x308] sm:$0xff] }
 0x3f6   :  { %21306 = vst [vmem:[#allocation113_spill] sm:$0xff] %v17145_v1  ;;  %v10588_v26 = vpack.i.bf16 %v4307_v36, %v4306_v0  ;;  %v10623_v36 = vpack.i.bf16 %v4321_v11, %v4320_v3  ;;  %v4325_v0 = vld [vmem:[#allocation2 + $0x2f0] sm:$0xff]  ;;  %v4323_v3 = vld [vmem:[#allocation2 + $0x2d8] sm:$0xff]  ;;  %21520 = vst [vmem:[#allocation253_spill] sm:$0xff] %v18040_v43 }
 0x3f7   :  { %10569 = vrot.lane.b32.xlu1 %v10568_v33, %s11642_s14  ;;  %v17142_v19 = vpop.permute.xlu0 %10314  ;;  %v4311_v33 = vld [vmem:[#allocation2 + $0x248] sm:$0xff]  ;;  %v17633_v1 = vld [vmem:[#allocation2 + $0x138] sm:$0xff] }
 0x3f8   :  { %21305 = vst [vmem:[#allocation112_spill] sm:$0xff] %v17142_v19  ;;  %v18134_v43 = vld [vmem:[#allocation2 + $0x331] sm:$0xff] }
 0x3f9   :  { %10594 = vrot.lane.b32.xlu0 %v10593_v6, %s11642_s14  ;;  %v4310_v6 = vld [vmem:[#allocation2 + $0x240] sm:$0xff]  ;;  %v17151_v10 = vpop.permute.xlu1 %10309 }
 0x3fa   :  { %21308 = vst [vmem:[#allocation116_spill] sm:$0xff] %v17151_v10  ;;  %v10598_v24 = vpack.i.bf16 %v4311_v33, %v4310_v6  ;;  %v10633_v33 = vpack.i.bf16 %v4325_v0, %v4324_v50  ;;  %v4329_v6 = vld [vmem:[#allocation2 + $0x320] sm:$0xff]  ;;  %v4327_v50 = vld [vmem:[#allocation2 + $0x308] sm:$0xff] }
 0x3fb   :  { %10579 = vrot.lane.b32.xlu1 %v10578_v62, %s11642_s14  ;;  %v4315_v62 = vld [vmem:[#allocation2 + $0x278] sm:$0xff] }
 0x3fd   :  { %10604 = vrot.lane.b32.xlu0 %v10603_v52, %s11642_s14  ;;  %v4314_v52 = vld [vmem:[#allocation2 + $0x270] sm:$0xff] }
 0x3fe   :  { %v10608_v55 = vpack.i.bf16 %v4315_v62, %v4314_v52  ;;  %v10643_v62 = vpack.i.bf16 %v4329_v6, %v4328_v38  ;;  %v4523_v52 = vld [vmem:[#allocation2 + $0x21] sm:$0xff]  ;;  %v4526_v6 = vld [vmem:[#allocation2 + $0x49] sm:$0xff] }
 0x3ff   :  { %v17148_v29 = vpop.permute.xlu0 %10324  ;;  %10589 = vrot.lane.b32.xlu1 %v10588_v26, %s11642_s14  ;;  %v4319_v26 = vld [vmem:[#allocation2 + $0x2a8] sm:$0xff] }
 0x400   :  { %21307 = vst [vmem:[#allocation9_spill] sm:$0xff] %v17148_v29 }
 0x401   :  { %10614 = vrot.lane.b32.xlu0 %v10613_v42, %s11642_s14  ;;  %v17157_v31 = vpop.permute.xlu1 %10319  ;;  %v4318_v42 = vld [vmem:[#allocation2 + $0x2a0] sm:$0xff] }
 0x402   :  { %21310 = vst [vmem:[#allocation115_spill] sm:$0xff] %v17157_v31  ;;  %v10618_v11 = vpack.i.bf16 %v4319_v26, %v4318_v42  ;;  %v10653_v26 = vpack.i.bf16 %v4523_v52, %v4522_v18  ;;  %v4326_v42 = vld [vmem:[#allocation2 + $0x300] sm:$0xff] }
 0x403   :  { %v17154_v45 = vpop.permute.xlu0 %10334  ;;  %10599 = vrot.lane.b32.xlu1 %v10598_v24, %s11642_s14  ;;  %v10638_v38 = vpack.i.bf16 %v4327_v50, %v4326_v42  ;;  %v4530_v52 = vld [vmem:[#allocation2 + $0x79] sm:$0xff]  ;;  %v4524_v42 = vld [vmem:[#allocation2 + $0x31] sm:$0xff] }
 0x404   :  { %21309 = vst [vmem:[#allocation93_spill] sm:$0xff] %v17154_v45  ;;  %v10673_v50 = vpack.i.bf16 %v4531_v15, %v4530_v52  ;;  %v4538_v52 = vld [vmem:[#allocation2 + $0xd9] sm:$0xff] }
 0x405   :  { %10624 = vrot.lane.b32.xlu0 %v10623_v36, %s11642_s14  ;;  %v4322_v36 = vld [vmem:[#allocation2 + $0x2d0] sm:$0xff] }
 0x406   :  { %v10628_v0 = vpack.i.bf16 %v4323_v3, %v4322_v36  ;;  %v10663_v3 = vpack.i.bf16 %v4527_v56, %v4526_v6  ;;  %v4520_v36 = vld [vmem:[#allocation2 + $0x330] sm:$0xff]  ;;  %v10658_v56 = vpack.i.bf16 %v4525_v54, %v4524_v42  ;;  %v10693_v54 = vpack.i.bf16 %v4539_v44, %v4538_v52  ;;  %v4546_v52 = vld [vmem:[#allocation2 + $0x139] sm:$0xff] }
 0x407   :  { %v17160_v61 = vpop.permute.xlu0 %10344  ;;  %10609 = vrot.lane.b32.xlu1 %v10608_v55, %s11642_s14  ;;  %v10648_v18 = vpack.i.bf16 %v4521_v20, %v4520_v36  ;;  %v4534_v6 = vld [vmem:[#allocation2 + $0xa9] sm:$0xff]  ;;  %v4528_v36 = vld [vmem:[#allocation2 + $0x61] sm:$0xff]  ;;  %v4532_v42 = vld [vmem:[#allocation2 + $0x91] sm:$0xff] }
 0x408   :  { %21311 = vst [vmem:[#allocation6_spill] sm:$0xff] %v17160_v61  ;;  %v10683_v20 = vpack.i.bf16 %v4535_v58, %v4534_v6  ;;  %v10668_v15 = vpack.i.bf16 %v4529_v27, %v4528_v36  ;;  %v10678_v58 = vpack.i.bf16 %v4533_v37, %v4532_v42  ;;  %v4542_v6 = vld [vmem:[#allocation2 + $0x109] sm:$0xff]  ;;  %v4536_v36 = vld [vmem:[#allocation2 + $0xc1] sm:$0xff]  ;;  %v10713_v37 = vpack.i.bf16 %v4547_v12, %v4546_v52  ;;  %v4540_v42 = vld [vmem:[#allocation2 + $0xf1] sm:$0xff] }
 0x409   :  { %10634 = vrot.lane.b32.xlu0 %v10633_v33, %s11642_s14  ;;  %v17164_v24 = vpop.permute.xlu1 %10329  ;;  %v10703_v27 = vpack.i.bf16 %v4543_v13, %v4542_v6  ;;  %v10688_v44 = vpack.i.bf16 %v4537_v14, %v4536_v36  ;;  %v10698_v13 = vpack.i.bf16 %v4541_v30, %v4540_v42  ;;  %v4550_v6 = vld [vmem:[#allocation2 + $0x169] sm:$0xff]  ;;  %v4544_v36 = vld [vmem:[#allocation2 + $0x121] sm:$0xff]  ;;  %v4548_v42 = vld [vmem:[#allocation2 + $0x151] sm:$0xff] }
 0x40a   :  { %21312 = vst [vmem:[#allocation95_spill] sm:$0xff] %v17164_v24  ;;  %v10723_v14 = vpack.i.bf16 %v4551_v48, %v4550_v6  ;;  %v10708_v12 = vpack.i.bf16 %v4545_v28, %v4544_v36  ;;  %v4554_v52 = vld [vmem:[#allocation2 + $0x1c9] sm:$0xff]  ;;  %v4549_v24 = vld [vmem:[#allocation2 + $0x159] sm:$0xff]  ;;  %v4552_v36 = vld [vmem:[#allocation2 + $0x181] sm:$0xff] }
 0x40b   :  { %v17166_v46 = vpop.permute.xlu0 %10354  ;;  %10619 = vrot.lane.b32.xlu1 %v10618_v11, %s11642_s14  ;;  %v10733_v30 = vpack.i.bf16 %v4555_v9, %v4554_v52  ;;  %v10718_v48 = vpack.i.bf16 %v4549_v24, %v4548_v42  ;;  %v4558_v6 = vld [vmem:[#allocation2 + $0x1f9] sm:$0xff]  ;;  %v4562_v52 = vld [vmem:[#allocation2 + $0x229] sm:$0xff]  ;;  %v4556_v42 = vld [vmem:[#allocation2 + $0x1e1] sm:$0xff] }
 0x40c   :  { %21313 = vst [vmem:[#allocation96_spill] sm:$0xff] %v17166_v46  ;;  %v17606_v46 = vld [vmem:[#allocation2 + $0xf9] sm:$0xff]  ;;  %v17608_v61 = vld [vmem:[#allocation2 + $0x109] sm:$0xff] }
 0x40d   :  { %10644 = vrot.lane.b32.xlu0 %v10643_v62, %s11642_s14  ;;  %v17170_v55 = vpop.permute.xlu1 %10339 }
 0x40e   :  { %21314 = vst [vmem:[#allocation10_spill] sm:$0xff] %v17170_v55  ;;  %v17604_v55 = vld [vmem:[#allocation2 + $0xf8] sm:$0xff] }
 0x40f   :  { %v17172_v33 = vpop.permute.xlu0 %10364  ;;  %10629 = vrot.lane.b32.xlu1 %v10628_v0, %s11642_s14 }
 0x410   :  { %21315 = vst [vmem:[#allocation11_spill] sm:$0xff] %v17172_v33  ;;  %v17602_v33 = vld [vmem:[#allocation2 + $0x111] sm:$0xff] }
 0x411   :  { %10654 = vrot.lane.b32.xlu0 %v10653_v26, %s11644_s18  ;;  %v17176_v11 = vpop.permute.xlu1 %10349 }
 0x412   :  { %21316 = vst [vmem:[#allocation97_spill] sm:$0xff] %v17176_v11  ;;  %v4630_v11 = vld [vmem:[#allocation2 + $0x25a] sm:$0xff] }
 0x413   :  { %v17178_v62 = vpop.permute.xlu0 %10374  ;;  %10639 = vrot.lane.b32.xlu1 %v10638_v38, %s11642_s14 }
 0x414   :  { %21317 = vst [vmem:[#allocation114_spill] sm:$0xff] %v17178_v62 }
 0x415   :  { %10664 = vrot.lane.b32.xlu0 %v10663_v3, %s11644_s18  ;;  %v17182_v0 = vpop.permute.xlu1 %10359 }
 0x416   :  { %21318 = vst [vmem:[#allocation12_spill] sm:$0xff] %v17182_v0  ;;  %v4623_v0 = vld [vmem:[#allocation2 + $0x202] sm:$0xff] }
 0x417   :  { %v17184_v26 = vpop.permute.xlu0 %10384  ;;  %10649 = vrot.lane.b32.xlu1 %v10648_v18, %s11642_s14 }
 0x418   :  { %21319 = vst [vmem:[#allocation65_spill] sm:$0xff] %v17184_v26 }
 0x419   :  { %10674 = vrot.lane.b32.xlu0 %v10673_v50, %s11644_s18  ;;  %v17188_v38 = vpop.permute.xlu1 %10369 }
 0x41a   :  { %21320 = vst [vmem:[#allocation55_spill] sm:$0xff] %v17188_v38 }
 0x41b   :  { %v17190_v3 = vpop.permute.xlu0 %10394  ;;  %10659 = vrot.lane.b32.xlu1 %v10658_v56, %s11644_s18 }
 0x41c   :  { %21321 = vst [vmem:[#allocation54_spill] sm:$0xff] %v17190_v3 }
 0x41d   :  { %10684 = vrot.lane.b32.xlu0 %v10683_v20, %s11644_s18  ;;  %v17194_v18 = vpop.permute.xlu1 %10379 }
 0x41e   :  { %21322 = vst [vmem:[#allocation120_spill] sm:$0xff] %v17194_v18  ;;  %v4615_v18 = vld [vmem:[#allocation2 + $0x172] sm:$0xff] }
 0x41f   :  { %v17196_v50 = vpop.permute.xlu0 %10404  ;;  %10669 = vrot.lane.b32.xlu1 %v10668_v15, %s11644_s18 }
 0x420   :  { %21323 = vst [vmem:[#allocation13_spill] sm:$0xff] %v17196_v50 }
 0x421   :  { %10694 = vrot.lane.b32.xlu0 %v10693_v54, %s11644_s18  ;;  %v17200_v56 = vpop.permute.xlu1 %10389 }
 0x422   :  { %21324 = vst [vmem:[#allocation119_spill] sm:$0xff] %v17200_v56 }
 0x423   :  { %v17202_v20 = vpop.permute.xlu0 %10414  ;;  %10679 = vrot.lane.b32.xlu1 %v10678_v58, %s11644_s18 }
 0x424   :  { %21325 = vst [vmem:[#allocation125_spill] sm:$0xff] %v17202_v20 }
 0x425   :  { %10704 = vrot.lane.b32.xlu0 %v10703_v27, %s11644_s18  ;;  %v17206_v15 = vpop.permute.xlu1 %10399 }
 0x426   :  { %21326 = vst [vmem:[#allocation14_spill] sm:$0xff] %v17206_v15 }
 0x427   :  { %v17208_v54 = vpop.permute.xlu0 %10424  ;;  %10689 = vrot.lane.b32.xlu1 %v10688_v44, %s11644_s18 }
 0x428   :  { %21327 = vst [vmem:[#allocation15_spill] sm:$0xff] %v17208_v54  ;;  %v21356_v54 = vld [vmem:[#allocation3_spill] sm:$0xff] }
 0x429   :  { %10714 = vrot.lane.b32.xlu0 %v10713_v37, %s11644_s18  ;;  %v17212_v58 = vpop.permute.xlu1 %10409 }
 0x42a   :  { %21328 = vst [vmem:[#allocation98_spill] sm:$0xff] %v17212_v58  ;;  %v4559_v58 = vld [vmem:[#allocation2 + $0x201] sm:$0xff] }
 0x42b   :  { %v17214_v27 = vpop.permute.xlu0 %10434  ;;  %10699 = vrot.lane.b32.xlu1 %v10698_v13, %s11644_s18  ;;  %v10743_v28 = vpack.i.bf16 %v4559_v58, %v4558_v6  ;;  %v4566_v6 = vld [vmem:[#allocation2 + $0x259] sm:$0xff] }
 0x42c   :  { %21329 = vst [vmem:[#allocation122_spill] sm:$0xff] %v17214_v27  ;;  %v4553_v27 = vld [vmem:[#allocation2 + $0x189] sm:$0xff] }
 0x42d   :  { %10724 = vrot.lane.b32.xlu0 %v10723_v14, %s11644_s18  ;;  %v17218_v44 = vpop.permute.xlu1 %10419  ;;  %v10728_v9 = vpack.i.bf16 %v4553_v27, %v4552_v36  ;;  %v4560_v36 = vld [vmem:[#allocation2 + $0x211] sm:$0xff] }
 0x42e   :  { %21330 = vst [vmem:[#allocation16_spill] sm:$0xff] %v17218_v44  ;;  %v4563_v44 = vld [vmem:[#allocation2 + $0x231] sm:$0xff] }
 0x42f   :  { %v17220_v37 = vpop.permute.xlu0 %10444  ;;  %10709 = vrot.lane.b32.xlu1 %v10708_v12, %s11644_s18  ;;  %v10753_v24 = vpack.i.bf16 %v4563_v44, %v4562_v52  ;;  %v4570_v52 = vld [vmem:[#allocation2 + $0x289] sm:$0xff] }
 0x430   :  { %21331 = vst [vmem:[#allocation121_spill] sm:$0xff] %v17220_v37  ;;  %v4557_v37 = vld [vmem:[#allocation2 + $0x1e9] sm:$0xff] }
 0x431   :  { %10734 = vrot.lane.b32.xlu0 %v10733_v30, %s11644_s18  ;;  %v17224_v13 = vpop.permute.xlu1 %10429  ;;  %v10738_v58 = vpack.i.bf16 %v4557_v37, %v4556_v42  ;;  %v4564_v42 = vld [vmem:[#allocation2 + $0x241] sm:$0xff] }
 0x432   :  { %21332 = vst [vmem:[#allocation99_spill] sm:$0xff] %v17224_v13  ;;  %v4567_v13 = vld [vmem:[#allocation2 + $0x261] sm:$0xff] }
 0x433   :  { %v17226_v14 = vpop.permute.xlu0 %10454  ;;  %10719 = vrot.lane.b32.xlu1 %v10718_v48, %s11644_s18  ;;  %v10763_v27 = vpack.i.bf16 %v4567_v13, %v4566_v6  ;;  %v4574_v6 = vld [vmem:[#allocation2 + $0x2b9] sm:$0xff] }
 0x434   :  { %21333 = vst [vmem:[#allocation124_spill] sm:$0xff] %v17226_v14  ;;  %v4561_v14 = vld [vmem:[#allocation2 + $0x219] sm:$0xff] }
 0x435   :  { %10744 = vrot.lane.b32.xlu0 %v10743_v28, %s11644_s18  ;;  %v17230_v12 = vpop.permute.xlu1 %10439  ;;  %v10748_v44 = vpack.i.bf16 %v4561_v14, %v4560_v36  ;;  %v4568_v36 = vld [vmem:[#allocation2 + $0x271] sm:$0xff] }
 0x436   :  { %21334 = vst [vmem:[#allocation123_spill] sm:$0xff] %v17230_v12  ;;  %v4571_v12 = vld [vmem:[#allocation2 + $0x291] sm:$0xff] }
 0x437   :  { %v17232_v30 = vpop.permute.xlu0 %10464  ;;  %10729 = vrot.lane.b32.xlu1 %v10728_v9, %s11644_s18  ;;  %v10773_v37 = vpack.i.bf16 %v4571_v12, %v4570_v52  ;;  %v4578_v52 = vld [vmem:[#allocation2 + $0x2e9] sm:$0xff] }
 0x438   :  { %21335 = vst [vmem:[#allocation17_spill] sm:$0xff] %v17232_v30  ;;  %v4565_v30 = vld [vmem:[#allocation2 + $0x249] sm:$0xff] }
 0x439   :  { %10754 = vrot.lane.b32.xlu0 %v10753_v24, %s11644_s18  ;;  %v17236_v48 = vpop.permute.xlu1 %10449  ;;  %v10758_v13 = vpack.i.bf16 %v4565_v30, %v4564_v42  ;;  %v4572_v42 = vld [vmem:[#allocation2 + $0x2a1] sm:$0xff] }
 0x43a   :  { %21336 = vst [vmem:[#allocation100_spill] sm:$0xff] %v17236_v48  ;;  %v4575_v48 = vld [vmem:[#allocation2 + $0x2c1] sm:$0xff] }
 0x43b   :  { %v17238_v28 = vpop.permute.xlu0 %10474  ;;  %10739 = vrot.lane.b32.xlu1 %v10738_v58, %s11644_s18  ;;  %v10783_v14 = vpack.i.bf16 %v4575_v48, %v4574_v6  ;;  %v4582_v6 = vld [vmem:[#allocation2 + $0x319] sm:$0xff] }
 0x43c   :  { %21337 = vst [vmem:[#allocation101_spill] sm:$0xff] %v17238_v28  ;;  %v4569_v28 = vld [vmem:[#allocation2 + $0x279] sm:$0xff] }
 0x43d   :  { %10764 = vrot.lane.b32.xlu0 %v10763_v27, %s11644_s18  ;;  %v17242_v9 = vpop.permute.xlu1 %10459  ;;  %v10768_v12 = vpack.i.bf16 %v4569_v28, %v4568_v36  ;;  %v4576_v36 = vld [vmem:[#allocation2 + $0x2d1] sm:$0xff] }
 0x43e   :  { %21338 = vst [vmem:[#allocation18_spill] sm:$0xff] %v17242_v9  ;;  %v4579_v9 = vld [vmem:[#allocation2 + $0x2f1] sm:$0xff] }
 0x43f   :  { %v17244_v24 = vpop.permute.xlu0 %10484  ;;  %10749 = vrot.lane.b32.xlu1 %v10748_v44, %s11644_s18  ;;  %v10793_v30 = vpack.i.bf16 %v4579_v9, %v4578_v52  ;;  %v4581_v52 = vld [vmem:[#allocation2 + $0x309] sm:$0xff] }
 0x440   :  { %21339 = vst [vmem:[#allocation19_spill] sm:$0xff] %v17244_v24  ;;  %v4573_v24 = vld [vmem:[#allocation2 + $0x2a9] sm:$0xff] }
 0x441   :  { %10774 = vrot.lane.b32.xlu0 %v10773_v37, %s11644_s18  ;;  %v17248_v58 = vpop.permute.xlu1 %10469  ;;  %v10778_v48 = vpack.i.bf16 %v4573_v24, %v4572_v42  ;;  %v4580_v42 = vld [vmem:[#allocation2 + $0x301] sm:$0xff] }
 0x442   :  { %21340 = vst [vmem:[#allocation102_spill] sm:$0xff] %v17248_v58  ;;  %v4583_v58 = vld [vmem:[#allocation2 + $0x321] sm:$0xff] }
 0x443   :  { %v17250_v27 = vpop.permute.xlu0 %10494  ;;  %10759 = vrot.lane.b32.xlu1 %v10758_v13, %s11644_s18  ;;  %v10803_v28 = vpack.i.bf16 %v4583_v58, %v4582_v6  ;;  %v4585_v6 = vld [vmem:[#allocation2 + $0x339] sm:$0xff] }
 0x444   :  { %21341 = vst [vmem:[#allocation103_spill] sm:$0xff] %v17250_v27  ;;  %v4577_v27 = vld [vmem:[#allocation2 + $0x2d9] sm:$0xff] }
 0x445   :  { %10784 = vrot.lane.b32.xlu0 %v10783_v14, %s11644_s18  ;;  %v17254_v44 = vpop.permute.xlu1 %10479 }
 0x446   :  { %21342 = vst [vmem:[#allocation20_spill] sm:$0xff] %v17254_v44  ;;  %v4586_v44 = vld [vmem:[#allocation2 + $0x1a] sm:$0xff] }
 0x447   :  { %v17256_v37 = vpop.permute.xlu0 %10504  ;;  %10769 = vrot.lane.b32.xlu1 %v10768_v12, %s11644_s18  ;;  %v10788_v12 = vpack.i.bf16 %v4577_v27, %v4576_v36  ;;  %v4584_v36 = vld [vmem:[#allocation2 + $0x331] sm:$0xff] }
 0x448   :  { %21343 = vst [vmem:[#allocation104_spill] sm:$0xff] %v17256_v37  ;;  %v4587_v37 = vld [vmem:[#allocation2 + $0x22] sm:$0xff] }
 0x449   :  { %10794 = vrot.lane.b32.xlu0 %v10793_v30, %s11644_s18  ;;  %v17260_v13 = vpop.permute.xlu1 %10489  ;;  %v10813_v24 = vpack.i.bf16 %v4587_v37, %v4586_v44  ;;  %v10808_v37 = vpack.i.bf16 %v4585_v6, %v4584_v36 }
 0x44a   :  { %21344 = vst [vmem:[#allocation58_spill] sm:$0xff] %v17260_v13  ;;  %v4590_v13 = vld [vmem:[#allocation2 + $0x4a] sm:$0xff] }
 0x44b   :  { %v17262_v14 = vpop.permute.xlu0 %10514  ;;  %10779 = vrot.lane.b32.xlu1 %v10778_v48, %s11644_s18  ;;  %v10798_v48 = vpack.i.bf16 %v4581_v52, %v4580_v42  ;;  %v4598_v42 = vld [vmem:[#allocation2 + $0xaa] sm:$0xff] }
 0x44c   :  { %21345 = vst [vmem:[#allocation127_spill] sm:$0xff] %v17262_v14  ;;  %v4591_v14 = vld [vmem:[#allocation2 + $0x52] sm:$0xff] }
 0x44d   :  { %10804 = vrot.lane.b32.xlu0 %v10803_v28, %s11644_s18  ;;  %v17266_v9 = vpop.permute.xlu1 %10499  ;;  %v17277_v27 = vpack.i.bf16 %v4591_v14, %v4590_v13  ;;  %v4599_v13 = vld [vmem:[#allocation2 + $0xb2] sm:$0xff] }
 0x44e   :  { %21346 = vst [vmem:[#allocation126_spill] sm:$0xff] %v17266_v9  ;;  %v4589_v9 = vld [vmem:[#allocation2 + $0x3a] sm:$0xff]  ;;  %v17298_v36 = vpack.i.bf16 %v4599_v13, %v4598_v42  ;;  %v4596_v42 = vld [vmem:[#allocation2 + $0x92] sm:$0xff] }
 0x44f   :  { %v17268_v30 = vpop.permute.xlu0 %10524  ;;  %10789 = vrot.lane.b32.xlu1 %v10788_v12, %s11644_s18  ;;  %v4595_v12 = vld [vmem:[#allocation2 + $0x82] sm:$0xff]  ;;  %v4597_v13 = vld [vmem:[#allocation2 + $0x9a] sm:$0xff] }
 0x450   :  { %21347 = vst [vmem:[#allocation90_spill] sm:$0xff] %v17268_v30  ;;  %v4594_v30 = vld [vmem:[#allocation2 + $0x7a] sm:$0xff] }
 0x451   :  { %10814 = vrot.lane.b32.xlu0 %v10813_v24, %s11646_s4  ;;  %v17272_v58 = vpop.permute.xlu1 %10509  ;;  %v4588_v24 = vld [vmem:[#allocation2 + $0x32] sm:$0xff]  ;;  %v17286_v52 = vpack.i.bf16 %v4595_v12, %v4594_v30  ;;  %v11548_v12 = vld [vmem:[%s20314_s0 + $0x21] sm:$0xff] }
 0x452   :  { %21348 = vst [vmem:[#allocation105_spill] sm:$0xff] %v17272_v58  ;;  %v11547_v30 = vld [vmem:[%s20314_s0 + $0x19] sm:$0xff] }
 0x453   :  { %v17274_v28 = vpop.permute.xlu0 %10534  ;;  %10799 = vrot.lane.b32.xlu1 %v10798_v48, %s11644_s18  ;;  %v17292_v48 = vpack.i.bf16 %v4589_v9, %v4588_v24  ;;  %v4602_v9 = vld [vmem:[#allocation2 + $0xda] sm:$0xff]  ;;  %v4603_v24 = vld [vmem:[#allocation2 + $0xe2] sm:$0xff] }
 0x454   :  { %21349 = vst [vmem:[#allocation106_spill] sm:$0xff] %v17274_v28  ;;  %v4592_v28 = vld [vmem:[#allocation2 + $0x62] sm:$0xff] }
 0x455   :  { %10824 = vrot.lane.b32.xlu0 %v17277_v27, %s11646_s4  ;;  %v17281_v44 = vpop.permute.xlu1 %10519 }
 0x456   :  { %21350 = vst [vmem:[#allocation91_spill] sm:$0xff] %v17281_v44  ;;  %v4593_v44 = vld [vmem:[#allocation2 + $0x6a] sm:$0xff] }
 0x457   :  { %v17283_v58 = vpop.permute.xlu0 %10544  ;;  %10809 = vrot.lane.b32.xlu1 %v10808_v37, %s11644_s18  ;;  %v92_v37 = vpack.c.bf16 %v11548_v12, %v11547_v30  ;;  %v17321_v30 = vpack.i.bf16 %v4603_v24, %v4602_v9  ;;  %v4606_v12 = vld [vmem:[#allocation2 + $0x10a] sm:$0xff] }
 0x458   :  { %21351 = vst [vmem:[#allocation117_spill] sm:$0xff] %v17283_v58  ;;  %v21355_v58 = vld [vmem:[#allocation4_spill] sm:$0xff]  ;;  %v11550_v24 = vld [vmem:[%s20314_s0 + $0x51] sm:$0xff] }
 0x459   :  { %10834 = vrot.lane.b32.xlu0 %v17286_v52, %s11646_s4  ;;  %v17290_v14 = vpop.permute.xlu1 %10529  ;;  %8666 = vmatprep.mubr.msk.bf16.mxu0 %vm132_vm0, %v92_v37  ;;  %v21357_v15 = vpack.c.bf16 %v21355_v58, %v21356_v54  ;;  %v4600_v37 = vld [vmem:[#allocation2 + $0xc2] sm:$0xff]  ;;  %v4601_v54 = vld [vmem:[#allocation2 + $0xca] sm:$0xff] }
 0x45a   :  { %21352 = vst [vmem:[#allocation84_spill] sm:$0xff] %v17290_v14  ;;  %v17310_v14 = vpack.i.bf16 %v4593_v44, %v4592_v28  ;;  %v17327_v44 = vpack.i.bf16 %v4597_v13, %v4596_v42  ;;  %v11549_v9 = vld [vmem:[%s20314_s0 + $0x49] sm:$0xff]  ;;  %v11551_v42 = vld [vmem:[%s20314_s0 + $0x61] sm:$0xff]  ;;  %v17351_v56 = vpack.i.bf16 %v4601_v54, %v4600_v37 }
 0x45b   :  { %v17294_v6 = vpop.permute.xlu0 %10554  ;;  %10819 = vrot.lane.b32.xlu1 %v17292_v48, %s11646_s4  ;;  %8667 = vmatmul.mubr.msk.bf16.vlgmr.msra.gmra.mxu0 %vm132_vm0, %v21357_v15  ;;  %v11552_v13 = vld [vmem:[%s20314_s0 + $0x69] sm:$0xff] }
 0x45c   :  { %21353 = vst [vmem:[#allocation64_spill] sm:$0xff] %v17294_v6 }
 0x45d   :  { %10844 = vrot.lane.b32.xlu0 %v17298_v36, %s11646_s4  ;;  %v17308_v6 = vpop.permute.xlu1 %10539 }
 0x45e   :  { %21354 = vst [vmem:[#allocation130_spill] sm:$0xff] %v17308_v6  ;;  %v4607_v6 = vld [vmem:[#allocation2 + $0x112] sm:$0xff] }
 0x45f   :  { %v17317_v20 = vpop.permute.xlu0 %10564  ;;  %10829 = vrot.lane.b32.xlu1 %v17310_v14, %s11646_s4  ;;  %v17333_v15 = vpack.i.bf16 %v4607_v6, %v4606_v12  ;;  %v4610_v6 = vld [vmem:[#allocation2 + $0x13a] sm:$0xff]  ;;  %v4611_v12 = vld [vmem:[#allocation2 + $0x142] sm:$0xff] }
 0x460   :  { %21358 = vst [vmem:[#allocation85_spill] sm:$0xff] %v17317_v20 }
 0x461   :  { %10854 = vrot.lane.b32.xlu0 %v17321_v30, %s11646_s4  ;;  %v17325_v28 = vpop.permute.xlu1 %10549 }
 0x462   :  { %21359 = vst [vmem:[#allocation132_spill] sm:$0xff] %v17325_v28  ;;  %v94_v28 = vpack.c.bf16 %v11550_v24, %v11549_v9  ;;  %v4604_v9 = vld [vmem:[#allocation2 + $0xf2] sm:$0xff]  ;;  %v4605_v24 = vld [vmem:[#allocation2 + $0xfa] sm:$0xff] }
 0x463   :  { %v17329_v58 = vpop.permute.xlu0 %10574  ;;  %10839 = vrot.lane.b32.xlu1 %v17327_v44, %s11646_s4  ;;  %v17365_v54 = vpack.i.bf16 %v4605_v24, %v4604_v9  ;;  %v11555_v9 = vld [vmem:[%s20314_s0 + $0x91] sm:$0xff]  ;;  %v11556_v24 = vld [vmem:[%s20314_s0 + $0x99] sm:$0xff] }
 0x464   :  { %21360 = vst [vmem:[#allocation131_spill] sm:$0xff] %v17329_v58  ;;  %v95_v58 = vpack.c.bf16 %v11552_v13, %v11551_v42  ;;  %8670 = vmatprep.mubr.msk.bf16.mxu0 %vm132_vm0, %v94_v28  ;;  %v17359_v42 = vpack.i.bf16 %v4611_v12, %v4610_v6  ;;  %v4614_v13 = vld [vmem:[#allocation2 + $0x16a] sm:$0xff]  ;;  %v4608_v28 = vld [vmem:[#allocation2 + $0x122] sm:$0xff]  ;;  %v11553_v6 = vld [vmem:[%s20314_s0 + $0x79] sm:$0xff] }
 0x465   :  { %10864 = vrot.lane.b32.xlu0 %v17333_v15, %s11646_s4  ;;  %v17349_v20 = vpop.permute.xlu1 %10559  ;;  %21365 = vst [vmem:[#allocation22_spill] sm:$0xff] %v17365_v54  ;;  %v11554_v12 = vld [vmem:[%s20314_s0 + $0x81] sm:$0xff] }
 0x466   :  { %21361 = vst [vmem:[#allocation8_spill] sm:$0xff] %v17349_v20  ;;  %8671 = vmatmul.mubr.msk.bf16.gmra.mxu0 %vm132_vm0, %v95_v58  ;;  %21363 = vst [vmem:[#allocation86_spill] sm:$0xff] %v17359_v42  ;;  %v4609_v20 = vld [vmem:[#allocation2 + $0x12a] sm:$0xff]  ;;  %v10883_v58 = vpack.i.bf16 %v4615_v18, %v4614_v13  ;;  %v4619_v18 = vld [vmem:[#allocation2 + $0x1d2] sm:$0xff] }
 0x467   :  { %v17355_v50 = vpop.permute.xlu0 %10584  ;;  %10849 = vrot.lane.b32.xlu1 %v17351_v56, %s11646_s4  ;;  %v17386_v38 = vpack.i.bf16 %v4609_v20, %v4608_v28  ;;  %v4616_v28 = vld [vmem:[#allocation2 + $0x182] sm:$0xff] }
 0x468   :  { %21362 = vst [vmem:[#allocation21_spill] sm:$0xff] %v17355_v50  ;;  %v96_v50 = vpack.c.bf16 %v11554_v12, %v11553_v6  ;;  %v4612_v6 = vld [vmem:[#allocation2 + $0x152] sm:$0xff]  ;;  %v4613_v12 = vld [vmem:[#allocation2 + $0x15a] sm:$0xff] }
 0x469   :  { %10874 = vrot.lane.b32.xlu0 %v17359_v42, %s11646_s4  ;;  %v17363_v37 = vpop.permute.xlu1 %10569  ;;  %21368 = vst [vmem:[#allocation89_spill] sm:$0xff] %v17386_v38  ;;  %v10878_v20 = vpack.i.bf16 %v4613_v12, %v4612_v6  ;;  %v11559_v6 = vld [vmem:[%s20314_s0 + $0xc1] sm:$0xff]  ;;  %v11560_v12 = vld [vmem:[%s20314_s0 + $0xc9] sm:$0xff] }
 0x46a   :  { %21364 = vst [vmem:[#allocation83_spill] sm:$0xff] %v17363_v37  ;;  %v4618_v37 = vld [vmem:[#allocation2 + $0x1ca] sm:$0xff]  ;;  %8674 = vmatprep.mubr.msk.bf16.mxu0 %vm132_vm0, %v96_v50  ;;  %v17637_v42 = vld [vmem:[#allocation2 + $0x120] sm:$0xff] }
 0x46b   :  { %v17367_v3 = vpop.permute.xlu0 %10594  ;;  %10859 = vrot.lane.b32.xlu1 %v17365_v54, %s11646_s4  ;;  %21408 = vst [vmem:[#allocation145_spill] sm:$0xff] %v17637_v42  ;;  %v17695_v54 = vld [vmem:[#allocation2 + $0x189] sm:$0xff]  ;;  %v17710_v42 = vld [vmem:[#allocation2 + $0x181] sm:$0xff] }
 0x46c   :  { %21366 = vst [vmem:[#allocation94_spill] sm:$0xff] %v17367_v3  ;;  %v97_v3 = vpack.c.bf16 %v11556_v24, %v11555_v9  ;;  %v10893_v9 = vpack.i.bf16 %v4619_v18, %v4618_v37  ;;  %v4622_v24 = vld [vmem:[#allocation2 + $0x1fa] sm:$0xff]  ;;  %v11558_v37 = vld [vmem:[%s20314_s0 + $0xb1] sm:$0xff]  ;;  %21424 = vst [vmem:[#allocation161_spill] sm:$0xff] %v17695_v54 }
 0x46d   :  { %10884 = vrot.lane.b32.xlu0 %v10883_v58, %s11646_s4  ;;  %v17384_v13 = vpop.permute.xlu1 %10579  ;;  %21428 = vst [vmem:[#allocation165_spill] sm:$0xff] %v17710_v42  ;;  %v17801_v54 = vld [vmem:[#allocation2 + $0x210] sm:$0xff] }
 0x46e   :  { %21367 = vst [vmem:[#allocation87_spill] sm:$0xff] %v17384_v13  ;;  %8675 = vmatmul.mubr.msk.bf16.gmra.mxu0 %vm132_vm0, %v97_v3  ;;  %v4617_v13 = vld [vmem:[#allocation2 + $0x18a] sm:$0xff]  ;;  %v10903_v3 = vpack.i.bf16 %v4623_v0, %v4622_v24  ;;  %v4627_v0 = vld [vmem:[#allocation2 + $0x232] sm:$0xff]  ;;  %21454 = vst [vmem:[#allocation191_spill] sm:$0xff] %v17801_v54 }
 0x46f   :  { %v17390_v26 = vpop.permute.xlu0 %10604  ;;  %10869 = vrot.lane.b32.xlu1 %v17386_v38, %s11646_s4  ;;  %v17618_v38 = vld [vmem:[#allocation2 + $0x128] sm:$0xff]  ;;  %v17887_v54 = vld [vmem:[#allocation2 + $0x292] sm:$0xff] }
 0x470   :  { %21369 = vst [vmem:[#allocation23_spill] sm:$0xff] %v17390_v26  ;;  %v11557_v26 = vld [vmem:[%s20314_s0 + $0xa9] sm:$0xff]  ;;  %21403 = vst [vmem:[#allocation140_spill] sm:$0xff] %v17618_v38 }
 0x471   :  { %10894 = vrot.lane.b32.xlu0 %v10893_v9, %s11646_s4  ;;  %v17395_v58 = vpop.permute.xlu1 %10589  ;;  %v98_v18 = vpack.c.bf16 %v11558_v37, %v11557_v26  ;;  %v99_v9 = vpack.c.bf16 %v11560_v12, %v11559_v6  ;;  %v4621_v26 = vld [vmem:[#allocation2 + $0x1ea] sm:$0xff]  ;;  %v4631_v6 = vld [vmem:[#allocation2 + $0x262] sm:$0xff]  ;;  %21480 = vst [vmem:[#allocation215_spill] sm:$0xff] %v17887_v54 }
 0x472   :  { %21370 = vst [vmem:[#allocation82_spill] sm:$0xff] %v17395_v58  ;;  %v4620_v58 = vld [vmem:[#allocation2 + $0x1e2] sm:$0xff] }
 0x473   :  { %v17397_v50 = vpop.permute.xlu0 %10614  ;;  %10879 = vrot.lane.b32.xlu1 %v10878_v20, %s11646_s4  ;;  %v4626_v20 = vld [vmem:[#allocation2 + $0x22a] sm:$0xff]  ;;  %8678 = vmatprep.mubr.msk.bf16.mxu0 %vm132_vm0, %v98_v18  ;;  %v10923_v18 = vpack.i.bf16 %v4631_v6, %v4630_v11  ;;  %v4635_v11 = vld [vmem:[#allocation2 + $0x292] sm:$0xff]  ;;  %v17712_v38 = vld [vmem:[#allocation2 + $0x182] sm:$0xff] }
 0x474   :  { %21371 = vst [vmem:[#allocation25_spill] sm:$0xff] %v17397_v50  ;;  %v10888_v50 = vpack.i.bf16 %v4617_v13, %v4616_v28  ;;  %v10913_v62 = vpack.i.bf16 %v4627_v0, %v4626_v20  ;;  %v4625_v13 = vld [vmem:[#allocation2 + $0x21a] sm:$0xff]  ;;  %21429 = vst [vmem:[#allocation166_spill] sm:$0xff] %v17712_v38 }
 0x475   :  { %10904 = vrot.lane.b32.xlu0 %v10903_v3, %s11646_s4  ;;  %v17413_v24 = vpop.permute.xlu1 %10599  ;;  %v10898_v3 = vpack.i.bf16 %v4621_v26, %v4620_v58  ;;  %v11564_v58 = vld [vmem:[%s20314_s0 + $0xf9] sm:$0xff]  ;;  %v4634_v26 = vld [vmem:[#allocation2 + $0x28a] sm:$0xff] }
 0x476   :  { %21372 = vst [vmem:[#allocation92_spill] sm:$0xff] %v17413_v24  ;;  %8679 = vmatmul.mubr.msk.bf16.gmra.mxu0 %vm132_vm0, %v99_v9  ;;  %v4624_v24 = vld [vmem:[#allocation2 + $0x212] sm:$0xff] }
 0x477   :  { %v17417_v37 = vpop.permute.xlu0 %10624  ;;  %10889 = vrot.lane.b32.xlu1 %v10888_v50, %s11646_s4  ;;  %v11561_v9 = vld [vmem:[%s20314_s0 + $0xd9] sm:$0xff]  ;;  %v11562_v50 = vld [vmem:[%s20314_s0 + $0xe1] sm:$0xff] }
 0x478   :  { %21373 = vst [vmem:[#allocation26_spill] sm:$0xff] %v17417_v37  ;;  %v100_v20 = vpack.c.bf16 %v11562_v50, %v11561_v9  ;;  %v4629_v9 = vld [vmem:[#allocation2 + $0x24a] sm:$0xff]  ;;  %v4638_v37 = vld [vmem:[#allocation2 + $0x2ba] sm:$0xff] }
 0x479   :  { %10914 = vrot.lane.b32.xlu0 %v10913_v62, %s11646_s4  ;;  %v17421_v12 = vpop.permute.xlu1 %10609  ;;  %v11563_v62 = vld [vmem:[%s20314_s0 + $0xf1] sm:$0xff] }
 0x47a   :  { %21374 = vst [vmem:[#allocation27_spill] sm:$0xff] %v17421_v12  ;;  %v101_v0 = vpack.c.bf16 %v11564_v58, %v11563_v62  ;;  %8682 = vmatprep.mubr.msk.bf16.mxu0 %vm132_vm0, %v100_v20  ;;  %v10933_v12 = vpack.i.bf16 %v4635_v11, %v4634_v26  ;;  %v4639_v62 = vld [vmem:[#allocation2 + $0x2c2] sm:$0xff]  ;;  %v11566_v26 = vld [vmem:[%s20314_s0 + $0x111] sm:$0xff] }
 0x47b   :  { %v17423_v28 = vpop.permute.xlu0 %10634  ;;  %10899 = vrot.lane.b32.xlu1 %v10898_v3, %s11646_s4  ;;  %v10908_v3 = vpack.i.bf16 %v4625_v13, %v4624_v24  ;;  %v4633_v24 = vld [vmem:[#allocation2 + $0x27a] sm:$0xff]  ;;  %v10943_v20 = vpack.i.bf16 %v4639_v62, %v4638_v37  ;;  %v4643_v37 = vld [vmem:[#allocation2 + $0x2f2] sm:$0xff] }
 0x47c   :  { %21375 = vst [vmem:[#allocation28_spill] sm:$0xff] %v17423_v28  ;;  %v4628_v28 = vld [vmem:[#allocation2 + $0x242] sm:$0xff] }
 0x47d   :  { %10924 = vrot.lane.b32.xlu0 %v10923_v18, %s11646_s4  ;;  %v17439_v6 = vpop.permute.xlu1 %10619  ;;  %v10918_v18 = vpack.i.bf16 %v4629_v9, %v4628_v28  ;;  %v11568_v28 = vld [vmem:[%s20314_s0 + $0x129] sm:$0xff] }
 0x47e   :  { %21376 = vst [vmem:[#allocation29_spill] sm:$0xff] %v17439_v6  ;;  %8683 = vmatmul.mubr.msk.bf16.gmra.mxu0 %vm132_vm0, %v101_v0  ;;  %v4632_v6 = vld [vmem:[#allocation2 + $0x272] sm:$0xff]  ;;  %v11565_v0 = vld [vmem:[%s20314_s0 + $0x109] sm:$0xff] }
 0x47f   :  { %v17443_v50 = vpop.permute.xlu0 %10644  ;;  %10909 = vrot.lane.b32.xlu1 %v10908_v3, %s11646_s4  ;;  %v102_v11 = vpack.c.bf16 %v11566_v26, %v11565_v0  ;;  %v4642_v9 = vld [vmem:[#allocation2 + $0x2ea] sm:$0xff]  ;;  %v4646_v26 = vld [vmem:[#allocation2 + $0x31a] sm:$0xff] }
 0x480   :  { %21377 = vst [vmem:[#allocation30_spill] sm:$0xff] %v17443_v50  ;;  %v4636_v50 = vld [vmem:[#allocation2 + $0x2a2] sm:$0xff]  ;;  %v4637_v0 = vld [vmem:[#allocation2 + $0x2aa] sm:$0xff] }
 0x481   :  { %10934 = vrot.lane.b32.xlu0 %v10933_v12, %s11646_s4  ;;  %v17447_v58 = vpop.permute.xlu1 %10629  ;;  %v11567_v12 = vld [vmem:[%s20314_s0 + $0x121] sm:$0xff]  ;;  %8686 = vmatprep.mubr.msk.bf16.mxu0 %vm132_vm0, %v102_v11 }
 0x482   :  { %21378 = vst [vmem:[#allocation31_spill] sm:$0xff] %v17447_v58  ;;  %v103_v3 = vpack.c.bf16 %v11568_v28, %v11567_v12  ;;  %v4647_v12 = vld [vmem:[#allocation2 + $0x322] sm:$0xff]  ;;  %v4640_v28 = vld [vmem:[#allocation2 + $0x2d2] sm:$0xff]  ;;  %v4641_v11 = vld [vmem:[#allocation2 + $0x2da] sm:$0xff] }
 0x483   :  { %v17449_v13 = vpop.permute.xlu0 %10654  ;;  %10919 = vrot.lane.b32.xlu1 %v10918_v18, %s11646_s4  ;;  %v10928_v18 = vpack.i.bf16 %v4633_v24, %v4632_v6  ;;  %v10938_v24 = vpack.i.bf16 %v4637_v0, %v4636_v50  ;;  %v11570_v50 = vld [vmem:[%s20314_s0 + $0x141] sm:$0xff] }
 0x484   :  { %21379 = vst [vmem:[#allocation32_spill] sm:$0xff] %v17449_v13  ;;  %v10953_v13 = vpack.i.bf16 %v4643_v37, %v4642_v9  ;;  %v11457_v9 = vld [vmem:[%s20318_s5 + $0x18] sm:$0xff]  }
 0x485   :  { %10944 = vrot.lane.b32.xlu0 %v10943_v20, %s11646_s4  ;;  %v17465_v62 = vpop.permute.xlu1 %10639  ;;  %v11456_v20 = vld [vmem:[%s20318_s5 + $0x20] ss:$0 sps:$4 sm:$0xff]  }
 0x486   :  { %21380 = vst [vmem:[#allocation33_spill] sm:$0xff] %v17465_v62  ;;  %8687 = vmatmul.mubr.msk.bf16.gmra.mxu0 %vm132_vm0, %v103_v3  ;;  %8879 = vmatprep.subr.msk.bf16.mxu0 %vm7579_vm12, %v11456_v20  ;;  %v7581_v3 = vsel %vm7579_vm12, %v11456_v20, 0  ;;  %v11571_v20 = vld [vmem:[%s20314_s0 + $0x151] sm:$0xff]  ;;  %v4653_v62 = vld [vmem:[#allocation2 + $0x48] sm:$0xff] }
 0x487   :  { %v17469_v58 = vpop.permute.xlu0 %10664  ;;  %10929 = vrot.lane.b32.xlu1 %v10928_v18, %s11646_s4  ;;  %8801 = vmatpush3.bf16.msra.mxu0 %v7581_v3  ;;  %v10963_v18 = vpack.i.bf16 %v4647_v12, %v4646_v26  ;;  %v11572_v3 = vld [vmem:[%s20314_s0 + $0x159] sm:$0xff]  ;;  %v10948_v12 = vpack.i.bf16 %v4641_v11, %v4640_v28 }
 0x488   :  { %21381 = vst [vmem:[#allocation34_spill] sm:$0xff] %v17469_v58  ;;  %8802 = vmatprep.subr.bf16.mxu0 %v11457_v9 }
 0x489   :  { %10954 = vrot.lane.b32.xlu0 %v10953_v13, %s11646_s4  ;;  %v17476_v6 = vpop.permute.xlu1 %10649  ;;  %v11569_v13 = vld [vmem:[%s20314_s0 + $0x139] sm:$0xff] }
 0x48a   :  { %21382 = vst [vmem:[#allocation35_spill] sm:$0xff] %v17476_v6  ;;  %v104_v0 = vpack.c.bf16 %v11570_v50, %v11569_v13  ;;  %v105_v6 = vpack.c.bf16 %v11572_v3, %v11571_v20  ;;  %v4644_v13 = vld [vmem:[#allocation2 + $0x302] sm:$0xff]  ;;  %v4645_v50 = vld [vmem:[#allocation2 + $0x30a] sm:$0xff] }
 0x48b   :  { %v17481_v37 = vpop.permute.xlu0 %10674  ;;  %10939 = vrot.lane.b32.xlu1 %v10938_v24, %s11646_s4  ;;  %v4654_v24 = vld [vmem:[#allocation2 + $0x50] sm:$0xff]  ;;  %8803 = vmatpush3.bf16.msra.mxu0 %v11457_v9  ;;  %v10958_v11 = vpack.i.bf16 %v4645_v50, %v4644_v13  ;;  %v11459_v3 = vld [vmem:[%s20318_s5 + $0x8] sm:$0xff]  }
 0x48c   :  { %21383 = vst [vmem:[#allocation36_spill] sm:$0xff] %v17481_v37  ;;  %8690 = vmatprep.mubr.msk.bf16.mxu0 %vm132_vm0, %v104_v0  ;;  %v10973_v58 = vpack.i.bf16 %v4654_v24, %v4653_v62  ;;  %v4718_v20 = vld [vmem:[#allocation2 + $0x51] sm:$0xff]  ;;  %v4717_v0 = vld [vmem:[#allocation2 + $0x49] sm:$0xff]  ;;  %v11575_v13 = vld [vmem:[%s20314_s0 + $0x181] sm:$0xff] }
 0x48d   :  { %10964 = vrot.lane.b32.xlu0 %v10963_v18, %s11646_s4  ;;  %v17497_v26 = vpop.permute.xlu1 %10659  ;;  %v11458_v18 = vld [vmem:[%s20318_s5 + $0x10] sm:$0xff]   ;;  %v10983_v9 = vpack.i.bf16 %v4718_v20, %v4717_v0 }
 0x48e   :  { %21384 = vst [vmem:[#allocation24_spill] sm:$0xff] %v17497_v26  ;;  %8691 = vmatmul.mubr.msk.bf16.gmra.mxu0 %vm132_vm0, %v105_v6  ;;  %8804 = vmatprep.subr.bf16.mxu0 %v11458_v18  ;;  %v4652_v6 = vld [vmem:[#allocation2 + $0x38] sm:$0xff]  ;;  %v11576_v50 = vld [vmem:[%s20314_s0 + $0x189] sm:$0xff] }
 0x48f   :  { %v17501_v37 = vpop.permute.xlu0 %10684  ;;  %10949 = vrot.lane.b32.xlu1 %v10948_v12, %s11646_s4  ;;  %8805 = vmatpush3.bf16.msra.mxu0 %v11458_v18  ;;  %v11574_v24 = vld [vmem:[%s20314_s0 + $0x171] sm:$0xff]  ;;  %v17600_v26 = vld [vmem:[#allocation2 + $0x108] sm:$0xff] }
 0x490   :  { %21385 = vst [vmem:[#allocation37_spill] sm:$0xff] %v17501_v37  ;;  %v4651_v20 = vld [vmem:[#allocation2 + $0x30] sm:$0xff]  ;;  %8806 = vmatprep.subr.bf16.mxu0 %v11459_v3  ;;  %v4656_v37 = vld [vmem:[#allocation2 + $0x68] sm:$0xff] }
 0x491   :  { %10974 = vrot.lane.b32.xlu0 %v10973_v58, %s11647_s12  ;;  %v17508_v28 = vpop.permute.xlu1 %10669  ;;  %v11573_v58 = vld [vmem:[%s20314_s0 + $0x169] sm:$0xff]  ;;  %v10968_v0 = vpack.i.bf16 %v4652_v6, %v4651_v20  ;;  %s11649_s0 = smov 64  }
 0x492   :  { %21386 = vst [vmem:[#allocation38_spill] sm:$0xff] %v17508_v28  ;;  %v106_v12 = vpack.c.bf16 %v11574_v24, %v11573_v58  ;;  %v4716_v58 = vld [vmem:[#allocation2 + $0x39] sm:$0xff]  ;;  %v17598_v28 = vld [vmem:[#allocation2 + $0xc1] sm:$0xff] }
 0x493   :  { %v17513_v62 = vpop.permute.xlu0 %10694  ;;  %10959 = vrot.lane.b32.xlu1 %v10958_v11, %s11646_s4  ;;  %v107_v11 = vpack.c.bf16 %v11576_v50, %v11575_v13  ;;  %v11460_v24 = vld [vmem:[%s20318_s5] sm:$0xff]   ;;  %8807 = vmatpush3.bf16.msra.mxu0 %v11459_v3  ;;  %v4715_v13 = vld [vmem:[#allocation2 + $0x31] sm:$0xff] }
 0x494   :  { %21387 = vst [vmem:[#allocation39_spill] sm:$0xff] %v17513_v62  ;;  %8694 = vmatprep.mubr.msk.bf16.mxu0 %vm132_vm0, %v106_v12  ;;  %v4658_v50 = vld [vmem:[#allocation2 + $0x80] sm:$0xff]  ;;  %8808 = vmatprep.subr.bf16.mxu0 %v11460_v24  ;;  %v4657_v12 = vld [vmem:[#allocation2 + $0x78] sm:$0xff] }
 0x495   :  { %10984 = vrot.lane.b32.xlu0 %v10983_v9, %s11648_s22  ;;  %v17529_v18 = vpop.permute.xlu1 %10679  ;;  %v10978_v9 = vpack.i.bf16 %v4716_v58, %v4715_v13  ;;  %v11003_v20 = vpack.i.bf16 %v4658_v50, %v4657_v12  ;;  %v4655_v58 = vld [vmem:[#allocation2 + $0x60] sm:$0xff] }
 0x496   :  { %21388 = vst [vmem:[#allocation40_spill] sm:$0xff] %v17529_v18  ;;  %8695 = vmatmul.mubr.msk.bf16.gmra.mxu0 %vm132_vm0, %v107_v11  ;;  %v10998_v50 = vpack.i.bf16 %v4656_v37, %v4655_v58  ;;  %v4719_v12 = vld [vmem:[#allocation2 + $0x61] sm:$0xff]  ;;  %v4726_v37 = vld [vmem:[#allocation2 + $0xb1] sm:$0xff]  ;;  %vm7342_vm0 = vcmask 523264  }
 0x497   :  { %v17536_v62 = vpop.permute.xlu0 %10704  ;;  %10969 = vrot.lane.b32.xlu1 %v10968_v0, %s11647_s12  ;;  %8809 = vmatpush3.bf16.msra.mxu0 %v11460_v24  ;;  %v4721_v0 = vld [vmem:[#allocation2 + $0x79] sm:$0xff]  ;;  %v4720_v24 = vld [vmem:[#allocation2 + $0x69] sm:$0xff] }
 0x498   :  { %21389 = vst [vmem:[#allocation41_spill] sm:$0xff] %v17536_v62  ;;  %v4722_v62 = vld [vmem:[#allocation2 + $0x81] sm:$0xff] }
 0x499   :  { %10994 = vrot.lane.b32.xlu0 %v17277_v27, %s11649_s0  ;;  %v17541_v6 = vpop.permute.xlu1 %10689  ;;  %v11013_v27 = vpack.i.bf16 %v4722_v62, %v4721_v0  ;;  %v4661_v62 = vld [vmem:[#allocation2 + $0xa8] sm:$0xff] }
 0x49a   :  { %21390 = vst [vmem:[#allocation42_spill] sm:$0xff] %v17541_v6  ;;  %v17587_v6 = vld [vmem:[#allocation2 + $0xc9] sm:$0xff] }
 0x49b   :  { %v17543_v11 = vpop.permute.xlu0 %10714  ;;  %10979 = vrot.lane.b32.xlu1 %v10978_v9, %s11648_s22 }
 0x49c   :  { %21391 = vst [vmem:[#allocation43_spill] sm:$0xff] %v17543_v11  ;;  %v4725_v11 = vld [vmem:[#allocation2 + $0xa9] sm:$0xff] }
 0x49d   :  { %11004 = vrot.lane.b32.xlu0 %v11003_v20, %s11647_s12  ;;  %v17547_v3 = vpop.permute.xlu1 %10699  ;;  %v4662_v20 = vld [vmem:[#allocation2 + $0xb0] sm:$0xff] }
 0x49e   :  { %21392 = vst [vmem:[#allocation44_spill] sm:$0xff] %v17547_v3  ;;  %v4660_v3 = vld [vmem:[#allocation2 + $0x98] sm:$0xff] }
 0x49f   :  { %v17549_v18 = vpop.permute.xlu0 %10724  ;;  %10989 = vrot.lane.b32.xlu1 %v17292_v48, %s11649_s0  ;;  %v11008_v48 = vpack.i.bf16 %v4720_v24, %v4719_v12  ;;  %v10176_v24 = vunpack.i.l.bf16 %v17060_v5 }
 0x4a0   :  { %21393 = vst [vmem:[#allocation45_spill] sm:$0xff] %v17549_v18 }
 0x4a1   :  { %11014 = vrot.lane.b32.xlu0 %v11013_v27, %s11648_s22  ;;  %v17554_v13 = vpop.permute.xlu1 %10709  ;;  %v11033_v27 = vpack.i.bf16 %v4662_v20, %v4661_v62  ;;  %v11043_v20 = vpack.i.bf16 %v4726_v37, %v4725_v11  ;;  %v17577_v62 = vld [vmem:[#allocation2 + $0xe0] sm:$0xff] }
 0x4a2   :  { %21394 = vst [vmem:[#allocation46_spill] sm:$0xff] %v17554_v13  ;;  %v4659_v13 = vld [vmem:[#allocation2 + $0x90] sm:$0xff]  ;;  %v17594_v37 = vld [vmem:[#allocation2 + $0xd9] sm:$0xff] }
 0x4a3   :  { %v17556_v9 = vpop.permute.xlu0 %10734  ;;  %10999 = vrot.lane.b32.xlu1 %v10998_v50, %s11647_s12  ;;  %v4266_v50 = vld [vmem:[#allocation2] sm:$0xff]  ;;  %v11028_v11 = vpack.i.bf16 %v4660_v3, %v4659_v13 }
 0x4a4   :  { %21395 = vst [vmem:[#allocation47_spill] sm:$0xff] %v17556_v9  ;;  %v4267_v9 = vld [vmem:[#allocation2 + $0x8] sm:$0xff]  ;;  %v17614_v3 = vld [vmem:[#allocation2 + $0x140] sm:$0xff]  ;;  %v17624_v31 = vsel %vm3147_vm1, %v4266_v50, %v10176_v24  ;;  %v17641_v50 = vld [vmem:[#allocation2 + $0x170] sm:$0xff]  ;;  %v10186_v24 = vunpack.i.l.bf16 %v17065_v16 }
 0x4a5   :  { %11024 = vrot.lane.b32.xlu0 %v17286_v52, %s11649_s0  ;;  %v17561_v18 = vpop.permute.xlu1 %10719  ;;  %v10177_v52 = vunpack.i.h.bf16 %v17060_v5  ;;  %v17589_v5 = vld [vmem:[#allocation2 + $0x110] sm:$0xff]  ;;  %v17616_v13 = vld [vmem:[#allocation2 + $0x141] sm:$0xff]  ;;  %21405 = vst [vmem:[#allocation142_spill] sm:$0xff] %v17624_v31  ;;  %21410 = vst [vmem:[#allocation147_spill] sm:$0xff] %v17641_v50 }
 0x4a6   :  { %21396 = vst [vmem:[#allocation4_spill] sm:$0xff] %v17561_v18  ;;  %v17585_v18 = vld [vmem:[#allocation2 + $0xc8] sm:$0xff]  ;;  %21402 = vst [vmem:[#allocation139_spill] sm:$0xff] %v17616_v13  ;;  %v17730_v50 = vld [vmem:[#allocation2 + $0x1fa] sm:$0xff] }
 0x4a7   :  { %v17563_v0 = vpop.permute.xlu0 %10744  ;;  %11009 = vrot.lane.b32.xlu1 %v11008_v48, %s11648_s22  ;;  %v17575_v48 = vld [vmem:[#allocation2 + $0x99] sm:$0xff]  ;;  %v17621_v45 = vsel %vm3147_vm1, %v4267_v9, %v10177_v52  ;;  %v17639_v9 = vld [vmem:[#allocation2 + $0x129] sm:$0xff]  ;;  %v17643_v52 = vld [vmem:[#allocation2 + $0x171] sm:$0xff]  ;;  %21434 = vst [vmem:[#allocation171_spill] sm:$0xff] %v17730_v50 }
 0x4a8   :  { %21397 = vst [vmem:[#allocation3_spill] sm:$0xff] %v17563_v0  ;;  %v17581_v0 = vld [vmem:[#allocation2 + $0x91] sm:$0xff]  ;;  %21404 = vst [vmem:[#allocation141_spill] sm:$0xff] %v17621_v45  ;;  %v17716_v13 = vld [vmem:[#allocation2 + $0x201] sm:$0xff] }
 0x4a9   :  { %11034 = vrot.lane.b32.xlu0 %v11033_v27, %s11647_s12  ;;  %v17567_v58 = vpop.permute.xlu1 %10729  ;;  %v17579_v27 = vld [vmem:[#allocation2 + $0xe1] sm:$0xff]  ;;  %v11038_v10 = vpack.i.bf16 %v17575_v48, %v17581_v0  ;;  %21409 = vst [vmem:[#allocation146_spill] sm:$0xff] %v17639_v9  ;;  %v17659_v31 = vld [vmem:[#allocation2 + $0x16a] sm:$0xff]  ;;  %v17661_v45 = vld [vmem:[#allocation2 + $0x172] sm:$0xff]  ;;  %v10187_v48 = vunpack.i.h.bf16 %v17065_v16 }
 0x4aa   :  { %21398 = vst [vmem:[#allocation135_spill] sm:$0xff] %v17567_v58  ;;  %v17583_v58 = vld [vmem:[#allocation2 + $0xd8] sm:$0xff]  ;;  %21414 = vst [vmem:[#allocation151_spill] sm:$0xff] %v17659_v31  ;;  %v11577_v9 = vld [vmem:[#allocation2 + $0x30] sm:$0xff] }
 0x4ab   :  { %v17571_v12 = vpop.permute.xlu0 %10754  ;;  %11019 = vrot.lane.b32.xlu1 %v17310_v14, %s11649_s0  ;;  %v11063_v19 = vpack.i.bf16 %v17577_v62, %v17583_v58  ;;  %v17653_v62 = vld [vmem:[#allocation2 + $0x121] sm:$0xff]  ;;  %21415 = vst [vmem:[#allocation152_spill] sm:$0xff] %v17661_v45  ;;  %21431 = vst [vmem:[#allocation168_spill] sm:$0xff] %v17716_v13  ;;  %v17748_v31 = vld [vmem:[#allocation2 + $0x1e9] sm:$0xff] }
 0x4ac   :  { %21399 = vst [vmem:[#allocation136_spill] sm:$0xff] %v17571_v12  ;;  %v17596_v12 = vld [vmem:[#allocation2 + $0xc0] sm:$0xff]  ;;  %21411 = vst [vmem:[#allocation148_spill] sm:$0xff] %v17653_v62  ;;  %v17750_v45 = vld [vmem:[#allocation2 + $0x230] sm:$0xff] }
 0x4ad   :  { %11044 = vrot.lane.b32.xlu0 %v11043_v20, %s11648_s22  ;;  %v17592_v14 = vpop.permute.xlu1 %10739  ;;  %v17610_v20 = vld [vmem:[#allocation2 + $0xf0] sm:$0xff]  ;;  %v17708_v58 = vld [vmem:[#allocation2 + $0x180] sm:$0xff]  ;;  %21440 = vst [vmem:[#allocation177_spill] sm:$0xff] %v17748_v31  ;;  %21441 = vst [vmem:[#allocation178_spill] sm:$0xff] %v17750_v45  ;;  %v21472_v41 = vpack.i.bf16 %v17585_v18, %v17596_v12 }
 0x4ae   :  { %21400 = vst [vmem:[#allocation137_spill] sm:$0xff] %v17592_v14  ;;  %v17612_v14 = vld [vmem:[#allocation2 + $0xf1] sm:$0xff]  ;;  %21427 = vst [vmem:[#allocation164_spill] sm:$0xff] %v17708_v58  ;;  %v17732_v62 = vld [vmem:[#allocation2 + $0x202] sm:$0xff] }
 0x4af   :  { %21401 = vst [vmem:[#allocation138_spill] sm:$0xff] %v17612_v14  ;;  %v17626_v29 = vpop.permute.xlu0 %10764  ;;  %11029 = vrot.lane.b32.xlu1 %v11028_v11, %s11647_s12  ;;  %v17655_v11 = vld [vmem:[#allocation2 + $0x168] sm:$0xff]  ;;  %v10181_v14 = vunpack.i.l.bf16 %v17073_v21  ;;  %21435 = vst [vmem:[#allocation172_spill] sm:$0xff] %v17732_v62  ;;  %v17735_v21 = vsel %vm3147_vm1, %v11577_v9, %v10186_v24  ;;  %v11578_v24 = vld [vmem:[#allocation2 + $0x38] sm:$0xff]  ;;  %v10206_v62 = vunpack.i.l.bf16 %v17075_v17 }
 0x4b0   :  { %21406 = vst [vmem:[#allocation143_spill] sm:$0xff] %v17626_v29  ;;  %21412 = vst [vmem:[#allocation149_spill] sm:$0xff] %v17655_v11  ;;  %v17657_v29 = vld [vmem:[#allocation2 + $0x158] sm:$0xff]  ;;  %v17728_v11 = vld [vmem:[#allocation2 + $0x1e8] sm:$0xff] }
 0x4b1   :  { %21413 = vst [vmem:[#allocation150_spill] sm:$0xff] %v17657_v29  ;;  %11054 = vrot.lane.b32.xlu0 %v17298_v36, %s11649_s0  ;;  %v17666_v0 = vpop.permute.xlu1 %10749  ;;  %v17682_v36 = vld [vmem:[#allocation2 + $0x152] sm:$0xff]  ;;  %21433 = vst [vmem:[#allocation170_spill] sm:$0xff] %v17728_v11  ;;  %v17752_v9 = vld [vmem:[#allocation2 + $0x1e2] sm:$0xff] }
 0x4b2   :  { %21416 = vst [vmem:[#allocation153_spill] sm:$0xff] %v17666_v0  ;;  %21421 = vst [vmem:[#allocation158_spill] sm:$0xff] %v17682_v36  ;;  %v17684_v0 = vld [vmem:[#allocation2 + $0x15a] sm:$0xff]  ;;  %v17768_v29 = vld [vmem:[#allocation2 + $0x231] sm:$0xff] }
 0x4b3   :  { %21422 = vst [vmem:[#allocation159_spill] sm:$0xff] %v17684_v0  ;;  %v17701_v16 = vpop.permute.xlu0 %10774  ;;  %11039 = vrot.lane.b32.xlu1 %v11038_v10, %s11648_s22  ;;  %21436 = vst [vmem:[#allocation173_spill] sm:$0xff] %v17735_v21  ;;  %v10197_v10 = vunpack.i.h.bf16 %v17069_v63  ;;  %v17755_v63 = vsel %vm3147_vm1, %v11578_v24, %v10187_v48  ;;  %v17762_v36 = vld [vmem:[#allocation2 + $0x1e1] sm:$0xff]  ;;  %v17766_v21 = vld [vmem:[#allocation2 + $0x1ea] sm:$0xff] }
 0x4b4   :  { %21426 = vst [vmem:[#allocation163_spill] sm:$0xff] %v17701_v16  ;;  %v17726_v16 = vld [vmem:[#allocation2 + $0x1f8] sm:$0xff]  ;;  %21442 = vst [vmem:[#allocation179_spill] sm:$0xff] %v17752_v9  ;;  %v17764_v0 = vld [vmem:[#allocation2 + $0x228] sm:$0xff] }
 0x4b5   :  { %21432 = vst [vmem:[#allocation169_spill] sm:$0xff] %v17726_v16  ;;  %11064 = vrot.lane.b32.xlu0 %v11063_v19, %s11647_s12  ;;  %v17740_v8 = vpop.permute.xlu1 %10759  ;;  %21443 = vst [vmem:[#allocation180_spill] sm:$0xff] %v17755_v63  ;;  %v10192_v19 = vunpack.i.h.bf16 %v17079_v22  ;;  %v11579_v48 = vld [vmem:[#allocation2 + $0x18] sm:$0xff]  ;;  %v11580_v63 = vld [vmem:[#allocation2 + $0x20] sm:$0xff] }
 0x4b6   :  { %21437 = vst [vmem:[#allocation174_spill] sm:$0xff] %v17740_v8  ;;  %21444 = vst [vmem:[#allocation181_spill] sm:$0xff] %v17762_v36  ;;  %v17773_v24 = vsel %vm3147_vm1, %v11579_v48, %v10181_v14  ;;  %v17776_v8 = vsel %vm3147_vm1, %v11580_v63, %v10182_v49  ;;  %v17785_v58 = vld [vmem:[#allocation2 + $0x22a] sm:$0xff]  ;;  %v17789_v14 = vld [vmem:[#allocation2 + $0x219] sm:$0xff] }
 0x4b7   :  { %21445 = vst [vmem:[#allocation182_spill] sm:$0xff] %v17764_v0  ;;  %21446 = vst [vmem:[#allocation183_spill] sm:$0xff] %v17766_v21  ;;  %v17779_v42 = vpop.permute.xlu0 %10784  ;;  %11049 = vrot.lane.b32.xlu1 %v17327_v44, %s11649_s0  ;;  %v17799_v48 = vld [vmem:[#allocation2 + $0x229] sm:$0xff]  ;;  %v17805_v16 = vld [vmem:[#allocation2 + $0x212] sm:$0xff]  ;;  %v21458_v44 = vpack.i.bf16 %v17579_v27, %v17594_v37 }
 0x4b8   :  { %21447 = vst [vmem:[#allocation184_spill] sm:$0xff] %v17768_v29  ;;  %21449 = vst [vmem:[#allocation186_spill] sm:$0xff] %v17779_v42  ;;  %v17803_v42 = vld [vmem:[#allocation2 + $0x260] sm:$0xff]  ;;  %v11582_v22 = vld [vmem:[#allocation2 + $0x68] sm:$0xff] }
 0x4b9   :  { %21450 = vst [vmem:[#allocation187_spill] sm:$0xff] %v17785_v58  ;;  %21452 = vst [vmem:[#allocation189_spill] sm:$0xff] %v17789_v14  ;;  %v11581_v49 = vld [vmem:[#allocation2 + $0x60] sm:$0xff]  ;;  %v17813_v63 = vsel %vm3147_vm1, %v11582_v22, %v10197_v10  ;;  %11074 = vrot.lane.b32.xlu0 %v21458_v44, %s11648_s22  ;;  %v17819_v50 = vpop.permute.xlu1 %10769  ;;  %v17825_v11 = vld [vmem:[#allocation2 + $0x211] sm:$0xff]  ;;  %v10207_v44 = vunpack.i.h.bf16 %v17075_v17  ;;  %v10211_v14 = vunpack.i.l.bf16 %v17091_v59 }
 0x4ba   :  { %21453 = vst [vmem:[#allocation190_spill] sm:$0xff] %v17799_v48  ;;  %21455 = vst [vmem:[#allocation192_spill] sm:$0xff] %v17803_v42  ;;  %v17810_v38 = vsel %vm3147_vm1, %v11581_v49, %v10196_v51  ;;  %v17827_v51 = vld [vmem:[#allocation2 + $0x258] sm:$0xff]  ;;  %v17829_v49 = vld [vmem:[#allocation2 + $0x261] sm:$0xff] }
 0x4bb   :  { %21456 = vst [vmem:[#allocation193_spill] sm:$0xff] %v17805_v16  ;;  %21459 = vst [vmem:[#allocation195_spill] sm:$0xff] %v17819_v50  ;;  %v17831_v10 = vld [vmem:[#allocation2 + $0x248] sm:$0xff]  ;;  %v17833_v22 = vld [vmem:[#allocation2 + $0x25a] sm:$0xff]  ;;  %v17856_v17 = vpop.permute.xlu0 %10794  ;;  %11059 = vrot.lane.b32.xlu1 %v21472_v41, %s11647_s12  ;;  %v10216_v41 = vunpack.i.l.bf16 %v17081_v35 }
 0x4bc   :  { %21460 = vst [vmem:[#allocation196_spill] sm:$0xff] %v17825_v11  ;;  %21461 = vst [vmem:[#allocation197_spill] sm:$0xff] %v17827_v51  ;;  %v11583_v27 = vld [vmem:[#allocation2 + $0x50] sm:$0xff]  ;;  %v17842_v50 = vld [vmem:[#allocation2 + $0x259] sm:$0xff] }
 0x4bd   :  { %21462 = vst [vmem:[#allocation198_spill] sm:$0xff] %v17829_v49  ;;  %21463 = vst [vmem:[#allocation199_spill] sm:$0xff] %v17831_v10  ;;  %v17836_v37 = vsel %vm3147_vm1, %v11583_v27, %v10192_v19  ;;  %v17844_v0 = vld [vmem:[#allocation2 + $0x240] sm:$0xff]  ;;  %v17848_v36 = vld [vmem:[#allocation2 + $0x249] sm:$0xff]  ;;  %v17853_v19 = vsel %vm3147_vm1, %v11584_v23, %v10191_v32  ;;  %v10202_v27 = vunpack.i.h.bf16 %v17085_v60  ;;  %11084 = vrot.lane.b32.xlu0 %v17321_v30, %s11649_s0  ;;  %v17891_v25 = vpop.permute.xlu1 %10779 }
 0x4be   :  { %21464 = vst [vmem:[#allocation200_spill] sm:$0xff] %v17833_v22  ;;  %21465 = vst [vmem:[#allocation201_spill] sm:$0xff] %v17836_v37  ;;  %v17846_v45 = vld [vmem:[#allocation2 + $0x262] sm:$0xff]  ;;  %v17850_v31 = vld [vmem:[#allocation2 + $0x290] sm:$0xff]  ;;  %v10201_v37 = vunpack.i.l.bf16 %v17085_v60  ;;  %v21493_v22 = vpack.i.bf16 %v17587_v6, %v17598_v28  ;;  %v10212_v28 = vunpack.i.h.bf16 %v17091_v59 }
 0x4bf   :  { %21466 = vst [vmem:[#allocation202_spill] sm:$0xff] %v17842_v50  ;;  %21467 = vst [vmem:[#allocation203_spill] sm:$0xff] %v17844_v0  ;;  %v17866_v13 = vld [vmem:[#allocation2 + $0x241] sm:$0xff]  ;;  %v17872_v32 = vld [vmem:[#allocation2 + $0x24a] sm:$0xff] }
 0x4c0   :  { %21468 = vst [vmem:[#allocation204_spill] sm:$0xff] %v17846_v45  ;;  %21469 = vst [vmem:[#allocation205_spill] sm:$0xff] %v17848_v36  ;;  %v17870_v23 = vld [vmem:[#allocation2 + $0x242] sm:$0xff]  ;;  %v17883_v21 = vld [vmem:[#allocation2 + $0x278] sm:$0xff]  ;;  %11069 = vrot.lane.b32.xlu1 %v21493_v22, %s11648_s22 }
 0x4c1   :  { %21470 = vst [vmem:[#allocation206_spill] sm:$0xff] %v17850_v31  ;;  %21471 = vst [vmem:[#allocation207_spill] sm:$0xff] %v17856_v17  ;;  %v17874_v17 = vld [vmem:[#allocation2 + $0x291] sm:$0xff]  ;;  %v17901_v51 = vld [vmem:[#allocation2 + $0x289] sm:$0xff] }
 0x4c2   :  { %21473 = vst [vmem:[#allocation208_spill] sm:$0xff] %v17866_v13  ;;  %21475 = vst [vmem:[#allocation210_spill] sm:$0xff] %v17870_v23  ;;  %v17885_v9 = vld [vmem:[#allocation2 + $0x28a] sm:$0xff]  ;;  %v17905_v11 = vld [vmem:[#allocation2 + $0x279] sm:$0xff]  ;;  %v17936_v13 = vpop.permute.xlu0 %10804 }
 0x4c3   :  { %21476 = vst [vmem:[#allocation211_spill] sm:$0xff] %v17872_v32  ;;  %21477 = vst [vmem:[#allocation212_spill] sm:$0xff] %v17874_v17  ;;  %v17903_v42 = vld [vmem:[#allocation2 + $0x270] sm:$0xff]  ;;  %v17907_v30 = vld [vmem:[#allocation2 + $0x2c0] sm:$0xff] }
 0x4c4   :  { %21478 = vst [vmem:[#allocation213_spill] sm:$0xff] %v17883_v21  ;;  %21479 = vst [vmem:[#allocation214_spill] sm:$0xff] %v17885_v9  ;;  %v11585_v60 = vld [vmem:[#allocation2 + $0x90] sm:$0xff]  ;;  %v11586_v18 = vld [vmem:[#allocation2 + $0x98] sm:$0xff]  ;;  %11079 = vrot.lane.b32.xlu1 %v17351_v56, %s11649_s0 }
 0x4c5   :  { %21481 = vst [vmem:[#allocation216_spill] sm:$0xff] %v17891_v25  ;;  %21482 = vst [vmem:[#allocation217_spill] sm:$0xff] %v17901_v51  ;;  %v17909_v25 = vld [vmem:[#allocation2 + $0x272] sm:$0xff]  ;;  %v17912_v16 = vsel %vm3147_vm1, %v11585_v60, %v10206_v62  ;;  %v17915_v12 = vsel %vm3147_vm1, %v11586_v18, %v10207_v44  ;;  %v17925_v10 = vld [vmem:[#allocation2 + $0x27a] sm:$0xff]  ;;  %v10217_v18 = vunpack.i.h.bf16 %v17081_v35 }
 0x4c6   :  { %21483 = vst [vmem:[#allocation218_spill] sm:$0xff] %v17903_v42  ;;  %21484 = vst [vmem:[#allocation219_spill] sm:$0xff] %v17905_v11  ;;  %v17921_v45 = vld [vmem:[#allocation2 + $0x271] sm:$0xff]  ;;  %v17927_v50 = vld [vmem:[#allocation2 + $0x2c1] sm:$0xff]  ;;  %v10226_v42 = vunpack.i.l.bf16 %v17087_v2 }
 0x4c7   :  { %21485 = vst [vmem:[#allocation220_spill] sm:$0xff] %v17907_v30  ;;  %21486 = vst [vmem:[#allocation221_spill] sm:$0xff] %v17909_v25  ;;  %v17923_v0 = vld [vmem:[#allocation2 + $0x2b8] sm:$0xff]  ;;  %v17929_v62 = vld [vmem:[#allocation2 + $0x2a8] sm:$0xff] }
 0x4c8   :  { %21487 = vst [vmem:[#allocation222_spill] sm:$0xff] %v17921_v45  ;;  %21488 = vst [vmem:[#allocation223_spill] sm:$0xff] %v17923_v0  ;;  %v11587_v60 = vld [vmem:[#allocation2 + $0x80] sm:$0xff]  ;;  %v17952_v49 = vld [vmem:[#allocation2 + $0x2a9] sm:$0xff] }
 0x4c9   :  { %21489 = vst [vmem:[#allocation224_spill] sm:$0xff] %v17925_v10  ;;  %21490 = vst [vmem:[#allocation225_spill] sm:$0xff] %v17927_v50  ;;  %v17932_v44 = vsel %vm3147_vm1, %v11587_v60, %v10202_v27  ;;  %v17944_v31 = vld [vmem:[#allocation2 + $0x2b9] sm:$0xff]  ;;  %v17950_v60 = vld [vmem:[#allocation2 + $0x2c2] sm:$0xff]  ;;  %v10227_v50 = vunpack.i.h.bf16 %v17087_v2  ;;  %v21523_v2 = vpack.i.bf16 %v17602_v33, %v17608_v61  ;;  %v21531_v33 = vpack.i.bf16 %v17604_v55, %v17610_v20 }
 0x4ca   :  { %21491 = vst [vmem:[#allocation226_spill] sm:$0xff] %v17929_v62  ;;  %21492 = vst [vmem:[#allocation227_spill] sm:$0xff] %v17936_v13  ;;  %v17946_v36 = vld [vmem:[#allocation2 + $0x2a0] sm:$0xff]  ;;  %v11588_v35 = vld [vmem:[#allocation2 + $0x78] sm:$0xff]  ;;  %v10246_v20 = vunpack.i.l.bf16 %v17099_v34 }
 0x4cb   :  { %21494 = vst [vmem:[#allocation228_spill] sm:$0xff] %v17944_v31  ;;  %21495 = vst [vmem:[#allocation229_spill] sm:$0xff] %v17946_v36  ;;  %v17948_v27 = vld [vmem:[#allocation2 + $0x2ba] sm:$0xff]  ;;  %v17955_v13 = vsel %vm3147_vm1, %v11588_v35, %v10201_v37  ;;  %v17964_v23 = vld [vmem:[#allocation2 + $0x2f0] sm:$0xff]  ;;  %v21503_v37 = vpack.i.bf16 %v17589_v5, %v17600_v26  ;;  %v17975_v35 = vpop.permute.xlu1 %10789  ;;  %11089 = vrot.lane.b32.xlu1 %v21531_v33, %s11647_s12  ;;  %v10237_v33 = vunpack.i.h.bf16 %v17093_v57 }
 0x4cc   :  { %21496 = vst [vmem:[#allocation230_spill] sm:$0xff] %v17948_v27  ;;  %21497 = vst [vmem:[#allocation231_spill] sm:$0xff] %v17950_v60  ;;  %v17966_v32 = vld [vmem:[#allocation2 + $0x2a2] sm:$0xff]  ;;  %v17985_v51 = vld [vmem:[#allocation2 + $0x2f1] sm:$0xff]  ;;  %v18016_v27 = vpop.permute.xlu0 %10814  ;;  %v10232_v60 = vunpack.i.h.bf16 %v17103_v40 }
 0x4cd   :  { %21498 = vst [vmem:[#allocation232_spill] sm:$0xff] %v17952_v49  ;;  %21500 = vst [vmem:[#allocation234_spill] sm:$0xff] %v17964_v23  ;;  %11094 = vrot.lane.b32.xlu0 %v21503_v37, %s11647_s12  ;;  %v17983_v21 = vld [vmem:[#allocation2 + $0x2e8] sm:$0xff]  ;;  %v17987_v59 = vld [vmem:[#allocation2 + $0x2d8] sm:$0xff] }
 0x4ce   :  { %21501 = vst [vmem:[#allocation235_spill] sm:$0xff] %v17966_v32  ;;  %21504 = vst [vmem:[#allocation237_spill] sm:$0xff] %v17975_v35  ;;  %v17989_v17 = vld [vmem:[#allocation2 + $0x2ea] sm:$0xff]  ;;  %v18003_v35 = vld [vmem:[#allocation2 + $0x2f2] sm:$0xff] }
 0x4cf   :  { %21505 = vst [vmem:[#allocation238_spill] sm:$0xff] %v17983_v21  ;;  %21506 = vst [vmem:[#allocation239_spill] sm:$0xff] %v17985_v51  ;;  %v17999_v6 = vld [vmem:[#allocation2 + $0x2e9] sm:$0xff]  ;;  %v18005_v0 = vld [vmem:[#allocation2 + $0x2d9] sm:$0xff] }
 0x4d0   :  { %21507 = vst [vmem:[#allocation240_spill] sm:$0xff] %v17987_v59  ;;  %21508 = vst [vmem:[#allocation241_spill] sm:$0xff] %v17989_v17  ;;  %v18001_v22 = vld [vmem:[#allocation2 + $0x2d0] sm:$0xff]  ;;  %v18007_v30 = vld [vmem:[#allocation2 + $0x320] sm:$0xff]  ;;  %v18083_v61 = vpop.permute.xlu0 %10824 }
 0x4d1   :  { %21509 = vst [vmem:[#allocation242_spill] sm:$0xff] %v17999_v6  ;;  %21510 = vst [vmem:[#allocation243_spill] sm:$0xff] %v18001_v22  ;;  %v11589_v26 = vld [vmem:[#allocation2 + $0xc0] sm:$0xff]  ;;  %v11590_v5 = vld [vmem:[#allocation2 + $0xc8] sm:$0xff]  ;;  %11104 = vrot.lane.b32.xlu0 %v21523_v2, %s11648_s22  ;;  %v10236_v2 = vunpack.i.l.bf16 %v17093_v57 }
 0x4d2   :  { %21511 = vst [vmem:[#allocation244_spill] sm:$0xff] %v18003_v35  ;;  %21512 = vst [vmem:[#allocation245_spill] sm:$0xff] %v18005_v0  ;;  %v18010_v25 = vsel %vm3147_vm1, %v11589_v26, %v10216_v41  ;;  %v18013_v37 = vsel %vm3147_vm1, %v11590_v5, %v10217_v18  ;;  %v18022_v36 = vld [vmem:[#allocation2 + $0x2d1] sm:$0xff]  ;;  %v18028_v26 = vld [vmem:[#allocation2 + $0x2da] sm:$0xff]  ;;  %v10222_v35 = vunpack.i.h.bf16 %v17097_v47 }
 0x4d3   :  { %21513 = vst [vmem:[#allocation246_spill] sm:$0xff] %v18007_v30  ;;  %21514 = vst [vmem:[#allocation247_spill] sm:$0xff] %v18016_v27  ;;  %v18024_v62 = vld [vmem:[#allocation2 + $0x318] sm:$0xff]  ;;  %v18030_v18 = vld [vmem:[#allocation2 + $0x321] sm:$0xff] }
 0x4d4   :  { %21515 = vst [vmem:[#allocation248_spill] sm:$0xff] %v18022_v36  ;;  %21516 = vst [vmem:[#allocation249_spill] sm:$0xff] %v18024_v62  ;;  %v18026_v41 = vld [vmem:[#allocation2 + $0x2d2] sm:$0xff]  ;;  %v18042_v49 = vld [vmem:[#allocation2 + $0x31a] sm:$0xff] }
 0x4d5   :  { %21517 = vst [vmem:[#allocation250_spill] sm:$0xff] %v18026_v41  ;;  %21518 = vst [vmem:[#allocation251_spill] sm:$0xff] %v18028_v26  ;;  %v11591_v5 = vld [vmem:[#allocation2 + $0xb0] sm:$0xff]  ;;  %v18044_v10 = vld [vmem:[#allocation2 + $0x322] sm:$0xff]  ;;  %v10221_v26 = vunpack.i.l.bf16 %v17097_v47  ;;  %11114 = vrot.lane.b32.xlu0 %v17333_v15, %s11649_s0  ;;  %v10241_v15 = vunpack.i.l.bf16 %v17109_v39 }
 0x4d6   :  { %21519 = vst [vmem:[#allocation252_spill] sm:$0xff] %v18030_v18  ;;  %v18033_v31 = vsel %vm3147_vm1, %v11591_v5, %v10212_v28  ;;  %21521 = vst [vmem:[#allocation254_spill] sm:$0xff] %v18042_v49  ;;  %v11592_v45 = vld [vmem:[#allocation2 + $0xa8] sm:$0xff]  ;;  %v18053_v28 = vpop.permute.xlu1 %10799  ;;  %v18061_v32 = vld [vmem:[#allocation2 + $0x319] sm:$0xff]  ;;  %v10231_v49 = vunpack.i.l.bf16 %v17103_v40 }
 0x4d7   :  { %21522 = vst [vmem:[#allocation255_spill] sm:$0xff] %v18044_v10  ;;  %v18047_v11 = vsel %vm3147_vm1, %v11592_v45, %v10211_v14  ;;  %21524 = vst [vmem:[#allocation256_spill] sm:$0xff] %v18053_v28  ;;  %v18063_v45 = vld [vmem:[#allocation2 + $0x309] sm:$0xff]  ;;  %v18065_v14 = vld [vmem:[#allocation2 + $0x338] sm:$0xff]  ;;  %v18128_v10 = vpop.permute.xlu0 %10834 }
 0x4d8   :  { %21525 = vst [vmem:[#allocation257_spill] sm:$0xff] %v18061_v32  ;;  %21526 = vst [vmem:[#allocation258_spill] sm:$0xff] %v18063_v45  ;;  %v18075_v5 = vld [vmem:[#allocation2 + $0x300] sm:$0xff]  ;;  %v11593_v28 = vld [vmem:[#allocation2 + $0xf0] sm:$0xff]  ;;  %v10256_v45 = vunpack.i.l.bf16 %v17105_v4 }
 0x4d9   :  { %21527 = vst [vmem:[#allocation259_spill] sm:$0xff] %v18065_v14  ;;  %21528 = vst [vmem:[#allocation260_spill] sm:$0xff] %v18075_v5  ;;  %v18077_v56 = vld [vmem:[#allocation2 + $0x301] sm:$0xff]  ;;  %v18080_v17 = vsel %vm3147_vm1, %v11593_v28, %v10226_v42  ;;  %v18093_v32 = vld [vmem:[#allocation2 + $0x330] sm:$0xff] }
 0x4da   :  { %21529 = vst [vmem:[#allocation261_spill] sm:$0xff] %v18077_v56  ;;  %21530 = vst [vmem:[#allocation262_spill] sm:$0xff] %v18083_v61  ;;  %v18095_v18 = vld [vmem:[#allocation2 + $0x302] sm:$0xff]  ;;  %v18097_v42 = vld [vmem:[#allocation2 + $0x30a] sm:$0xff]  ;;  %v10247_v56 = vunpack.i.h.bf16 %v17099_v34 }
 0x4db   :  { %21532 = vst [vmem:[#allocation263_spill] sm:$0xff] %v18093_v32  ;;  %21533 = vst [vmem:[#allocation264_spill] sm:$0xff] %v18095_v18  ;;  %v11594_v28 = vld [vmem:[#allocation2 + $0xf8] sm:$0xff]  ;;  %v10242_v32 = vunpack.i.h.bf16 %v17109_v39  ;;  %v11595_v14 = vld [vmem:[#allocation2 + $0xe0] sm:$0xff] }
 0x4dc   :  { %21534 = vst [vmem:[#allocation265_spill] sm:$0xff] %v18097_v42  ;;  %v18100_v41 = vsel %vm3147_vm1, %v11594_v28, %v10227_v50  ;;  %v18113_v50 = vpop.permute.xlu1 %10809  ;;  %v18115_v47 = vld [vmem:[#allocation2 + $0x339] sm:$0xff]  ;;  %v18123_v40 = vsel %vm3147_vm1, %v11595_v14, %v10222_v35  ;;  %21537 = vst [vmem:[#allocation268_spill] sm:$0xff] %v18128_v10  ;;  %v4298_v39 = vld [vmem:[#allocation2 + $0x1b0] sm:$0xff] }
 0x4dd   :  { %21535 = vst [vmem:[#allocation266_spill] sm:$0xff] %v18113_v50  ;;  %21536 = vst [vmem:[#allocation267_spill] sm:$0xff] %v18115_v47  ;;  %v4648_v28 = vld [vmem:[#allocation2 + $0x332] sm:$0xff]  ;;  %v4649_v55 = vld [vmem:[#allocation2 + $0x33a] sm:$0xff]  ;;  %v10257_v50 = vunpack.i.h.bf16 %v17105_v4 }
 0x4de   :  { %v21538_v34 = vld [vmem:[#allocation138_spill] sm:$0xff]  ;;  %v18142_v62 = vpack.i.bf16 %v4649_v55, %v4648_v28  ;;  %v11597_v30 = vld [vmem:[#allocation2 + $0x120] sm:$0xff]  ;;  %v21543_v55 = vpack.i.bf16 %v17614_v3, %v17633_v1  ;;  %v21552_v47 = vld [vmem:[#allocation144_spill] sm:$0xff] }
 0x4df   :  { %v21539_v5 = vpack.i.bf16 %v17606_v46, %v21538_v34  ;;  %21540 = vst [vmem:[#allocation138_spill] sm:$0xff] %v18134_v43  ;;  %v11596_v57 = vld [vmem:[#allocation2 + $0xd8] sm:$0xff]  ;;  %v18145_v36 = vsel %vm3147_vm1, %v11597_v30, %v10236_v2  ;;  %v11598_v46 = vld [vmem:[#allocation2 + $0x128] sm:$0xff]  ;;  %v11599_v34 = vld [vmem:[#allocation2 + $0x110] sm:$0xff] }
 0x4e0   :  { %v18137_v18 = vsel %vm3147_vm1, %v11596_v57, %v10221_v26  ;;  %v21541_v35 = vld [vmem:[#allocation62_spill] sm:$0xff]  ;;  %v18151_v26 = vsel %vm3147_vm1, %v11599_v34, %v10232_v60  ;;  %v11600_v57 = vld [vmem:[#allocation2 + $0x108] sm:$0xff]  ;;  %11124 = vrot.lane.b32.xlu0 %v21543_v55, %s11647_s12  ;;  %v18160_v28 = vpop.permute.xlu1 %10819  ;;  %v11601_v30 = vld [vmem:[#allocation2 + $0x150] sm:$0xff] }
 0x4e1   :  { %11099 = vrot.lane.b32.xlu1 %v21539_v5, %s11648_s22  ;;  %v10252_v14 = vunpack.i.h.bf16 %v21541_v35  ;;  %v4299_v42 = vld [vmem:[#allocation2 + $0x1b8] sm:$0xff]  ;;  %21542 = vst [vmem:[#allocation62_spill] sm:$0xff] %v18142_v62  ;;  %v18148_v5 = vsel %vm3147_vm1, %v11598_v46, %v10237_v33  ;;  %v18154_v0 = vsel %vm3147_vm1, %v11600_v57, %v10231_v49  ;;  %21544 = vst [vmem:[#allocation269_spill] sm:$0xff] %v18160_v28  ;;  %v11603_v60 = vld [vmem:[#allocation2 + $0x140] sm:$0xff]  ;;  %v10251_v49 = vunpack.i.l.bf16 %v21541_v35 }
 0x4e2   :  { %v18163_v2 = vsel %vm3147_vm1, %v11601_v30, %v10246_v20  ;;  %v11602_v33 = vld [vmem:[#allocation2 + $0x158] sm:$0xff]  ;;  %v18169_v34 = vsel %vm3147_vm1, %v11603_v60, %v10242_v32  ;;  %v18176_v3 = vsel %vm3147_vm1, %v4299_v42, %v10257_v50  ;;  %v18179_v20 = vsel %vm3147_vm1, %v4298_v39, %v10256_v45  ;;  %v21545_v55 = vld [vmem:[#allocation60_spill] sm:$0xff]  ;;  %v11605_v32 = vld [vmem:[#allocation2 + $0x170] sm:$0xff] }
 0x4e3   :  { %v18166_v46 = vsel %vm3147_vm1, %v11602_v33, %v10247_v56  ;;  %v11604_v57 = vld [vmem:[#allocation2 + $0x138] sm:$0xff]  ;;  %v10266_v30 = vunpack.i.l.bf16 %v21545_v55  ;;  %v18182_v56 = vpop.permute.xlu0 %10844  ;;  %v18187_v35 = vsel %vm3147_vm1, %v11605_v32, %v10252_v14  ;;  %v21549_v50 = vld [vmem:[#allocation133_spill] sm:$0xff]  ;;  %v21550_v4 = vld [vmem:[#allocation107_spill] sm:$0xff] }
 0x4e4   :  { %v18173_v1 = vsel %vm3147_vm1, %v11604_v57, %v10241_v15  ;;  %21546 = vst [vmem:[#allocation60_spill] sm:$0xff] %v18182_v56  ;;  %v21547_v33 = vld [vmem:[#allocation22_spill] sm:$0xff]  ;;  %v10267_v15 = vunpack.i.h.bf16 %v21545_v55  ;;  %v10277_v45 = vunpack.i.h.bf16 %v21549_v50  ;;  %v10276_v39 = vunpack.i.l.bf16 %v21549_v50  ;;  %v18200_v14 = vpop.permute.xlu1 %10829  ;;  %v11606_v55 = vld [vmem:[#allocation2 + $0x168] sm:$0xff]  ;;  %v21556_v50 = vld [vmem:[#allocation7_spill] sm:$0xff] }
 0x4e5   :  { %11109 = vrot.lane.b32.xlu1 %v21547_v33, %s11649_s0  ;;  %v21548_v60 = vld [vmem:[#allocation134_spill] sm:$0xff]  ;;  %v10272_v62 = vunpack.i.h.bf16 %v21550_v4  ;;  %v10271_v43 = vunpack.i.l.bf16 %v21550_v4  ;;  %v21551_v33 = vld [vmem:[#allocation139_spill] sm:$0xff]  ;;  %21554 = vst [vmem:[#allocation22_spill] sm:$0xff] %v18200_v14  ;;  %v18203_v32 = vsel %vm3147_vm1, %v11606_v55, %v10251_v49  ;;  %v10282_v51 = vunpack.i.h.bf16 %v21556_v50  ;;  %v21559_v49 = vld [vmem:[#allocation140_spill] sm:$0xff] }
 0x4e6   :  { %v10262_v57 = vunpack.i.h.bf16 %v21548_v60  ;;  %v10261_v42 = vunpack.i.l.bf16 %v21548_v60  ;;  %v21553_v22 = vpack.i.bf16 %v21551_v33, %v21552_v47  ;;  %v21555_v60 = vld [vmem:[#allocation61_spill] sm:$0xff]  ;;  %v11607_v56 = vld [vmem:[#allocation2 + $0x1e0] sm:$0xff]  ;;  %v10281_v53 = vunpack.i.l.bf16 %v21556_v50 }
 0x4e7   :  { %v10287_v59 = vunpack.i.h.bf16 %v21555_v60  ;;  %v10286_v6 = vunpack.i.l.bf16 %v21555_v60  ;;  %v18209_v4 = vsel %vm3147_vm1, %v11607_v56, %v10266_v30  ;;  %v21557_v47 = vld [vmem:[#allocation129_spill] sm:$0xff]  ;;  %v18214_v21 = vpop.permute.xlu0 %10854  ;;  %v11608_v60 = vld [vmem:[#allocation2 + $0x1e8] sm:$0xff]  ;;  %v11621_v27 = vld [vmem:[#allocation2 + $0x260] sm:$0xff] }
 0x4e8   :  { %11134 = vrot.lane.b32.xlu0 %v21553_v22, %s11648_s22  ;;  %v10297_v22 = vunpack.i.h.bf16 %v21557_v47  ;;  %v10296_v33 = vunpack.i.l.bf16 %v21557_v47  ;;  %21558 = vst [vmem:[#allocation134_spill] sm:$0xff] %v18214_v21  ;;  %v21560_v55 = vld [vmem:[#allocation145_spill] sm:$0xff]  ;;  %v18221_v10 = vsel %vm3147_vm1, %v11608_v60, %v10267_v15  ;;  %v11610_v56 = vld [vmem:[#allocation2 + $0x1c8] sm:$0xff]  ;;  %v11613_v15 = vld [vmem:[#allocation2 + $0x200] sm:$0xff]  ;;  %v18244_v60 = vpop.permute.xlu1 %10839 }
 0x4e9   :  { %v21561_v23 = vpack.i.bf16 %v21559_v49, %v21560_v55  ;;  %v11609_v9 = vld [vmem:[#allocation2 + $0x1d0] sm:$0xff]  ;;  %v18227_v50 = vsel %vm3147_vm1, %v11610_v56, %v10261_v42  ;;  %v11612_v49 = vld [vmem:[#allocation2 + $0x218] sm:$0xff]  ;;  %v18237_v55 = vsel %vm3147_vm1, %v11613_v15, %v10272_v62  ;;  %21565 = vst [vmem:[#allocation107_spill] sm:$0xff] %v18244_v60  ;;  %v11615_v56 = vld [vmem:[#allocation2 + $0x240] sm:$0xff] }
 0x4ea   :  { %v18224_v30 = vsel %vm3147_vm1, %v11609_v9, %v10262_v57  ;;  %v21562_v47 = vld [vmem:[#allocation5_spill] sm:$0xff]  ;;  %21563 = vst [vmem:[#allocation133_spill] sm:$0xff] %v18237_v55  ;;  %v11614_v9 = vld [vmem:[#allocation2 + $0x1f8] sm:$0xff]  ;;  %v11618_v15 = vld [vmem:[#allocation2 + $0x228] sm:$0xff] }
 0x4eb   :  { %11119 = vrot.lane.b32.xlu1 %v21561_v23, %s11647_s12  ;;  %v10292_v54 = vunpack.i.h.bf16 %v21562_v47  ;;  %v11611_v21 = vld [vmem:[#allocation2 + $0x210] sm:$0xff]  ;;  %v18234_v23 = vsel %vm3147_vm1, %v11612_v49, %v10277_v45  ;;  %v18240_v57 = vsel %vm3147_vm1, %v11614_v9, %v10271_v43  ;;  %v21564_v42 = vld [vmem:[#allocation86_spill] sm:$0xff]  ;;  %v10291_v43 = vunpack.i.l.bf16 %v21562_v47  ;;  %v18266_v14 = vpop.permute.xlu0 %10864 }
 0x4ec   :  { %v18231_v61 = vsel %vm3147_vm1, %v11611_v21, %v10276_v39  ;;  %11144 = vrot.lane.b32.xlu0 %v21564_v42, %s11649_s0  ;;  %v18247_v21 = vsel %vm3147_vm1, %v11615_v56, %v10286_v6  ;;  %v11616_v39 = vld [vmem:[#allocation2 + $0x248] sm:$0xff]  ;;  %v11617_v49 = vld [vmem:[#allocation2 + $0x230] sm:$0xff]  ;;  %v18257_v9 = vsel %vm3147_vm1, %v11618_v15, %v10281_v53  ;;  %v11620_v6 = vld [vmem:[#allocation2 + $0x278] sm:$0xff]  ;;  %21571 = vst [vmem:[#allocation129_spill] sm:$0xff] %v18266_v14 }
 0x4ed   :  { %v18250_v45 = vsel %vm3147_vm1, %v11616_v39, %v10287_v59  ;;  %v18253_v62 = vsel %vm3147_vm1, %v11617_v49, %v10282_v51  ;;  %21567 = vst [vmem:[#allocation144_spill] sm:$0xff] %v18257_v9  ;;  %v11619_v42 = vld [vmem:[#allocation2 + $0x270] sm:$0xff]  ;;  %v18263_v56 = vsel %vm3147_vm1, %v11620_v6, %v10297_v22  ;;  %v21570_v59 = vld [vmem:[#allocation63_spill] sm:$0xff]  ;;  %v21572_v51 = vld [vmem:[#allocation146_spill] sm:$0xff]  ;;  %v18273_v53 = vsel %vm3147_vm1, %v11621_v27, %v10292_v54  ;;  %v18286_v54 = vpop.permute.xlu1 %10849 }
 0x4ee   :  { %21566 = vst [vmem:[#allocation139_spill] sm:$0xff] %v18253_v62  ;;  %v18260_v60 = vsel %vm3147_vm1, %v11619_v42, %v10296_v33  ;;  %21569 = vst [vmem:[#allocation7_spill] sm:$0xff] %v18263_v56  ;;  %v10306_v39 = vunpack.i.l.bf16 %v21570_v59  ;;  %v21573_v49 = vld [vmem:[#allocation148_spill] sm:$0xff]  ;;  %v10307_v33 = vunpack.i.h.bf16 %v21570_v59  ;;  %v21576_v15 = vld [vmem:[#allocation113_spill] sm:$0xff] }
 0x4ef   :  { %21568 = vst [vmem:[#allocation61_spill] sm:$0xff] %v18260_v60  ;;  %v21574_v47 = vpack.i.bf16 %v21572_v51, %v21573_v49  ;;  %21575 = vst [vmem:[#allocation140_spill] sm:$0xff] %v18273_v53  ;;  %v10302_v42 = vunpack.i.h.bf16 %v21576_v15  ;;  %v10301_v22 = vunpack.i.l.bf16 %v21576_v15  ;;  %v21577_v6 = vld [vmem:[#allocation112_spill] sm:$0xff]  ;;  %v21579_v51 = vld [vmem:[#allocation147_spill] sm:$0xff] }
 0x4f0   :  { %v10317_v28 = vunpack.i.h.bf16 %v21577_v6  ;;  %v10316_v58 = vunpack.i.l.bf16 %v21577_v6  ;;  %v21578_v14 = vld [vmem:[#allocation116_spill] sm:$0xff]  ;;  %v21580_v49 = vld [vmem:[#allocation149_spill] sm:$0xff]  ;;  %21582 = vst [vmem:[#allocation145_spill] sm:$0xff] %v18286_v54  ;;  %v11622_v27 = vld [vmem:[#allocation2 + $0x258] sm:$0xff]  ;;  %v18300_v54 = vpop.permute.xlu0 %10874 }
 0x4f1   :  { %11129 = vrot.lane.b32.xlu1 %v21574_v47, %s11648_s22  ;;  %v10312_v7 = vunpack.i.h.bf16 %v21578_v14  ;;  %v10311_v48 = vunpack.i.l.bf16 %v21578_v14  ;;  %v21581_v47 = vpack.i.bf16 %v21579_v51, %v21580_v49  ;;  %v18289_v59 = vsel %vm3147_vm1, %v11622_v27, %v10291_v43  ;;  %v21584_v15 = vld [vmem:[#allocation9_spill] sm:$0xff]  ;;  %v21585_v6 = vld [vmem:[#allocation115_spill] sm:$0xff]  ;;  %21588 = vst [vmem:[#allocation63_spill] sm:$0xff] %v18300_v54  ;;  %v11624_v27 = vld [vmem:[#allocation2 + $0x2a8] sm:$0xff] }
 0x4f2   :  { %21583 = vst [vmem:[#allocation5_spill] sm:$0xff] %v18289_v59  ;;  %v10327_v29 = vunpack.i.h.bf16 %v21584_v15  ;;  %v10326_v53 = vunpack.i.l.bf16 %v21584_v15  ;;  %v10322_v62 = vunpack.i.h.bf16 %v21585_v6  ;;  %v11623_v9 = vld [vmem:[#allocation2 + $0x2a0] sm:$0xff]  ;;  %v10321_v60 = vunpack.i.l.bf16 %v21585_v6  ;;  %v21587_v51 = vld [vmem:[#allocation93_spill] sm:$0xff]  ;;  %v21592_v6 = vld [vmem:[#allocation6_spill] sm:$0xff] }
 0x4f3   :  { %11154 = vrot.lane.b32.xlu0 %v21581_v47, %s11647_s12  ;;  %v18295_v14 = vsel %vm3147_vm1, %v11623_v9, %v10306_v39  ;;  %v10337_v49 = vunpack.i.h.bf16 %v21587_v51  ;;  %v10336_v47 = vunpack.i.l.bf16 %v21587_v51  ;;  %v21589_v43 = vld [vmem:[#allocation89_spill] sm:$0xff]  ;;  %v18305_v15 = vsel %vm3147_vm1, %v11624_v27, %v10307_v33  ;;  %v11626_v9 = vld [vmem:[#allocation2 + $0x288] sm:$0xff]  ;;  %v11628_v55 = vld [vmem:[#allocation2 + $0x2d8] sm:$0xff] }
 0x4f4   :  { %21586 = vst [vmem:[#allocation86_spill] sm:$0xff] %v18295_v14  ;;  %v11625_v59 = vld [vmem:[#allocation2 + $0x290] sm:$0xff]  ;;  %v18311_v39 = vsel %vm3147_vm1, %v11626_v9, %v10301_v22  ;;  %v10347_v14 = vunpack.i.h.bf16 %v21592_v6  ;;  %v11629_v33 = vld [vmem:[#allocation2 + $0x2c0] sm:$0xff]  ;;  %v21597_v22 = vld [vmem:[#allocation154_spill] sm:$0xff] }
 0x4f5   :  { %11139 = vrot.lane.b32.xlu1 %v21589_v43, %s11649_s0  ;;  %v18308_v56 = vsel %vm3147_vm1, %v11625_v59, %v10302_v42  ;;  %21591 = vst [vmem:[#allocation148_spill] sm:$0xff] %v18311_v39  ;;  %v11627_v51 = vld [vmem:[#allocation2 + $0x2d0] sm:$0xff]  ;;  %v18318_v43 = vsel %vm3147_vm1, %v11628_v55, %v10317_v28  ;;  %v18321_v27 = vsel %vm3147_vm1, %v11629_v33, %v10312_v7  ;;  %v11630_v42 = vld [vmem:[#allocation2 + $0x2b8] sm:$0xff]  ;;  %v11632_v28 = vld [vmem:[#allocation2 + $0x308] sm:$0xff] }
 0x4f6   :  { %21590 = vst [vmem:[#allocation146_spill] sm:$0xff] %v18308_v56  ;;  %v18315_v54 = vsel %vm3147_vm1, %v11627_v51, %v10316_v58  ;;  %21594 = vst [vmem:[#allocation112_spill] sm:$0xff] %v18318_v43  ;;  %v18324_v59 = vsel %vm3147_vm1, %v11630_v42, %v10311_v48  ;;  %v21598_v9 = vpack.i.bf16 %v17643_v52, %v21597_v22  ;;  %v18330_v56 = vpop.permute.xlu1 %10859  ;;  %v11631_v58 = vld [vmem:[#allocation2 + $0x300] sm:$0xff]  ;;  %v11633_v7 = vld [vmem:[#allocation2 + $0x2f0] sm:$0xff]  ;;  %v10346_v48 = vunpack.i.l.bf16 %v21592_v6 }
 0x4f7   :  { %21593 = vst [vmem:[#allocation113_spill] sm:$0xff] %v18315_v54  ;;  %21595 = vst [vmem:[#allocation116_spill] sm:$0xff] %v18321_v27  ;;  %v18333_v51 = vsel %vm3147_vm1, %v11631_v58, %v10326_v53  ;;  %v18336_v55 = vsel %vm3147_vm1, %v11632_v28, %v10327_v29  ;;  %v18339_v33 = vsel %vm3147_vm1, %v11633_v7, %v10322_v62  ;;  %v4681_v42 = vld [vmem:[#allocation2 + $0x198] sm:$0xff]  ;;  %v4682_v27 = vld [vmem:[#allocation2 + $0x1a0] sm:$0xff]  ;;  %v18354_v62 = vpop.permute.xlu0 %10884 }
 0x4f8   :  { %21596 = vst [vmem:[#allocation147_spill] sm:$0xff] %v18324_v59  ;;  %11164 = vrot.lane.b32.xlu0 %v21598_v9, %s11648_s22  ;;  %21599 = vst [vmem:[#allocation149_spill] sm:$0xff] %v18330_v56  ;;  %v11634_v52 = vld [vmem:[#allocation2 + $0x2e8] sm:$0xff]  ;;  %v21604_v9 = vld [vmem:[#allocation141_spill] sm:$0xff] }
 0x4f9   :  { %21600 = vst [vmem:[#allocation9_spill] sm:$0xff] %v18333_v51  ;;  %21601 = vst [vmem:[#allocation115_spill] sm:$0xff] %v18336_v55  ;;  %v18343_v22 = vsel %vm3147_vm1, %v11634_v52, %v10321_v60  ;;  %v18347_v53 = vsel %vm3277_vm4, %v21604_v9, %v10337_v49  ;;  %v21606_v58 = vld [vmem:[#allocation142_spill] sm:$0xff]  ;;  %v21608_v28 = vld [vmem:[#allocation96_spill] sm:$0xff] }
 0x4fa   :  { %21602 = vst [vmem:[#allocation93_spill] sm:$0xff] %v18339_v33  ;;  %21603 = vst [vmem:[#allocation89_spill] sm:$0xff] %v18343_v22  ;;  %v18351_v29 = vsel %vm3277_vm4, %v21606_v58, %v10336_v47  ;;  %v10357_v56 = vunpack.i.h.bf16 %v21608_v28  ;;  %v21610_v6 = vld [vmem:[#allocation150_spill] sm:$0xff]  ;;  %v21611_v7 = vld [vmem:[#allocation155_spill] sm:$0xff]  ;;  %v10356_v49 = vunpack.i.l.bf16 %v21608_v28 }
 0x4fb   :  { %21605 = vst [vmem:[#allocation6_spill] sm:$0xff] %v18347_v53  ;;  %21607 = vst [vmem:[#allocation154_spill] sm:$0xff] %v18351_v29  ;;  %v21612_v33 = vpack.i.bf16 %v21610_v6, %v21611_v7  ;;  %v21613_v59 = vld [vmem:[#allocation180_spill] sm:$0xff]  ;;  %v21615_v52 = vld [vmem:[#allocation10_spill] sm:$0xff]  ;;  %v18374_v7 = vpop.permute.xlu1 %10869 }
 0x4fc   :  { %21609 = vst [vmem:[#allocation141_spill] sm:$0xff] %v18354_v62  ;;  %v18362_v60 = vsel %vm3277_vm4, %v21613_v59, %v10347_v14  ;;  %v10342_v9 = vunpack.i.h.bf16 %v21615_v52  ;;  %v10341_v47 = vunpack.i.l.bf16 %v21615_v52  ;;  %v21616_v58 = vld [vmem:[#allocation11_spill] sm:$0xff]  ;;  %v21617_v62 = vld [vmem:[#allocation97_spill] sm:$0xff]  ;;  %v21618_v55 = vld [vmem:[#allocation152_spill] sm:$0xff]  ;;  %v11183_v14 = vpack.i.bf16 %v4682_v27, %v4681_v42 }
 0x4fd   :  { %11149 = vrot.lane.b32.xlu1 %v21612_v33, %s11647_s12  ;;  %21614 = vst [vmem:[#allocation142_spill] sm:$0xff] %v18362_v60  ;;  %v10367_v22 = vunpack.i.h.bf16 %v21616_v58  ;;  %v10366_v29 = vunpack.i.l.bf16 %v21616_v58  ;;  %v10351_v53 = vunpack.i.l.bf16 %v21617_v62  ;;  %v21619_v6 = vld [vmem:[#allocation151_spill] sm:$0xff]  ;;  %21621 = vst [vmem:[#allocation96_spill] sm:$0xff] %v18374_v7  ;;  %v21622_v59 = vld [vmem:[#allocation173_spill] sm:$0xff]  ;;  %v10352_v52 = vunpack.i.h.bf16 %v21617_v62 }
 0x4fe   :  { %v21620_v33 = vpack.i.bf16 %v21618_v55, %v21619_v6  ;;  %v18378_v28 = vsel %vm3277_vm4, %v21622_v59, %v10346_v48  ;;  %v21623_v60 = vld [vmem:[#allocation114_spill] sm:$0xff]  ;;  %v4746_v54 = vld [vmem:[#allocation2 + $0x1a1] sm:$0xff]  ;;  %v18385_v43 = vsel %vm3277_vm4, %v17813_v63, %v10357_v56  ;;  %v21625_v42 = vld [vmem:[#allocation65_spill] sm:$0xff]  ;;  %v18390_v48 = vpop.permute.xlu0 %10894  ;;  %v18402_v63 = vsel %vm3277_vm4, %v17773_v24, %v10341_v47 }
 0x4ff   :  { %v10377_v51 = vunpack.i.h.bf16 %v21623_v60  ;;  %v10376_v58 = vunpack.i.l.bf16 %v21623_v60  ;;  %v4745_v39 = vld [vmem:[#allocation2 + $0x199] sm:$0xff]  ;;  %v21624_v55 = vld [vmem:[#allocation12_spill] sm:$0xff]  ;;  %21626 = vst [vmem:[#allocation150_spill] sm:$0xff] %v18390_v48  ;;  %v21627_v62 = vld [vmem:[#allocation157_spill] sm:$0xff]  ;;  %v18398_v60 = vsel %vm3277_vm4, %v17810_v38, %v10356_v49  ;;  %v18406_v56 = vsel %vm3277_vm4, %v17776_v8, %v10342_v9  ;;  %v18422_v24 = vpop.permute.xlu1 %10879 }
 0x500   :  { %11174 = vrot.lane.b32.xlu0 %v21620_v33, %s11649_s0  ;;  %v10362_v6 = vunpack.i.h.bf16 %v21624_v55  ;;  %v10361_v27 = vunpack.i.l.bf16 %v21624_v55  ;;  %v10387_v33 = vunpack.i.h.bf16 %v21625_v42  ;;  %v21628_v59 = vld [vmem:[#allocation156_spill] sm:$0xff]  ;;  %v10386_v55 = vunpack.i.l.bf16 %v21625_v42  ;;  %21630 = vst [vmem:[#allocation155_spill] sm:$0xff] %v18422_v24  ;;  %v21631_v49 = vld [vmem:[#allocation201_spill] sm:$0xff] }
 0x501   :  { %v21629_v7 = vpack.i.bf16 %v21627_v62, %v21628_v59  ;;  %v18411_v48 = vsel %vm3277_vm4, %v17915_v12, %v10367_v22  ;;  %v18419_v38 = vsel %vm3277_vm4, %v17853_v19, %v10351_v53  ;;  %v11193_v8 = vpack.i.bf16 %v4746_v54, %v4745_v39  ;;  %v21632_v22 = vld [vmem:[#allocation55_spill] sm:$0xff] }
 0x502   :  { %v18426_v9 = vsel %vm3277_vm4, %v21631_v49, %v10352_v52  ;;  %v18430_v12 = vsel %vm3277_vm4, %v18013_v37, %v10377_v51  ;;  %v10371_v19 = vunpack.i.l.bf16 %v21632_v22  ;;  %v4809_v53 = vld [vmem:[#allocation2 + $0x19a] sm:$0xff]  ;;  %v18439_v47 = vsel %vm3277_vm4, %v17955_v13, %v10361_v27  ;;  %v21638_v27 = vld [vmem:[#allocation120_spill] sm:$0xff] }
 0x503   :  { %11159 = vrot.lane.b32.xlu1 %v21629_v7, %s11648_s22  ;;  %v18415_v7 = vsel %vm3277_vm4, %v17912_v16, %v10366_v29  ;;  %v18434_v16 = vsel %vm3277_vm4, %v18010_v25, %v10376_v58  ;;  %v4810_v29 = vld [vmem:[#allocation2 + $0x1a2] sm:$0xff]  ;;  %v18443_v54 = vsel %vm3277_vm4, %v17932_v44, %v10362_v6  ;;  %v18447_v37 = vsel %vm3277_vm4, %v18100_v41, %v10387_v33  ;;  %v18450_v25 = vpop.permute.xlu0 %10904  ;;  %v21637_v58 = vld [vmem:[#allocation54_spill] sm:$0xff]  ;;  %v21639_v33 = vld [vmem:[#allocation13_spill] sm:$0xff]  ;;  %v18467_v49 = vpop.permute.xlu1 %10889 }
 0x504   :  { %11184 = vrot.lane.b32.xlu0 %v11183_v14, %s11647_s12  ;;  %v10372_v39 = vunpack.i.h.bf16 %v21632_v22  ;;  %21633 = vst [vmem:[#allocation180_spill] sm:$0xff] %v18450_v25  ;;  %v21634_v51 = vld [vmem:[#allocation159_spill] sm:$0xff]  ;;  %v21635_v14 = vld [vmem:[#allocation158_spill] sm:$0xff]  ;;  %v18458_v13 = vsel %vm3277_vm4, %v18080_v17, %v10386_v55  ;;  %v10397_v44 = vunpack.i.h.bf16 %v21637_v58  ;;  %v10396_v6 = vunpack.i.l.bf16 %v21637_v58  ;;  %21640 = vst [vmem:[#allocation10_spill] sm:$0xff] %v18467_v49 }
 0x505   :  { %v21636_v52 = vpack.i.bf16 %v21634_v51, %v21635_v14  ;;  %v10382_v41 = vunpack.i.h.bf16 %v21638_v27  ;;  %v10381_v42 = vunpack.i.l.bf16 %v21638_v27  ;;  %v10407_v62 = vunpack.i.h.bf16 %v21639_v33  ;;  %v21641_v55 = vld [vmem:[#allocation119_spill] sm:$0xff] }
 0x506   :  { %v10406_v59 = vunpack.i.l.bf16 %v21639_v33  ;;  %v11203_v22 = vpack.i.bf16 %v4810_v29, %v4809_v53  ;;  %v18471_v17 = vsel %vm3277_vm4, %v18047_v11, %v10371_v19  ;;  %v10392_v51 = vunpack.i.h.bf16 %v21641_v55  ;;  %v21645_v11 = vld [vmem:[#allocation160_spill] sm:$0xff] }
 0x507   :  { %11169 = vrot.lane.b32.xlu1 %v21636_v52, %s11649_s0  ;;  %v10391_v14 = vunpack.i.l.bf16 %v21641_v55  ;;  %v21642_v52 = vld [vmem:[#allocation125_spill] sm:$0xff]  ;;  %v18478_v27 = vsel %vm3277_vm4, %v18033_v31, %v10372_v39  ;;  %v18483_v29 = vpop.permute.xlu0 %10914  ;;  %v21646_v19 = vld [vmem:[#allocation164_spill] sm:$0xff]  ;;  %v18491_v55 = vsel %vm3277_vm4, %v18148_v5, %v10397_v44  ;;  %v18495_v31 = vsel %vm3277_vm4, %v18145_v36, %v10396_v6  ;;  %v21648_v39 = vld [vmem:[#allocation15_spill] sm:$0xff]  ;;  %v18516_v44 = vpop.permute.xlu1 %10899 }
 0x508   :  { %11194 = vrot.lane.b32.xlu0 %v11193_v8, %s11648_s22  ;;  %v10417_v58 = vunpack.i.h.bf16 %v21642_v52  ;;  %v10416_v33 = vunpack.i.l.bf16 %v21642_v52  ;;  %v21643_v8 = vld [vmem:[#allocation14_spill] sm:$0xff]  ;;  %21644 = vst [vmem:[#allocation11_spill] sm:$0xff] %v18483_v29  ;;  %v21647_v49 = vpack.i.bf16 %v21645_v11, %v21646_v19  ;;  %v10427_v52 = vunpack.i.h.bf16 %v21648_v39  ;;  %21649 = vst [vmem:[#allocation97_spill] sm:$0xff] %v18516_v44  ;;  %v21721_v44 = vld [vmem:[#allocation113_spill] sm:$0xff] }
 0x509   :  { %v10402_v25 = vunpack.i.h.bf16 %v21643_v8  ;;  %v10401_v53 = vunpack.i.l.bf16 %v21643_v8  ;;  %v10426_v24 = vunpack.i.l.bf16 %v21648_v39  ;;  %v18501_v8 = vsel %vm3277_vm4, %v18137_v18, %v10381_v42  ;;  %v21650_v6 = vld [vmem:[#allocation98_spill] sm:$0xff] }
 0x50a   :  { %v18505_v11 = vsel %vm3277_vm4, %v18123_v40, %v10382_v41  ;;  %v18509_v5 = vsel %vm3277_vm4, %v18166_v46, %v10407_v62  ;;  %v18513_v36 = vsel %vm3277_vm4, %v18163_v2, %v10406_v59  ;;  %v18520_v18 = vsel %vm3277_vm4, %v18154_v0, %v10391_v14  ;;  %v21653_v59 = vld [vmem:[#allocation165_spill] sm:$0xff]  ;;  %v21658_v39 = vld [vmem:[#allocation162_spill] sm:$0xff] }
 0x50b   :  { %11179 = vrot.lane.b32.xlu1 %v21647_v49, %s11647_s12  ;;  %v18524_v40 = vsel %vm3277_vm4, %v18151_v26, %v10392_v51  ;;  %v18528_v46 = vsel %vm3277_vm4, %v18176_v3, %v10417_v58  ;;  %v10411_v41 = vunpack.i.l.bf16 %v21650_v6  ;;  %v18533_v2 = vsel %vm3277_vm4, %v18179_v20, %v10416_v33  ;;  %v18544_v62 = vpop.permute.xlu0 %10924  ;;  %v21652_v3 = vld [vmem:[#allocation161_spill] sm:$0xff]  ;;  %v21656_v51 = vld [vmem:[#allocation16_spill] sm:$0xff] }
 0x50c   :  { %11204 = vrot.lane.b32.xlu0 %v11203_v22, %s11649_s0  ;;  %v18537_v42 = vsel %vm3277_vm4, %v18173_v1, %v10401_v53  ;;  %v18541_v0 = vsel %vm3277_vm4, %v18169_v34, %v10402_v25  ;;  %v10412_v26 = vunpack.i.h.bf16 %v21650_v6  ;;  %21651 = vst [vmem:[#allocation152_spill] sm:$0xff] %v18544_v62  ;;  %v21654_v49 = vpack.i.bf16 %v21652_v3, %v21653_v59  ;;  %v21655_v22 = vld [vmem:[#allocation122_spill] sm:$0xff]  ;;  %v21657_v33 = vld [vmem:[#allocation121_spill] sm:$0xff]  ;;  %v18568_v6 = vpop.permute.xlu1 %10909 }
 0x50d   :  { %v18552_v20 = vsel %vm3277_vm4, %v18221_v10, %v10427_v52  ;;  %v18556_v1 = vsel %vm3277_vm4, %v18209_v4, %v10426_v24  ;;  %v10437_v34 = vunpack.i.h.bf16 %v21655_v22  ;;  %v10436_v25 = vunpack.i.l.bf16 %v21655_v22  ;;  %v21659_v10 = vld [vmem:[#allocation169_spill] sm:$0xff]  ;;  %21661 = vst [vmem:[#allocation151_spill] sm:$0xff] %v18568_v6  ;;  %v21663_v24 = vld [vmem:[#allocation99_spill] sm:$0xff] }
 0x50e   :  { %v10422_v14 = vunpack.i.h.bf16 %v21656_v51  ;;  %v10421_v58 = vunpack.i.l.bf16 %v21656_v51  ;;  %v10447_v53 = vunpack.i.h.bf16 %v21657_v33  ;;  %v10446_v19 = vunpack.i.l.bf16 %v21657_v33 }
 0x50f   :  { %11189 = vrot.lane.b32.xlu1 %v21654_v49, %s11648_s22  ;;  %v21660_v52 = vpack.i.bf16 %v21658_v39, %v21659_v10  ;;  %v18572_v4 = vsel %vm3277_vm4, %v18203_v32, %v10411_v41  ;;  %v10432_v3 = vunpack.i.h.bf16 %v21663_v24  ;;  %v10431_v59 = vunpack.i.l.bf16 %v21663_v24  ;;  %v21664_v49 = vld [vmem:[#allocation124_spill] sm:$0xff]  ;;  %v21666_v39 = vld [vmem:[#allocation123_spill] sm:$0xff]  ;;  %v18584_v62 = vpop.permute.xlu0 %10934  ;;  %v21669_v41 = vld [vmem:[#allocation166_spill] sm:$0xff] }
 0x510   :  { %21662 = vst [vmem:[#allocation173_spill] sm:$0xff] %v18572_v4  ;;  %v10457_v22 = vunpack.i.h.bf16 %v21664_v49  ;;  %v18579_v51 = vsel %vm3277_vm4, %v18187_v35, %v10412_v26  ;;  %v10456_v33 = vunpack.i.l.bf16 %v21664_v49  ;;  %v10442_v10 = vunpack.i.h.bf16 %v21666_v39  ;;  %21667 = vst [vmem:[#allocation12_spill] sm:$0xff] %v18584_v62  ;;  %v21668_v32 = vld [vmem:[#allocation167_spill] sm:$0xff]  ;;  %v21673_v26 = vld [vmem:[#allocation17_spill] sm:$0xff] }
 0x511   :  { %11214 = vrot.lane.b32.xlu0 %v21660_v52, %s11647_s12  ;;  %21665 = vst [vmem:[#allocation114_spill] sm:$0xff] %v18579_v51  ;;  %v10441_v52 = vunpack.i.l.bf16 %v21666_v39  ;;  %v21670_v29 = vpack.i.bf16 %v21668_v32, %v21669_v41  ;;  %v18592_v24 = vsel %vm3277_vm4, %v18234_v23, %v10437_v34  ;;  %v18596_v35 = vsel %vm3277_vm4, %v18231_v61, %v10436_v25  ;;  %v21679_v34 = vld [vmem:[#allocation175_spill] sm:$0xff]  ;;  %v18620_v41 = vpop.permute.xlu1 %10919 }
 0x512   :  { %21671 = vst [vmem:[#allocation65_spill] sm:$0xff] %v18592_v24  ;;  %21672 = vst [vmem:[#allocation157_spill] sm:$0xff] %v18596_v35  ;;  %v10467_v49 = vunpack.i.h.bf16 %v21673_v26  ;;  %v10466_v6 = vunpack.i.l.bf16 %v21673_v26  ;;  %v18602_v39 = vsel %vm3277_vm4, %v18227_v50, %v10421_v58  ;;  %v18606_v32 = vsel %vm3277_vm4, %v18224_v30, %v10422_v14  ;;  %v21683_v30 = vld [vmem:[#allocation133_spill] sm:$0xff]  ;;  %v21788_v35 = vld [vmem:[#allocation198_spill] sm:$0xff] }
 0x513   :  { %11199 = vrot.lane.b32.xlu1 %v21670_v29, %s11649_s0  ;;  %21674 = vst [vmem:[#allocation156_spill] sm:$0xff] %v18602_v39  ;;  %21675 = vst [vmem:[#allocation201_spill] sm:$0xff] %v18606_v32  ;;  %v18610_v23 = vsel %vm3277_vm4, %v18250_v45, %v10447_v53  ;;  %v18614_v61 = vsel %vm3277_vm4, %v18247_v21, %v10446_v19  ;;  %v21678_v29 = vld [vmem:[#allocation168_spill] sm:$0xff]  ;;  %v18624_v50 = vsel %vm3277_vm4, %v18240_v57, %v10431_v59  ;;  %v21685_v45 = vld [vmem:[#allocation7_spill] sm:$0xff] }
 0x514   :  { %21676 = vst [vmem:[#allocation55_spill] sm:$0xff] %v18610_v23  ;;  %21677 = vst [vmem:[#allocation159_spill] sm:$0xff] %v18614_v61  ;;  %v21680_v25 = vpack.i.bf16 %v21678_v29, %v21679_v34  ;;  %v18628_v14 = vsel %vm3277_vm4, %v21683_v30, %v10432_v3  ;;  %v18632_v58 = vsel %vm3277_vm4, %v21685_v45, %v10457_v22  ;;  %v21687_v21 = vld [vmem:[#allocation100_spill] sm:$0xff]  ;;  %v21688_v19 = vld [vmem:[#allocation61_spill] sm:$0xff] }
 0x515   :  { %21681 = vst [vmem:[#allocation158_spill] sm:$0xff] %v18620_v41  ;;  %21682 = vst [vmem:[#allocation54_spill] sm:$0xff] %v18624_v50  ;;  %v10451_v53 = vunpack.i.l.bf16 %v21687_v21  ;;  %v18637_v26 = vsel %vm3277_vm4, %v21688_v19, %v10456_v33  ;;  %v21690_v29 = vld [vmem:[#allocation144_spill] sm:$0xff]  ;;  %v21692_v57 = vld [vmem:[#allocation139_spill] sm:$0xff]  ;;  %v10452_v3 = vunpack.i.h.bf16 %v21687_v21  ;;  %v18656_v33 = vsel %vm3277_vm4, %v18305_v15, %v10467_v49 }
 0x516   :  { %11224 = vrot.lane.b32.xlu0 %v21680_v25, %s11648_s22  ;;  %21684 = vst [vmem:[#allocation120_spill] sm:$0xff] %v18628_v14  ;;  %21686 = vst [vmem:[#allocation13_spill] sm:$0xff] %v18632_v58  ;;  %v18641_v34 = vsel %vm3277_vm4, %v21690_v29, %v10441_v52  ;;  %v18645_v59 = vsel %vm3277_vm4, %v21692_v57, %v10442_v10  ;;  %v18648_v25 = vpop.permute.xlu0 %10944  ;;  %v21695_v22 = vld [vmem:[#allocation170_spill] sm:$0xff]  ;;  %v21696_v30 = vld [vmem:[#allocation176_spill] sm:$0xff] }
 0x517   :  { %21689 = vst [vmem:[#allocation119_spill] sm:$0xff] %v18637_v26  ;;  %21691 = vst [vmem:[#allocation125_spill] sm:$0xff] %v18641_v34  ;;  %v21697_v45 = vpack.i.bf16 %v21695_v22, %v21696_v30  ;;  %v21699_v19 = vld [vmem:[#allocation86_spill] sm:$0xff]  ;;  %v21701_v29 = vld [vmem:[#allocation101_spill] sm:$0xff] }
 0x518   :  { %21693 = vst [vmem:[#allocation14_spill] sm:$0xff] %v18645_v59  ;;  %21694 = vst [vmem:[#allocation160_spill] sm:$0xff] %v18648_v25  ;;  %v18660_v52 = vsel %vm3277_vm4, %v21699_v19, %v10466_v6  ;;  %v10477_v10 = vunpack.i.h.bf16 %v21701_v29  ;;  %v10476_v57 = vunpack.i.l.bf16 %v21701_v29  ;;  %v21702_v21 = vld [vmem:[#allocation18_spill] sm:$0xff]  ;;  %v21703_v41 = vld [vmem:[#allocation19_spill] sm:$0xff] }
 0x519   :  { %11209 = vrot.lane.b32.xlu1 %v21697_v45, %s11647_s12  ;;  %21698 = vst [vmem:[#allocation164_spill] sm:$0xff] %v18656_v33  ;;  %21700 = vst [vmem:[#allocation15_spill] sm:$0xff] %v18660_v52  ;;  %v10462_v62 = vunpack.i.h.bf16 %v21702_v21  ;;  %v10461_v25 = vunpack.i.l.bf16 %v21702_v21  ;;  %v10487_v59 = vunpack.i.h.bf16 %v21703_v41  ;;  %v10486_v22 = vunpack.i.l.bf16 %v21703_v41  ;;  %v21704_v30 = vld [vmem:[#allocation172_spill] sm:$0xff]  ;;  %v21705_v15 = vld [vmem:[#allocation171_spill] sm:$0xff]  ;;  %v18672_v45 = vpop.permute.xlu1 %10929 }
 0x51a   :  { %v21706_v49 = vpack.i.bf16 %v21704_v30, %v21705_v15  ;;  %21707 = vst [vmem:[#allocation98_spill] sm:$0xff] %v18672_v45  ;;  %v21708_v6 = vld [vmem:[#allocation5_spill] sm:$0xff]  ;;  %v21710_v29 = vld [vmem:[#allocation102_spill] sm:$0xff]  ;;  %v21711_v21 = vld [vmem:[#allocation103_spill] sm:$0xff]  ;;  %v18688_v45 = vpop.permute.xlu0 %10954 }
 0x51b   :  { %v18676_v19 = vsel %vm3277_vm4, %v21708_v6, %v10451_v53  ;;  %v10472_v52 = vunpack.i.h.bf16 %v21710_v29  ;;  %v10471_v33 = vunpack.i.l.bf16 %v21710_v29  ;;  %v10497_v34 = vunpack.i.h.bf16 %v21711_v21  ;;  %v21712_v26 = vld [vmem:[#allocation140_spill] sm:$0xff]  ;;  %21715 = vst [vmem:[#allocation122_spill] sm:$0xff] %v18688_v45  ;;  %v21716_v53 = vld [vmem:[#allocation177_spill] sm:$0xff]  ;;  %v21726_v50 = vld [vmem:[#allocation146_spill] sm:$0xff] }
 0x51c   :  { %11234 = vrot.lane.b32.xlu0 %v21706_v49, %s11649_s0  ;;  %21709 = vst [vmem:[#allocation161_spill] sm:$0xff] %v18676_v19  ;;  %v18683_v41 = vsel %vm3277_vm4, %v21712_v26, %v10452_v3  ;;  %v10496_v58 = vunpack.i.l.bf16 %v21711_v21  ;;  %v21714_v30 = vld [vmem:[#allocation20_spill] sm:$0xff]  ;;  %v21717_v6 = vld [vmem:[#allocation181_spill] sm:$0xff]  ;;  %v18700_v26 = vsel %vm3277_vm4, %v21721_v44, %v10476_v57  ;;  %v21732_v57 = vld [vmem:[#allocation178_spill] sm:$0xff] }
 0x51d   :  { %21713 = vst [vmem:[#allocation165_spill] sm:$0xff] %v18683_v41  ;;  %v10482_v15 = vunpack.i.h.bf16 %v21714_v30  ;;  %v10481_v49 = vunpack.i.l.bf16 %v21714_v30  ;;  %v21718_v19 = vpack.i.bf16 %v21716_v53, %v21717_v6  ;;  %v21719_v29 = vld [vmem:[#allocation112_spill] sm:$0xff]  ;;  %21722 = vst [vmem:[#allocation121_spill] sm:$0xff] %v18700_v26  ;;  %v18710_v53 = vsel %vm3277_vm4, %v21726_v50, %v10462_v62  ;;  %v21730_v6 = vld [vmem:[#allocation115_spill] sm:$0xff]  ;;  %v18724_v26 = vpop.permute.xlu1 %10939 }
 0x51e   :  { %v18696_v14 = vsel %vm3277_vm4, %v21719_v29, %v10477_v10  ;;  %v21723_v3 = vld [vmem:[#allocation104_spill] sm:$0xff]  ;;  %21727 = vst [vmem:[#allocation169_spill] sm:$0xff] %v18710_v53  ;;  %v18718_v44 = vsel %vm3277_vm4, %v21730_v6, %v10487_v59  ;;  %v21733_v29 = vld [vmem:[#allocation182_spill] sm:$0xff]  ;;  %21735 = vst [vmem:[#allocation123_spill] sm:$0xff] %v18724_v26 }
 0x51f   :  { %11219 = vrot.lane.b32.xlu1 %v21718_v19, %s11648_s22  ;;  %21720 = vst [vmem:[#allocation16_spill] sm:$0xff] %v18696_v14  ;;  %v10507_v21 = vunpack.i.h.bf16 %v21723_v3  ;;  %v10506_v41 = vunpack.i.l.bf16 %v21723_v3  ;;  %v21724_v30 = vld [vmem:[#allocation148_spill] sm:$0xff]  ;;  %v21728_v19 = vld [vmem:[#allocation9_spill] sm:$0xff]  ;;  %21731 = vst [vmem:[#allocation124_spill] sm:$0xff] %v18718_v44  ;;  %v21734_v3 = vpack.i.bf16 %v21732_v57, %v21733_v29 }
 0x520   :  { %v18706_v45 = vsel %vm3277_vm4, %v21724_v30, %v10461_v25  ;;  %v18714_v10 = vsel %vm3277_vm4, %v21728_v19, %v10486_v22  ;;  %v21736_v25 = vld [vmem:[#allocation147_spill] sm:$0xff]  ;;  %v21738_v62 = vld [vmem:[#allocation116_spill] sm:$0xff]  ;;  %v21740_v22 = vld [vmem:[#allocation6_spill] sm:$0xff] }
 0x521   :  { %21725 = vst [vmem:[#allocation162_spill] sm:$0xff] %v18706_v45  ;;  %21729 = vst [vmem:[#allocation99_spill] sm:$0xff] %v18714_v10  ;;  %11244 = vrot.lane.b32.xlu0 %v21734_v3, %s11647_s12  ;;  %v18728_v30 = vsel %vm3277_vm4, %v21736_v25, %v10471_v33  ;;  %v18732_v50 = vsel %vm3277_vm4, %v21738_v62, %v10472_v52  ;;  %v18736_v19 = vsel %vm3407_vm6, %v21740_v22, %v10497_v34  ;;  %v21741_v59 = vld [vmem:[#allocation127_spill] sm:$0xff]  ;;  %v21742_v10 = vld [vmem:[#allocation154_spill] sm:$0xff]  ;;  %v18750_v25 = vpop.permute.xlu0 %10964 }
 0x522   :  { %21737 = vst [vmem:[#allocation167_spill] sm:$0xff] %v18728_v30  ;;  %21739 = vst [vmem:[#allocation166_spill] sm:$0xff] %v18732_v50  ;;  %v10517_v6 = vunpack.i.h.bf16 %v21741_v59  ;;  %v7019_v57 = vsel %vm3407_vm6, %v21742_v10, %v10496_v58  ;;  %v21743_v29 = vld [vmem:[#allocation89_spill] sm:$0xff]  ;;  %v10516_v52 = vunpack.i.l.bf16 %v21741_v59  ;;  %v21748_v34 = vld [vmem:[#allocation183_spill] sm:$0xff] }
 0x523   :  { %v18743_v3 = vsel %vm3277_vm4, %v21743_v29, %v10481_v49  ;;  %v21745_v44 = vld [vmem:[#allocation93_spill] sm:$0xff]  ;;  %21747 = vst [vmem:[#allocation175_spill] sm:$0xff] %v18750_v25  ;;  %v21749_v62 = vld [vmem:[#allocation179_spill] sm:$0xff]  ;;  %v21751_v50 = vld [vmem:[#allocation142_spill] sm:$0xff]  ;;  %v18762_v49 = vsel %vm3407_vm6, %v18378_v28, %v10506_v41 }
 0x524   :  { %21744 = vst [vmem:[#allocation17_spill] sm:$0xff] %v18743_v3  ;;  %v18747_v33 = vsel %vm3277_vm4, %v21745_v44, %v10482_v15  ;;  %v21750_v22 = vpack.i.bf16 %v21748_v34, %v21749_v62  ;;  %v18758_v58 = vsel %vm3407_vm6, %v21751_v50, %v10507_v21  ;;  %v21752_v10 = vld [vmem:[#allocation126_spill] sm:$0xff]  ;;  %v21755_v62 = vld [vmem:[#allocation184_spill] sm:$0xff]  ;;  %v18778_v28 = vsel %vm3407_vm6, %v18385_v43, %v10517_v6  ;;  %v21762_v43 = vld [vmem:[#allocation185_spill] sm:$0xff] }
 0x525   :  { %21746 = vst [vmem:[#allocation168_spill] sm:$0xff] %v18747_v33  ;;  %v10502_v15 = vunpack.i.h.bf16 %v21752_v10  ;;  %v10501_v44 = vunpack.i.l.bf16 %v21752_v10  ;;  %v21753_v59 = vld [vmem:[#allocation90_spill] sm:$0xff]  ;;  %v21754_v33 = vld [vmem:[#allocation105_spill] sm:$0xff]  ;;  %v21763_v6 = vld [vmem:[#allocation191_spill] sm:$0xff] }
 0x526   :  { %11229 = vrot.lane.b32.xlu1 %v21750_v22, %s11649_s0  ;;  %v10527_v29 = vunpack.i.h.bf16 %v21753_v59  ;;  %v10526_v25 = vunpack.i.l.bf16 %v21753_v59  ;;  %v10512_v3 = vunpack.i.h.bf16 %v21754_v33  ;;  %v10511_v34 = vunpack.i.l.bf16 %v21754_v33  ;;  %v21756_v21 = vld [vmem:[#allocation190_spill] sm:$0xff]  ;;  %v18774_v22 = vpop.permute.xlu1 %10949  ;;  %v21760_v59 = vld [vmem:[#allocation91_spill] sm:$0xff] }
 0x527   :  { %v21757_v50 = vpack.i.bf16 %v21755_v62, %v21756_v21  ;;  %21758 = vst [vmem:[#allocation133_spill] sm:$0xff] %v18774_v22  ;;  %v21759_v41 = vld [vmem:[#allocation106_spill] sm:$0xff]  ;;  %v10521_v26 = vunpack.i.l.bf16 %v21760_v59  ;;  %v18785_v33 = vsel %vm3407_vm6, %v18398_v60, %v10516_v52  ;;  %v10522_v53 = vunpack.i.h.bf16 %v21760_v59  ;;  %v21761_v62 = vld [vmem:[#allocation117_spill] sm:$0xff]  ;;  %v18790_v22 = vpop.permute.xlu0 %10974  ;;  %v21765_v52 = vld [vmem:[#allocation84_spill] sm:$0xff] }
 0x528   :  { %v10537_v10 = vunpack.i.h.bf16 %v21759_v41  ;;  %v10536_v30 = vunpack.i.l.bf16 %v21759_v41  ;;  %v10547_v21 = vunpack.i.h.bf16 %v21761_v62  ;;  %v21764_v45 = vpack.i.bf16 %v21762_v43, %v21763_v6  ;;  %v21789_v24 = vld [vmem:[#allocation202_spill] sm:$0xff] }
 0x529   :  { %11254 = vrot.lane.b32.xlu0 %v21757_v50, %s11648_s22  ;;  %v10546_v50 = vunpack.i.l.bf16 %v21761_v62  ;;  %v7021_v41 = vsel %vm3407_vm6, %v18402_v63, %v10501_v44  ;;  %v7022_v60 = vsel %vm3407_vm6, %v18406_v56, %v10502_v15  ;;  %v10532_v14 = vunpack.i.h.bf16 %v21765_v52  ;;  %v21766_v56 = vld [vmem:[#allocation188_spill] sm:$0xff]  ;;  %v21767_v15 = vld [vmem:[#allocation187_spill] sm:$0xff] }
 0x52a   :  { %11239 = vrot.lane.b32.xlu1 %v21764_v45, %s11647_s12  ;;  %v10531_v59 = vunpack.i.l.bf16 %v21765_v52  ;;  %v18804_v62 = vsel %vm3407_vm6, %v18411_v48, %v10527_v29  ;;  %v18808_v61 = vsel %vm3407_vm6, %v18415_v7, %v10526_v25  ;;  %v18812_v45 = vsel %vm3407_vm6, %v18419_v38, %v10511_v34  ;;  %v18822_v48 = vpop.permute.xlu1 %10959  ;;  %v21778_v52 = vld [vmem:[#allocation130_spill] sm:$0xff] }
 0x52b   :  { %v18816_v63 = vsel %vm3407_vm6, %v18426_v9, %v10512_v3  ;;  %v21768_v44 = vpack.i.bf16 %v21766_v56, %v21767_v15  ;;  %21769 = vst [vmem:[#allocation7_spill] sm:$0xff] %v18822_v48  ;;  %v18826_v7 = vsel %vm3407_vm6, %v18430_v12, %v10537_v10  ;;  %v18830_v38 = vsel %vm3407_vm6, %v18434_v16, %v10536_v30  ;;  %v21770_v3 = vld [vmem:[#allocation32_spill] sm:$0xff]  ;;  %v10985_v30 = vpop.permute.xlu0 %10984 }
 0x52c   :  { %v18834_v9 = vsel %vm3407_vm6, %v18439_v47, %v10521_v26  ;;  %v10656_v25 = vunpack.i.l.bf16 %v21770_v3  ;;  %v18839_v29 = vsel %vm3407_vm6, %v18443_v54, %v10522_v53  ;;  %v18843_v34 = vsel %vm3407_vm6, %v18447_v37, %v10547_v21  ;;  %v21773_v47 = vld [vmem:[#allocation189_spill] sm:$0xff]  ;;  %v21774_v26 = vld [vmem:[#allocation196_spill] sm:$0xff] }
 0x52d   :  { %11264 = vrot.lane.b32.xlu0 %v21768_v44, %s11649_s0  ;;  %21771 = vst [vmem:[#allocation100_spill] sm:$0xff] %v18843_v34  ;;  %v18847_v12 = vsel %vm3407_vm6, %v18458_v13, %v10546_v50  ;;  %v10657_v16 = vunpack.i.h.bf16 %v21770_v3  ;;  %v21775_v10 = vpack.i.bf16 %v21773_v47, %v21774_v26  ;;  %v18856_v54 = vsel %vm3407_vm6, %v18471_v17, %v10531_v59  ;;  %v21776_v53 = vld [vmem:[#allocation24_spill] sm:$0xff]  ;;  %v21780_v17 = vld [vmem:[#allocation197_spill] sm:$0xff] }
 0x52e   :  { %21772 = vst [vmem:[#allocation61_spill] sm:$0xff] %v18847_v12  ;;  %v18860_v37 = vsel %vm3407_vm6, %v18478_v27, %v10532_v14  ;;  %v10662_v21 = vunpack.i.h.bf16 %v21776_v53  ;;  %v10661_v13 = vunpack.i.l.bf16 %v21776_v53  ;;  %v21777_v50 = vld [vmem:[#allocation64_spill] sm:$0xff]  ;;  %v10541_v15 = vunpack.i.l.bf16 %v21778_v52  ;;  %v10970_v3 = vpop.permute.xlu1 %10969  ;;  %v21782_v14 = vld [vmem:[#allocation269_spill] sm:$0xff]  ;;  %v21783_v53 = vld [vmem:[#allocation34_spill] sm:$0xff] }
 0x52f   :  { %11249 = vrot.lane.b32.xlu1 %v21775_v10, %s11648_s22  ;;  %v10557_v43 = vunpack.i.h.bf16 %v21777_v50  ;;  %v10556_v6 = vunpack.i.l.bf16 %v21777_v50  ;;  %v21779_v44 = vld [vmem:[#allocation192_spill] sm:$0xff]  ;;  %v7083_v27 = vsel %vm3537_vm8, %v7019_v57, %v10656_v25  ;;  %v10822_v47 = vunpack.i.h.bf16 %v21782_v14  ;;  %v10995_v48 = vpop.permute.xlu0 %10994 }
 0x530   :  { %v21781_v59 = vpack.i.bf16 %v21779_v44, %v21780_v17  ;;  %v10821_v26 = vunpack.i.l.bf16 %v21782_v14  ;;  %v7084_v10 = vsel %vm3537_vm8, %v18736_v19, %v10657_v16  ;;  %v10666_v56 = vunpack.i.l.bf16 %v21783_v53  ;;  %v21784_v44 = vld [vmem:[#allocation194_spill] sm:$0xff]  ;;  %v21785_v17 = vld [vmem:[#allocation193_spill] sm:$0xff]  ;;  %v21787_v19 = vld [vmem:[#allocation247_spill] sm:$0xff] }
 0x531   :  { %v7085_v57 = vsel %vm3537_vm8, %v7021_v41, %v10661_v13  ;;  %v7086_v25 = vsel %vm3537_vm8, %v7022_v60, %v10662_v21  ;;  %v10977_v14 = vunpack.i.h.bf16 %v18790_v22  ;;  %v10976_v23 = vunpack.i.l.bf16 %v18790_v22 }
 0x532   :  { %11274 = vrot.lane.b32.xlu0 %v21781_v59, %s11647_s12  ;;  %v21786_v59 = vpack.i.bf16 %v21784_v44, %v21785_v17  ;;  %v10817_v16 = vunpack.i.h.bf16 %v21787_v19  ;;  %v10816_v50 = vunpack.i.l.bf16 %v21787_v19  ;;  %v10987_v32 = vunpack.i.h.bf16 %v10985_v30  ;;  %v10980_v44 = vpop.permute.xlu1 %10979  ;;  %v21792_v19 = vld [vmem:[#allocation203_spill] sm:$0xff] }
 0x533   :  { %v10986_v39 = vunpack.i.l.bf16 %v10985_v30  ;;  %v21790_v51 = vpack.i.bf16 %v21788_v35, %v21789_v24  ;;  %v7150_v41 = vsel %vm7147_vm13, %v7085_v57, %v10821_v26  ;;  %v7151_v60 = vsel %vm7147_vm13, %v7086_v25, %v10822_v47  ;;  %v18895_v12 = vpop.permute.xlu0 %11004  ;;  %v21791_v30 = vld [vmem:[#allocation199_spill] sm:$0xff]  ;;  %v21794_v24 = vld [vmem:[#allocation38_spill] sm:$0xff]  ;;  %v21795_v25 = vld [vmem:[#allocation204_spill] sm:$0xff] }
 0x534   :  { %11259 = vrot.lane.b32.xlu1 %v21786_v59, %s11649_s0  ;;  %v10972_v21 = vunpack.i.h.bf16 %v10970_v3  ;;  %v10971_v13 = vunpack.i.l.bf16 %v10970_v3  ;;  %v10997_v17 = vunpack.i.h.bf16 %v10995_v48  ;;  %v10996_v22 = vunpack.i.l.bf16 %v10995_v48 }
 0x535   :  { %v10982_v59 = vunpack.i.h.bf16 %v10980_v44  ;;  %v10981_v34 = vunpack.i.l.bf16 %v10980_v44  ;;  %v21793_v4 = vpack.i.bf16 %v21791_v30, %v21792_v19  ;;  %v7215_v35 = vsel %vm7212_vm14, %v7150_v41, %v10976_v23  ;;  %v21796_v44 = vld [vmem:[#allocation200_spill] sm:$0xff] }
 0x536   :  { %11284 = vrot.lane.b32.xlu0 %v21790_v51, %s11648_s22  ;;  %v10672_v51 = vunpack.i.h.bf16 %v21794_v24  ;;  %v7216_v26 = vsel %vm7212_vm14, %v7151_v60, %v10977_v14  ;;  %v7148_v3 = vsel %vm7147_vm13, %v7083_v27, %v10816_v50  ;;  %v7149_v48 = vsel %vm7147_vm13, %v7084_v10, %v10817_v16  ;;  %v21798_v16 = vld [vmem:[#allocation205_spill] sm:$0xff]  ;;  %v21799_v60 = vld [vmem:[#allocation208_spill] sm:$0xff] }
 0x537   :  { %v7280_v47 = vsel %vm7277_vm15, %v7215_v35, %v10986_v39  ;;  %v7281_v57 = vsel %vm7277_vm15, %v7216_v26, %v10987_v32  ;;  %v21797_v30 = vpack.i.bf16 %v21795_v25, %v21796_v44  ;;  %v7214_v19 = vsel %vm7212_vm14, %v7149_v48, %v10972_v21  ;;  %v11015_v50 = vpop.permute.xlu0 %11014 }
 0x538   :  { %11269 = vrot.lane.b32.xlu1 %v21793_v4, %s11647_s12  ;;  %v10990_v4 = vpop.permute.xlu1 %10989  ;;  %v7213_v23 = vsel %vm7212_vm14, %v7148_v3, %v10971_v13  ;;  %v7345_v27 = vsel %vm7342_vm0, %v7280_v47, %v10996_v22  ;;  %v7346_v10 = vsel %vm7342_vm0, %v7281_v57, %v10997_v17  ;;  %v7279_v32 = vsel %vm7277_vm15, %v7214_v19, %v10982_v59  ;;  %v21802_v3 = vld [vmem:[#allocation209_spill] sm:$0xff] }
 0x539   :  { %v10992_v14 = vunpack.i.h.bf16 %v10990_v4  ;;  %v10991_v41 = vunpack.i.l.bf16 %v10990_v4  ;;  %v7278_v39 = vsel %vm7277_vm15, %v7213_v23, %v10981_v34  ;;  %v21800_v35 = vpack.i.bf16 %v21798_v16, %v21799_v60  ;;  %v21809_v23 = vld [vmem:[#allocation210_spill] sm:$0xff]  ;;  %v21812_v16 = vld [vmem:[#allocation212_spill] sm:$0xff]  ;;  %v21813_v60 = vld [vmem:[#allocation217_spill] sm:$0xff] }
 0x53a   :  { %11294 = vrot.lane.b32.xlu0 %v21797_v30, %s11649_s0  ;;  %v10671_v21 = vunpack.i.l.bf16 %v21794_v24  ;;  %v18927_v17 = vsel %vm3407_vm6, %v18491_v55, %v10557_v43  ;;  %v18931_v34 = vsel %vm3407_vm6, %v18495_v31, %v10556_v6  ;;  %v18935_v22 = vsel %vm3407_vm6, %v18501_v8, %v10541_v15  ;;  %v21801_v24 = vld [vmem:[#allocation206_spill] sm:$0xff]  ;;  %v21806_v8 = vld [vmem:[#allocation85_spill] sm:$0xff] }
 0x53b   :  { %v7343_v13 = vsel %vm7342_vm0, %v7278_v39, %v10991_v41  ;;  %v7344_v26 = vsel %vm7342_vm0, %v7279_v32, %v10992_v14  ;;  %v21803_v48 = vpack.i.bf16 %v21801_v24, %v21802_v3  ;;  %v21804_v57 = vunpack.i.h.bf16 %v21778_v52  ;;  %v21805_v43 = vld [vmem:[#allocation22_spill] sm:$0xff]  ;;  %v11025_v19 = vpop.permute.xlu0 %11024 }
 0x53c   :  { %11279 = vrot.lane.b32.xlu1 %v21800_v35, %s11648_s22  ;;  %v7407_v59 = vpack.c.bf16 %v7344_v26, %v7343_v13  ;;  %v11000_v47 = vpop.permute.xlu1 %10999  ;;  %v10832_v31 = vunpack.i.h.bf16 %v21805_v43  ;;  %v10831_v6 = vunpack.i.l.bf16 %v21805_v43  ;;  %v7408_v25 = vpack.c.bf16 %v7346_v10, %v7345_v27  ;;  %v21818_v43 = vld [vmem:[#allocation36_spill] sm:$0xff] }
 0x53d   :  { %v18945_v55 = vsel %vm3407_vm6, %v18505_v11, %v21804_v57  ;;  %v10567_v15 = vunpack.i.h.bf16 %v21806_v8  ;;  %v10566_v44 = vunpack.i.l.bf16 %v21806_v8  ;;  %v7087_v30 = vsel %vm3537_vm8, %v18762_v49, %v10666_v56  ;;  %v21808_v11 = vld [vmem:[#allocation211_spill] sm:$0xff] }
 0x53e   :  { %11304 = vrot.lane.b32.xlu0 %v21803_v48, %s11647_s12  ;;  %v21807_v4 = vunpack.i.h.bf16 %v21783_v53  ;;  %v21810_v14 = vpack.i.bf16 %v21808_v11, %v21809_v23  ;;  %8810 = vmatprep.mubr.msk.bf16.mxu0 %vm7482_vm2, %v7407_v59  ;;  %v7089_v41 = vsel %vm3537_vm8, %v18812_v45, %v10671_v21  ;;  %v7090_v27 = vsel %vm3537_vm8, %v18816_v63, %v10672_v51  ;;  %v21816_v48 = vld [vmem:[#allocation218_spill] sm:$0xff]  ;;  %v21819_v23 = vld [vmem:[#allocation215_spill] sm:$0xff] }
 0x53f   :  { %v11007_v49 = vunpack.i.h.bf16 %v18895_v12  ;;  %v11006_v56 = vunpack.i.l.bf16 %v18895_v12  ;;  %8811 = vmatmul.mubr.msk.bf16.vlgmr.msra.gmra.mxu0 %vm7482_vm2, %v7408_v25  ;;  %v11017_v39 = vunpack.i.h.bf16 %v11015_v50  ;;  %v11016_v32 = vunpack.i.l.bf16 %v11015_v50  ;;  %v18977_v3 = vpop.permute.xlu0 %11034  ;;  %v21815_v50 = vld [vmem:[#allocation213_spill] sm:$0xff] }
 0x540   :  { %v7088_v52 = vsel %vm3537_vm8, %v18758_v58, %v21807_v4  ;;  %11289 = vrot.lane.b32.xlu1 %v21810_v14, %s11649_s0  ;;  %v21811_v58 = vld [vmem:[#allocation262_spill] sm:$0xff]  ;;  %v21814_v35 = vpack.i.bf16 %v21812_v16, %v21813_v60  ;;  %v11010_v45 = vpop.permute.xlu1 %11009  ;;  %v7154_v63 = vsel %vm7147_vm13, %v7089_v41, %v10831_v6  ;;  %v7155_v51 = vsel %vm7147_vm13, %v7090_v27, %v10832_v31 }
 0x541   :  { %v10827_v53 = vunpack.i.h.bf16 %v21811_v58  ;;  %v10826_v10 = vunpack.i.l.bf16 %v21811_v58  ;;  %v11002_v21 = vunpack.i.h.bf16 %v11000_v47  ;;  %v11001_v12 = vunpack.i.l.bf16 %v11000_v47  ;;  %v21820_v14 = vld [vmem:[#allocation214_spill] sm:$0xff] }
 0x542   :  { %11314 = vrot.lane.b32.xlu0 %v21814_v35, %s11648_s22  ;;  %v11027_v13 = vunpack.i.h.bf16 %v11025_v19  ;;  %v11026_v26 = vunpack.i.l.bf16 %v11025_v19  ;;  %v11012_v59 = vunpack.i.h.bf16 %v11010_v45  ;;  %v11011_v24 = vunpack.i.l.bf16 %v11010_v45  ;;  %v21823_v60 = vld [vmem:[#allocation222_spill] sm:$0xff]  ;;  %v21825_v45 = vld [vmem:[#allocation40_spill] sm:$0xff] }
 0x543   :  { %v21817_v57 = vpack.i.bf16 %v21815_v50, %v21816_v48  ;;  %v10677_v25 = vunpack.i.h.bf16 %v21818_v43  ;;  %v10676_v8 = vunpack.i.l.bf16 %v21818_v43  ;;  %v7219_v6 = vsel %vm7212_vm14, %v7154_v63, %v11006_v56  ;;  %v21827_v48 = vld [vmem:[#allocation220_spill] sm:$0xff] }
 0x544   :  { %v7220_v31 = vsel %vm7212_vm14, %v7155_v51, %v11007_v49  ;;  %v7152_v47 = vsel %vm7147_vm13, %v7087_v30, %v10826_v10  ;;  %v7153_v4 = vsel %vm7147_vm13, %v7088_v52, %v10827_v53  ;;  %v7284_v19 = vsel %vm7277_vm15, %v7219_v6, %v11016_v32  ;;  %v11020_v27 = vpop.permute.xlu1 %11019  ;;  %v21822_v32 = vld [vmem:[#allocation219_spill] sm:$0xff] }
 0x545   :  { %11299 = vrot.lane.b32.xlu1 %v21817_v57, %s11647_s12  ;;  %v7285_v11 = vsel %vm7277_vm15, %v7220_v31, %v11017_v39  ;;  %v21821_v41 = vpack.i.bf16 %v21819_v23, %v21820_v14  ;;  %v7218_v58 = vsel %vm7212_vm14, %v7153_v4, %v11002_v21  ;;  %v7217_v56 = vsel %vm7212_vm14, %v7152_v47, %v11001_v12  ;;  %v11045_v39 = vpop.permute.xlu0 %11044  ;;  %v21828_v57 = vld [vmem:[#allocation223_spill] sm:$0xff] }
 0x546   :  { %v11022_v16 = vunpack.i.h.bf16 %v11020_v27  ;;  %v11021_v49 = vunpack.i.l.bf16 %v11020_v27  ;;  %v7349_v30 = vsel %vm7342_vm0, %v7284_v19, %v11026_v26  ;;  %v7350_v52 = vsel %vm7342_vm0, %v7285_v11, %v11027_v13  ;;  %v21830_v47 = vld [vmem:[#allocation107_spill] sm:$0xff]  ;;  %v21833_v27 = vld [vmem:[#allocation221_spill] sm:$0xff] }
 0x547   :  { %11324 = vrot.lane.b32.xlu0 %v21821_v41, %s11649_s0  ;;  %v7282_v53 = vsel %vm7277_vm15, %v7217_v56, %v11011_v24  ;;  %v7283_v10 = vsel %vm7277_vm15, %v7218_v58, %v11012_v59  ;;  %v21824_v35 = vpack.i.bf16 %v21822_v32, %v21823_v60  ;;  %v10682_v63 = vunpack.i.h.bf16 %v21825_v45  ;;  %v21826_v59 = vld [vmem:[#allocation132_spill] sm:$0xff]  ;;  %v21831_v19 = vld [vmem:[#allocation131_spill] sm:$0xff] }
 0x548   :  { %v10681_v51 = vunpack.i.l.bf16 %v21825_v45  ;;  %v7347_v21 = vsel %vm7342_vm0, %v7282_v53, %v11021_v49  ;;  %v7348_v12 = vsel %vm7342_vm0, %v7283_v10, %v11022_v16  ;;  %v19011_v13 = vsel %vm3407_vm6, %v18509_v5, %v10567_v15  ;;  %v11030_v6 = vpop.permute.xlu1 %11029  ;;  %v21832_v41 = vld [vmem:[#allocation224_spill] sm:$0xff]  ;;  %v21836_v53 = vld [vmem:[#allocation225_spill] sm:$0xff] }
 0x549   :  { %11309 = vrot.lane.b32.xlu1 %v21824_v35, %s11648_s22  ;;  %v19015_v26 = vsel %vm3407_vm6, %v18513_v36, %v10566_v44  ;;  %v10552_v24 = vunpack.i.h.bf16 %v21826_v59  ;;  %v7409_v50 = vpack.c.bf16 %v7348_v12, %v7347_v21  ;;  %v21829_v43 = vpack.i.bf16 %v21827_v48, %v21828_v57  ;;  %v11055_v14 = vpop.permute.xlu0 %11054  ;;  %v21837_v10 = vld [vmem:[#allocation228_spill] sm:$0xff]  ;;  %v21842_v48 = vld [vmem:[#allocation37_spill] sm:$0xff] }
 0x54a   :  { %v10551_v31 = vunpack.i.l.bf16 %v21826_v59  ;;  %v10842_v4 = vunpack.i.h.bf16 %v21830_v47  ;;  %v10841_v5 = vunpack.i.l.bf16 %v21830_v47  ;;  %v7410_v15 = vpack.c.bf16 %v7350_v52, %v7349_v30  ;;  %v21840_v59 = vld [vmem:[#allocation229_spill] sm:$0xff] }
 0x54b   :  { %11334 = vrot.lane.b32.xlu0 %v21829_v43, %s11647_s12  ;;  %v10577_v11 = vunpack.i.h.bf16 %v21831_v19  ;;  %v10576_v36 = vunpack.i.l.bf16 %v21831_v19  ;;  %v7091_v44 = vsel %vm3537_vm8, %v18785_v33, %v10676_v8  ;;  %v7092_v23 = vsel %vm3537_vm8, %v18778_v28, %v10677_v25  ;;  %8814 = vmatprep.mubr.msk.bf16.mxu0 %vm7482_vm2, %v7409_v50  ;;  %v21835_v28 = vld [vmem:[#allocation268_spill] sm:$0xff] }
 0x54c   :  { %v21834_v58 = vpack.i.bf16 %v21832_v41, %v21833_v27  ;;  %v7093_v56 = vsel %vm3537_vm8, %v18834_v9, %v10681_v51  ;;  %v7094_v16 = vsel %vm3537_vm8, %v18839_v29, %v10682_v63  ;;  %v11037_v49 = vunpack.i.h.bf16 %v18977_v3  ;;  %8815 = vmatmul.mubr.msk.bf16.gmra.mxu0 %vm7482_vm2, %v7410_v15  ;;  %v11040_v9 = vpop.permute.xlu1 %11039  ;;  %v21844_v41 = vld [vmem:[#allocation230_spill] sm:$0xff] }
 0x54d   :  { %v11036_v33 = vunpack.i.l.bf16 %v18977_v3  ;;  %v10837_v25 = vunpack.i.h.bf16 %v21835_v28  ;;  %v10836_v8 = vunpack.i.l.bf16 %v21835_v28  ;;  %v11047_v30 = vunpack.i.h.bf16 %v11045_v39  ;;  %v19051_v12 = vpop.permute.xlu0 %11064 }
 0x54e   :  { %11319 = vrot.lane.b32.xlu1 %v21834_v58, %s11649_s0  ;;  %v11046_v52 = vunpack.i.l.bf16 %v11045_v39  ;;  %v21838_v32 = vpack.i.bf16 %v21836_v53, %v21837_v10  ;;  %v7158_v29 = vsel %vm7147_vm13, %v7093_v56, %v10841_v5  ;;  %v7159_v60 = vsel %vm7147_vm13, %v7094_v16, %v10842_v4  ;;  %v21839_v39 = vld [vmem:[#allocation226_spill] sm:$0xff] }
 0x54f   :  { %v11032_v35 = vunpack.i.h.bf16 %v11030_v6  ;;  %v11031_v3 = vunpack.i.l.bf16 %v11030_v6  ;;  %v11057_v45 = vunpack.i.h.bf16 %v11055_v14  ;;  %v11056_v63 = vunpack.i.l.bf16 %v11055_v14  ;;  %v21843_v14 = vld [vmem:[#allocation231_spill] sm:$0xff]  ;;  %v21849_v10 = vld [vmem:[#allocation42_spill] sm:$0xff] }
 0x550   :  { %11344 = vrot.lane.b32.xlu0 %v21838_v32, %s11648_s22  ;;  %v11042_v51 = vunpack.i.h.bf16 %v11040_v9  ;;  %v11041_v21 = vunpack.i.l.bf16 %v11040_v9  ;;  %v21841_v50 = vpack.i.bf16 %v21839_v39, %v21840_v59  ;;  %v10687_v57 = vunpack.i.h.bf16 %v21842_v48  ;;  %v11050_v58 = vpop.permute.xlu1 %11049 }
 0x551   :  { %v10686_v43 = vunpack.i.l.bf16 %v21842_v48  ;;  %v7223_v47 = vsel %vm7212_vm14, %v7158_v29, %v11036_v33  ;;  %v7224_v4 = vsel %vm7212_vm14, %v7159_v60, %v11037_v49  ;;  %v7156_v6 = vsel %vm7147_vm13, %v7091_v44, %v10836_v8  ;;  %v11075_v8 = vpop.permute.xlu0 %11074  ;;  %v21854_v48 = vld [vmem:[#allocation8_spill] sm:$0xff] }
 0x552   :  { %11329 = vrot.lane.b32.xlu1 %v21841_v50, %s11647_s12  ;;  %v7157_v5 = vsel %vm7147_vm13, %v7092_v23, %v10837_v25  ;;  %v7288_v15 = vsel %vm7277_vm15, %v7223_v47, %v11046_v52  ;;  %v7289_v19 = vsel %vm7277_vm15, %v7224_v4, %v11047_v30  ;;  %v21845_v27 = vpack.i.bf16 %v21843_v14, %v21844_v41  ;;  %v21846_v30 = vld [vmem:[#allocation232_spill] sm:$0xff]  ;;  %v21847_v52 = vld [vmem:[#allocation233_spill] sm:$0xff] }
 0x553   :  { %v7222_v56 = vsel %vm7212_vm14, %v7157_v5, %v11032_v35  ;;  %v7221_v16 = vsel %vm7212_vm14, %v7156_v6, %v11031_v3  ;;  %v11052_v33 = vunpack.i.h.bf16 %v11050_v58  ;;  %v11051_v49 = vunpack.i.l.bf16 %v11050_v58  ;;  %v21855_v5 = vld [vmem:[#allocation236_spill] sm:$0xff]  ;;  %v21859_v58 = vld [vmem:[#allocation239_spill] sm:$0xff] }
 0x554   :  { %11354 = vrot.lane.b32.xlu0 %v21845_v27, %s11649_s0  ;;  %v7353_v44 = vsel %vm7342_vm0, %v7288_v15, %v11056_v63  ;;  %v7354_v23 = vsel %vm7342_vm0, %v7289_v19, %v11057_v45  ;;  %v7286_v28 = vsel %vm7277_vm15, %v7221_v16, %v11041_v21  ;;  %v7287_v25 = vsel %vm7277_vm15, %v7222_v56, %v11042_v51  ;;  %v21850_v51 = vld [vmem:[#allocation234_spill] sm:$0xff]  ;;  %v11060_v59 = vpop.permute.xlu1 %11059 }
 0x555   :  { %v21848_v53 = vpack.i.bf16 %v21846_v30, %v21847_v52  ;;  %v10692_v32 = vunpack.i.h.bf16 %v21849_v10  ;;  %v10691_v9 = vunpack.i.l.bf16 %v21849_v10  ;;  %v7351_v29 = vsel %vm7342_vm0, %v7286_v28, %v11051_v49  ;;  %v21851_v21 = vld [vmem:[#allocation238_spill] sm:$0xff]  ;;  %v11085_v6 = vpop.permute.xlu0 %11084  ;;  %v21863_v52 = vld [vmem:[#allocation243_spill] sm:$0xff] }
 0x556   :  { %v7352_v60 = vsel %vm7342_vm0, %v7287_v25, %v11052_v33  ;;  %v19085_v35 = vsel %vm3407_vm6, %v18520_v18, %v10551_v31  ;;  %v19089_v3 = vsel %vm3407_vm6, %v18524_v40, %v10552_v24  ;;  %v19093_v45 = vsel %vm3407_vm6, %v18528_v46, %v10577_v11  ;;  %v21853_v18 = vld [vmem:[#allocation145_spill] sm:$0xff]  ;;  %v21860_v56 = vld [vmem:[#allocation242_spill] sm:$0xff]  ;;  %v21865_v10 = vld [vmem:[#allocation39_spill] sm:$0xff] }
 0x557   :  { %11339 = vrot.lane.b32.xlu1 %v21848_v53, %s11648_s22  ;;  %v7411_v63 = vpack.c.bf16 %v7352_v60, %v7351_v29  ;;  %v21852_v39 = vpack.i.bf16 %v21850_v51, %v21851_v21  ;;  %v19101_v50 = vsel %vm3407_vm6, %v18533_v2, %v10576_v36  ;;  %v10852_v31 = vunpack.i.h.bf16 %v21853_v18  ;;  %v21856_v2 = vld [vmem:[#allocation235_spill] sm:$0xff] }
 0x558   :  { %v10851_v40 = vunpack.i.l.bf16 %v21853_v18  ;;  %v7412_v24 = vpack.c.bf16 %v7354_v23, %v7353_v44  ;;  %v10562_v47 = vunpack.i.h.bf16 %v21854_v48  ;;  %v10561_v46 = vunpack.i.l.bf16 %v21854_v48  ;;  %v21867_v18 = vld [vmem:[#allocation241_spill] sm:$0xff] }
 0x559   :  { %11364 = vrot.lane.b32.xlu0 %v21852_v39, %s11647_s12  ;;  %v7095_v11 = vsel %vm3537_vm8, %v18808_v61, %v10686_v43  ;;  %v7096_v4 = vsel %vm3537_vm8, %v18804_v62, %v10687_v57  ;;  %v21857_v36 = vpack.i.bf16 %v21855_v5, %v21856_v2  ;;  %8818 = vmatprep.mubr.msk.bf16.mxu0 %vm7482_vm2, %v7411_v63  ;;  %v11067_v14 = vunpack.i.h.bf16 %v19051_v12  ;;  %v21858_v62 = vld [vmem:[#allocation60_spill] sm:$0xff]  ;;  %v19131_v30 = vpop.permute.xlu0 %11094 }
 0x55a   :  { %v7097_v15 = vsel %vm3537_vm8, %v18856_v54, %v10691_v9  ;;  %v7098_v19 = vsel %vm3537_vm8, %v18860_v37, %v10692_v32  ;;  %v11066_v61 = vunpack.i.l.bf16 %v19051_v12  ;;  %8819 = vmatmul.mubr.msk.bf16.gmra.mxu0 %vm7482_vm2, %v7412_v24  ;;  %v10847_v57 = vunpack.i.h.bf16 %v21858_v62  ;;  %v11070_v54 = vpop.permute.xlu1 %11069 }
 0x55b   :  { %11349 = vrot.lane.b32.xlu1 %v21857_v36, %s11649_s0  ;;  %v10846_v43 = vunpack.i.l.bf16 %v21858_v62  ;;  %v11077_v41 = vunpack.i.h.bf16 %v11075_v8  ;;  %v11076_v27 = vunpack.i.l.bf16 %v11075_v8  ;;  %v21861_v16 = vpack.i.bf16 %v21859_v58, %v21860_v56  ;;  %v21862_v8 = vld [vmem:[#allocation240_spill] sm:$0xff] }
 0x55c   :  { %v7162_v37 = vsel %vm7147_vm13, %v7097_v15, %v10851_v40  ;;  %v7163_v33 = vsel %vm7147_vm13, %v7098_v19, %v10852_v31  ;;  %v11062_v49 = vunpack.i.h.bf16 %v11060_v59  ;;  %v11061_v12 = vunpack.i.l.bf16 %v11060_v59  ;;  %v21866_v59 = vld [vmem:[#allocation244_spill] sm:$0xff]  ;;  %v21869_v19 = vld [vmem:[#allocation245_spill] sm:$0xff] }
 0x55d   :  { %11374 = vrot.lane.b32.xlu0 %v21861_v16, %s11648_s22  ;;  %v11087_v44 = vunpack.i.h.bf16 %v11085_v6  ;;  %v11086_v23 = vunpack.i.l.bf16 %v11085_v6  ;;  %v11072_v28 = vunpack.i.h.bf16 %v11070_v54  ;;  %v11071_v25 = vunpack.i.l.bf16 %v11070_v54  ;;  %v11105_v15 = vpop.permute.xlu0 %11104  ;;  %v21872_v62 = vld [vmem:[#allocation44_spill] sm:$0xff]  ;;  %v21873_v16 = vld [vmem:[#allocation21_spill] sm:$0xff] }
 0x55e   :  { %v21864_v53 = vpack.i.bf16 %v21862_v8, %v21863_v52  ;;  %v10697_v32 = vunpack.i.h.bf16 %v21865_v10  ;;  %v10696_v9 = vunpack.i.l.bf16 %v21865_v10  ;;  %v7227_v29 = vsel %vm7212_vm14, %v7162_v37, %v11066_v61  ;;  %v11080_v40 = vpop.permute.xlu1 %11079  ;;  %v21878_v8 = vld [vmem:[#allocation83_spill] sm:$0xff] }
 0x55f   :  { %v7228_v60 = vsel %vm7212_vm14, %v7163_v33, %v11067_v14  ;;  %v7160_v63 = vsel %vm7147_vm13, %v7095_v11, %v10846_v43  ;;  %v7161_v51 = vsel %vm7147_vm13, %v7096_v4, %v10847_v57  ;;  %v7292_v21 = vsel %vm7277_vm15, %v7227_v29, %v11076_v27  ;;  %v21870_v14 = vld [vmem:[#allocation248_spill] sm:$0xff]  ;;  %v21874_v33 = vld [vmem:[#allocation246_spill] sm:$0xff] }
 0x560   :  { %11359 = vrot.lane.b32.xlu1 %v21864_v53, %s11647_s12  ;;  %v7293_v39 = vsel %vm7277_vm15, %v7228_v60, %v11077_v41  ;;  %v21868_v31 = vpack.i.bf16 %v21866_v59, %v21867_v18  ;;  %v7226_v24 = vsel %vm7212_vm14, %v7161_v51, %v11062_v49  ;;  %v7225_v48 = vsel %vm7212_vm14, %v7160_v63, %v11061_v12  ;;  %v21875_v49 = vld [vmem:[#allocation249_spill] sm:$0xff]  ;;  %v21880_v60 = vld [vmem:[#allocation251_spill] sm:$0xff]  ;;  %v21881_v63 = vld [vmem:[#allocation250_spill] sm:$0xff] }
 0x561   :  { %v11082_v6 = vunpack.i.h.bf16 %v11080_v40  ;;  %v11081_v5 = vunpack.i.l.bf16 %v11080_v40  ;;  %v7357_v11 = vsel %vm7342_vm0, %v7292_v21, %v11086_v23  ;;  %v7358_v4 = vsel %vm7342_vm0, %v7293_v39, %v11087_v44  ;;  %v21879_v53 = vld [vmem:[#allocation41_spill] sm:$0xff]  ;;  %v11115_v29 = vpop.permute.xlu0 %11114  ;;  %v21884_v40 = vld [vmem:[#allocation252_spill] sm:$0xff] }
 0x562   :  { %11384 = vrot.lane.b32.xlu0 %v21868_v31, %s11649_s0  ;;  %v7290_v2 = vsel %vm7277_vm15, %v7225_v48, %v11071_v25  ;;  %v7291_v36 = vsel %vm7277_vm15, %v7226_v24, %v11072_v28  ;;  %v21871_v61 = vpack.i.bf16 %v21869_v19, %v21870_v14  ;;  %v10702_v57 = vunpack.i.h.bf16 %v21872_v62  ;;  %v11090_v44 = vpop.permute.xlu1 %11089  ;;  %v21877_v28 = vld [vmem:[#allocation149_spill] sm:$0xff]  ;;  %v21888_v14 = vld [vmem:[#allocation260_spill] sm:$0xff] }
 0x563   :  { %v10701_v43 = vunpack.i.l.bf16 %v21872_v62  ;;  %v7355_v41 = vsel %vm7342_vm0, %v7290_v2, %v11081_v5  ;;  %v7356_v27 = vsel %vm7342_vm0, %v7291_v36, %v11082_v6  ;;  %v19165_v58 = vsel %vm3407_vm6, %v18537_v42, %v10561_v46  ;;  %v21885_v24 = vld [vmem:[#allocation257_spill] sm:$0xff] }
 0x564   :  { %11369 = vrot.lane.b32.xlu1 %v21871_v61, %s11648_s22  ;;  %v19169_v56 = vsel %vm3407_vm6, %v18541_v0, %v10562_v47  ;;  %v10587_v54 = vunpack.i.h.bf16 %v21873_v16  ;;  %v7413_v37 = vpack.c.bf16 %v7356_v27, %v7355_v41  ;;  %v21876_v12 = vpack.i.bf16 %v21874_v33, %v21875_v49 }
 0x565   :  { %v10586_v23 = vunpack.i.l.bf16 %v21873_v16  ;;  %v10862_v25 = vunpack.i.h.bf16 %v21877_v28  ;;  %v10861_v42 = vunpack.i.l.bf16 %v21877_v28  ;;  %v7414_v46 = vpack.c.bf16 %v7358_v4, %v7357_v11  ;;  %v19205_v19 = vpop.permute.xlu0 %11124 }
 0x566   :  { %11394 = vrot.lane.b32.xlu0 %v21876_v12, %s11647_s12  ;;  %v10571_v52 = vunpack.i.l.bf16 %v21878_v8  ;;  %v7099_v0 = vsel %vm3537_vm8, %v18830_v38, %v10696_v9  ;;  %v7100_v47 = vsel %vm3537_vm8, %v18826_v7, %v10697_v32  ;;  %v10707_v10 = vunpack.i.h.bf16 %v21879_v53  ;;  %8822 = vmatprep.mubr.msk.bf16.mxu0 %vm7482_vm2, %v7413_v37  ;;  %v21883_v32 = vld [vmem:[#allocation134_spill] sm:$0xff]  ;;  %v21891_v12 = vld [vmem:[#allocation255_spill] sm:$0xff] }
 0x567   :  { %v21882_v51 = vpack.i.bf16 %v21880_v60, %v21881_v63  ;;  %v7101_v21 = vsel %vm3537_vm8, %v18935_v22, %v10701_v43  ;;  %v7102_v39 = vsel %vm3537_vm8, %v18945_v55, %v10702_v57  ;;  %v11097_v38 = vunpack.i.h.bf16 %v19131_v30  ;;  %8823 = vmatmul.mubr.msk.bf16.gmra.mxu0 %vm7482_vm2, %v7414_v46  ;;  %v11100_v22 = vpop.permute.xlu1 %11099  ;;  %v21890_v57 = vld [vmem:[#allocation46_spill] sm:$0xff] }
 0x568   :  { %v11096_v7 = vunpack.i.l.bf16 %v19131_v30  ;;  %v10857_v9 = vunpack.i.h.bf16 %v21883_v32  ;;  %v10856_v59 = vunpack.i.l.bf16 %v21883_v32  ;;  %v11107_v18 = vunpack.i.h.bf16 %v11105_v15 }
 0x569   :  { %11379 = vrot.lane.b32.xlu1 %v21882_v51, %s11649_s0  ;;  %v11106_v31 = vunpack.i.l.bf16 %v11105_v15  ;;  %v21886_v48 = vpack.i.bf16 %v21884_v40, %v21885_v24  ;;  %v7166_v55 = vsel %vm7147_vm13, %v7101_v21, %v10861_v42  ;;  %v7167_v6 = vsel %vm7147_vm13, %v7102_v39, %v10862_v25  ;;  %v21887_v15 = vld [vmem:[#allocation253_spill] sm:$0xff]  ;;  %v11135_v21 = vpop.permute.xlu0 %11134  ;;  %v21894_v39 = vld [vmem:[#allocation258_spill] sm:$0xff] }
 0x56a   :  { %v11092_v5 = vunpack.i.h.bf16 %v11090_v44  ;;  %v11091_v30 = vunpack.i.l.bf16 %v11090_v44  ;;  %v11117_v11 = vunpack.i.h.bf16 %v11115_v29  ;;  %v11116_v4 = vunpack.i.l.bf16 %v11115_v29  ;;  %v21892_v44 = vld [vmem:[#allocation254_spill] sm:$0xff]  ;;  %v21897_v24 = vld [vmem:[#allocation173_spill] sm:$0xff] }
 0x56b   :  { %11404 = vrot.lane.b32.xlu0 %v21886_v48, %s11648_s22  ;;  %v11102_v2 = vunpack.i.h.bf16 %v11100_v22  ;;  %v11101_v36 = vunpack.i.l.bf16 %v11100_v22  ;;  %v21889_v61 = vpack.i.bf16 %v21887_v15, %v21888_v14  ;;  %v10706_v62 = vunpack.i.l.bf16 %v21879_v53  ;;  %v11110_v25 = vpop.permute.xlu1 %11109  ;;  %v21903_v15 = vld [vmem:[#allocation61_spill] sm:$0xff]  ;;  %v21904_v14 = vld [vmem:[#allocation100_spill] sm:$0xff] }
 0x56c   :  { %v10711_v43 = vunpack.i.l.bf16 %v21890_v57  ;;  %v7231_v41 = vsel %vm7212_vm14, %v7166_v55, %v11096_v7  ;;  %v7232_v27 = vsel %vm7212_vm14, %v7167_v6, %v11097_v38  ;;  %v7164_v16 = vsel %vm7147_vm13, %v7099_v0, %v10856_v59  ;;  %v21895_v38 = vld [vmem:[#allocation261_spill] sm:$0xff] }
 0x56d   :  { %11389 = vrot.lane.b32.xlu1 %v21889_v61, %s11647_s12  ;;  %v7165_v37 = vsel %vm7147_vm13, %v7100_v47, %v10857_v9  ;;  %v7296_v33 = vsel %vm7277_vm15, %v7231_v41, %v11106_v31  ;;  %v7297_v49 = vsel %vm7277_vm15, %v7232_v27, %v11107_v18  ;;  %v21893_v28 = vpack.i.bf16 %v21891_v12, %v21892_v44  ;;  %v21909_v44 = vld [vmem:[#allocation129_spill] sm:$0xff] }
 0x56e   :  { %v7230_v42 = vsel %vm7212_vm14, %v7165_v37, %v11092_v5  ;;  %v7229_v46 = vsel %vm7212_vm14, %v7164_v16, %v11091_v30  ;;  %v11112_v29 = vunpack.i.h.bf16 %v11110_v25  ;;  %v11111_v60 = vunpack.i.l.bf16 %v11110_v25  ;;  %v4713_v5 = vld [vmem:[#allocation2 + $0x348] sm:$0xff]  ;;  %v4714_v30 = vld [vmem:[#allocation2 + $0x350] sm:$0xff]  ;;  %v11145_v16 = vpop.permute.xlu0 %11144 }
 0x56f   :  { %11414 = vrot.lane.b32.xlu0 %v21893_v28, %s11649_s0  ;;  %v7361_v0 = vsel %vm7342_vm0, %v7296_v33, %v11116_v4  ;;  %v7362_v47 = vsel %vm7342_vm0, %v7297_v49, %v11117_v11  ;;  %v7294_v63 = vsel %vm7277_vm15, %v7229_v46, %v11101_v36  ;;  %v7295_v51 = vsel %vm7277_vm15, %v7230_v42, %v11102_v2  ;;  %v11120_v6 = vpop.permute.xlu1 %11119  ;;  %v21901_v11 = vld [vmem:[#allocation94_spill] sm:$0xff]  ;;  %v21902_v2 = vld [vmem:[#allocation96_spill] sm:$0xff]  ;;  %v21906_v37 = vld [vmem:[#allocation265_spill] sm:$0xff] }
 0x570   :  { %v21896_v7 = vpack.i.bf16 %v21894_v39, %v21895_v38  ;;  %v19235_v32 = vsel %vm3407_vm6, %v18552_v20, %v10587_v54  ;;  %v10712_v9 = vunpack.i.h.bf16 %v21890_v57  ;;  %v7359_v59 = vsel %vm7342_vm0, %v7294_v63, %v11111_v60  ;;  %v21898_v20 = vld [vmem:[#allocation259_spill] sm:$0xff]  ;;  %v21907_v33 = vld [vmem:[#allocation264_spill] sm:$0xff]  ;;  %v21911_v46 = vld [vmem:[#allocation138_spill] sm:$0xff] }
 0x571   :  { %v7360_v18 = vsel %vm7342_vm0, %v7295_v51, %v11112_v29  ;;  %v19242_v31 = vsel %vm3407_vm6, %v18556_v1, %v10586_v23  ;;  %v10572_v40 = vunpack.i.h.bf16 %v21878_v8  ;;  %v19247_v48 = vsel %vm3407_vm6, %v21897_v24, %v10571_v52  ;;  %v21899_v54 = vld [vmem:[#allocation263_spill] sm:$0xff] }
 0x572   :  { %11399 = vrot.lane.b32.xlu1 %v21896_v7, %s11648_s22  ;;  %v7415_v22 = vpack.c.bf16 %v7360_v18, %v7359_v59  ;;  %v21900_v55 = vpack.i.bf16 %v21898_v20, %v21899_v54  ;;  %v10597_v4 = vunpack.i.h.bf16 %v21901_v11  ;;  %v10872_v1 = vunpack.i.h.bf16 %v21902_v2  ;;  %v21905_v57 = vld [vmem:[#allocation43_spill] sm:$0xff]  ;;  %v19283_v59 = vpop.permute.xlu0 %11154 }
 0x573   :  { %v10871_v23 = vunpack.i.l.bf16 %v21902_v2  ;;  %v7416_v36 = vpack.c.bf16 %v7362_v47, %v7361_v0  ;;  %v7103_v52 = vsel %vm3537_vm8, %v21903_v15, %v10706_v62  ;;  %v7104_v61 = vsel %vm3537_vm8, %v21904_v14, %v10707_v10  ;;  %v21910_v42 = vld [vmem:[#allocation267_spill] sm:$0xff]  ;;  %v11130_v60 = vpop.permute.xlu1 %11129  ;;  %v4778_v0 = vld [vmem:[#allocation2 + $0x351] sm:$0xff] }
 0x574   :  { %11424 = vrot.lane.b32.xlu0 %v21900_v55, %s11647_s12  ;;  %v10717_v41 = vunpack.i.h.bf16 %v21905_v57  ;;  %v7105_v27 = vsel %vm3537_vm8, %v19085_v35, %v10711_v43  ;;  %v21908_v49 = vpack.i.bf16 %v21906_v37, %v21907_v33  ;;  %8826 = vmatprep.mubr.msk.bf16.mxu0 %vm7482_vm2, %v7415_v22  ;;  %v7106_v62 = vsel %vm3537_vm8, %v19089_v3, %v10712_v9  ;;  %v4777_v3 = vld [vmem:[#allocation2 + $0x349] sm:$0xff] }
 0x575   :  { %v11127_v53 = vunpack.i.h.bf16 %v19205_v19  ;;  %v11126_v10 = vunpack.i.l.bf16 %v19205_v19  ;;  %8827 = vmatmul.mubr.msk.bf16.gmra.mxu0 %vm7482_vm2, %v7416_v36  ;;  %v11428_v12 = vpack.i.bf16 %v4714_v30, %v4713_v5  ;;  %v10867_v35 = vunpack.i.h.bf16 %v21909_v44 }
 0x576   :  { %11409 = vrot.lane.b32.xlu1 %v21908_v49, %s11649_s0  ;;  %v10866_v43 = vunpack.i.l.bf16 %v21909_v44  ;;  %v11137_v28 = vunpack.i.h.bf16 %v11135_v21  ;;  %v11136_v25 = vunpack.i.l.bf16 %v11135_v21  ;;  %v21912_v29 = vpack.i.bf16 %v21910_v42, %v21911_v46  ;;  %v21913_v21 = vld [vmem:[#allocation62_spill] sm:$0xff]  ;;  %v21917_v46 = vld [vmem:[#allocation87_spill] sm:$0xff] }
 0x577   :  { %v7170_v47 = vsel %vm7147_vm13, %v7105_v27, %v10871_v23  ;;  %v7171_v19 = vsel %vm7147_vm13, %v7106_v62, %v10872_v1  ;;  %v11122_v63 = vunpack.i.h.bf16 %v11120_v6  ;;  %v11121_v51 = vunpack.i.l.bf16 %v11120_v6  ;;  %v11140_v30 = vpop.permute.xlu1 %11139  ;;  %v11165_v27 = vpop.permute.xlu0 %11164  ;;  %v21915_v44 = vld [vmem:[#allocation114_spill] sm:$0xff] }
 0x578   :  { %11434 = vrot.lane.b32.xlu0 %v21912_v29, %s11648_s22  ;;  %v11147_v39 = vunpack.i.h.bf16 %v11145_v16  ;;  %v11146_v38 = vunpack.i.l.bf16 %v11145_v16  ;;  %v11132_v7 = vunpack.i.h.bf16 %v11130_v60  ;;  %v11131_v9 = vunpack.i.l.bf16 %v11130_v60  ;;  %v21914_v16 = vld [vmem:[#allocation4_spill] sm:$0xff]  ;;  %v21918_v60 = vld [vmem:[#allocation155_spill] sm:$0xff] }
 0x579   :  { %v10716_v18 = vunpack.i.l.bf16 %v21905_v57  ;;  %v7235_v24 = vsel %vm7212_vm14, %v7170_v47, %v11126_v10  ;;  %v7236_v22 = vsel %vm7212_vm14, %v7171_v19, %v11127_v53  ;;  %v11438_v20 = vpack.i.bf16 %v4778_v0, %v4777_v3  ;;  %v4841_v53 = vld [vmem:[#allocation2 + $0x34a] sm:$0xff]  ;;  %v4842_v10 = vld [vmem:[#allocation2 + $0x352] sm:$0xff]  ;;  %v21919_v57 = vld [vmem:[#allocation63_spill] sm:$0xff] }
 0x57a   :  { %11419 = vrot.lane.b32.xlu1 %v21913_v21, %s11646_s4  ;;  %v7168_v54 = vsel %vm7147_vm13, %v7103_v52, %v10866_v43  ;;  %v7169_v55 = vsel %vm7147_vm13, %v7104_v61, %v10867_v35  ;;  %v7300_v6 = vsel %vm7277_vm15, %v7235_v24, %v11136_v25  ;;  %v7301_v5 = vsel %vm7277_vm15, %v7236_v22, %v11137_v28  ;;  %v21916_v43 = vld [vmem:[#allocation65_spill] sm:$0xff] }
 0x57b   :  { %v7234_v2 = vsel %vm7212_vm14, %v7169_v55, %v11122_v63  ;;  %v7233_v1 = vsel %vm7212_vm14, %v7168_v54, %v11121_v51  ;;  %v11142_v23 = vunpack.i.h.bf16 %v11140_v30  ;;  %v11141_v36 = vunpack.i.l.bf16 %v11140_v30  ;;  %v11150_v42 = vpop.permute.xlu1 %11149  ;;  %v21920_v55 = vld [vmem:[#allocation45_spill] sm:$0xff] }
 0x57c   :  { %11444 = vrot.lane.b32.xlu0 %v21913_v21, %s11649_s0  ;;  %v7365_v15 = vsel %vm7342_vm0, %v7300_v6, %v11146_v38  ;;  %v7366_v52 = vsel %vm7342_vm0, %v7301_v5, %v11147_v39  ;;  %v7298_v14 = vsel %vm7277_vm15, %v7233_v1, %v11131_v9  ;;  %v7299_v61 = vsel %vm7277_vm15, %v7234_v2, %v11132_v7  ;;  %v19348_v1 = vpop.f32.mrf.mxu0 }
 0x57d   :  { %v10722_v37 = vunpack.i.h.bf16 %v21914_v16  ;;  %v10721_v33 = vunpack.i.l.bf16 %v21914_v16  ;;  %v7363_v49 = vsel %vm7342_vm0, %v7298_v14, %v11141_v36  ;;  %v7364_v62 = vsel %vm7342_vm0, %v7299_v61, %v11142_v23 }
 0x57e   :  { %11429 = vrot.lane.b32.xlu1 %v11428_v12, %s11647_s12  ;;  %v19311_v35 = vsel %vm3407_vm6, %v21915_v44, %v10572_v40  ;;  %v19315_v28 = vsel %vm3407_vm6, %v21916_v43, %v10597_v4  ;;  %v10596_v12 = vunpack.i.l.bf16 %v21901_v11  ;;  %v7417_v25 = vpack.c.bf16 %v7364_v62, %v7363_v49  ;;  %v11175_v11 = vpop.permute.xlu0 %11174  ;;  %v21921_v44 = vld [vmem:[#allocation135_spill] sm:$0xff] }
 0x57f   :  { %v10582_v29 = vunpack.i.h.bf16 %v21917_v46  ;;  %v10882_v3 = vunpack.i.h.bf16 %v21918_v60  ;;  %v10881_v0 = vunpack.i.l.bf16 %v21918_v60  ;;  %v7418_v47 = vpack.c.bf16 %v7366_v52, %v7365_v15  ;;  %v11160_v9 = vpop.permute.xlu1 %11159  ;;  %v19364_v60 = vpop.f32.mrf.mxu0 }
 0x580   :  { %v10581_v8 = vunpack.i.l.bf16 %v21917_v46  ;;  %v7107_v40 = vsel %vm3537_vm8, %v18931_v34, %v10716_v18  ;;  %v7108_v4 = vsel %vm3537_vm8, %v18927_v17, %v10717_v41  ;;  %8830 = vmatprep.mubr.msk.bf16.mxu0 %vm7482_vm2, %v7417_v25  ;;  %v11448_v19 = vpack.i.bf16 %v4842_v10, %v4841_v53 }
 0x581   :  { %v7109_v63 = vsel %vm3537_vm8, %v19165_v58, %v10721_v33  ;;  %v7110_v51 = vsel %vm3537_vm8, %v19169_v56, %v10722_v37  ;;  %v11157_v39 = vunpack.i.h.bf16 %v19283_v59  ;;  %v11156_v34 = vunpack.i.l.bf16 %v19283_v59  ;;  %8831 = vmatmul.mubr.msk.bf16.gmra.mxu0 %vm7482_vm2, %v7418_v47  ;;  %v21923_v47 = vld [vmem:[#allocation156_spill] sm:$0xff] }
 0x582   :  { %11439 = vrot.lane.b32.xlu1 %v11438_v20, %s11648_s22  ;;  %v10877_v17 = vunpack.i.h.bf16 %v21919_v57  ;;  %v10876_v41 = vunpack.i.l.bf16 %v21919_v57  ;;  %v11167_v38 = vunpack.i.h.bf16 %v11165_v27  ;;  %v11166_v7 = vunpack.i.l.bf16 %v11165_v27  ;;  %v19341_v59 = vpop.permute.xlu0 %11184 }
 0x583   :  { %v7174_v21 = vsel %vm7147_vm13, %v7109_v63, %v10881_v0  ;;  %v7175_v58 = vsel %vm7147_vm13, %v7110_v51, %v10882_v3  ;;  %v11152_v18 = vunpack.i.h.bf16 %v11150_v42  ;;  %v11151_v24 = vunpack.i.l.bf16 %v11150_v42  ;;  %v11170_v14 = vpop.permute.xlu1 %11169  ;;  %v21922_v3 = vld [vmem:[#allocation157_spill] sm:$0xff]  ;;  %v21925_v51 = vld [vmem:[#allocation23_spill] sm:$0xff] }
 0x584   :  { %v11177_v56 = vunpack.i.h.bf16 %v11175_v11  ;;  %v11176_v22 = vunpack.i.l.bf16 %v11175_v11  ;;  %v11162_v20 = vunpack.i.h.bf16 %v11160_v9  ;;  %v11161_v54 = vunpack.i.l.bf16 %v11160_v9 }
 0x585   :  { %v10727_v6 = vunpack.i.h.bf16 %v21920_v55  ;;  %v10726_v5 = vunpack.i.l.bf16 %v21920_v55  ;;  %v7239_v30 = vsel %vm7212_vm14, %v7174_v21, %v11156_v34  ;;  %v7240_v2 = vsel %vm7212_vm14, %v7175_v58, %v11157_v39  ;;  %v21926_v34 = vld [vmem:[#allocation10_spill] sm:$0xff] }
 0x586   :  { %11449 = vrot.lane.b32.xlu1 %v11448_v19, %s11649_s0  ;;  %v7172_v23 = vsel %vm7147_vm13, %v7107_v40, %v10876_v41  ;;  %v7173_v36 = vsel %vm7147_vm13, %v7108_v4, %v10877_v17  ;;  %v7304_v15 = vsel %vm7277_vm15, %v7239_v30, %v11166_v7  ;;  %v7305_v52 = vsel %vm7277_vm15, %v7240_v2, %v11167_v38  ;;  %v11195_v10 = vpop.permute.xlu0 %11194  ;;  %v21924_v4 = vld [vmem:[#allocation201_spill] sm:$0xff]  ;;  %v21927_v38 = vld [vmem:[#allocation82_spill] sm:$0xff] }
 0x587   :  { %v7238_v61 = vsel %vm7212_vm14, %v7173_v36, %v11152_v18  ;;  %v7237_v27 = vsel %vm7212_vm14, %v7172_v23, %v11151_v24  ;;  %v11172_v16 = vunpack.i.h.bf16 %v11170_v14  ;;  %v11171_v37 = vunpack.i.l.bf16 %v11170_v14  ;;  %v11180_v63 = vpop.permute.xlu1 %11179 }
 0x588   :  { %v7369_v33 = vsel %vm7342_vm0, %v7304_v15, %v11176_v22  ;;  %v7370_v49 = vsel %vm7342_vm0, %v7305_v52, %v11177_v56  ;;  %v7302_v62 = vsel %vm7277_vm15, %v7237_v27, %v11161_v54  ;;  %v7303_v53 = vsel %vm7277_vm15, %v7238_v61, %v11162_v20  ;;  %v19395_v56 = vpop.f32.mrf.mxu0  ;;  %v21929_v15 = vld [vmem:[#allocation47_spill] sm:$0xff] }
 0x589   :  { %v10732_v43 = vunpack.i.h.bf16 %v21921_v44  ;;  %v10731_v25 = vunpack.i.l.bf16 %v21921_v44  ;;  %v7367_v42 = vsel %vm7342_vm0, %v7302_v62, %v11171_v37  ;;  %v7368_v46 = vsel %vm7342_vm0, %v7303_v53, %v11172_v16 }
 0x58a   :  { %v19368_v0 = vsel %vm3407_vm6, %v21922_v3, %v10596_v12  ;;  %v19372_v40 = vsel %vm3407_vm6, %v21923_v47, %v10581_v8  ;;  %v19376_v11 = vsel %vm3407_vm6, %v21924_v4, %v10582_v29  ;;  %v7419_v19 = vpack.c.bf16 %v7368_v46, %v7367_v42  ;;  %v11205_v9 = vpop.permute.xlu0 %11204  ;;  %v19407_v16 = vpop.f32.mrf.mxu0 }
 0x58b   :  { %v10607_v39 = vunpack.i.h.bf16 %v21925_v51  ;;  %v10892_v57 = vunpack.i.h.bf16 %v21926_v34  ;;  %v10891_v17 = vunpack.i.l.bf16 %v21926_v34  ;;  %v7420_v41 = vpack.c.bf16 %v7370_v49, %v7369_v33  ;;  %v11190_v55 = vpop.permute.xlu1 %11189 }
 0x58c   :  { %v10606_v12 = vunpack.i.l.bf16 %v21925_v51  ;;  %v10591_v7 = vunpack.i.l.bf16 %v21927_v38  ;;  %v7111_v8 = vsel %vm3537_vm8, %v19015_v26, %v10726_v5  ;;  %v7112_v29 = vsel %vm3537_vm8, %v19011_v13, %v10727_v6  ;;  %8834 = vmatprep.mubr.msk.bf16.mxu0 %vm7482_vm2, %v7419_v19  ;;  %v21928_v26 = vld [vmem:[#allocation141_spill] sm:$0xff] }
 0x58d   :  { %v7113_v21 = vsel %vm3537_vm8, %v19247_v48, %v10731_v25  ;;  %v7114_v58 = vsel %vm3537_vm8, %v19311_v35, %v10732_v43  ;;  %v11187_v18 = vunpack.i.h.bf16 %v19341_v59  ;;  %v11186_v24 = vunpack.i.l.bf16 %v19341_v59  ;;  %8835 = vmatmul.mubr.msk.bf16.gmra.mxu0 %vm7482_vm2, %v7420_v41  ;;  %v21930_v19 = vld [vmem:[#allocation137_spill] sm:$0xff]  ;;  %v21931_v41 = vld [vmem:[#allocation55_spill] sm:$0xff] }
 0x58e   :  { %v10887_v22 = vunpack.i.h.bf16 %v21928_v26  ;;  %v10886_v13 = vunpack.i.l.bf16 %v21928_v26  ;;  %v11197_v20 = vunpack.i.h.bf16 %v11195_v10  ;;  %v11196_v54 = vunpack.i.l.bf16 %v11195_v10  ;;  %v19401_v36 = vpop.permute.xlu0 %11214 }
 0x58f   :  { %v7178_v48 = vsel %vm7147_vm13, %v7113_v21, %v10891_v17  ;;  %v7179_v6 = vsel %vm7147_vm13, %v7114_v58, %v10892_v57  ;;  %v11182_v35 = vunpack.i.h.bf16 %v11180_v63  ;;  %v11181_v5 = vunpack.i.l.bf16 %v11180_v63  ;;  %v11200_v53 = vpop.permute.xlu1 %11199  ;;  %v19423_v17 = vpop.f32.mrf.mxu0 }
 0x590   :  { %v11207_v30 = vunpack.i.h.bf16 %v11205_v9  ;;  %v11206_v2 = vunpack.i.l.bf16 %v11205_v9  ;;  %v11192_v59 = vunpack.i.h.bf16 %v11190_v55  ;;  %v11191_v23 = vunpack.i.l.bf16 %v11190_v55  ;;  %v21935_v55 = vld [vmem:[#allocation25_spill] sm:$0xff] }
 0x591   :  { %v10737_v52 = vunpack.i.h.bf16 %v21929_v15  ;;  %v10736_v14 = vunpack.i.l.bf16 %v21929_v15  ;;  %v7243_v61 = vsel %vm7212_vm14, %v7178_v48, %v11186_v24  ;;  %v7244_v27 = vsel %vm7212_vm14, %v7179_v6, %v11187_v18  ;;  %v21933_v24 = vld [vmem:[#allocation54_spill] sm:$0xff] }
 0x592   :  { %v7176_v37 = vsel %vm7147_vm13, %v7111_v8, %v10886_v13  ;;  %v7177_v33 = vsel %vm7147_vm13, %v7112_v29, %v10887_v22  ;;  %v7308_v49 = vsel %vm7277_vm15, %v7243_v61, %v11196_v54  ;;  %v7309_v62 = vsel %vm7277_vm15, %v7244_v27, %v11197_v20  ;;  %v11225_v4 = vpop.permute.xlu0 %11224  ;;  %v21932_v29 = vld [vmem:[#allocation159_spill] sm:$0xff]  ;;  %v21934_v22 = vld [vmem:[#allocation97_spill] sm:$0xff] }
 0x593   :  { %v7242_v10 = vsel %vm7212_vm14, %v7177_v33, %v11182_v35  ;;  %v7241_v44 = vsel %vm7212_vm14, %v7176_v37, %v11181_v5  ;;  %v11202_v43 = vunpack.i.h.bf16 %v11200_v53  ;;  %v11201_v25 = vunpack.i.l.bf16 %v11200_v53  ;;  %v11210_v18 = vpop.permute.xlu1 %11209 }
 0x594   :  { %v7373_v42 = vsel %vm7342_vm0, %v7308_v49, %v11206_v2  ;;  %v7374_v46 = vsel %vm7342_vm0, %v7309_v62, %v11207_v30  ;;  %v7306_v3 = vsel %vm7277_vm15, %v7241_v44, %v11191_v23  ;;  %v7307_v47 = vsel %vm7277_vm15, %v7242_v10, %v11192_v59  ;;  %v19454_v2 = vpop.f32.mrf.mxu0  ;;  %v21937_v62 = vld [vmem:[#allocation3_spill] sm:$0xff] }
 0x595   :  { %v10742_v63 = vunpack.i.h.bf16 %v21930_v19  ;;  %v10741_v51 = vunpack.i.l.bf16 %v21930_v19  ;;  %v7371_v34 = vsel %vm7342_vm0, %v7306_v3, %v11201_v25  ;;  %v7372_v57 = vsel %vm7342_vm0, %v7307_v47, %v11202_v43 }
 0x596   :  { %v19427_v8 = vsel %vm3407_vm6, %v21931_v41, %v10607_v39  ;;  %v19431_v9 = vsel %vm3407_vm6, %v21932_v29, %v10606_v12  ;;  %v10592_v21 = vunpack.i.h.bf16 %v21927_v38  ;;  %v7421_v58 = vpack.c.bf16 %v7372_v57, %v7371_v34  ;;  %v11235_v6 = vpop.permute.xlu0 %11234  ;;  %v19466_v25 = vpop.f32.mrf.mxu0 }
 0x597   :  { %v19436_v26 = vsel %vm3407_vm6, %v21933_v24, %v10591_v7  ;;  %v10902_v13 = vunpack.i.h.bf16 %v21934_v22  ;;  %v10901_v20 = vunpack.i.l.bf16 %v21934_v22  ;;  %v7422_v54 = vpack.c.bf16 %v7374_v46, %v7373_v42  ;;  %v21938_v24 = vld [vmem:[#allocation153_spill] sm:$0xff] }
 0x598   :  { %v10617_v39 = vunpack.i.h.bf16 %v21935_v55  ;;  %v10616_v48 = vunpack.i.l.bf16 %v21935_v55  ;;  %v7115_v12 = vsel %vm3537_vm8, %v19101_v50, %v10736_v14  ;;  %v7116_v38 = vsel %vm3537_vm8, %v19093_v45, %v10737_v52  ;;  %8838 = vmatprep.mubr.msk.bf16.mxu0 %vm7482_vm2, %v7421_v58  ;;  %v21936_v50 = vld [vmem:[#allocation150_spill] sm:$0xff]  ;;  %v11220_v52 = vpop.permute.xlu1 %11219  ;;  %v19482_v55 = vpop.f32.mrf.mxu0 }
 0x599   :  { %v7117_v7 = vsel %vm3537_vm8, %v19372_v40, %v10741_v51  ;;  %v7118_v35 = vsel %vm3537_vm8, %v19376_v11, %v10742_v63  ;;  %v11217_v5 = vunpack.i.h.bf16 %v19401_v36  ;;  %v11216_v30 = vunpack.i.l.bf16 %v19401_v36  ;;  %8839 = vmatmul.mubr.msk.bf16.gmra.mxu0 %vm7482_vm2, %v7422_v54 }
 0x59a   :  { %v10897_v59 = vunpack.i.h.bf16 %v21936_v50  ;;  %v10896_v45 = vunpack.i.l.bf16 %v21936_v50  ;;  %v11227_v23 = vunpack.i.h.bf16 %v11225_v4  ;;  %v11226_v15 = vunpack.i.l.bf16 %v11225_v4  ;;  %v19460_v49 = vpop.permute.xlu0 %11244 }
 0x59b   :  { %v7182_v40 = vsel %vm7147_vm13, %v7117_v7, %v10901_v20  ;;  %v7183_v14 = vsel %vm7147_vm13, %v7118_v35, %v10902_v13  ;;  %v11212_v11 = vunpack.i.h.bf16 %v11210_v18  ;;  %v11211_v61 = vunpack.i.l.bf16 %v11210_v18  ;;  %v21941_v35 = vld [vmem:[#allocation119_spill] sm:$0xff] }
 0x59c   :  { %v11237_v27 = vunpack.i.h.bf16 %v11235_v6  ;;  %v11236_v37 = vunpack.i.l.bf16 %v11235_v6  ;;  %v11222_v36 = vunpack.i.h.bf16 %v11220_v52  ;;  %v11221_v33 = vunpack.i.l.bf16 %v11220_v52  ;;  %v11230_v4 = vpop.permute.xlu1 %11229  ;;  %v21940_v6 = vld [vmem:[#allocation13_spill] sm:$0xff] }
 0x59d   :  { %v10747_v53 = vunpack.i.h.bf16 %v21937_v62  ;;  %v10746_v10 = vunpack.i.l.bf16 %v21937_v62  ;;  %v7247_v44 = vsel %vm7212_vm14, %v7182_v40, %v11216_v30  ;;  %v7248_v43 = vsel %vm7212_vm14, %v7183_v14, %v11217_v5  ;;  %v19510_v62 = vpop.f32.mrf.mxu0 }
 0x59e   :  { %v7180_v42 = vsel %vm7147_vm13, %v7115_v12, %v10896_v45  ;;  %v7181_v46 = vsel %vm7147_vm13, %v7116_v38, %v10897_v59  ;;  %v7312_v3 = vsel %vm7277_vm15, %v7247_v44, %v11226_v15  ;;  %v7313_v47 = vsel %vm7277_vm15, %v7248_v43, %v11227_v23  ;;  %v11255_v18 = vpop.permute.xlu0 %11254  ;;  %v21939_v12 = vld [vmem:[#allocation120_spill] sm:$0xff]  ;;  %v21943_v23 = vld [vmem:[#allocation151_spill] sm:$0xff] }
 0x59f   :  { %v7246_v19 = vsel %vm7212_vm14, %v7181_v46, %v11212_v11  ;;  %v7245_v63 = vsel %vm7212_vm14, %v7180_v42, %v11211_v61  ;;  %v11232_v51 = vunpack.i.h.bf16 %v11230_v4  ;;  %v11231_v34 = vunpack.i.l.bf16 %v11230_v4  ;;  %v21942_v59 = vld [vmem:[#allocation92_spill] sm:$0xff] }
 0x5a0   :  { %v7377_v57 = vsel %vm7342_vm0, %v7312_v3, %v11236_v37  ;;  %v7378_v41 = vsel %vm7342_vm0, %v7313_v47, %v11237_v27  ;;  %v7310_v29 = vsel %vm7277_vm15, %v7245_v63, %v11221_v33  ;;  %v7311_v58 = vsel %vm7277_vm15, %v7246_v19, %v11222_v36  ;;  %v11240_v50 = vpop.permute.xlu1 %11239 }
 0x5a1   :  { %v10752_v22 = vunpack.i.h.bf16 %v21938_v24  ;;  %v10751_v13 = vunpack.i.l.bf16 %v21938_v24  ;;  %v7375_v20 = vsel %vm7342_vm0, %v7310_v29, %v11231_v34  ;;  %v7376_v54 = vsel %vm7342_vm0, %v7311_v58, %v11232_v51  ;;  %v21946_v51 = vld [vmem:[#allocation136_spill] sm:$0xff]  ;;  %v19522_v58 = vpop.f32.mrf.mxu0 }
 0x5a2   :  { %v7058_v38 = vsel %vm3407_vm6, %v21939_v12, %v10592_v21  ;;  %v19488_v7 = vsel %vm3407_vm6, %v21940_v6, %v10617_v39  ;;  %v19492_v5 = vsel %vm3407_vm6, %v21941_v35, %v10616_v48  ;;  %v7423_v30 = vpack.c.bf16 %v7376_v54, %v7375_v20  ;;  %v21944_v21 = vld [vmem:[#allocation26_spill] sm:$0xff]  ;;  %v11265_v61 = vpop.permute.xlu0 %11264 }
 0x5a3   :  { %v10602_v45 = vunpack.i.h.bf16 %v21942_v59  ;;  %v10912_v15 = vunpack.i.h.bf16 %v21943_v23  ;;  %v10911_v52 = vunpack.i.l.bf16 %v21943_v23  ;;  %v7424_v40 = vpack.c.bf16 %v7378_v41, %v7377_v57 }
 0x5a4   :  { %v10601_v14 = vunpack.i.l.bf16 %v21942_v59  ;;  %v10627_v11 = vunpack.i.h.bf16 %v21944_v21  ;;  %v7119_v39 = vsel %vm3537_vm8, %v19242_v31, %v10746_v10  ;;  %v7120_v48 = vsel %vm3537_vm8, %v19235_v32, %v10747_v53  ;;  %8842 = vmatprep.mubr.msk.bf16.mxu0 %vm7482_vm2, %v7423_v30  ;;  %v21945_v31 = vld [vmem:[#allocation180_spill] sm:$0xff]  ;;  %v11250_v43 = vpop.permute.xlu1 %11249 }
 0x5a5   :  { %v7121_v27 = vsel %vm3537_vm8, %v19436_v26, %v10751_v13  ;;  %v7122_v37 = vsel %vm3537_vm8, %v7058_v38, %v10752_v22  ;;  %v11247_v36 = vunpack.i.h.bf16 %v19460_v49  ;;  %v11246_v33 = vunpack.i.l.bf16 %v19460_v49  ;;  %8843 = vmatmul.mubr.msk.bf16.gmra.mxu0 %vm7482_vm2, %v7424_v40 }
 0x5a6   :  { %v10907_v10 = vunpack.i.h.bf16 %v21945_v31  ;;  %v10906_v32 = vunpack.i.l.bf16 %v21945_v31  ;;  %v11257_v53 = vunpack.i.h.bf16 %v11255_v18  ;;  %v11256_v44 = vunpack.i.l.bf16 %v11255_v18  ;;  %v19516_v63 = vpop.permute.xlu0 %11274 }
 0x5a7   :  { %v7186_v42 = vsel %vm7147_vm13, %v7121_v27, %v10911_v52  ;;  %v7187_v26 = vsel %vm7147_vm13, %v7122_v37, %v10912_v15  ;;  %v11242_v46 = vunpack.i.h.bf16 %v11240_v50  ;;  %v11241_v3 = vunpack.i.l.bf16 %v11240_v50  ;;  %v21947_v15 = vld [vmem:[#allocation174_spill] sm:$0xff]  ;;  %v21948_v27 = vld [vmem:[#allocation125_spill] sm:$0xff] }
 0x5a8   :  { %v11267_v47 = vunpack.i.h.bf16 %v11265_v61  ;;  %v11266_v4 = vunpack.i.l.bf16 %v11265_v61  ;;  %v11252_v49 = vunpack.i.h.bf16 %v11250_v43  ;;  %v11251_v19 = vunpack.i.l.bf16 %v11250_v43  ;;  %v11260_v20 = vpop.permute.xlu1 %11259  ;;  %v19538_v61 = vpop.f32.mrf.mxu0  ;;  %v21951_v43 = vld [vmem:[#allocation158_spill] sm:$0xff] }
 0x5a9   :  { %v10757_v34 = vunpack.i.h.bf16 %v21946_v51  ;;  %v10756_v57 = vunpack.i.l.bf16 %v21946_v51  ;;  %v7251_v41 = vsel %vm7212_vm14, %v7186_v42, %v11246_v33  ;;  %v7252_v29 = vsel %vm7212_vm14, %v7187_v26, %v11247_v36  ;;  %v21949_v36 = vld [vmem:[#allocation14_spill] sm:$0xff] }
 0x5aa   :  { %v7184_v18 = vsel %vm7147_vm13, %v7119_v39, %v10906_v32  ;;  %v7185_v24 = vsel %vm7147_vm13, %v7120_v48, %v10907_v10  ;;  %v7316_v22 = vsel %vm7277_vm15, %v7251_v41, %v11256_v44  ;;  %v7317_v13 = vsel %vm7277_vm15, %v7252_v29, %v11257_v53  ;;  %v11285_v23 = vpop.permute.xlu0 %11284  ;;  %v21950_v53 = vld [vmem:[#allocation164_spill] sm:$0xff]  ;;  %v19563_v41 = vpop.f32.mrf.mxu0  ;;  %v21953_v29 = vld [vmem:[#allocation11_spill] sm:$0xff] }
 0x5ab   :  { %v7250_v54 = vsel %vm7212_vm14, %v7185_v24, %v11242_v46  ;;  %v7249_v12 = vsel %vm7212_vm14, %v7184_v18, %v11241_v3  ;;  %v11262_v38 = vunpack.i.h.bf16 %v11260_v20  ;;  %v11261_v6 = vunpack.i.l.bf16 %v11260_v20  ;;  %v21952_v3 = vld [vmem:[#allocation27_spill] sm:$0xff] }
 0x5ac   :  { %v7381_v35 = vsel %vm7342_vm0, %v7316_v22, %v11266_v4  ;;  %v7382_v30 = vsel %vm7342_vm0, %v7317_v13, %v11267_v47  ;;  %v7314_v50 = vsel %vm7277_vm15, %v7249_v12, %v11251_v19  ;;  %v7315_v59 = vsel %vm7277_vm15, %v7250_v54, %v11252_v49  ;;  %v11270_v32 = vpop.permute.xlu1 %11269 }
 0x5ad   :  { %v10762_v52 = vunpack.i.h.bf16 %v21947_v15  ;;  %v10761_v40 = vunpack.i.l.bf16 %v21947_v15  ;;  %v7379_v39 = vsel %vm7342_vm0, %v7314_v50, %v11261_v6  ;;  %v7380_v48 = vsel %vm7342_vm0, %v7315_v59, %v11262_v38  ;;  %v19575_v15 = vpop.f32.mrf.mxu0 }
 0x5ae   :  { %v7061_v37 = vsel %vm3407_vm6, %v21948_v27, %v10601_v14  ;;  %v7062_v33 = vsel %vm3407_vm6, %v21949_v36, %v10602_v45  ;;  %v10626_v31 = vunpack.i.l.bf16 %v21944_v21  ;;  %v7425_v10 = vpack.c.bf16 %v7380_v48, %v7379_v39  ;;  %v11295_v4 = vpop.permute.xlu0 %11294 }
 0x5af   :  { %v19547_v44 = vsel %vm3407_vm6, %v21950_v53, %v10627_v11  ;;  %v10922_v42 = vunpack.i.h.bf16 %v21951_v43  ;;  %v10921_v26 = vunpack.i.l.bf16 %v21951_v43  ;;  %v7426_v46 = vpack.c.bf16 %v7382_v30, %v7381_v35  ;;  %v21954_v35 = vld [vmem:[#allocation143_spill] sm:$0xff] }
 0x5b0   :  { %v10612_v47 = vunpack.i.h.bf16 %v21952_v3  ;;  %v10611_v14 = vunpack.i.l.bf16 %v21952_v3  ;;  %v7123_v45 = vsel %vm3537_vm8, %v19368_v0, %v10756_v57  ;;  %v7124_v21 = vsel %vm3537_vm8, %v19315_v28, %v10757_v34  ;;  %8846 = vmatprep.mubr.msk.bf16.mxu0 %vm7482_vm2, %v7425_v10  ;;  %v11280_v18 = vpop.permute.xlu1 %11279 }
 0x5b1   :  { %v7125_v11 = vsel %vm3537_vm8, %v7061_v37, %v10761_v40  ;;  %v7126_v49 = vsel %vm3537_vm8, %v7062_v33, %v10762_v52  ;;  %v11277_v19 = vunpack.i.h.bf16 %v19516_v63  ;;  %v11276_v51 = vunpack.i.l.bf16 %v19516_v63  ;;  %8847 = vmatmul.mubr.msk.bf16.gmra.mxu0 %vm7482_vm2, %v7426_v46  ;;  %v21955_v46 = vld [vmem:[#allocation195_spill] sm:$0xff] }
 0x5b2   :  { %v10917_v0 = vunpack.i.h.bf16 %v21953_v29  ;;  %v10916_v57 = vunpack.i.l.bf16 %v21953_v29  ;;  %v11287_v28 = vunpack.i.h.bf16 %v11285_v23  ;;  %v11286_v34 = vunpack.i.l.bf16 %v11285_v23  ;;  %v19569_v6 = vpop.permute.xlu0 %11304 }
 0x5b3   :  { %v7190_v24 = vsel %vm7147_vm13, %v7125_v11, %v10921_v26  ;;  %v7191_v22 = vsel %vm7147_vm13, %v7126_v49, %v10922_v42  ;;  %v11272_v13 = vunpack.i.h.bf16 %v11270_v32  ;;  %v11271_v20 = vunpack.i.l.bf16 %v11270_v32  ;;  %v19591_v11 = vpop.f32.mrf.mxu0  ;;  %v21956_v49 = vld [vmem:[#allocation15_spill] sm:$0xff] }
 0x5b4   :  { %v11297_v54 = vunpack.i.h.bf16 %v11295_v4  ;;  %v11296_v12 = vunpack.i.l.bf16 %v11295_v4  ;;  %v11282_v63 = vunpack.i.h.bf16 %v11280_v18  ;;  %v11281_v38 = vunpack.i.l.bf16 %v11280_v18  ;;  %v11290_v27 = vpop.permute.xlu1 %11289  ;;  %v21959_v18 = vld [vmem:[#allocation28_spill] sm:$0xff] }
 0x5b5   :  { %v10767_v30 = vunpack.i.h.bf16 %v21954_v35  ;;  %v10766_v50 = vunpack.i.l.bf16 %v21954_v35  ;;  %v7255_v59 = vsel %vm7212_vm14, %v7190_v24, %v11276_v51  ;;  %v7256_v23 = vsel %vm7212_vm14, %v7191_v22, %v11277_v19  ;;  %v21957_v51 = vld [vmem:[#allocation161_spill] sm:$0xff]  ;;  %v21960_v22 = vld [vmem:[#allocation98_spill] sm:$0xff] }
 0x5b6   :  { %v7188_v52 = vsel %vm7147_vm13, %v7123_v45, %v10916_v57  ;;  %v7189_v40 = vsel %vm7147_vm13, %v7124_v21, %v10917_v0  ;;  %v7320_v39 = vsel %vm7277_vm15, %v7255_v59, %v11286_v34  ;;  %v7321_v48 = vsel %vm7277_vm15, %v7256_v23, %v11287_v28  ;;  %v11315_v26 = vpop.permute.xlu0 %11314  ;;  %v21958_v0 = vld [vmem:[#allocation165_spill] sm:$0xff] }
 0x5b7   :  { %v7254_v37 = vsel %vm7212_vm14, %v7189_v40, %v11272_v13  ;;  %v7253_v36 = vsel %vm7212_vm14, %v7188_v52, %v11271_v20  ;;  %v11292_v33 = vunpack.i.h.bf16 %v11290_v27  ;;  %v11291_v10 = vunpack.i.l.bf16 %v11290_v27  ;;  %v19616_v40 = vpop.f32.mrf.mxu0 }
 0x5b8   :  { %v7385_v32 = vsel %vm7342_vm0, %v7320_v39, %v11296_v12  ;;  %v7386_v53 = vsel %vm7342_vm0, %v7321_v48, %v11297_v54  ;;  %v7318_v43 = vsel %vm7277_vm15, %v7253_v36, %v11281_v38  ;;  %v7319_v42 = vsel %vm7277_vm15, %v7254_v37, %v11282_v63  ;;  %v11300_v34 = vpop.permute.xlu1 %11299  ;;  %v21961_v12 = vld [vmem:[#allocation29_spill] sm:$0xff]  ;;  %v21962_v39 = vld [vmem:[#allocation152_spill] sm:$0xff] }
 0x5b9   :  { %v10772_v3 = vunpack.i.h.bf16 %v21955_v46  ;;  %v10771_v45 = vunpack.i.l.bf16 %v21955_v46  ;;  %v7383_v21 = vsel %vm7342_vm0, %v7318_v43, %v11291_v10  ;;  %v7384_v4 = vsel %vm7342_vm0, %v7319_v42, %v11292_v33  ;;  %v21963_v42 = vld [vmem:[#allocation163_spill] sm:$0xff] }
 0x5ba   :  { %v19595_v19 = vsel %vm3407_vm6, %v21956_v49, %v10626_v31  ;;  %v7065_v29 = vsel %vm3407_vm6, %v21957_v51, %v10611_v14  ;;  %v7066_v57 = vsel %vm3407_vm6, %v21958_v0, %v10612_v47  ;;  %v7427_v28 = vpack.c.bf16 %v7384_v4, %v7383_v21  ;;  %v11325_v47 = vpop.permute.xlu0 %11324  ;;  %v19628_v21 = vpop.f32.mrf.mxu0 }
 0x5bb   :  { %v10637_v24 = vunpack.i.h.bf16 %v21959_v18  ;;  %v10932_v13 = vunpack.i.h.bf16 %v21960_v22  ;;  %v10931_v20 = vunpack.i.l.bf16 %v21960_v22  ;;  %v7428_v54 = vpack.c.bf16 %v7386_v53, %v7385_v32 }
 0x5bc   :  { %v10622_v63 = vunpack.i.h.bf16 %v21961_v12  ;;  %v10621_v31 = vunpack.i.l.bf16 %v21961_v12  ;;  %v7127_v38 = vsel %vm3537_vm8, %v19431_v9, %v10766_v50  ;;  %v7128_v14 = vsel %vm3537_vm8, %v19427_v8, %v10767_v30  ;;  %8850 = vmatprep.mubr.msk.bf16.mxu0 %vm7482_vm2, %v7427_v28  ;;  %v11310_v48 = vpop.permute.xlu1 %11309 }
 0x5bd   :  { %v7129_v35 = vsel %vm3537_vm8, %v7065_v29, %v10771_v45  ;;  %v7130_v59 = vsel %vm3537_vm8, %v7066_v57, %v10772_v3  ;;  %v11307_v23 = vunpack.i.h.bf16 %v19569_v6  ;;  %v11306_v52 = vunpack.i.l.bf16 %v19569_v6  ;;  %8851 = vmatmul.mubr.msk.bf16.gmra.mxu0 %vm7482_vm2, %v7428_v54 }
 0x5be   :  { %v10927_v9 = vunpack.i.h.bf16 %v21962_v39  ;;  %v10926_v50 = vunpack.i.l.bf16 %v21962_v39  ;;  %v11317_v8 = vunpack.i.h.bf16 %v11315_v26  ;;  %v11316_v30 = vunpack.i.l.bf16 %v11315_v26  ;;  %v19622_v43 = vpop.permute.xlu0 %11334  ;;  %v21965_v39 = vld [vmem:[#allocation16_spill] sm:$0xff] }
 0x5bf   :  { %v7194_v27 = vsel %vm7147_vm13, %v7129_v35, %v10931_v20  ;;  %v7195_v37 = vsel %vm7147_vm13, %v7130_v59, %v10932_v13  ;;  %v11302_v36 = vunpack.i.h.bf16 %v11300_v34  ;;  %v11301_v33 = vunpack.i.l.bf16 %v11300_v34 }
 0x5c0   :  { %v11327_v10 = vunpack.i.h.bf16 %v11325_v47  ;;  %v11326_v32 = vunpack.i.l.bf16 %v11325_v47  ;;  %v11312_v6 = vunpack.i.h.bf16 %v11310_v48  ;;  %v11311_v53 = vunpack.i.l.bf16 %v11310_v48  ;;  %v11320_v0 = vpop.permute.xlu1 %11319 }
 0x5c1   :  { %v10777_v46 = vunpack.i.h.bf16 %v21963_v42  ;;  %v10776_v3 = vunpack.i.l.bf16 %v21963_v42  ;;  %v7259_v45 = vsel %vm7212_vm14, %v7194_v27, %v11306_v52  ;;  %v7260_v26 = vsel %vm7212_vm14, %v7195_v37, %v11307_v23  ;;  %v19644_v52 = vpop.f32.mrf.mxu0  ;;  %v21967_v37 = vld [vmem:[#allocation169_spill] sm:$0xff] }
 0x5c2   :  { %v7192_v4 = vsel %vm7147_vm13, %v7127_v38, %v10926_v50  ;;  %v7193_v49 = vsel %vm7147_vm13, %v7128_v14, %v10927_v9  ;;  %v7324_v51 = vsel %vm7277_vm15, %v7259_v45, %v11316_v30  ;;  %v7325_v29 = vsel %vm7277_vm15, %v7260_v26, %v11317_v8  ;;  %v11345_v38 = vpop.permute.xlu0 %11344  ;;  %v21964_v14 = vld [vmem:[#allocation216_spill] sm:$0xff]  ;;  %v21966_v8 = vld [vmem:[#allocation162_spill] sm:$0xff] }
 0x5c3   :  { %v7258_v57 = vsel %vm7212_vm14, %v7193_v49, %v11302_v36  ;;  %v7257_v28 = vsel %vm7212_vm14, %v7192_v4, %v11301_v33  ;;  %v11322_v34 = vunpack.i.h.bf16 %v11320_v0  ;;  %v11321_v22 = vunpack.i.l.bf16 %v11320_v0  ;;  %v21968_v33 = vld [vmem:[#allocation123_spill] sm:$0xff] }
 0x5c4   :  { %v7389_v13 = vsel %vm7342_vm0, %v7324_v51, %v11326_v32  ;;  %v7390_v20 = vsel %vm7342_vm0, %v7325_v29, %v11327_v10  ;;  %v7322_v54 = vsel %vm7277_vm15, %v7257_v28, %v11311_v53  ;;  %v7323_v12 = vsel %vm7277_vm15, %v7258_v57, %v11312_v6  ;;  %v11330_v27 = vpop.permute.xlu1 %11329  ;;  %v21969_v53 = vld [vmem:[#allocation31_spill] sm:$0xff]  ;;  %v19669_v51 = vpop.f32.mrf.mxu0  ;;  %v21970_v29 = vld [vmem:[#allocation12_spill] sm:$0xff] }
 0x5c5   :  { %v10782_v47 = vunpack.i.h.bf16 %v21964_v14  ;;  %v10781_v35 = vunpack.i.l.bf16 %v21964_v14  ;;  %v7387_v59 = vsel %vm7342_vm0, %v7322_v54, %v11321_v22  ;;  %v7388_v23 = vsel %vm7342_vm0, %v7323_v12, %v11322_v34  ;;  %v21971_v14 = vld [vmem:[#allocation186_spill] sm:$0xff] }
 0x5c6   :  { %v19648_v9 = vsel %vm3407_vm6, %v21965_v39, %v10637_v24  ;;  %v10636_v50 = vunpack.i.l.bf16 %v21959_v18  ;;  %v7069_v30 = vsel %vm3407_vm6, %v21966_v8, %v10621_v31  ;;  %v7429_v48 = vpack.c.bf16 %v7388_v23, %v7387_v59  ;;  %v11355_v45 = vpop.permute.xlu0 %11354  ;;  %v19681_v23 = vpop.f32.mrf.mxu0 }
 0x5c7   :  { %v7070_v36 = vsel %vm3407_vm6, %v21967_v37, %v10622_v63  ;;  %v10942_v10 = vunpack.i.h.bf16 %v21968_v33  ;;  %v10941_v32 = vunpack.i.l.bf16 %v21968_v33  ;;  %v7430_v6 = vpack.c.bf16 %v7390_v20, %v7389_v13 }
 0x5c8   :  { %v10632_v42 = vunpack.i.h.bf16 %v21969_v53  ;;  %v10631_v24 = vunpack.i.l.bf16 %v21969_v53  ;;  %v7131_v18 = vsel %vm3537_vm8, %v19492_v5, %v10776_v3  ;;  %v7132_v31 = vsel %vm3537_vm8, %v19488_v7, %v10777_v46  ;;  %8854 = vmatprep.mubr.msk.bf16.mxu0 %vm7482_vm2, %v7429_v48 }
 0x5c9   :  { %v7133_v63 = vsel %vm3537_vm8, %v7069_v30, %v10781_v35  ;;  %v7134_v26 = vsel %vm3537_vm8, %v7070_v36, %v10782_v47  ;;  %v11337_v4 = vunpack.i.h.bf16 %v19622_v43  ;;  %v11336_v49 = vunpack.i.l.bf16 %v19622_v43  ;;  %8855 = vmatmul.mubr.msk.bf16.gmra.mxu0 %vm7482_vm2, %v7430_v6  ;;  %v11340_v0 = vpop.permute.xlu1 %11339 }
 0x5ca   :  { %v10937_v5 = vunpack.i.h.bf16 %v21970_v29  ;;  %v10936_v3 = vunpack.i.l.bf16 %v21970_v29  ;;  %v11347_v7 = vunpack.i.h.bf16 %v11345_v38  ;;  %v11346_v46 = vunpack.i.l.bf16 %v11345_v38  ;;  %v19697_v29 = vpop.f32.mrf.mxu0 }
 0x5cb   :  { %v7198_v57 = vsel %vm7147_vm13, %v7133_v63, %v10941_v32  ;;  %v7199_v28 = vsel %vm7147_vm13, %v7134_v26, %v10942_v10  ;;  %v11332_v34 = vunpack.i.h.bf16 %v11330_v27  ;;  %v11331_v22 = vunpack.i.l.bf16 %v11330_v27  ;;  %v19675_v12 = vpop.permute.xlu0 %11364 }
 0x5cc   :  { %v11357_v13 = vunpack.i.h.bf16 %v11355_v45  ;;  %v11356_v20 = vunpack.i.l.bf16 %v11355_v45  ;;  %v11342_v43 = vunpack.i.h.bf16 %v11340_v0  ;;  %v11341_v54 = vunpack.i.l.bf16 %v11340_v0  ;;  %v21972_v45 = vld [vmem:[#allocation237_spill] sm:$0xff]  ;;  %v21975_v0 = vld [vmem:[#allocation167_spill] sm:$0xff] }
 0x5cd   :  { %v10787_v47 = vunpack.i.h.bf16 %v21971_v14  ;;  %v10786_v35 = vunpack.i.l.bf16 %v21971_v14  ;;  %v7263_v59 = vsel %vm7212_vm14, %v7198_v57, %v11336_v49  ;;  %v7264_v38 = vsel %vm7212_vm14, %v7199_v28, %v11337_v4  ;;  %v11350_v27 = vpop.permute.xlu1 %11349 }
 0x5ce   :  { %v7196_v39 = vsel %vm7147_vm13, %v7131_v18, %v10936_v3  ;;  %v7197_v8 = vsel %vm7147_vm13, %v7132_v31, %v10937_v5  ;;  %v7328_v30 = vsel %vm7277_vm15, %v7263_v59, %v11346_v46  ;;  %v7329_v48 = vsel %vm7277_vm15, %v7264_v38, %v11347_v7  ;;  %v21973_v5 = vld [vmem:[#allocation121_spill] sm:$0xff]  ;;  %v21974_v7 = vld [vmem:[#allocation30_spill] sm:$0xff] }
 0x5cf   :  { %v7262_v37 = vsel %vm7212_vm14, %v7197_v8, %v11332_v34  ;;  %v7261_v36 = vsel %vm7212_vm14, %v7196_v39, %v11331_v22  ;;  %v11352_v33 = vunpack.i.h.bf16 %v11350_v27  ;;  %v11351_v10 = vunpack.i.l.bf16 %v11350_v27  ;;  %v11375_v31 = vpop.permute.xlu0 %11374  ;;  %v21976_v22 = vld [vmem:[#allocation166_spill] sm:$0xff]  ;;  %v21978_v59 = vld [vmem:[#allocation33_spill] sm:$0xff] }
 0x5d0   :  { %v7393_v32 = vsel %vm7342_vm0, %v7328_v30, %v11356_v20  ;;  %v7394_v6 = vsel %vm7342_vm0, %v7329_v48, %v11357_v13  ;;  %v7326_v53 = vsel %vm7277_vm15, %v7261_v36, %v11341_v54  ;;  %v7327_v18 = vsel %vm7277_vm15, %v7262_v37, %v11342_v43  ;;  %v21977_v20 = vld [vmem:[#allocation133_spill] sm:$0xff]  ;;  %v19722_v37 = vpop.f32.mrf.mxu0  ;;  %v21979_v36 = vld [vmem:[#allocation160_spill] sm:$0xff] }
 0x5d1   :  { %v10792_v63 = vunpack.i.h.bf16 %v21972_v45  ;;  %v10791_v26 = vunpack.i.l.bf16 %v21972_v45  ;;  %v7391_v4 = vsel %vm7342_vm0, %v7326_v53, %v11351_v10  ;;  %v7392_v49 = vsel %vm7342_vm0, %v7327_v18, %v11352_v33 }
 0x5d2   :  { %v19701_v3 = vsel %vm3407_vm6, %v21973_v5, %v10636_v50  ;;  %v10647_v46 = vunpack.i.h.bf16 %v21974_v7  ;;  %v7073_v57 = vsel %vm3407_vm6, %v21975_v0, %v10631_v24  ;;  %v7431_v28 = vpack.c.bf16 %v7392_v49, %v7391_v4  ;;  %v11360_v34 = vpop.permute.xlu1 %11359  ;;  %v21980_v4 = vld [vmem:[#allocation207_spill] sm:$0xff] }
 0x5d3   :  { %v7074_v13 = vsel %vm3407_vm6, %v21976_v22, %v10632_v42  ;;  %v10952_v43 = vunpack.i.h.bf16 %v21977_v20  ;;  %v10951_v54 = vunpack.i.l.bf16 %v21977_v20  ;;  %v7432_v14 = vpack.c.bf16 %v7394_v6, %v7393_v32 }
 0x5d4   :  { %v10642_v38 = vunpack.i.h.bf16 %v21978_v59  ;;  %v10641_v50 = vunpack.i.l.bf16 %v21978_v59  ;;  %v7135_v39 = vsel %vm3537_vm8, %v19595_v19, %v10786_v35  ;;  %v7136_v24 = vsel %vm3537_vm8, %v19547_v44, %v10787_v47  ;;  %v11385_v8 = vpop.permute.xlu0 %11384  ;;  %8858 = vmatprep.mubr.msk.bf16.mxu0 %vm7482_vm2, %v7431_v28 }
 0x5d5   :  { %v7137_v42 = vsel %vm3537_vm8, %v7073_v57, %v10791_v26  ;;  %v7138_v30 = vsel %vm3537_vm8, %v7074_v13, %v10792_v63  ;;  %v11367_v48 = vunpack.i.h.bf16 %v19675_v12  ;;  %v11366_v27 = vunpack.i.l.bf16 %v19675_v12  ;;  %8859 = vmatmul.mubr.msk.bf16.gmra.mxu0 %vm7482_vm2, %v7432_v14  ;;  %v19734_v57 = vpop.f32.mrf.mxu0 }
 0x5d6   :  { %v10947_v19 = vunpack.i.h.bf16 %v21979_v36  ;;  %v10946_v35 = vunpack.i.l.bf16 %v21979_v36  ;;  %v11377_v44 = vunpack.i.h.bf16 %v11375_v31  ;;  %v11376_v47 = vunpack.i.l.bf16 %v11375_v31  ;;  %v11370_v33 = vpop.permute.xlu1 %11369 }
 0x5d7   :  { %v7202_v10 = vsel %vm7147_vm13, %v7137_v42, %v10951_v54  ;;  %v7203_v32 = vsel %vm7147_vm13, %v7138_v30, %v10952_v43  ;;  %v11362_v6 = vunpack.i.h.bf16 %v11360_v34  ;;  %v11361_v53 = vunpack.i.l.bf16 %v11360_v34 }
 0x5d8   :  { %v11387_v18 = vunpack.i.h.bf16 %v11385_v8  ;;  %v11386_v45 = vunpack.i.l.bf16 %v11385_v8  ;;  %v11372_v12 = vunpack.i.h.bf16 %v11370_v33  ;;  %v11371_v63 = vunpack.i.l.bf16 %v11370_v33  ;;  %v19728_v26 = vpop.permute.xlu0 %11394 }
 0x5d9   :  { %v10797_v49 = vunpack.i.h.bf16 %v21980_v4  ;;  %v10796_v5 = vunpack.i.l.bf16 %v21980_v4  ;;  %v7267_v0 = vsel %vm7212_vm14, %v7202_v10, %v11366_v27  ;;  %v7268_v31 = vsel %vm7212_vm14, %v7203_v32, %v11367_v48  ;;  %v21981_v48 = vld [vmem:[#allocation124_spill] sm:$0xff] }
 0x5da   :  { %v7200_v28 = vsel %vm7147_vm13, %v7135_v39, %v10946_v35  ;;  %v7201_v34 = vsel %vm7147_vm13, %v7136_v24, %v10947_v19  ;;  %v7332_v22 = vsel %vm7277_vm15, %v7267_v0, %v11376_v47  ;;  %v7333_v13 = vsel %vm7277_vm15, %v7268_v31, %v11377_v44  ;;  %v19753_v44 = vpop.f32.mrf.mxu0  ;;  %v21982_v47 = vld [vmem:[#allocation17_spill] sm:$0xff]  ;;  %v21983_v10 = vld [vmem:[#allocation256_spill] sm:$0xff] }
 0x5db   :  { %v11380_v20 = vpop.permute.xlu1 %11379  ;;  %v7266_v43 = vsel %vm7212_vm14, %v7201_v34, %v11362_v6  ;;  %v7265_v54 = vsel %vm7212_vm14, %v7200_v28, %v11361_v53  ;;  %v7397_v8 = vsel %vm7342_vm0, %v7332_v22, %v11386_v45  ;;  %v7398_v42 = vsel %vm7342_vm0, %v7333_v13, %v11387_v18  ;;  %v21984_v45 = vld [vmem:[#allocation168_spill] sm:$0xff]  ;;  %v21986_v28 = vld [vmem:[#allocation227_spill] sm:$0xff] }
 0x5dc   :  { %v11382_v14 = vunpack.i.h.bf16 %v11380_v20  ;;  %v11381_v59 = vunpack.i.l.bf16 %v11380_v20  ;;  %v7330_v30 = vsel %vm7277_vm15, %v7265_v54, %v11371_v63  ;;  %v7331_v39 = vsel %vm7277_vm15, %v7266_v43, %v11372_v12  ;;  %v21985_v12 = vld [vmem:[#allocation7_spill] sm:$0xff]  ;;  %v21987_v20 = vld [vmem:[#allocation122_spill] sm:$0xff] }
 0x5dd   :  { %v11405_v24 = vpop.permute.xlu0 %11404  ;;  %v19748_v27 = vsel %vm3407_vm6, %v21981_v48, %v10647_v46  ;;  %v10646_v36 = vunpack.i.l.bf16 %v21974_v7  ;;  %v7077_v33 = vsel %vm3407_vm6, %v21982_v47, %v10641_v50  ;;  %v10802_v32 = vunpack.i.h.bf16 %v21983_v10 }
 0x5de   :  { %v7395_v19 = vsel %vm7342_vm0, %v7330_v30, %v11381_v59  ;;  %v7396_v35 = vsel %vm7342_vm0, %v7331_v39, %v11382_v14  ;;  %v10801_v6 = vunpack.i.l.bf16 %v21983_v10  ;;  %v7078_v46 = vsel %vm3407_vm6, %v21984_v45, %v10642_v38  ;;  %v21988_v45 = vld [vmem:[#allocation175_spill] sm:$0xff] }
 0x5df   :  { %v7433_v53 = vpack.c.bf16 %v7396_v35, %v7395_v19  ;;  %v11390_v18 = vpop.permute.xlu1 %11389  ;;  %v10962_v63 = vunpack.i.h.bf16 %v21985_v12  ;;  %v10961_v4 = vunpack.i.l.bf16 %v21985_v12  ;;  %v7434_v0 = vpack.c.bf16 %v7398_v42, %v7397_v8 }
 0x5e0   :  { %v7139_v31 = vsel %vm3537_vm8, %v19701_v3, %v10796_v5  ;;  %v7140_v50 = vsel %vm3537_vm8, %v19648_v9, %v10797_v49  ;;  %v10807_v34 = vunpack.i.h.bf16 %v21986_v28  ;;  %v10806_v22 = vunpack.i.l.bf16 %v21986_v28  ;;  %v19775_v3 = vpop.f32.mrf.mxu0 }
 0x5e1   :  { %v11415_v13 = vpop.permute.xlu0 %11414  ;;  %8862 = vmatprep.mubr.msk.bf16.mxu0 %vm7482_vm2, %v7433_v53  ;;  %v10957_v38 = vunpack.i.h.bf16 %v21987_v20  ;;  %v10956_v43 = vunpack.i.l.bf16 %v21987_v20  ;;  %v11397_v54 = vunpack.i.h.bf16 %v19728_v26  ;;  %v11396_v14 = vunpack.i.l.bf16 %v19728_v26 }
 0x5e2   :  { %8863 = vmatmul.mubr.msk.bf16.gmra.mxu0 %vm7482_vm2, %v7434_v0  ;;  %v7141_v9 = vsel %vm3537_vm8, %v7077_v33, %v10801_v6  ;;  %v7142_v49 = vsel %vm3537_vm8, %v7078_v46, %v10802_v32  ;;  %v11407_v5 = vunpack.i.h.bf16 %v11405_v24  ;;  %v11406_v59 = vunpack.i.l.bf16 %v11405_v24  ;;  %v19785_v6 = vpop.f32.mrf.mxu0 }
 0x5e3   :  { %v7206_v42 = vsel %vm7147_vm13, %v7141_v9, %v10961_v4  ;;  %v7207_v30 = vsel %vm7147_vm13, %v7142_v49, %v10962_v63  ;;  %v11392_v39 = vunpack.i.h.bf16 %v11390_v18  ;;  %v11391_v48 = vunpack.i.l.bf16 %v11390_v18 }
 0x5e4   :  { %v11400_v8 = vpop.permute.xlu1 %11399  ;;  %v11417_v19 = vunpack.i.h.bf16 %v11415_v13  ;;  %v11416_v35 = vunpack.i.l.bf16 %v11415_v13  ;;  %v7204_v53 = vsel %vm7147_vm13, %v7139_v31, %v10956_v43  ;;  %v7205_v33 = vsel %vm7147_vm13, %v7140_v50, %v10957_v38 }
 0x5e5   :  { %v11402_v26 = vunpack.i.h.bf16 %v11400_v8  ;;  %v11401_v47 = vunpack.i.l.bf16 %v11400_v8  ;;  %v7271_v32 = vsel %vm7212_vm14, %v7206_v42, %v11396_v14  ;;  %v7272_v24 = vsel %vm7212_vm14, %v7207_v30, %v11397_v54  ;;  %v21989_v8 = vld [vmem:[#allocation99_spill] sm:$0xff] }
 0x5e6   :  { %v11425_v10 = vpop.permute.xlu0 %11424  ;;  %v10967_v46 = vunpack.i.h.bf16 %v21988_v45  ;;  %v10966_v12 = vunpack.i.l.bf16 %v21988_v45  ;;  %v7336_v18 = vsel %vm7277_vm15, %v7271_v32, %v11406_v59  ;;  %v7337_v63 = vsel %vm7277_vm15, %v7272_v24, %v11407_v5  ;;  %v19799_v59 = vpop.f32.mrf.mxu0  ;;  %v21990_v45 = vld [vmem:[#allocation95_spill] sm:$0xff] }
 0x5e7   :  { %v7270_v0 = vsel %vm7212_vm14, %v7205_v33, %v11392_v39  ;;  %v7269_v31 = vsel %vm7212_vm14, %v7204_v53, %v11391_v48  ;;  %v7401_v13 = vsel %vm7342_vm0, %v7336_v18, %v11416_v35  ;;  %v7402_v20 = vsel %vm7342_vm0, %v7337_v63, %v11417_v19  ;;  %v21991_v63 = vld [vmem:[#allocation58_spill] sm:$0xff] }
 0x5e8   :  { %v11410_v4 = vpop.permute.xlu1 %11409  ;;  %v7334_v38 = vsel %vm7277_vm15, %v7269_v31, %v11401_v47  ;;  %v7335_v43 = vsel %vm7277_vm15, %v7270_v0, %v11402_v26  ;;  %v11427_v14 = vunpack.i.h.bf16 %v11425_v10  ;;  %v11426_v9 = vunpack.i.l.bf16 %v11425_v10 }
 0x5e9   :  { %v11412_v50 = vunpack.i.h.bf16 %v11410_v4  ;;  %v11411_v28 = vunpack.i.l.bf16 %v11410_v4  ;;  %v7079_v42 = vsel %vm3407_vm6, %v21989_v8, %v10646_v36  ;;  %v7144_v26 = vsel %vm3537_vm8, %v19748_v27, %v10807_v34  ;;  %v11636_v8 = vld [vmem:[#allocation2 + $0x318] sm:$0xff] }
 0x5ea   :  { %v11435_v54 = vpop.permute.xlu0 %11434  ;;  %v7143_v35 = vsel %vm3537_vm8, %v7079_v42, %v10806_v22  ;;  %v7436_v47 = vpack.c.bf16 %v7402_v20, %v7401_v13  ;;  %v7209_v53 = vsel %vm7147_vm13, %v7144_v26, %v10967_v46  ;;  %v19814_v22 = vpop.f32.mrf.mxu0  ;;  %v10332_v27 = vunpack.i.h.bf16 %v21990_v45 }
 0x5eb   :  { %v7399_v49 = vsel %vm7342_vm0, %v7334_v38, %v11411_v28  ;;  %v7400_v5 = vsel %vm7342_vm0, %v7335_v43, %v11412_v50  ;;  %v11437_v39 = vunpack.i.h.bf16 %v11435_v54  ;;  %v11436_v48 = vunpack.i.l.bf16 %v11435_v54  ;;  %v21992_v28 = vld [vmem:[#allocation35_spill] sm:$0xff]  ;;  %v21993_v43 = vld [vmem:[#allocation266_spill] sm:$0xff] }
 0x5ec   :  { %v7435_v30 = vpack.c.bf16 %v7400_v5, %v7399_v49  ;;  %v11420_v19 = vpop.permute.xlu1 %11419  ;;  %v7208_v10 = vsel %vm7147_vm13, %v7143_v35, %v10966_v12  ;;  %v7274_v36 = vsel %vm7212_vm14, %v7209_v53, %v11427_v14  ;;  %v10331_v34 = vunpack.i.l.bf16 %v21990_v45  ;;  %v11635_v49 = vld [vmem:[#allocation2 + $0x320] sm:$0xff] }
 0x5ed   :  { %v7273_v7 = vsel %vm7212_vm14, %v7208_v10, %v11426_v9  ;;  %v7339_v46 = vsel %vm7277_vm15, %v7274_v36, %v11437_v39  ;;  %v10492_v4 = vunpack.i.h.bf16 %v21991_v63  ;;  %v10491_v0 = vunpack.i.l.bf16 %v21991_v63  ;;  %v19828_v9 = vpop.f32.mrf.mxu0 }
 0x5ee   :  { %v11445_v33 = vpop.permute.xlu0 %11444  ;;  %8866 = vmatprep.mubr.msk.bf16.mxu0 %vm7482_vm2, %v7435_v30  ;;  %v7338_v12 = vsel %vm7277_vm15, %v7273_v7, %v11436_v48  ;;  %v10652_v13 = vunpack.i.h.bf16 %v21992_v28  ;;  %v10651_v20 = vunpack.i.l.bf16 %v21992_v28  ;;  %v10812_v54 = vunpack.i.h.bf16 %v21993_v43 }
 0x5ef   :  { %v11447_v32 = vunpack.i.h.bf16 %v11445_v33  ;;  %v11446_v24 = vunpack.i.l.bf16 %v11445_v33  ;;  %8867 = vmatmul.mubr.msk.bf16.gmra.mxu0 %vm7482_vm2, %v7436_v47  ;;  %v10811_v14 = vunpack.i.l.bf16 %v21993_v43  ;;  %v6954_v5 = vsel %vm3147_vm1, %v11635_v49, %v10332_v27  ;;  %v19859_v43 = vld [vmem:[%s20319_s2] ss:$0 sm:$0xff] }
 0x5f0   :  { %v11430_v18 = vpop.permute.xlu1 %11429  ;;  %v6953_v42 = vsel %vm3147_vm1, %v11636_v8, %v10331_v34  ;;  %v11422_v30 = vunpack.i.h.bf16 %v11420_v19  ;;  %v11421_v39 = vunpack.i.l.bf16 %v11420_v19  ;;  %v7018_v26 = vsel %vm3277_vm4, %v6954_v5, %v10492_v4  ;;  %v19839_v19 = vpop.f32.mrf.mxu0 }
 0x5f1   :  { %v7403_v31 = vsel %vm7342_vm0, %v7338_v12, %v11446_v24  ;;  %v7404_v50 = vsel %vm7342_vm0, %v7339_v46, %v11447_v32  ;;  %v7017_v35 = vsel %vm3277_vm4, %v6953_v42, %v10491_v0  ;;  %v11432_v47 = vunpack.i.h.bf16 %v11430_v18 }
 0x5f2   :  { %v7437_v38 = vpack.c.bf16 %v7404_v50, %v7403_v31  ;;  %v11431_v10 = vunpack.i.l.bf16 %v11430_v18  ;;  %v7081_v53 = vsel %vm3407_vm6, %v7017_v35, %v10651_v20  ;;  %v7082_v33 = vsel %vm3407_vm6, %v7018_v26, %v10652_v13  ;;  %v19849_v28 = vpop.f32.mrf.mxu0 }
 0x5f3   :  { %v7145_v32 = vsel %vm3537_vm8, %v7081_v53, %v10811_v14  ;;  %v7146_v24 = vsel %vm3537_vm8, %v7082_v33, %v10812_v54  ;;  %v19864_v54 = vld [vmem:[%s20320_s6] ss:$0 sm:$0xff]  ;;  %v276_v14 = vadd.f32 %v19348_v1, %v19859_v43  ;;  %v268_v42 = vadd.f32 %v19859_v43, %v19364_v60 }
 0x5f4   :  { %v11440_v48 = vpop.permute.xlu1 %11439  ;;  %8870 = vmatprep.mubr.msk.bf16.mxu0 %vm7482_vm2, %v7437_v38  ;;  %v7210_v45 = vsel %vm7147_vm13, %v7145_v32, %v11421_v39  ;;  %v7211_v27 = vsel %vm7147_vm13, %v7146_v24, %v11422_v30  ;;  %v19852_v20 = vpop.f32.mrf.mxu0  ;;  %v279_v35 = vadd.f32 %v19395_v56, %v19859_v43  ;;  %v271_v1 = vadd.f32 %v19859_v43, %v19407_v16 }
 0x5f5   :  { %v11442_v7 = vunpack.i.h.bf16 %v11440_v48  ;;  %v11441_v36 = vunpack.i.l.bf16 %v11440_v48  ;;  %v7275_v12 = vsel %vm7212_vm14, %v7210_v45, %v11431_v10  ;;  %v7276_v46 = vsel %vm7212_vm14, %v7211_v27, %v11432_v47 }
 0x5f6   :  { %v19854_v38 = vpop.f32.mrf.mxu0  ;;  %v292_v24 = vadd.f32 %v19423_v17, %v19859_v43 }
 0x5f7   :  { %v7340_v4 = vsel %vm7277_vm15, %v7275_v12, %v11441_v36  ;;  %v7341_v0 = vsel %vm7277_vm15, %v7276_v46, %v11442_v7 }
 0x5f8   :  { %v11450_v34 = vpop.permute.xlu1 %11449 }
 0x5f9   :  { %v11452_v18 = vunpack.i.h.bf16 %v11450_v34  ;;  %v11451_v63 = vunpack.i.l.bf16 %v11450_v34  ;;  %v284_v34 = vadd.f32 %v19859_v43, %v19454_v2 }
 0x5fb   :  { %v7405_v31 = vsel %vm7342_vm0, %v7340_v4, %v11451_v63  ;;  %v7406_v50 = vsel %vm7342_vm0, %v7341_v0, %v11452_v18  ;;  %v295_v63 = vadd.f32 %v19466_v25, %v19859_v43 }
 0x5fc   :  { %v7438_v13 = vpack.c.bf16 %v7406_v50, %v7405_v31  ;;  %v287_v50 = vadd.f32 %v19859_v43, %v19482_v55 }
 0x5fe   :  { %8871 = vmatmul.mubr.msk.bf16.gmra.mxu0 %vm7482_vm2, %v7438_v13 }
 0x5ff   :  { %v8812_v49 = vpop.f32.mrf.mxu0 }
 0x600   :  { %v7626_v5 = vadd.f32 %v8812_v49, %v19864_v54 }
 0x601   :  { %v7617_v8 = vpop.f32.mrf.mxu0 }
 0x602   :  { %v7874_v30 = vadd.f32 %v7626_v5, %v276_v14  ;;  %v7618_v39 = vadd.f32 %v19864_v54, %v7617_v8  ;;  %v308_v8 = vadd.f32 %v19510_v62, %v19859_v43 }
 0x603   :  { %v8813_v48 = vpop.f32.mrf.mxu0 }
 0x604   :  { %v7938_v26 = vmax.f32 %v7874_v30, 0.0  ;;  %v7872_v47 = vadd.f32 %v7618_v39, %v268_v42  ;;  %v7629_v10 = vadd.f32 %v8813_v48, %v19864_v54  ;;  %v300_v39 = vadd.f32 %v19859_v43, %v19522_v58 }
 0x605   :  { %v7620_v53 = vpop.f32.mrf.mxu0 }
 0x606   :  { %8002 = vst.msk [vmem:[%s20321_s7 + $0x10] sm:$0xff] %vm3147_vm1, %v7938_v26  ;;  %v7936_v60 = vmax.f32 %v7872_v47, 0.0  ;;  %v7875_v33 = vadd.f32 %v7629_v10, %v279_v35  ;;  %v7621_v7 = vadd.f32 %v19864_v54, %v7620_v53  ;;  %v311_v47 = vadd.f32 %v19538_v61, %v19859_v43 }
 0x608   :  { %8000 = vst.msk [vmem:[%s20321_s7] sm:$0xff] %vm3147_vm1, %v7936_v60  ;;  %v7939_v56 = vmax.f32 %v7875_v33, 0.0  ;;  %v7873_v36 = vadd.f32 %v7621_v7, %v271_v1  ;;  %v303_v60 = vadd.f32 %v19859_v43, %v19563_v41 }
 0x60a   :  { %8003 = vst.msk [vmem:[%s20321_s7 + $0x18] sm:$0xff] %vm3147_vm1, %v7939_v56  ;;  %v7937_v16 = vmax.f32 %v7873_v36, 0.0 }
 0x60c   :  { %v8816_v32 = vpop.f32.mrf.mxu0  ;;  %8001 = vst.msk [vmem:[%s20321_s7 + $0x8] sm:$0xff] %vm3147_vm1, %v7937_v16  ;;  %v324_v16 = vadd.f32 %v19575_v15, %v19859_v43 }
 0x60d   :  { %v7642_v45 = vadd.f32 %v8816_v32, %v19864_v54 }
 0x60e   :  { %v7633_v27 = vpop.f32.mrf.mxu0 }
 0x60f   :  { %v7878_v12 = vadd.f32 %v7642_v45, %v292_v24  ;;  %v7634_v46 = vadd.f32 %v19864_v54, %v7633_v27  ;;  %v316_v45 = vadd.f32 %v19859_v43, %v19591_v11 }
 0x610   :  { %v8817_v18 = vpop.f32.mrf.mxu0 }
 0x611   :  { %v7942_v4 = vmax.f32 %v7878_v12, 0.0  ;;  %v7876_v17 = vadd.f32 %v7634_v46, %v284_v34  ;;  %v7645_v0 = vadd.f32 %v8817_v18, %v19864_v54  ;;  %v327_v46 = vadd.f32 %v19616_v40, %v19859_v43 }
 0x612   :  { %v7636_v31 = vpop.f32.mrf.mxu0 }
 0x613   :  { %8006 = vst.msk [vmem:[%s20321_s7 + $0x30] sm:$0xff] %vm3147_vm1, %v7942_v4  ;;  %v7940_v2 = vmax.f32 %v7876_v17, 0.0  ;;  %v7879_v13 = vadd.f32 %v7645_v0, %v295_v63  ;;  %v7637_v14 = vadd.f32 %v19864_v54, %v7636_v31  ;;  %v319_v17 = vadd.f32 %v19859_v43, %v19628_v21 }
 0x615   :  { %8004 = vst.msk [vmem:[%s20321_s7 + $0x20] sm:$0xff] %vm3147_vm1, %v7940_v2  ;;  %v7943_v25 = vmax.f32 %v7879_v13, 0.0  ;;  %v7877_v49 = vadd.f32 %v7637_v14, %v287_v50  ;;  %v340_v13 = vadd.f32 %v19644_v52, %v19859_v43 }
 0x617   :  { %8007 = vst.msk [vmem:[%s20321_s7 + $0x38] sm:$0xff] %vm3147_vm1, %v7943_v25  ;;  %v7941_v55 = vmax.f32 %v7877_v49, 0.0  ;;  %v332_v49 = vadd.f32 %v19859_v43, %v19669_v51 }
 0x619   :  { %8005 = vst.msk [vmem:[%s20321_s7 + $0x28] sm:$0xff] %vm3147_vm1, %v7941_v55 }
 0x61a   :  { %v8820_v5 = vpop.f32.mrf.mxu0 }
 0x61b   :  { %v7658_v42 = vadd.f32 %v8820_v5, %v19864_v54 }
 0x61c   :  { %v7649_v30 = vpop.f32.mrf.mxu0 }
 0x61d   :  { %v7882_v48 = vadd.f32 %v7658_v42, %v308_v8  ;;  %v7650_v35 = vadd.f32 %v19864_v54, %v7649_v30  ;;  %v343_v42 = vadd.f32 %v19681_v23, %v19859_v43 }
 0x61e   :  { %v8821_v26 = vpop.f32.mrf.mxu0 }
 0x61f   :  { %v7946_v10 = vmax.f32 %v7882_v48, 0.0  ;;  %v7880_v62 = vadd.f32 %v7650_v35, %v300_v39  ;;  %v7661_v53 = vadd.f32 %v8821_v26, %v19864_v54  ;;  %v335_v35 = vadd.f32 %v19859_v43, %v19697_v29 }
 0x620   :  { %v7652_v1 = vpop.f32.mrf.mxu0 }
 0x621   :  { %8010 = vst.msk [vmem:[%s20321_s7 + $0x50] sm:$0xff] %vm3147_vm1, %v7946_v10  ;;  %v7944_v58 = vmax.f32 %v7880_v62, 0.0  ;;  %v7883_v33 = vadd.f32 %v7661_v53, %v311_v47  ;;  %v7653_v7 = vadd.f32 %v19864_v54, %v7652_v1  ;;  %v356_v53 = vadd.f32 %v19722_v37, %v19859_v43 }
 0x623   :  { %8008 = vst.msk [vmem:[%s20321_s7 + $0x40] sm:$0xff] %vm3147_vm1, %v7944_v58  ;;  %v7947_v61 = vmax.f32 %v7883_v33, 0.0  ;;  %v7881_v56 = vadd.f32 %v7653_v7, %v303_v60  ;;  %v348_v58 = vadd.f32 %v19859_v43, %v19734_v57 }
 0x625   :  { %8011 = vst.msk [vmem:[%s20321_s7 + $0x58] sm:$0xff] %vm3147_vm1, %v7947_v61  ;;  %v7945_v41 = vmax.f32 %v7881_v56, 0.0  ;;  %v359_v56 = vadd.f32 %v19753_v44, %v19859_v43 }
 0x627   :  { %v8824_v36 = vpop.f32.mrf.mxu0  ;;  %8009 = vst.msk [vmem:[%s20321_s7 + $0x48] sm:$0xff] %vm3147_vm1, %v7945_v41 }
 0x628   :  { %v7674_v32 = vadd.f32 %v8824_v36, %v19864_v54 }
 0x629   :  { %v7665_v24 = vpop.f32.mrf.mxu0 }
 0x62a   :  { %v7886_v27 = vadd.f32 %v7674_v32, %v324_v16  ;;  %v7666_v34 = vadd.f32 %v19864_v54, %v7665_v24  ;;  %v351_v32 = vadd.f32 %v19859_v43, %v19775_v3 }
 0x62b   :  { %v8825_v12 = vpop.f32.mrf.mxu0 }
 0x62c   :  { %v7950_v18 = vmax.f32 %v7886_v27, 0.0  ;;  %v7884_v15 = vadd.f32 %v7666_v34, %v316_v45  ;;  %v7677_v63 = vadd.f32 %v8825_v12, %v19864_v54  ;;  %v372_v12 = vadd.f32 %v19785_v6, %v19859_v43 }
 0x62d   :  { %v7668_v4 = vpop.f32.mrf.mxu0 }
 0x62e   :  { %8014 = vst.msk [vmem:[%s20321_s7 + $0x70] sm:$0xff] %vm3147_vm1, %v7950_v18  ;;  %v7948_v11 = vmax.f32 %v7884_v15, 0.0  ;;  %v7887_v0 = vadd.f32 %v7677_v63, %v327_v46  ;;  %v7669_v31 = vadd.f32 %v19864_v54, %v7668_v4  ;;  %v364_v15 = vadd.f32 %v19859_v43, %v19799_v59 }
 0x630   :  { %8012 = vst.msk [vmem:[%s20321_s7 + $0x60] sm:$0xff] %vm3147_vm1, %v7948_v11  ;;  %v7951_v40 = vmax.f32 %v7887_v0, 0.0  ;;  %v7885_v50 = vadd.f32 %v7669_v31, %v319_v17  ;;  %v375_v11 = vadd.f32 %v19814_v22, %v19859_v43 }
 0x632   :  { %8015 = vst.msk [vmem:[%s20321_s7 + $0x78] sm:$0xff] %vm3147_vm1, %v7951_v40  ;;  %v7949_v21 = vmax.f32 %v7885_v50, 0.0  ;;  %v367_v50 = vadd.f32 %v19859_v43, %v19828_v9 }
 0x634   :  { %8013 = vst.msk [vmem:[%s20321_s7 + $0x68] sm:$0xff] %vm3147_vm1, %v7949_v21 }
 0x635   :  { %v8828_v2 = vpop.f32.mrf.mxu0 }
 0x636   :  { %v7690_v14 = vadd.f32 %v8828_v2, %v19864_v54 }
 0x637   :  { %v7681_v25 = vpop.f32.mrf.mxu0 }
 0x638   :  { %v7890_v55 = vadd.f32 %v7690_v14, %v340_v13  ;;  %v7682_v5 = vadd.f32 %v19864_v54, %v7681_v25  ;;  %v388_v25 = vadd.f32 %v19839_v19, %v19859_v43 }
 0x639   :  { %v8829_v8 = vpop.f32.mrf.mxu0 }
 0x63a   :  { %v7954_v30 = vmax.f32 %v7890_v55, 0.0  ;;  %v7888_v52 = vadd.f32 %v7682_v5, %v332_v49  ;;  %v7693_v39 = vadd.f32 %v8829_v8, %v19864_v54  ;;  %v380_v5 = vadd.f32 %v19859_v43, %v19849_v28 }
 0x63b   :  { %v7684_v48 = vpop.f32.mrf.mxu0 }
 0x63c   :  { %8018 = vst.msk [vmem:[%s20321_s7 + $0x90] sm:$0xff] %vm3147_vm1, %v7954_v30  ;;  %v7952_v51 = vmax.f32 %v7888_v52, 0.0  ;;  %v7891_v26 = vadd.f32 %v7693_v39, %v343_v42  ;;  %v7685_v47 = vadd.f32 %v19864_v54, %v7684_v48  ;;  %v391_v52 = vadd.f32 %v19852_v20, %v19859_v43 }
 0x63e   :  { %8016 = vst.msk [vmem:[%s20321_s7 + $0x80] sm:$0xff] %vm3147_vm1, %v7952_v51  ;;  %v7955_v23 = vmax.f32 %v7891_v26, 0.0  ;;  %v7889_v10 = vadd.f32 %v7685_v47, %v335_v35  ;;  %v383_v51 = vadd.f32 %v19859_v43, %v19854_v38 }
 0x640   :  { %8019 = vst.msk [vmem:[%s20321_s7 + $0x98] sm:$0xff] %vm3147_vm1, %v7955_v23  ;;  %v7953_v29 = vmax.f32 %v7889_v10, 0.0 }
 0x641   :  { %v8832_v62 = vpop.f32.mrf.mxu0 }
 0x642   :  { %8017 = vst.msk [vmem:[%s20321_s7 + $0x88] sm:$0xff] %vm3147_vm1, %v7953_v29  ;;  %v7706_v1 = vadd.f32 %v8832_v62, %v19864_v54  ;;  %v21994_v29 = vld [vmem:[#allocation48_spill] sm:$0xff] }
 0x643   :  { %v7697_v60 = vpop.f32.mrf.mxu0  ;;  %v404_v62 = vadd.f32 %v21994_v29, %v19859_v43 }
 0x644   :  { %v7894_v33 = vadd.f32 %v7706_v1, %v356_v53  ;;  %v7698_v7 = vadd.f32 %v19864_v54, %v7697_v60  ;;  %v21995_v60 = vld [vmem:[#allocation49_spill] sm:$0xff] }
 0x645   :  { %v8833_v61 = vpop.f32.mrf.mxu0 }
 0x646   :  { %v7958_v41 = vmax.f32 %v7894_v33, 0.0  ;;  %v7892_v37 = vadd.f32 %v7698_v7, %v348_v58  ;;  %v7709_v36 = vadd.f32 %v8833_v61, %v19864_v54  ;;  %v396_v58 = vadd.f32 %v19859_v43, %v21995_v60 }
 0x647   :  { %v7700_v16 = vpop.f32.mrf.mxu0 }
 0x648   :  { %8022 = vst.msk [vmem:[%s20321_s7 + $0xb0] sm:$0xff] %vm3147_vm1, %v7958_v41  ;;  %v7956_v57 = vmax.f32 %v7892_v37, 0.0  ;;  %v7895_v24 = vadd.f32 %v7709_v36, %v359_v56  ;;  %v7701_v45 = vadd.f32 %v19864_v54, %v7700_v16  ;;  %v21996_v56 = vld [vmem:[#allocation51_spill] sm:$0xff] }
 0x649   :  { %v407_v41 = vadd.f32 %v21996_v56, %v19859_v43 }
 0x64a   :  { %8020 = vst.msk [vmem:[%s20321_s7 + $0xa0] sm:$0xff] %vm3147_vm1, %v7956_v57  ;;  %v7959_v44 = vmax.f32 %v7895_v24, 0.0  ;;  %v7893_v27 = vadd.f32 %v7701_v45, %v351_v32  ;;  %v21997_v57 = vld [vmem:[#allocation66_spill] sm:$0xff] }
 0x64b   :  { %v399_v24 = vadd.f32 %v19859_v43, %v21997_v57 }
 0x64c   :  { %8023 = vst.msk [vmem:[%s20321_s7 + $0xb8] sm:$0xff] %vm3147_vm1, %v7959_v44  ;;  %v7957_v3 = vmax.f32 %v7893_v27, 0.0 }
 0x64d   :  { %v8836_v34 = vpop.f32.mrf.mxu0 }
 0x64e   :  { %8021 = vst.msk [vmem:[%s20321_s7 + $0xa8] sm:$0xff] %vm3147_vm1, %v7957_v3  ;;  %v7722_v46 = vadd.f32 %v8836_v34, %v19864_v54 }
 0x64f   :  { %v7713_v18 = vpop.f32.mrf.mxu0 }
 0x650   :  { %v7898_v63 = vadd.f32 %v7722_v46, %v372_v12  ;;  %v7714_v4 = vadd.f32 %v19864_v54, %v7713_v18  ;;  %v21998_v18 = vld [vmem:[#allocation67_spill] sm:$0xff] }
 0x651   :  { %v8837_v17 = vpop.f32.mrf.mxu0 }
 0x652   :  { %v7962_v0 = vmax.f32 %v7898_v63, 0.0  ;;  %v7896_v6 = vadd.f32 %v7714_v4, %v364_v15  ;;  %v7725_v31 = vadd.f32 %v8837_v17, %v19864_v54  ;;  %v420_v15 = vadd.f32 %v21998_v18, %v19859_v43  ;;  %v21999_v17 = vld [vmem:[#allocation68_spill] sm:$0xff] }
 0x653   :  { %v7716_v40 = vpop.f32.mrf.mxu0 }
 0x654   :  { %8026 = vst.msk [vmem:[%s20321_s7 + $0xd0] sm:$0xff] %vm3147_vm1, %v7962_v0  ;;  %v7960_v59 = vmax.f32 %v7896_v6, 0.0  ;;  %v7899_v21 = vadd.f32 %v7725_v31, %v375_v11  ;;  %v7717_v2 = vadd.f32 %v19864_v54, %v7716_v40  ;;  %v412_v11 = vadd.f32 %v19859_v43, %v21999_v17  ;;  %v22000_v40 = vld [vmem:[#allocation69_spill] sm:$0xff] }
 0x656   :  { %8024 = vst.msk [vmem:[%s20321_s7 + $0xc0] sm:$0xff] %vm3147_vm1, %v7960_v59  ;;  %v7963_v22 = vmax.f32 %v7899_v21, 0.0  ;;  %v7897_v13 = vadd.f32 %v7717_v2, %v367_v50  ;;  %v423_v50 = vadd.f32 %v22000_v40, %v19859_v43 }
 0x658   :  { %8027 = vst.msk [vmem:[%s20321_s7 + $0xd8] sm:$0xff] %vm3147_vm1, %v7963_v22  ;;  %v7961_v9 = vmax.f32 %v7897_v13, 0.0  ;;  %v22001_v13 = vld [vmem:[#allocation70_spill] sm:$0xff] }
 0x659   :  { %v8840_v14 = vpop.f32.mrf.mxu0 }
 0x65a   :  { %8025 = vst.msk [vmem:[%s20321_s7 + $0xc8] sm:$0xff] %vm3147_vm1, %v7961_v9  ;;  %v7738_v49 = vadd.f32 %v8840_v14, %v19864_v54  ;;  %v415_v9 = vadd.f32 %v19859_v43, %v22001_v13 }
 0x65b   :  { %v7729_v55 = vpop.f32.mrf.mxu0 }
 0x65c   :  { %v7902_v8 = vadd.f32 %v7738_v49, %v388_v25  ;;  %v7730_v42 = vadd.f32 %v19864_v54, %v7729_v55 }
 0x65d   :  { %v8841_v30 = vpop.f32.mrf.mxu0 }
 0x65e   :  { %v7966_v39 = vmax.f32 %v7902_v8, 0.0  ;;  %v7900_v19 = vadd.f32 %v7730_v42, %v380_v5  ;;  %v7741_v48 = vadd.f32 %v8841_v30, %v19864_v54  ;;  %v22002_v30 = vld [vmem:[#allocation71_spill] sm:$0xff] }
 0x65f   :  { %v7732_v35 = vpop.f32.mrf.mxu0 }
 0x660   :  { %8030 = vst.msk [vmem:[%s20321_s7 + $0xf0] sm:$0xff] %vm3147_vm1, %v7966_v39  ;;  %v7964_v28 = vmax.f32 %v7900_v19, 0.0  ;;  %v7903_v26 = vadd.f32 %v7741_v48, %v391_v52  ;;  %v7733_v47 = vadd.f32 %v19864_v54, %v7732_v35  ;;  %v436_v52 = vadd.f32 %v22002_v30, %v19859_v43  ;;  %v22003_v48 = vld [vmem:[#allocation72_spill] sm:$0xff] }
 0x661   :  { %v428_v35 = vadd.f32 %v19859_v43, %v22003_v48 }
 0x662   :  { %8028 = vst.msk [vmem:[%s20321_s7 + $0xe0] sm:$0xff] %vm3147_vm1, %v7964_v28  ;;  %v7967_v20 = vmax.f32 %v7903_v26, 0.0  ;;  %v7901_v23 = vadd.f32 %v7733_v47, %v383_v51  ;;  %v22004_v47 = vld [vmem:[#allocation73_spill] sm:$0xff] }
 0x664   :  { %8031 = vst.msk [vmem:[%s20321_s7 + $0xf8] sm:$0xff] %vm3147_vm1, %v7967_v20  ;;  %v7965_v38 = vmax.f32 %v7901_v23, 0.0  ;;  %v439_v20 = vadd.f32 %v22004_v47, %v19859_v43 }
 0x665   :  { %v8844_v10 = vpop.f32.mrf.mxu0 }
 0x666   :  { %8029 = vst.msk [vmem:[%s20321_s7 + $0xe8] sm:$0xff] %vm3147_vm1, %v7965_v38  ;;  %v7754_v53 = vadd.f32 %v8844_v10, %v19864_v54 }
 0x667   :  { %v7745_v1 = vpop.f32.mrf.mxu0 }
 0x668   :  { %v7906_v33 = vadd.f32 %v7754_v53, %v404_v62  ;;  %v7746_v7 = vadd.f32 %v19864_v54, %v7745_v1  ;;  %v22005_v62 = vld [vmem:[#allocation74_spill] sm:$0xff] }
 0x669   :  { %v8845_v61 = vpop.f32.mrf.mxu0  ;;  %v431_v53 = vadd.f32 %v19859_v43, %v22005_v62 }
 0x66a   :  { %v7970_v37 = vmax.f32 %v7906_v33, 0.0  ;;  %v7904_v36 = vadd.f32 %v7746_v7, %v396_v58  ;;  %v7757_v16 = vadd.f32 %v8845_v61, %v19864_v54 }
 0x66b   :  { %v7748_v32 = vpop.f32.mrf.mxu0 }
 0x66c   :  { %8034 = vst.msk [vmem:[%s20321_s7 + $0x110] sm:$0xff] %vm3147_vm1, %v7970_v37  ;;  %v7968_v45 = vmax.f32 %v7904_v36, 0.0  ;;  %v7907_v44 = vadd.f32 %v7757_v16, %v407_v41  ;;  %v7749_v27 = vadd.f32 %v19864_v54, %v7748_v32  ;;  %v22006_v41 = vld [vmem:[#allocation75_spill] sm:$0xff]  ;;  %v22007_v32 = vld [vmem:[#allocation76_spill] sm:$0xff] }
 0x66d   :  { %v452_v37 = vadd.f32 %v22006_v41, %v19859_v43  ;;  %v444_v57 = vadd.f32 %v19859_v43, %v22007_v32 }
 0x66e   :  { %8032 = vst.msk [vmem:[%s20321_s7 + $0x100] sm:$0xff] %vm3147_vm1, %v7968_v45  ;;  %v7971_v3 = vmax.f32 %v7907_v44, 0.0  ;;  %v7905_v34 = vadd.f32 %v7749_v27, %v399_v24  ;;  %v22008_v27 = vld [vmem:[#allocation77_spill] sm:$0xff] }
 0x670   :  { %8035 = vst.msk [vmem:[%s20321_s7 + $0x118] sm:$0xff] %vm3147_vm1, %v7971_v3  ;;  %v7969_v12 = vmax.f32 %v7905_v34, 0.0  ;;  %v455_v3 = vadd.f32 %v22008_v27, %v19859_v43 }
 0x671   :  { %v8848_v46 = vpop.f32.mrf.mxu0 }
 0x672   :  { %8033 = vst.msk [vmem:[%s20321_s7 + $0x108] sm:$0xff] %vm3147_vm1, %v7969_v12  ;;  %v7770_v63 = vadd.f32 %v8848_v46, %v19864_v54 }
 0x673   :  { %v7761_v4 = vpop.f32.mrf.mxu0 }
 0x674   :  { %v7910_v0 = vadd.f32 %v7770_v63, %v420_v15  ;;  %v7762_v6 = vadd.f32 %v19864_v54, %v7761_v4  ;;  %v22009_v15 = vld [vmem:[#allocation78_spill] sm:$0xff] }
 0x675   :  { %v8849_v31 = vpop.f32.mrf.mxu0  ;;  %v447_v63 = vadd.f32 %v19859_v43, %v22009_v15 }
 0x676   :  { %v7974_v59 = vmax.f32 %v7910_v0, 0.0  ;;  %v7908_v21 = vadd.f32 %v7762_v6, %v412_v11  ;;  %v7773_v2 = vadd.f32 %v8849_v31, %v19864_v54 }
 0x677   :  { %v7764_v22 = vpop.f32.mrf.mxu0 }
 0x678   :  { %8038 = vst.msk [vmem:[%s20321_s7 + $0x130] sm:$0xff] %vm3147_vm1, %v7974_v59  ;;  %v7972_v14 = vmax.f32 %v7908_v21, 0.0  ;;  %v7911_v25 = vadd.f32 %v7773_v2, %v423_v50  ;;  %v7765_v49 = vadd.f32 %v19864_v54, %v7764_v22  ;;  %v22010_v50 = vld [vmem:[#allocation79_spill] sm:$0xff]  ;;  %v22011_v22 = vld [vmem:[#allocation80_spill] sm:$0xff] }
 0x679   :  { %v468_v59 = vadd.f32 %v22010_v50, %v19859_v43  ;;  %v460_v13 = vadd.f32 %v19859_v43, %v22011_v22 }
 0x67a   :  { %8036 = vst.msk [vmem:[%s20321_s7 + $0x120] sm:$0xff] %vm3147_vm1, %v7972_v14  ;;  %v7975_v55 = vmax.f32 %v7911_v25, 0.0  ;;  %v7909_v5 = vadd.f32 %v7765_v49, %v415_v9  ;;  %v22012_v49 = vld [vmem:[#allocation81_spill] sm:$0xff] }
 0x67c   :  { %8039 = vst.msk [vmem:[%s20321_s7 + $0x138] sm:$0xff] %vm3147_vm1, %v7975_v55  ;;  %v7973_v8 = vmax.f32 %v7909_v5, 0.0  ;;  %v471_v55 = vadd.f32 %v22012_v49, %v19859_v43 }
 0x67d   :  { %v8852_v42 = vpop.f32.mrf.mxu0 }
 0x67e   :  { %8037 = vst.msk [vmem:[%s20321_s7 + $0x128] sm:$0xff] %vm3147_vm1, %v7973_v8  ;;  %v7786_v39 = vadd.f32 %v8852_v42, %v19864_v54 }
 0x67f   :  { %v7777_v19 = vpop.f32.mrf.mxu0 }
 0x680   :  { %v7914_v51 = vadd.f32 %v7786_v39, %v436_v52  ;;  %v7778_v28 = vadd.f32 %v19864_v54, %v7777_v19  ;;  %v22013_v52 = vld [vmem:[#allocation88_spill] sm:$0xff] }
 0x681   :  { %v8853_v26 = vpop.f32.mrf.mxu0  ;;  %v463_v39 = vadd.f32 %v19859_v43, %v22013_v52 }
 0x682   :  { %v7978_v23 = vmax.f32 %v7914_v51, 0.0  ;;  %v7912_v38 = vadd.f32 %v7778_v28, %v428_v35  ;;  %v7789_v10 = vadd.f32 %v8853_v26, %v19864_v54 }
 0x683   :  { %v7780_v29 = vpop.f32.mrf.mxu0 }
 0x684   :  { %8042 = vst.msk [vmem:[%s20321_s7 + $0x150] sm:$0xff] %vm3147_vm1, %v7978_v23  ;;  %v7976_v1 = vmax.f32 %v7912_v38, 0.0  ;;  %v7915_v60 = vadd.f32 %v7789_v10, %v439_v20  ;;  %v7781_v58 = vadd.f32 %v19864_v54, %v7780_v29  ;;  %v22014_v20 = vld [vmem:[#allocation108_spill] sm:$0xff]  ;;  %v22015_v29 = vld [vmem:[#allocation109_spill] sm:$0xff] }
 0x685   :  { %v484_v23 = vadd.f32 %v22014_v20, %v19859_v43  ;;  %v476_v62 = vadd.f32 %v19859_v43, %v22015_v29 }
 0x686   :  { %8040 = vst.msk [vmem:[%s20321_s7 + $0x140] sm:$0xff] %vm3147_vm1, %v7976_v1  ;;  %v7979_v33 = vmax.f32 %v7915_v60, 0.0  ;;  %v7913_v7 = vadd.f32 %v7781_v58, %v431_v53  ;;  %v22016_v58 = vld [vmem:[#allocation110_spill] sm:$0xff] }
 0x688   :  { %8043 = vst.msk [vmem:[%s20321_s7 + $0x158] sm:$0xff] %vm3147_vm1, %v7979_v33  ;;  %v7977_v61 = vmax.f32 %v7913_v7, 0.0  ;;  %v487_v33 = vadd.f32 %v22016_v58, %v19859_v43 }
 0x689   :  { %v8856_v56 = vpop.f32.mrf.mxu0 }
 0x68a   :  { %8041 = vst.msk [vmem:[%s20321_s7 + $0x148] sm:$0xff] %vm3147_vm1, %v7977_v61  ;;  %v7802_v36 = vadd.f32 %v8856_v56, %v19864_v54 }
 0x68b   :  { %v7793_v16 = vpop.f32.mrf.mxu0 }
 0x68c   :  { %v7918_v24 = vadd.f32 %v7802_v36, %v452_v37  ;;  %v7794_v45 = vadd.f32 %v19864_v54, %v7793_v16  ;;  %v22017_v37 = vld [vmem:[#allocation111_spill] sm:$0xff] }
 0x68d   :  { %v8857_v44 = vpop.f32.mrf.mxu0  ;;  %v479_v36 = vadd.f32 %v19859_v43, %v22017_v37 }
 0x68e   :  { %v7982_v34 = vmax.f32 %v7918_v24, 0.0  ;;  %v7916_v12 = vadd.f32 %v7794_v45, %v444_v57  ;;  %v7805_v46 = vadd.f32 %v8857_v44, %v19864_v54 }
 0x68f   :  { %v7796_v18 = vpop.f32.mrf.mxu0 }
 0x690   :  { %8046 = vst.msk [vmem:[%s20321_s7 + $0x170] sm:$0xff] %vm3147_vm1, %v7982_v34  ;;  %v7980_v4 = vmax.f32 %v7916_v12, 0.0  ;;  %v7919_v17 = vadd.f32 %v7805_v46, %v455_v3  ;;  %v7797_v11 = vadd.f32 %v19864_v54, %v7796_v18  ;;  %v22018_v3 = vld [vmem:[#allocation118_spill] sm:$0xff] }
 0x691   :  { %v500_v34 = vadd.f32 %v22018_v3, %v19859_v43  ;;  %v22019_v18 = vld [vmem:[#allocation50_spill] sm:$0xff] }
 0x692   :  { %8044 = vst.msk [vmem:[%s20321_s7 + $0x160] sm:$0xff] %vm3147_vm1, %v7980_v4  ;;  %v7983_v0 = vmax.f32 %v7919_v17, 0.0  ;;  %v7917_v6 = vadd.f32 %v7797_v11, %v447_v63  ;;  %v492_v15 = vadd.f32 %v19859_v43, %v22019_v18  ;;  %v22020_v11 = vld [vmem:[#allocation52_spill] sm:$0xff] }
 0x694   :  { %8047 = vst.msk [vmem:[%s20321_s7 + $0x178] sm:$0xff] %vm3147_vm1, %v7983_v0  ;;  %v7981_v31 = vmax.f32 %v7917_v6, 0.0  ;;  %v503_v0 = vadd.f32 %v22020_v11, %v19859_v43 }
 0x695   :  { %v8860_v40 = vpop.f32.mrf.mxu0 }
 0x696   :  { %8045 = vst.msk [vmem:[%s20321_s7 + $0x168] sm:$0xff] %vm3147_vm1, %v7981_v31  ;;  %v7818_v21 = vadd.f32 %v8860_v40, %v19864_v54 }
 0x697   :  { %v7809_v2 = vpop.f32.mrf.mxu0 }
 0x698   :  { %v7922_v9 = vadd.f32 %v7818_v21, %v468_v59  ;;  %v7810_v14 = vadd.f32 %v19864_v54, %v7809_v2  ;;  %v22021_v59 = vld [vmem:[#allocation53_spill] sm:$0xff] }
 0x699   :  { %v8861_v25 = vpop.f32.mrf.mxu0  ;;  %v495_v21 = vadd.f32 %v19859_v43, %v22021_v59 }
 0x69a   :  { %v7986_v5 = vmax.f32 %v7922_v9, 0.0  ;;  %v7920_v8 = vadd.f32 %v7810_v14, %v460_v13  ;;  %v7821_v42 = vadd.f32 %v8861_v25, %v19864_v54 }
 0x69b   :  { %v7812_v30 = vpop.f32.mrf.mxu0 }
 0x69c   :  { %8050 = vst.msk [vmem:[%s20321_s7 + $0x190] sm:$0xff] %vm3147_vm1, %v7986_v5  ;;  %v7984_v19 = vmax.f32 %v7920_v8, 0.0  ;;  %v7923_v48 = vadd.f32 %v7821_v42, %v471_v55  ;;  %v7813_v35 = vadd.f32 %v19864_v54, %v7812_v30  ;;  %v22022_v55 = vld [vmem:[#allocation56_spill] sm:$0xff]  ;;  %v22023_v30 = vld [vmem:[#allocation57_spill] sm:$0xff] }
 0x69d   :  { %v516_v5 = vadd.f32 %v22022_v55, %v19859_v43  ;;  %v508_v52 = vadd.f32 %v19859_v43, %v22023_v30 }
 0x69e   :  { %8048 = vst.msk [vmem:[%s20321_s7 + $0x180] sm:$0xff] %vm3147_vm1, %v7984_v19  ;;  %v7987_v51 = vmax.f32 %v7923_v48, 0.0  ;;  %v7921_v28 = vadd.f32 %v7813_v35, %v463_v39  ;;  %v22024_v35 = vld [vmem:[#allocation128_spill] sm:$0xff] }
 0x6a0   :  { %8051 = vst.msk [vmem:[%s20321_s7 + $0x198] sm:$0xff] %vm3147_vm1, %v7987_v51  ;;  %v7985_v26 = vmax.f32 %v7921_v28, 0.0  ;;  %v519_v51 = vadd.f32 %v22024_v35, %v19859_v43 }
 0x6a2   :  { %v8864_v47 = vpop.f32.mrf.mxu0  ;;  %8049 = vst.msk [vmem:[%s20321_s7 + $0x188] sm:$0xff] %vm3147_vm1, %v7985_v26 }
 0x6a3   :  { %v7834_v38 = vadd.f32 %v8864_v47, %v19864_v54 }
 0x6a4   :  { %v7825_v10 = vpop.f32.mrf.mxu0 }
 0x6a5   :  { %v7926_v53 = vadd.f32 %v7834_v38, %v484_v23  ;;  %v7826_v1 = vadd.f32 %v19864_v54, %v7825_v10  ;;  %v22025_v23 = vld [vmem:[#allocation59_spill] sm:$0xff] }
 0x6a6   :  { %v8865_v60 = vpop.f32.mrf.mxu0  ;;  %v511_v38 = vadd.f32 %v19859_v43, %v22025_v23 }
 0x6a7   :  { %v7990_v7 = vmax.f32 %v7926_v53, 0.0  ;;  %v7924_v61 = vadd.f32 %v7826_v1, %v476_v62  ;;  %v7837_v56 = vadd.f32 %v8865_v60, %v19864_v54 }
 0x6a8   :  { %v7828_v41 = vpop.f32.mrf.mxu0 }
 0x6a9   :  { %8054 = vst.msk [vmem:[%s20321_s7 + $0x1b0] sm:$0xff] %vm3147_vm1, %v7990_v7  ;;  %v7988_v16 = vmax.f32 %v7924_v61, 0.0  ;;  %v7927_v32 = vadd.f32 %v7837_v56, %v487_v33  ;;  %v7829_v57 = vadd.f32 %v19864_v54, %v7828_v41 }
 0x6ab   :  { %8052 = vst.msk [vmem:[%s20321_s7 + $0x1a0] sm:$0xff] %vm3147_vm1, %v7988_v16  ;;  %v7991_v24 = vmax.f32 %v7927_v32, 0.0  ;;  %v7925_v45 = vadd.f32 %v7829_v57, %v479_v36 }
 0x6ad   :  { %8055 = vst.msk [vmem:[%s20321_s7 + $0x1b8] sm:$0xff] %vm3147_vm1, %v7991_v24  ;;  %v7989_v44 = vmax.f32 %v7925_v45, 0.0 }
 0x6af   :  { %v8868_v27 = vpop.f32.mrf.mxu0  ;;  %8053 = vst.msk [vmem:[%s20321_s7 + $0x1a8] sm:$0xff] %vm3147_vm1, %v7989_v44 }
 0x6b0   :  { %v7850_v12 = vadd.f32 %v8868_v27, %v19864_v54 }
 0x6b1   :  { %v7841_v46 = vpop.f32.mrf.mxu0 }
 0x6b2   :  { %v7930_v63 = vadd.f32 %v7850_v12, %v500_v34  ;;  %v7842_v4 = vadd.f32 %v19864_v54, %v7841_v46 }
 0x6b3   :  { %v8869_v17 = vpop.f32.mrf.mxu0 }
 0x6b4   :  { %v7994_v6 = vmax.f32 %v7930_v63, 0.0  ;;  %v7928_v31 = vadd.f32 %v7842_v4, %v492_v15  ;;  %v7853_v40 = vadd.f32 %v8869_v17, %v19864_v54 }
 0x6b5   :  { %v7844_v50 = vpop.f32.mrf.mxu0 }
 0x6b6   :  { %8058 = vst.msk [vmem:[%s20321_s7 + $0x1d0] sm:$0xff] %vm3147_vm1, %v7994_v6  ;;  %v7992_v2 = vmax.f32 %v7928_v31, 0.0  ;;  %v7931_v22 = vadd.f32 %v7853_v40, %v503_v0  ;;  %v7845_v13 = vadd.f32 %v19864_v54, %v7844_v50 }
 0x6b8   :  { %8056 = vst.msk [vmem:[%s20321_s7 + $0x1c0] sm:$0xff] %vm3147_vm1, %v7992_v2  ;;  %v7995_v9 = vmax.f32 %v7931_v22, 0.0  ;;  %v7929_v14 = vadd.f32 %v7845_v13, %v495_v21 }
 0x6ba   :  { %8059 = vst.msk [vmem:[%s20321_s7 + $0x1d8] sm:$0xff] %vm3147_vm1, %v7995_v9  ;;  %v7993_v25 = vmax.f32 %v7929_v14, 0.0 }
 0x6bc   :  { %8057 = vst.msk [vmem:[%s20321_s7 + $0x1c8] sm:$0xff] %vm3147_vm1, %v7993_v25 }
 0x6be   :  { %v8872_v49 = vpop.f32.mrf.mxu0 }
 0x6bf   :  { %v7866_v8 = vadd.f32 %v8872_v49, %v19864_v54 }
 0x6c0   :  { %v7857_v42 = vpop.f32.mrf.mxu0 }
 0x6c1   :  { %v7934_v39 = vadd.f32 %v7866_v8, %v516_v5  ;;  %v7858_v19 = vadd.f32 %v19864_v54, %v7857_v42 }
 0x6c2   :  { %v8873_v48 = vpop.f32.mrf.mxu0 }
 0x6c3   :  { %v7998_v28 = vmax.f32 %v7934_v39, 0.0  ;;  %v7932_v26 = vadd.f32 %v7858_v19, %v508_v52  ;;  %v7869_v47 = vadd.f32 %v8873_v48, %v19864_v54 }
 0x6c4   :  { %v7860_v20 = vpop.f32.mrf.mxu0 }
 0x6c5   :  { %8062 = vst.msk [vmem:[%s20321_s7 + $0x1f0] sm:$0xff] %vm3147_vm1, %v7998_v28  ;;  %v7996_v10 = vmax.f32 %v7932_v26, 0.0  ;;  %v7935_v29 = vadd.f32 %v7869_v47, %v519_v51  ;;  %v7861_v62 = vadd.f32 %v19864_v54, %v7860_v20 }
 0x6c7   :  { %8060 = vst.msk [vmem:[%s20321_s7 + $0x1e0] sm:$0xff] %vm3147_vm1, %v7996_v10  ;;  %v7999_v53 = vmax.f32 %v7935_v29, 0.0  ;;  %v7933_v1 = vadd.f32 %v7861_v62, %v511_v38 }
 0x6c9   :  { %8063 = vst.msk [vmem:[%s20321_s7 + $0x1f8] sm:$0xff] %vm3147_vm1, %v7999_v53  ;;  %v7997_v43 = vmax.f32 %v7933_v1, 0.0 }
 0x6cb   :  { %8061 = vst.msk [vmem:[%s20321_s7 + $0x1e8] sm:$0xff] %vm3147_vm1, %v7997_v43 }

</bundles_post_ra>
